<compile_context>
chip_gen: v7x
topology: tpu7x:2x2x1
jax: 0.10.0
libtpu: 0.0.40
codegen_flags: <defaults>
</compile_context>

<pallas_src>
import functools

import jax
import jax.numpy as jnp
import numpy as np
from jax.experimental import pallas as pl
from jax.experimental.pallas import tpu as pltpu

EPS = 1e-5

# MXU operand dtype.  jnp.bfloat16 is the recommended setting on v6e / v7x
# (bf16-native MXU, halves the resident constant DMA); jnp.float32 keeps the
# parity check tight and is the safe choice on v5e.
MATMUL_DTYPE = jnp.float32


# ---------------------------------------------------------------------------
# The single fused kernel (one grid step == one batch element)
# ---------------------------------------------------------------------------
def _generator_kernel(
    x_ref,
    w_stem_ref, g_stem_ref, b_stem_ref,
    s_d0_ref, w_d0_ref, g_d0_ref, b_d0_ref,
    s_d1_ref, w_d1_ref, g_d1_ref, b_d1_ref,
    s_res_ref, w13_res_ref, w2_res_ref, g_res_ref, b_res_ref,
    s_u0_ref, w_u0_ref, g_u0_ref, b_u0_ref,
    s_u1_ref, w_u1_ref, g_u1_ref, b_u1_ref,
    b_head_ref,
    o_ref,
):
    cdt = w_stem_ref.dtype

    def instance_norm(h, gamma, beta):
        # Per-instance, per-channel stats (biased variance), f32 VPU math.
        mean = jnp.mean(h, axis=-1, keepdims=True)
        cen = h - mean
        var = jnp.mean(cen * cen, axis=-1, keepdims=True)
        return cen * jax.lax.rsqrt(var + EPS) * gamma + beta

    def relu(h):
        return jnp.maximum(h, 0.0)

    def gathered_conv(x, s_ref, w):
        # x: (Cin, M_in) f32.  s_ref: (T, M_in, M_out) 0/1 selection matrices
        # (exact spatial gathers done on the MXU).  w: (Cout, T*Cin) with the
        # contraction index ordered t-major / ci-minor to match the stacking.
        xm = x.astype(cdt)
        cols = [jnp.dot(xm, s_ref[t], preferred_element_type=jnp.float32)
                for t in range(s_ref.shape[0])]
        stacked = jnp.concatenate(cols, axis=0).astype(cdt)   # (T*Cin, M_out)
        return jnp.dot(w, stacked, preferred_element_type=jnp.float32)

    # --- ReflectionPad2d(3) + Conv2d(k=7) + IN + ReLU ----------------------
    # Reflect-padded im2col (Cin*49, HW) is built on the host; the conv is a
    # single K = Cin*49 matmul.
    h = jnp.dot(w_stem_ref[...], x_ref[0], preferred_element_type=jnp.float32)
    h = relu(instance_norm(h, g_stem_ref[...], b_stem_ref[...]))

    # --- 2 x [Conv2d(k=4, s=2, p=1) + IN + ReLU] ---------------------------
    h = relu(instance_norm(gathered_conv(h, s_d0_ref, w_d0_ref[...]),
                           g_d0_ref[...], b_d0_ref[...]))
    h = relu(instance_norm(gathered_conv(h, s_d1_ref, w_d1_ref[...]),
                           g_d1_ref[...], b_d1_ref[...]))

    # --- Residual blocks ---------------------------------------------------
    for bi in range(w2_res_ref.shape[0]):
        residual = h
        t = jnp.dot(w13_res_ref[bi, 0], h.astype(cdt),
                    preferred_element_type=jnp.float32)            # conv1 1x1
        t = relu(instance_norm(t, g_res_ref[bi, 0], b_res_ref[bi, 0]))
        t = gathered_conv(t, s_res_ref, w2_res_ref[bi])            # conv2 3x3
        t = relu(instance_norm(t, g_res_ref[bi, 1], b_res_ref[bi, 1]))
        t = jnp.dot(w13_res_ref[bi, 1], t.astype(cdt),
                    preferred_element_type=jnp.float32)            # conv3 1x1
        t = instance_norm(t, g_res_ref[bi, 2], b_res_ref[bi, 2])
        h = relu(t + residual)

    # --- 2 x [ConvTranspose2d(k=4, s=2, p=1) + IN + ReLU] ------------------
    # Zero-dilated-input formulation: the selection matrices place each input
    # pixel at its dilated position, so each layer is one K-concat matmul.
    h = relu(instance_norm(gathered_conv(h, s_u0_ref, w_u0_ref[...]),
                           g_u0_ref[...], b_u0_ref[...]))
    h = relu(instance_norm(gathered_conv(h, s_u1_ref, w_u1_ref[...]),
                           g_u1_ref[...], b_u1_ref[...]))

    # --- ReflectionPad2d(3) + Conv2d(k=7, Cout=1) + Tanh -------------------
    # Head weights + reflection gather folded into per-input-channel (HW, HW)
    # matrices: out[q] = sum_c h[c, :] @ B[c][:, q].
    hm = h.astype(cdt)
    out = None
    for c in range(b_head_ref.shape[0]):
        full = jnp.dot(hm, b_head_ref[c], preferred_element_type=jnp.float32)
        row = full[c:c + 1, :]
        out = row if out is None else out + row
    o_ref[0] = jnp.tanh(out)


# ---------------------------------------------------------------------------
# One-time (build-time) host prep: selection matrices & weight re-layouts
# ---------------------------------------------------------------------------
def _reflect_index(i, n):
    if i < 0:
        return -i
    if i >= n:
        return 2 * (n - 1) - i
    return i


def _conv_selection(h_in, w_in, k, stride, pad):
    """S[t, p, q] = 1 iff input pixel p is tap t of output pixel q (zero pad
    handled by leaving the column empty)."""
    h_out = (h_in + 2 * pad - k) // stride + 1
    w_out = (w_in + 2 * pad - k) // stride + 1
    sel = np.zeros((k * k, h_in * w_in, h_out * w_out), np.float32)
    for i in range(k):
        for j in range(k):
            t = i * k + j
            for oh in range(h_out):
                ih = oh * stride - pad + i
                if ih < 0 or ih >= h_in:
                    continue
                for ow in range(w_out):
                    iw = ow * stride - pad + j
                    if iw < 0 or iw >= w_in:
                        continue
                    sel[t, ih * w_in + iw, oh * w_out + ow] = 1.0
    return sel, h_out, w_out


def _convT_selection(h_in, w_in, k=4, stride=2, pad=1):
    """Selection matrices for the zero-dilated-input view of ConvTranspose2d."""
    h_out, w_out = stride * h_in, stride * w_in
    pad_d = k - 1 - pad
    sel = np.zeros((k * k, h_in * w_in, h_out * w_out), np.float32)
    for a in range(k):
        for b in range(k):
            t = a * k + b
            for oh in range(h_out):
                r = oh + a - pad_d
                if r < 0 or r > stride * (h_in - 1) or r % stride:
                    continue
                ih = r // stride
                for ow in range(w_out):
                    cc = ow + b - pad_d
                    if cc < 0 or cc > stride * (w_in - 1) or cc % stride:
                        continue
                    sel[t, ih * w_in + (cc // stride), oh * w_out + ow] = 1.0
    return sel, h_out, w_out


def _prep_conv_weight(w):
    """(Cout, Cin, k, k) -> (Cout, k*k*Cin); contraction index = t*Cin + ci."""
    w = np.asarray(w, np.float32)
    cout, cin, k, _ = w.shape
    return np.transpose(w, (0, 2, 3, 1)).reshape(cout, k * k * cin)


def _prep_convT_weight(w_t):
    """(Cin, Cout, k, k) -> (Cout, k*k*Cin) for the zero-dilated formulation
    (spatially flipped kernel); contraction index = t*Cin + ci."""
    w_t = np.asarray(w_t, np.float32)
    cin, cout, k, _ = w_t.shape
    wf = w_t[:, :, ::-1, ::-1]
    return np.transpose(wf, (1, 2, 3, 0)).reshape(cout, k * k * cin)


def _stem_gather_indices(h, w, k=7, pad=3):
    rows = np.zeros((k * k, h * w), np.int32)
    cols = np.zeros((k * k, h * w), np.int32)
    for i in range(k):
        for j in range(k):
            t = i * k + j
            for oh in range(h):
                for ow in range(w):
                    rows[t, oh * w + ow] = _reflect_index(oh + i - pad, h)
                    cols[t, oh * w + ow] = _reflect_index(ow + j - pad, w)
    return rows, cols


def _fold_head(w_head, h, w, k=7, pad=3):
    """Fold the reflect-padded 7x7 head conv (single output channel) into
    per-input-channel (HW, HW) matrices."""
    w_head = np.asarray(w_head, np.float32)
    cin = w_head.shape[1]
    fold = np.zeros((cin, h * w, h * w), np.float32)
    for ci in range(cin):
        for i in range(k):
            for j in range(k):
                wv = w_head[0, ci, i, j]
                for oh in range(h):
                    rh = _reflect_index(oh + i - pad, h)
                    for ow in range(w):
                        rw = _reflect_index(ow + j - pad, w)
                        fold[ci, rh * w + rw, oh * w + ow] += wv
    return fold


# ---------------------------------------------------------------------------
# Parameters (PyTorch layouts)
# ---------------------------------------------------------------------------
def init_params(key, input_nc=1, label_nc=2, conv_dim=8, n_blocks=2):
    def conv_w(k, cout, cin, ks):
        fan_in = cin * ks * ks
        return (jax.random.normal(k, (cout, cin, ks, ks), jnp.float32)
                / np.sqrt(fan_in))

    def convT_w(k, cin, cout, ks):
        fan_in = cin * ks * ks
        return (jax.random.normal(k, (cin, cout, ks, ks), jnp.float32)
                / np.sqrt(fan_in))

    keys = iter(jax.random.split(key, 64))
    p = {}
    c = conv_dim
    p["stem_w"] = conv_w(next(keys), c, input_nc + label_nc, 7)
    p["stem_g"], p["stem_b"] = jnp.ones((c,)), jnp.zeros((c,))
    curr = c
    for i in range(2):
        nxt = curr * 2
        p[f"down{i}_w"] = conv_w(next(keys), nxt, curr, 4)
        p[f"down{i}_g"], p[f"down{i}_b"] = jnp.ones((nxt,)), jnp.zeros((nxt,))
        curr = nxt
    for i in range(n_blocks):
        rb = {"w1": conv_w(next(keys), curr, curr, 1),
              "w2": conv_w(next(keys), curr, curr, 3),
              "w3": conv_w(next(keys), curr, curr, 1)}
        for j in (1, 2, 3):
            rb[f"g{j}"], rb[f"b{j}"] = jnp.ones((curr,)), jnp.zeros((curr,))
        p[f"res{i}"] = rb
    for i in range(2):
        nxt = curr // 2
        p[f"up{i}_w"] = convT_w(next(keys), curr, nxt, 4)
        p[f"up{i}_g"], p[f"up{i}_b"] = jnp.ones((nxt,)), jnp.zeros((nxt,))
        curr = nxt
    p["head_w"] = conv_w(next(keys), input_nc, curr, 7)
    return p


# ---------------------------------------------------------------------------
# Build the fused forward (all re-layouts happen here, once)
# ---------------------------------------------------------------------------
def build_generator(params, *, image_hw, input_nc=1, label_nc=2, conv_dim=8,
                    n_blocks=2, matmul_dtype=MATMUL_DTYPE):
    if input_nc != 1:
        # TODO(synk): head folding currently supports a single output channel.
        raise NotImplementedError("input_nc != 1 not supported")
    h_img, w_img = image_hw
    assert h_img % 4 == 0 and w_img % 4 == 0
    cin0 = input_nc + label_nc
    c = conv_dim
    hw = h_img * w_img

    def cvt(a):
        return jnp.asarray(np.asarray(a, np.float32), dtype=matmul_dtype)

    def col(a):
        return jnp.asarray(np.asarray(a, np.float32).reshape(-1, 1))

    # Stem (reflect pad + 7x7): gather indices + flat weight (K = Cin*49).
    rows_np, cols_np = _stem_gather_indices(h_img, w_img)
    w_stem = cvt(np.asarray(params["stem_w"], np.float32).reshape(c, cin0 * 49))

    # Down convs.
    s_d0, h1, w1 = _conv_selection(h_img, w_img, 4, 2, 1)
    s_d1, h2, w2 = _conv_selection(h1, w1, 4, 2, 1)
    w_d0 = _prep_conv_weight(params["down0_w"])
    w_d1 = _prep_conv_weight(params["down1_w"])

    # Residual blocks (3x3 selection shared by all blocks).
    s_res, _, _ = _conv_selection(h2, w2, 3, 1, 1)
    c4 = 4 * c
    w13 = np.stack([np.stack([
        np.asarray(params[f"res{i}"]["w1"], np.float32)[:, :, 0, 0],
        np.asarray(params[f"res{i}"]["w3"], np.float32)[:, :, 0, 0]])
        for i in range(n_blocks)])
    w2s = np.stack([_prep_conv_weight(params[f"res{i}"]["w2"])
                    for i in range(n_blocks)])
    g_res = np.stack([np.stack([np.asarray(params[f"res{i}"][f"g{j}"],
                                           np.float32).reshape(c4, 1)
                                for j in (1, 2, 3)]) for i in range(n_blocks)])
    b_res = np.stack([np.stack([np.asarray(params[f"res{i}"][f"b{j}"],
                                           np.float32).reshape(c4, 1)
                                for j in (1, 2, 3)]) for i in range(n_blocks)])

    # Transposed convs (zero-dilated formulation).
    s_u0, _, _ = _convT_selection(h2, w2)
    s_u1, _, _ = _convT_selection(h1, w1)
    w_u0 = _prep_convT_weight(params["up0_w"])
    w_u1 = _prep_convT_weight(params["up1_w"])

    # Head: reflection gather + weights folded per input channel.
    b_head = _fold_head(params["head_w"], h_img, w_img)

    consts = (
        w_stem, col(params["stem_g"]), col(params["stem_b"]),
        cvt(s_d0), cvt(w_d0), col(params["down0_g"]), col(params["down0_b"]),
        cvt(s_d1), cvt(w_d1), col(params["down1_g"]), col(params["down1_b"]),
        cvt(s_res), cvt(w13), cvt(w2s), jnp.asarray(g_res), jnp.asarray(b_res),
        cvt(s_u0), cvt(w_u0), col(params["up0_g"]), col(params["up0_b"]),
        cvt(s_u1), cvt(w_u1), col(params["up1_g"]), col(params["up1_b"]),
        cvt(b_head),
    )
    rows_j = jnp.asarray(rows_np)
    cols_j = jnp.asarray(cols_np)

    def _const_spec(a):
        zeros = (0,) * a.ndim
        return pl.BlockSpec(a.shape, lambda i, _z=zeros: _z)

    @jax.jit
    def _run(x, rows, cols, cst):
        n = x.shape[0]
        # Stem reflect-pad + im2col: a single XLA gather -> (N, Cin*49, HW).
        patches = x.astype(jnp.float32)[:, :, rows, cols]
        patches = patches.reshape(n, cin0 * 49, hw).astype(matmul_dtype)

        in_specs = [pl.BlockSpec((1, cin0 * 49, hw), lambda i: (i, 0, 0))]
        in_specs += [_const_spec(a) for a in cst]

        out = pl.pallas_call(
            _generator_kernel,
            grid=(n,),
            in_specs=in_specs,
            out_specs=pl.BlockSpec((1, input_nc, hw), lambda i: (i, 0, 0)),
            out_shape=jax.ShapeDtypeStruct((n, input_nc, hw), jnp.float32),
            compiler_params=pltpu.CompilerParams(
                dimension_semantics=("parallel",),
                vmem_limit_bytes=32 * 1024 * 1024),
        )(patches, *cst)
        return out.reshape(n, input_nc, h_img, w_img)

    def forward(x):
        return _run(x, rows_j, cols_j, consts)

    return forward


# ---------------------------------------------------------------------------
# Pure-JAX reference (full-precision XLA convs) for the parity check
# ---------------------------------------------------------------------------
def reference_forward(params, x, n_blocks):
    prec = jax.lax.Precision.HIGHEST

    def conv(h, w, stride, pad):
        return jax.lax.conv_general_dilated(
            h, w, (stride, stride), ((pad, pad), (pad, pad)),
            dimension_numbers=("NCHW", "OIHW", "NCHW"), precision=prec)

    def convT(h, w):
        wf = jnp.transpose(jnp.flip(w, (2, 3)), (1, 0, 2, 3))
        return jax.lax.conv_general_dilated(
            h, wf, (1, 1), ((2, 2), (2, 2)), lhs_dilation=(2, 2),
            dimension_numbers=("NCHW", "OIHW", "NCHW"), precision=prec)

    def inorm(h, g, b):
        m = jnp.mean(h, axis=(2, 3), keepdims=True)
        v = jnp.mean((h - m) ** 2, axis=(2, 3), keepdims=True)
        return ((h - m) * jax.lax.rsqrt(v + EPS) * g.reshape(1, -1, 1, 1)
                + b.reshape(1, -1, 1, 1))

    def refl(h):
        return jnp.pad(h, ((0, 0), (0, 0), (3, 3), (3, 3)), mode="reflect")

    relu = lambda t: jnp.maximum(t, 0.0)

    h = relu(inorm(conv(refl(x), params["stem_w"], 1, 0),
                   params["stem_g"], params["stem_b"]))
    for i in range(2):
        h = relu(inorm(conv(h, params[f"down{i}_w"], 2, 1),
                       params[f"down{i}_g"], params[f"down{i}_b"]))
    for i in range(n_blocks):
        rb = params[f"res{i}"]
        r = h
        t = relu(inorm(conv(h, rb["w1"], 1, 0), rb["g1"], rb["b1"]))
        t = relu(inorm(conv(t, rb["w2"], 1, 1), rb["g2"], rb["b2"]))
        t = inorm(conv(t, rb["w3"], 1, 0), rb["g3"], rb["b3"])
        h = relu(t + r)
    for i in range(2):
        h = relu(inorm(convT(h, params[f"up{i}_w"]),
                       params[f"up{i}_g"], params[f"up{i}_b"]))
    return jnp.tanh(conv(refl(h), params["head_w"], 1, 0))


if __name__ == "__main__":
    key = jax.random.PRNGKey(0)
    k_params, k_x = jax.random.split(key)

    INPUT_NC, LABEL_NC, CONV_DIM, N_BLOCKS = 1, 2, 8, 2
    BATCH, H, W = 2, 16, 16

    params = init_params(k_params, input_nc=INPUT_NC, label_nc=LABEL_NC,
                         conv_dim=CONV_DIM, n_blocks=N_BLOCKS)
    x = jax.random.normal(k_x, (BATCH, INPUT_NC + LABEL_NC, H, W), jnp.float32)

    fwd = build_generator(params, image_hw=(H, W), input_nc=INPUT_NC,
                          label_nc=LABEL_NC, conv_dim=CONV_DIM,
                          n_blocks=N_BLOCKS, matmul_dtype=MATMUL_DTYPE)
    y = jax.block_until_ready(fwd(x))

    assert y.shape == (BATCH, INPUT_NC, H, W), y.shape
    assert bool(jnp.all(jnp.isfinite(y)))
    assert bool(jnp.all(jnp.abs(y) <= 1.0 + 1e-6))   # tanh range

    # Numerical parity against a pure-JAX reference of the PyTorch module
    # (training-mode InstanceNorm statistics, affine=True).
    ref = jax.jit(functools.partial(reference_forward, n_blocks=N_BLOCKS))(
        params, x)
    max_err = float(jnp.max(jnp.abs(y - ref)))
    tol = 1e-1 if MATMUL_DTYPE == jnp.bfloat16 else 5e-2
    assert max_err < tol, f"parity check failed: max abs err = {max_err}"

    print("KERNEL_OK")
</pallas_src>

<mosaic_0001>
module attributes {stable_mosaic.version = 11 : i64} {
  func.func @_generator_kernel(%arg0: i32, %arg1: memref<1x147x256xf32, #tpu.memory_space<vmem>>, %arg2: memref<8x147xf32, #tpu.memory_space<vmem>>, %arg3: memref<8x1xf32, #tpu.memory_space<vmem>>, %arg4: memref<8x1xf32, #tpu.memory_space<vmem>>, %arg5: memref<16x256x64xf32, #tpu.memory_space<vmem>>, %arg6: memref<16x128xf32, #tpu.memory_space<vmem>>, %arg7: memref<16x1xf32, #tpu.memory_space<vmem>>, %arg8: memref<16x1xf32, #tpu.memory_space<vmem>>, %arg9: memref<16x64x16xf32, #tpu.memory_space<vmem>>, %arg10: memref<32x256xf32, #tpu.memory_space<vmem>>, %arg11: memref<32x1xf32, #tpu.memory_space<vmem>>, %arg12: memref<32x1xf32, #tpu.memory_space<vmem>>, %arg13: memref<9x16x16xf32, #tpu.memory_space<vmem>>, %arg14: memref<2x2x32x32xf32, #tpu.memory_space<vmem>>, %arg15: memref<2x32x288xf32, #tpu.memory_space<vmem>>, %arg16: memref<2x3x32x1xf32, #tpu.memory_space<vmem>>, %arg17: memref<2x3x32x1xf32, #tpu.memory_space<vmem>>, %arg18: memref<16x16x64xf32, #tpu.memory_space<vmem>>, %arg19: memref<16x512xf32, #tpu.memory_space<vmem>>, %arg20: memref<16x1xf32, #tpu.memory_space<vmem>>, %arg21: memref<16x1xf32, #tpu.memory_space<vmem>>, %arg22: memref<16x64x256xf32, #tpu.memory_space<vmem>>, %arg23: memref<8x256xf32, #tpu.memory_space<vmem>>, %arg24: memref<8x1xf32, #tpu.memory_space<vmem>>, %arg25: memref<8x1xf32, #tpu.memory_space<vmem>>, %arg26: memref<8x256x256xf32, #tpu.memory_space<vmem>>, %arg27: memref<1x1x256xf32, #tpu.memory_space<vmem>>) attributes {dimension_semantics = [#tpu.dimension_semantics<parallel>], iteration_bounds = array<i64: 2>, scalar_prefetch = 0 : i64, scratch_operands = 0 : i64, tpu.core_type = #tpu.core_type<tc>, window_params = [{transform_indices = @transform_0, window_bounds = array<i64: 1, 147, 256>}, {pipeline_mode = #tpu.pipeline_mode<synchronous>, transform_indices = @transform_1, window_bounds = array<i64: 8, 147>}, {pipeline_mode = #tpu.pipeline_mode<synchronous>, transform_indices = @transform_2, window_bounds = array<i64: 8, 1>}, {pipeline_mode = #tpu.pipeline_mode<synchronous>, transform_indices = @transform_3, window_bounds = array<i64: 8, 1>}, {pipeline_mode = #tpu.pipeline_mode<synchronous>, transform_indices = @transform_4, window_bounds = array<i64: 16, 256, 64>}, {pipeline_mode = #tpu.pipeline_mode<synchronous>, transform_indices = @transform_5, window_bounds = array<i64: 16, 128>}, {pipeline_mode = #tpu.pipeline_mode<synchronous>, transform_indices = @transform_6, window_bounds = array<i64: 16, 1>}, {pipeline_mode = #tpu.pipeline_mode<synchronous>, transform_indices = @transform_7, window_bounds = array<i64: 16, 1>}, {pipeline_mode = #tpu.pipeline_mode<synchronous>, transform_indices = @transform_8, window_bounds = array<i64: 16, 64, 16>}, {pipeline_mode = #tpu.pipeline_mode<synchronous>, transform_indices = @transform_9, window_bounds = array<i64: 32, 256>}, {pipeline_mode = #tpu.pipeline_mode<synchronous>, transform_indices = @transform_10, window_bounds = array<i64: 32, 1>}, {pipeline_mode = #tpu.pipeline_mode<synchronous>, transform_indices = @transform_11, window_bounds = array<i64: 32, 1>}, {pipeline_mode = #tpu.pipeline_mode<synchronous>, transform_indices = @transform_12, window_bounds = array<i64: 9, 16, 16>}, {pipeline_mode = #tpu.pipeline_mode<synchronous>, transform_indices = @transform_13, window_bounds = array<i64: 2, 2, 32, 32>}, {pipeline_mode = #tpu.pipeline_mode<synchronous>, transform_indices = @transform_14, window_bounds = array<i64: 2, 32, 288>}, {pipeline_mode = #tpu.pipeline_mode<synchronous>, transform_indices = @transform_15, window_bounds = array<i64: 2, 3, 32, 1>}, {pipeline_mode = #tpu.pipeline_mode<synchronous>, transform_indices = @transform_16, window_bounds = array<i64: 2, 3, 32, 1>}, {pipeline_mode = #tpu.pipeline_mode<synchronous>, transform_indices = @transform_17, window_bounds = array<i64: 16, 16, 64>}, {pipeline_mode = #tpu.pipeline_mode<synchronous>, transform_indices = @transform_18, window_bounds = array<i64: 16, 512>}, {pipeline_mode = #tpu.pipeline_mode<synchronous>, transform_indices = @transform_19, window_bounds = array<i64: 16, 1>}, {pipeline_mode = #tpu.pipeline_mode<synchronous>, transform_indices = @transform_20, window_bounds = array<i64: 16, 1>}, {pipeline_mode = #tpu.pipeline_mode<synchronous>, transform_indices = @transform_21, window_bounds = array<i64: 16, 64, 256>}, {pipeline_mode = #tpu.pipeline_mode<synchronous>, transform_indices = @transform_22, window_bounds = array<i64: 8, 256>}, {pipeline_mode = #tpu.pipeline_mode<synchronous>, transform_indices = @transform_23, window_bounds = array<i64: 8, 1>}, {pipeline_mode = #tpu.pipeline_mode<synchronous>, transform_indices = @transform_24, window_bounds = array<i64: 8, 1>}, {pipeline_mode = #tpu.pipeline_mode<synchronous>, transform_indices = @transform_25, window_bounds = array<i64: 8, 256, 256>}, {transform_indices = @transform_26, window_bounds = array<i64: 1, 1, 256>}]} {
    %c0 = arith.constant 0 : index
    %c0_0 = arith.constant 0 : index
    %0 = vector.load %arg2[%c0, %c0_0] : memref<8x147xf32, #tpu.memory_space<vmem>>, vector<8x147xf32>
    %c0_1 = arith.constant 0 : index
    %c0_2 = arith.constant 0 : index
    %c0_3 = arith.constant 0 : index
    %1 = vector.load %arg1[%c0_1, %c0_2, %c0_3] : memref<1x147x256xf32, #tpu.memory_space<vmem>>, vector<1x147x256xf32>
    %2 = vector.shape_cast %1 : vector<1x147x256xf32> to vector<147x256xf32>
    %cst = arith.constant dense<0.000000e+00> : vector<8x256xf32>
    %3 = tpu.matmul %0, %2, %cst {dimension_numbers = #tpu.dot_dimension_numbers<[1], [0], [0], [1], [0, 0, 1, 1], [], []>} : vector<8x147xf32>, vector<147x256xf32>, vector<8x256xf32> -> vector<8x256xf32>
    %c0_4 = arith.constant 0 : index
    %c0_5 = arith.constant 0 : index
    %4 = vector.load %arg3[%c0_4, %c0_5] : memref<8x1xf32, #tpu.memory_space<vmem>>, vector<8x1xf32>
    %c0_6 = arith.constant 0 : index
    %c0_7 = arith.constant 0 : index
    %5 = vector.load %arg4[%c0_6, %c0_7] : memref<8x1xf32, #tpu.memory_space<vmem>>, vector<8x1xf32>
    %cst_8 = arith.constant dense<0.000000e+00> : vector<8xf32>
    %6 = vector.multi_reduction <add>, %3, %cst_8 [1] : vector<8x256xf32> to vector<8xf32>
    %7 = vector.shape_cast %6 : vector<8xf32> to vector<8x1xf32>
    %cst_9 = arith.constant 2.560000e+02 : f32
    %8 = vector.broadcast %cst_9 : f32 to vector<8x1xf32>
    %9 = arith.divf %7, %8 : vector<8x1xf32>
    %10 = vector.broadcast %9 : vector<8x1xf32> to vector<8x256xf32>
    %11 = arith.subf %3, %10 : vector<8x256xf32>
    %12 = arith.mulf %11, %11 : vector<8x256xf32>
    %cst_10 = arith.constant dense<0.000000e+00> : vector<8xf32>
    %13 = vector.multi_reduction <add>, %12, %cst_10 [1] : vector<8x256xf32> to vector<8xf32>
    %14 = vector.shape_cast %13 : vector<8xf32> to vector<8x1xf32>
    %cst_11 = arith.constant 2.560000e+02 : f32
    %15 = vector.broadcast %cst_11 : f32 to vector<8x1xf32>
    %16 = arith.divf %14, %15 : vector<8x1xf32>
    %cst_12 = arith.constant 9.99999974E-6 : f32
    %17 = vector.broadcast %cst_12 : f32 to vector<8x1xf32>
    %18 = arith.addf %16, %17 : vector<8x1xf32>
    %19 = math.rsqrt %18 : vector<8x1xf32>
    %20 = vector.broadcast %19 : vector<8x1xf32> to vector<8x256xf32>
    %21 = arith.mulf %11, %20 : vector<8x256xf32>
    %22 = vector.broadcast %4 : vector<8x1xf32> to vector<8x256xf32>
    %23 = arith.mulf %21, %22 : vector<8x256xf32>
    %24 = vector.broadcast %5 : vector<8x1xf32> to vector<8x256xf32>
    %25 = arith.addf %23, %24 : vector<8x256xf32>
    %cst_13 = arith.constant 0.000000e+00 : f32
    %26 = vector.broadcast %cst_13 : f32 to vector<8x256xf32>
    %27 = arith.maximumf %25, %26 : vector<8x256xf32>
    %c0_14 = arith.constant 0 : index
    %c0_15 = arith.constant 0 : index
    %28 = vector.load %arg6[%c0_14, %c0_15] : memref<16x128xf32, #tpu.memory_space<vmem>>, vector<16x128xf32>
    %c0_16 = arith.constant 0 : index
    %c0_17 = arith.constant 0 : index
    %c0_18 = arith.constant 0 : index
    %29 = vector.load %arg5[%c0_16, %c0_17, %c0_18] : memref<16x256x64xf32, #tpu.memory_space<vmem>>, vector<1x256x64xf32>
    %30 = vector.shape_cast %29 : vector<1x256x64xf32> to vector<256x64xf32>
    %cst_19 = arith.constant dense<0.000000e+00> : vector<8x64xf32>
    %31 = tpu.matmul %27, %30, %cst_19 {dimension_numbers = #tpu.dot_dimension_numbers<[1], [0], [0], [1], [0, 0, 1, 1], [], []>} : vector<8x256xf32>, vector<256x64xf32>, vector<8x64xf32> -> vector<8x64xf32>
    %c1 = arith.constant 1 : index
    %c0_20 = arith.constant 0 : index
    %c0_21 = arith.constant 0 : index
    %32 = vector.load %arg5[%c1, %c0_20, %c0_21] : memref<16x256x64xf32, #tpu.memory_space<vmem>>, vector<1x256x64xf32>
    %33 = vector.shape_cast %32 : vector<1x256x64xf32> to vector<256x64xf32>
    %cst_22 = arith.constant dense<0.000000e+00> : vector<8x64xf32>
    %34 = tpu.matmul %27, %33, %cst_22 {dimension_numbers = #tpu.dot_dimension_numbers<[1], [0], [0], [1], [0, 0, 1, 1], [], []>} : vector<8x256xf32>, vector<256x64xf32>, vector<8x64xf32> -> vector<8x64xf32>
    %c2 = arith.constant 2 : index
    %c0_23 = arith.constant 0 : index
    %c0_24 = arith.constant 0 : index
    %35 = vector.load %arg5[%c2, %c0_23, %c0_24] : memref<16x256x64xf32, #tpu.memory_space<vmem>>, vector<1x256x64xf32>
    %36 = vector.shape_cast %35 : vector<1x256x64xf32> to vector<256x64xf32>
    %cst_25 = arith.constant dense<0.000000e+00> : vector<8x64xf32>
    %37 = tpu.matmul %27, %36, %cst_25 {dimension_numbers = #tpu.dot_dimension_numbers<[1], [0], [0], [1], [0, 0, 1, 1], [], []>} : vector<8x256xf32>, vector<256x64xf32>, vector<8x64xf32> -> vector<8x64xf32>
    %c3 = arith.constant 3 : index
    %c0_26 = arith.constant 0 : index
    %c0_27 = arith.constant 0 : index
    %38 = vector.load %arg5[%c3, %c0_26, %c0_27] : memref<16x256x64xf32, #tpu.memory_space<vmem>>, vector<1x256x64xf32>
    %39 = vector.shape_cast %38 : vector<1x256x64xf32> to vector<256x64xf32>
    %cst_28 = arith.constant dense<0.000000e+00> : vector<8x64xf32>
    %40 = tpu.matmul %27, %39, %cst_28 {dimension_numbers = #tpu.dot_dimension_numbers<[1], [0], [0], [1], [0, 0, 1, 1], [], []>} : vector<8x256xf32>, vector<256x64xf32>, vector<8x64xf32> -> vector<8x64xf32>
    %c4 = arith.constant 4 : index
    %c0_29 = arith.constant 0 : index
    %c0_30 = arith.constant 0 : index
    %41 = vector.load %arg5[%c4, %c0_29, %c0_30] : memref<16x256x64xf32, #tpu.memory_space<vmem>>, vector<1x256x64xf32>
    %42 = vector.shape_cast %41 : vector<1x256x64xf32> to vector<256x64xf32>
    %cst_31 = arith.constant dense<0.000000e+00> : vector<8x64xf32>
    %43 = tpu.matmul %27, %42, %cst_31 {dimension_numbers = #tpu.dot_dimension_numbers<[1], [0], [0], [1], [0, 0, 1, 1], [], []>} : vector<8x256xf32>, vector<256x64xf32>, vector<8x64xf32> -> vector<8x64xf32>
    %c5 = arith.constant 5 : index
    %c0_32 = arith.constant 0 : index
    %c0_33 = arith.constant 0 : index
    %44 = vector.load %arg5[%c5, %c0_32, %c0_33] : memref<16x256x64xf32, #tpu.memory_space<vmem>>, vector<1x256x64xf32>
    %45 = vector.shape_cast %44 : vector<1x256x64xf32> to vector<256x64xf32>
    %cst_34 = arith.constant dense<0.000000e+00> : vector<8x64xf32>
    %46 = tpu.matmul %27, %45, %cst_34 {dimension_numbers = #tpu.dot_dimension_numbers<[1], [0], [0], [1], [0, 0, 1, 1], [], []>} : vector<8x256xf32>, vector<256x64xf32>, vector<8x64xf32> -> vector<8x64xf32>
    %c6 = arith.constant 6 : index
    %c0_35 = arith.constant 0 : index
    %c0_36 = arith.constant 0 : index
    %47 = vector.load %arg5[%c6, %c0_35, %c0_36] : memref<16x256x64xf32, #tpu.memory_space<vmem>>, vector<1x256x64xf32>
    %48 = vector.shape_cast %47 : vector<1x256x64xf32> to vector<256x64xf32>
    %cst_37 = arith.constant dense<0.000000e+00> : vector<8x64xf32>
    %49 = tpu.matmul %27, %48, %cst_37 {dimension_numbers = #tpu.dot_dimension_numbers<[1], [0], [0], [1], [0, 0, 1, 1], [], []>} : vector<8x256xf32>, vector<256x64xf32>, vector<8x64xf32> -> vector<8x64xf32>
    %c7 = arith.constant 7 : index
    %c0_38 = arith.constant 0 : index
    %c0_39 = arith.constant 0 : index
    %50 = vector.load %arg5[%c7, %c0_38, %c0_39] : memref<16x256x64xf32, #tpu.memory_space<vmem>>, vector<1x256x64xf32>
    %51 = vector.shape_cast %50 : vector<1x256x64xf32> to vector<256x64xf32>
    %cst_40 = arith.constant dense<0.000000e+00> : vector<8x64xf32>
    %52 = tpu.matmul %27, %51, %cst_40 {dimension_numbers = #tpu.dot_dimension_numbers<[1], [0], [0], [1], [0, 0, 1, 1], [], []>} : vector<8x256xf32>, vector<256x64xf32>, vector<8x64xf32> -> vector<8x64xf32>
    %c8 = arith.constant 8 : index
    %c0_41 = arith.constant 0 : index
    %c0_42 = arith.constant 0 : index
    %53 = vector.load %arg5[%c8, %c0_41, %c0_42] : memref<16x256x64xf32, #tpu.memory_space<vmem>>, vector<1x256x64xf32>
    %54 = vector.shape_cast %53 : vector<1x256x64xf32> to vector<256x64xf32>
    %cst_43 = arith.constant dense<0.000000e+00> : vector<8x64xf32>
    %55 = tpu.matmul %27, %54, %cst_43 {dimension_numbers = #tpu.dot_dimension_numbers<[1], [0], [0], [1], [0, 0, 1, 1], [], []>} : vector<8x256xf32>, vector<256x64xf32>, vector<8x64xf32> -> vector<8x64xf32>
    %c9 = arith.constant 9 : index
    %c0_44 = arith.constant 0 : index
    %c0_45 = arith.constant 0 : index
    %56 = vector.load %arg5[%c9, %c0_44, %c0_45] : memref<16x256x64xf32, #tpu.memory_space<vmem>>, vector<1x256x64xf32>
    %57 = vector.shape_cast %56 : vector<1x256x64xf32> to vector<256x64xf32>
    %cst_46 = arith.constant dense<0.000000e+00> : vector<8x64xf32>
    %58 = tpu.matmul %27, %57, %cst_46 {dimension_numbers = #tpu.dot_dimension_numbers<[1], [0], [0], [1], [0, 0, 1, 1], [], []>} : vector<8x256xf32>, vector<256x64xf32>, vector<8x64xf32> -> vector<8x64xf32>
    %c10 = arith.constant 10 : index
    %c0_47 = arith.constant 0 : index
    %c0_48 = arith.constant 0 : index
    %59 = vector.load %arg5[%c10, %c0_47, %c0_48] : memref<16x256x64xf32, #tpu.memory_space<vmem>>, vector<1x256x64xf32>
    %60 = vector.shape_cast %59 : vector<1x256x64xf32> to vector<256x64xf32>
    %cst_49 = arith.constant dense<0.000000e+00> : vector<8x64xf32>
    %61 = tpu.matmul %27, %60, %cst_49 {dimension_numbers = #tpu.dot_dimension_numbers<[1], [0], [0], [1], [0, 0, 1, 1], [], []>} : vector<8x256xf32>, vector<256x64xf32>, vector<8x64xf32> -> vector<8x64xf32>
    %c11 = arith.constant 11 : index
    %c0_50 = arith.constant 0 : index
    %c0_51 = arith.constant 0 : index
    %62 = vector.load %arg5[%c11, %c0_50, %c0_51] : memref<16x256x64xf32, #tpu.memory_space<vmem>>, vector<1x256x64xf32>
    %63 = vector.shape_cast %62 : vector<1x256x64xf32> to vector<256x64xf32>
    %cst_52 = arith.constant dense<0.000000e+00> : vector<8x64xf32>
    %64 = tpu.matmul %27, %63, %cst_52 {dimension_numbers = #tpu.dot_dimension_numbers<[1], [0], [0], [1], [0, 0, 1, 1], [], []>} : vector<8x256xf32>, vector<256x64xf32>, vector<8x64xf32> -> vector<8x64xf32>
    %c12 = arith.constant 12 : index
    %c0_53 = arith.constant 0 : index
    %c0_54 = arith.constant 0 : index
    %65 = vector.load %arg5[%c12, %c0_53, %c0_54] : memref<16x256x64xf32, #tpu.memory_space<vmem>>, vector<1x256x64xf32>
    %66 = vector.shape_cast %65 : vector<1x256x64xf32> to vector<256x64xf32>
    %cst_55 = arith.constant dense<0.000000e+00> : vector<8x64xf32>
    %67 = tpu.matmul %27, %66, %cst_55 {dimension_numbers = #tpu.dot_dimension_numbers<[1], [0], [0], [1], [0, 0, 1, 1], [], []>} : vector<8x256xf32>, vector<256x64xf32>, vector<8x64xf32> -> vector<8x64xf32>
    %c13 = arith.constant 13 : index
    %c0_56 = arith.constant 0 : index
    %c0_57 = arith.constant 0 : index
    %68 = vector.load %arg5[%c13, %c0_56, %c0_57] : memref<16x256x64xf32, #tpu.memory_space<vmem>>, vector<1x256x64xf32>
    %69 = vector.shape_cast %68 : vector<1x256x64xf32> to vector<256x64xf32>
    %cst_58 = arith.constant dense<0.000000e+00> : vector<8x64xf32>
    %70 = tpu.matmul %27, %69, %cst_58 {dimension_numbers = #tpu.dot_dimension_numbers<[1], [0], [0], [1], [0, 0, 1, 1], [], []>} : vector<8x256xf32>, vector<256x64xf32>, vector<8x64xf32> -> vector<8x64xf32>
    %c14 = arith.constant 14 : index
    %c0_59 = arith.constant 0 : index
    %c0_60 = arith.constant 0 : index
    %71 = vector.load %arg5[%c14, %c0_59, %c0_60] : memref<16x256x64xf32, #tpu.memory_space<vmem>>, vector<1x256x64xf32>
    %72 = vector.shape_cast %71 : vector<1x256x64xf32> to vector<256x64xf32>
    %cst_61 = arith.constant dense<0.000000e+00> : vector<8x64xf32>
    %73 = tpu.matmul %27, %72, %cst_61 {dimension_numbers = #tpu.dot_dimension_numbers<[1], [0], [0], [1], [0, 0, 1, 1], [], []>} : vector<8x256xf32>, vector<256x64xf32>, vector<8x64xf32> -> vector<8x64xf32>
    %c15 = arith.constant 15 : index
    %c0_62 = arith.constant 0 : index
    %c0_63 = arith.constant 0 : index
    %74 = vector.load %arg5[%c15, %c0_62, %c0_63] : memref<16x256x64xf32, #tpu.memory_space<vmem>>, vector<1x256x64xf32>
    %75 = vector.shape_cast %74 : vector<1x256x64xf32> to vector<256x64xf32>
    %cst_64 = arith.constant dense<0.000000e+00> : vector<8x64xf32>
    %76 = tpu.matmul %27, %75, %cst_64 {dimension_numbers = #tpu.dot_dimension_numbers<[1], [0], [0], [1], [0, 0, 1, 1], [], []>} : vector<8x256xf32>, vector<256x64xf32>, vector<8x64xf32> -> vector<8x64xf32>
    %77 = tpu.concatenate %31, %34, %37, %40, %43, %46, %49, %52, %55, %58, %61, %64, %67, %70, %73, %76 in 0 : vector<8x64xf32>, vector<8x64xf32>, vector<8x64xf32>, vector<8x64xf32>, vector<8x64xf32>, vector<8x64xf32>, vector<8x64xf32>, vector<8x64xf32>, vector<8x64xf32>, vector<8x64xf32>, vector<8x64xf32>, vector<8x64xf32>, vector<8x64xf32>, vector<8x64xf32>, vector<8x64xf32>, vector<8x64xf32> -> vector<128x64xf32>
    %cst_65 = arith.constant dense<0.000000e+00> : vector<16x64xf32>
    %78 = tpu.matmul %28, %77, %cst_65 {dimension_numbers = #tpu.dot_dimension_numbers<[1], [0], [0], [1], [0, 0, 1, 1], [], []>} : vector<16x128xf32>, vector<128x64xf32>, vector<16x64xf32> -> vector<16x64xf32>
    %c0_66 = arith.constant 0 : index
    %c0_67 = arith.constant 0 : index
    %79 = vector.load %arg7[%c0_66, %c0_67] : memref<16x1xf32, #tpu.memory_space<vmem>>, vector<16x1xf32>
    %c0_68 = arith.constant 0 : index
    %c0_69 = arith.constant 0 : index
    %80 = vector.load %arg8[%c0_68, %c0_69] : memref<16x1xf32, #tpu.memory_space<vmem>>, vector<16x1xf32>
    %cst_70 = arith.constant dense<0.000000e+00> : vector<16xf32>
    %81 = vector.multi_reduction <add>, %78, %cst_70 [1] : vector<16x64xf32> to vector<16xf32>
    %82 = vector.shape_cast %81 : vector<16xf32> to vector<16x1xf32>
    %cst_71 = arith.constant 6.400000e+01 : f32
    %83 = vector.broadcast %cst_71 : f32 to vector<16x1xf32>
    %84 = arith.divf %82, %83 : vector<16x1xf32>
    %85 = vector.broadcast %84 : vector<16x1xf32> to vector<16x64xf32>
    %86 = arith.subf %78, %85 : vector<16x64xf32>
    %87 = arith.mulf %86, %86 : vector<16x64xf32>
    %cst_72 = arith.constant dense<0.000000e+00> : vector<16xf32>
    %88 = vector.multi_reduction <add>, %87, %cst_72 [1] : vector<16x64xf32> to vector<16xf32>
    %89 = vector.shape_cast %88 : vector<16xf32> to vector<16x1xf32>
    %cst_73 = arith.constant 6.400000e+01 : f32
    %90 = vector.broadcast %cst_73 : f32 to vector<16x1xf32>
    %91 = arith.divf %89, %90 : vector<16x1xf32>
    %cst_74 = arith.constant 9.99999974E-6 : f32
    %92 = vector.broadcast %cst_74 : f32 to vector<16x1xf32>
    %93 = arith.addf %91, %92 : vector<16x1xf32>
    %94 = math.rsqrt %93 : vector<16x1xf32>
    %95 = vector.broadcast %94 : vector<16x1xf32> to vector<16x64xf32>
    %96 = arith.mulf %86, %95 : vector<16x64xf32>
    %97 = vector.broadcast %79 : vector<16x1xf32> to vector<16x64xf32>
    %98 = arith.mulf %96, %97 : vector<16x64xf32>
    %99 = vector.broadcast %80 : vector<16x1xf32> to vector<16x64xf32>
    %100 = arith.addf %98, %99 : vector<16x64xf32>
    %cst_75 = arith.constant 0.000000e+00 : f32
    %101 = vector.broadcast %cst_75 : f32 to vector<16x64xf32>
    %102 = arith.maximumf %100, %101 : vector<16x64xf32>
    %c0_76 = arith.constant 0 : index
    %c0_77 = arith.constant 0 : index
    %103 = vector.load %arg10[%c0_76, %c0_77] : memref<32x256xf32, #tpu.memory_space<vmem>>, vector<32x256xf32>
    %c0_78 = arith.constant 0 : index
    %c0_79 = arith.constant 0 : index
    %c0_80 = arith.constant 0 : index
    %104 = vector.load %arg9[%c0_78, %c0_79, %c0_80] : memref<16x64x16xf32, #tpu.memory_space<vmem>>, vector<1x64x16xf32>
    %105 = vector.shape_cast %104 : vector<1x64x16xf32> to vector<64x16xf32>
    %cst_81 = arith.constant dense<0.000000e+00> : vector<16x16xf32>
    %106 = tpu.matmul %102, %105, %cst_81 {dimension_numbers = #tpu.dot_dimension_numbers<[1], [0], [0], [1], [0, 0, 1, 1], [], []>} : vector<16x64xf32>, vector<64x16xf32>, vector<16x16xf32> -> vector<16x16xf32>
    %c1_82 = arith.constant 1 : index
    %c0_83 = arith.constant 0 : index
    %c0_84 = arith.constant 0 : index
    %107 = vector.load %arg9[%c1_82, %c0_83, %c0_84] : memref<16x64x16xf32, #tpu.memory_space<vmem>>, vector<1x64x16xf32>
    %108 = vector.shape_cast %107 : vector<1x64x16xf32> to vector<64x16xf32>
    %cst_85 = arith.constant dense<0.000000e+00> : vector<16x16xf32>
    %109 = tpu.matmul %102, %108, %cst_85 {dimension_numbers = #tpu.dot_dimension_numbers<[1], [0], [0], [1], [0, 0, 1, 1], [], []>} : vector<16x64xf32>, vector<64x16xf32>, vector<16x16xf32> -> vector<16x16xf32>
    %c2_86 = arith.constant 2 : index
    %c0_87 = arith.constant 0 : index
    %c0_88 = arith.constant 0 : index
    %110 = vector.load %arg9[%c2_86, %c0_87, %c0_88] : memref<16x64x16xf32, #tpu.memory_space<vmem>>, vector<1x64x16xf32>
    %111 = vector.shape_cast %110 : vector<1x64x16xf32> to vector<64x16xf32>
    %cst_89 = arith.constant dense<0.000000e+00> : vector<16x16xf32>
    %112 = tpu.matmul %102, %111, %cst_89 {dimension_numbers = #tpu.dot_dimension_numbers<[1], [0], [0], [1], [0, 0, 1, 1], [], []>} : vector<16x64xf32>, vector<64x16xf32>, vector<16x16xf32> -> vector<16x16xf32>
    %c3_90 = arith.constant 3 : index
    %c0_91 = arith.constant 0 : index
    %c0_92 = arith.constant 0 : index
    %113 = vector.load %arg9[%c3_90, %c0_91, %c0_92] : memref<16x64x16xf32, #tpu.memory_space<vmem>>, vector<1x64x16xf32>
    %114 = vector.shape_cast %113 : vector<1x64x16xf32> to vector<64x16xf32>
    %cst_93 = arith.constant dense<0.000000e+00> : vector<16x16xf32>
    %115 = tpu.matmul %102, %114, %cst_93 {dimension_numbers = #tpu.dot_dimension_numbers<[1], [0], [0], [1], [0, 0, 1, 1], [], []>} : vector<16x64xf32>, vector<64x16xf32>, vector<16x16xf32> -> vector<16x16xf32>
    %c4_94 = arith.constant 4 : index
    %c0_95 = arith.constant 0 : index
    %c0_96 = arith.constant 0 : index
    %116 = vector.load %arg9[%c4_94, %c0_95, %c0_96] : memref<16x64x16xf32, #tpu.memory_space<vmem>>, vector<1x64x16xf32>
    %117 = vector.shape_cast %116 : vector<1x64x16xf32> to vector<64x16xf32>
    %cst_97 = arith.constant dense<0.000000e+00> : vector<16x16xf32>
    %118 = tpu.matmul %102, %117, %cst_97 {dimension_numbers = #tpu.dot_dimension_numbers<[1], [0], [0], [1], [0, 0, 1, 1], [], []>} : vector<16x64xf32>, vector<64x16xf32>, vector<16x16xf32> -> vector<16x16xf32>
    %c5_98 = arith.constant 5 : index
    %c0_99 = arith.constant 0 : index
    %c0_100 = arith.constant 0 : index
    %119 = vector.load %arg9[%c5_98, %c0_99, %c0_100] : memref<16x64x16xf32, #tpu.memory_space<vmem>>, vector<1x64x16xf32>
    %120 = vector.shape_cast %119 : vector<1x64x16xf32> to vector<64x16xf32>
    %cst_101 = arith.constant dense<0.000000e+00> : vector<16x16xf32>
    %121 = tpu.matmul %102, %120, %cst_101 {dimension_numbers = #tpu.dot_dimension_numbers<[1], [0], [0], [1], [0, 0, 1, 1], [], []>} : vector<16x64xf32>, vector<64x16xf32>, vector<16x16xf32> -> vector<16x16xf32>
    %c6_102 = arith.constant 6 : index
    %c0_103 = arith.constant 0 : index
    %c0_104 = arith.constant 0 : index
    %122 = vector.load %arg9[%c6_102, %c0_103, %c0_104] : memref<16x64x16xf32, #tpu.memory_space<vmem>>, vector<1x64x16xf32>
    %123 = vector.shape_cast %122 : vector<1x64x16xf32> to vector<64x16xf32>
    %cst_105 = arith.constant dense<0.000000e+00> : vector<16x16xf32>
    %124 = tpu.matmul %102, %123, %cst_105 {dimension_numbers = #tpu.dot_dimension_numbers<[1], [0], [0], [1], [0, 0, 1, 1], [], []>} : vector<16x64xf32>, vector<64x16xf32>, vector<16x16xf32> -> vector<16x16xf32>
    %c7_106 = arith.constant 7 : index
    %c0_107 = arith.constant 0 : index
    %c0_108 = arith.constant 0 : index
    %125 = vector.load %arg9[%c7_106, %c0_107, %c0_108] : memref<16x64x16xf32, #tpu.memory_space<vmem>>, vector<1x64x16xf32>
    %126 = vector.shape_cast %125 : vector<1x64x16xf32> to vector<64x16xf32>
    %cst_109 = arith.constant dense<0.000000e+00> : vector<16x16xf32>
    %127 = tpu.matmul %102, %126, %cst_109 {dimension_numbers = #tpu.dot_dimension_numbers<[1], [0], [0], [1], [0, 0, 1, 1], [], []>} : vector<16x64xf32>, vector<64x16xf32>, vector<16x16xf32> -> vector<16x16xf32>
    %c8_110 = arith.constant 8 : index
    %c0_111 = arith.constant 0 : index
    %c0_112 = arith.constant 0 : index
    %128 = vector.load %arg9[%c8_110, %c0_111, %c0_112] : memref<16x64x16xf32, #tpu.memory_space<vmem>>, vector<1x64x16xf32>
    %129 = vector.shape_cast %128 : vector<1x64x16xf32> to vector<64x16xf32>
    %cst_113 = arith.constant dense<0.000000e+00> : vector<16x16xf32>
    %130 = tpu.matmul %102, %129, %cst_113 {dimension_numbers = #tpu.dot_dimension_numbers<[1], [0], [0], [1], [0, 0, 1, 1], [], []>} : vector<16x64xf32>, vector<64x16xf32>, vector<16x16xf32> -> vector<16x16xf32>
    %c9_114 = arith.constant 9 : index
    %c0_115 = arith.constant 0 : index
    %c0_116 = arith.constant 0 : index
    %131 = vector.load %arg9[%c9_114, %c0_115, %c0_116] : memref<16x64x16xf32, #tpu.memory_space<vmem>>, vector<1x64x16xf32>
    %132 = vector.shape_cast %131 : vector<1x64x16xf32> to vector<64x16xf32>
    %cst_117 = arith.constant dense<0.000000e+00> : vector<16x16xf32>
    %133 = tpu.matmul %102, %132, %cst_117 {dimension_numbers = #tpu.dot_dimension_numbers<[1], [0], [0], [1], [0, 0, 1, 1], [], []>} : vector<16x64xf32>, vector<64x16xf32>, vector<16x16xf32> -> vector<16x16xf32>
    %c10_118 = arith.constant 10 : index
    %c0_119 = arith.constant 0 : index
    %c0_120 = arith.constant 0 : index
    %134 = vector.load %arg9[%c10_118, %c0_119, %c0_120] : memref<16x64x16xf32, #tpu.memory_space<vmem>>, vector<1x64x16xf32>
    %135 = vector.shape_cast %134 : vector<1x64x16xf32> to vector<64x16xf32>
    %cst_121 = arith.constant dense<0.000000e+00> : vector<16x16xf32>
    %136 = tpu.matmul %102, %135, %cst_121 {dimension_numbers = #tpu.dot_dimension_numbers<[1], [0], [0], [1], [0, 0, 1, 1], [], []>} : vector<16x64xf32>, vector<64x16xf32>, vector<16x16xf32> -> vector<16x16xf32>
    %c11_122 = arith.constant 11 : index
    %c0_123 = arith.constant 0 : index
    %c0_124 = arith.constant 0 : index
    %137 = vector.load %arg9[%c11_122, %c0_123, %c0_124] : memref<16x64x16xf32, #tpu.memory_space<vmem>>, vector<1x64x16xf32>
    %138 = vector.shape_cast %137 : vector<1x64x16xf32> to vector<64x16xf32>
    %cst_125 = arith.constant dense<0.000000e+00> : vector<16x16xf32>
    %139 = tpu.matmul %102, %138, %cst_125 {dimension_numbers = #tpu.dot_dimension_numbers<[1], [0], [0], [1], [0, 0, 1, 1], [], []>} : vector<16x64xf32>, vector<64x16xf32>, vector<16x16xf32> -> vector<16x16xf32>
    %c12_126 = arith.constant 12 : index
    %c0_127 = arith.constant 0 : index
    %c0_128 = arith.constant 0 : index
    %140 = vector.load %arg9[%c12_126, %c0_127, %c0_128] : memref<16x64x16xf32, #tpu.memory_space<vmem>>, vector<1x64x16xf32>
    %141 = vector.shape_cast %140 : vector<1x64x16xf32> to vector<64x16xf32>
    %cst_129 = arith.constant dense<0.000000e+00> : vector<16x16xf32>
    %142 = tpu.matmul %102, %141, %cst_129 {dimension_numbers = #tpu.dot_dimension_numbers<[1], [0], [0], [1], [0, 0, 1, 1], [], []>} : vector<16x64xf32>, vector<64x16xf32>, vector<16x16xf32> -> vector<16x16xf32>
    %c13_130 = arith.constant 13 : index
    %c0_131 = arith.constant 0 : index
    %c0_132 = arith.constant 0 : index
    %143 = vector.load %arg9[%c13_130, %c0_131, %c0_132] : memref<16x64x16xf32, #tpu.memory_space<vmem>>, vector<1x64x16xf32>
    %144 = vector.shape_cast %143 : vector<1x64x16xf32> to vector<64x16xf32>
    %cst_133 = arith.constant dense<0.000000e+00> : vector<16x16xf32>
    %145 = tpu.matmul %102, %144, %cst_133 {dimension_numbers = #tpu.dot_dimension_numbers<[1], [0], [0], [1], [0, 0, 1, 1], [], []>} : vector<16x64xf32>, vector<64x16xf32>, vector<16x16xf32> -> vector<16x16xf32>
    %c14_134 = arith.constant 14 : index
    %c0_135 = arith.constant 0 : index
    %c0_136 = arith.constant 0 : index
    %146 = vector.load %arg9[%c14_134, %c0_135, %c0_136] : memref<16x64x16xf32, #tpu.memory_space<vmem>>, vector<1x64x16xf32>
    %147 = vector.shape_cast %146 : vector<1x64x16xf32> to vector<64x16xf32>
    %cst_137 = arith.constant dense<0.000000e+00> : vector<16x16xf32>
    %148 = tpu.matmul %102, %147, %cst_137 {dimension_numbers = #tpu.dot_dimension_numbers<[1], [0], [0], [1], [0, 0, 1, 1], [], []>} : vector<16x64xf32>, vector<64x16xf32>, vector<16x16xf32> -> vector<16x16xf32>
    %c15_138 = arith.constant 15 : index
    %c0_139 = arith.constant 0 : index
    %c0_140 = arith.constant 0 : index
    %149 = vector.load %arg9[%c15_138, %c0_139, %c0_140] : memref<16x64x16xf32, #tpu.memory_space<vmem>>, vector<1x64x16xf32>
    %150 = vector.shape_cast %149 : vector<1x64x16xf32> to vector<64x16xf32>
    %cst_141 = arith.constant dense<0.000000e+00> : vector<16x16xf32>
    %151 = tpu.matmul %102, %150, %cst_141 {dimension_numbers = #tpu.dot_dimension_numbers<[1], [0], [0], [1], [0, 0, 1, 1], [], []>} : vector<16x64xf32>, vector<64x16xf32>, vector<16x16xf32> -> vector<16x16xf32>
    %152 = tpu.concatenate %106, %109, %112, %115, %118, %121, %124, %127, %130, %133, %136, %139, %142, %145, %148, %151 in 0 : vector<16x16xf32>, vector<16x16xf32>, vector<16x16xf32>, vector<16x16xf32>, vector<16x16xf32>, vector<16x16xf32>, vector<16x16xf32>, vector<16x16xf32>, vector<16x16xf32>, vector<16x16xf32>, vector<16x16xf32>, vector<16x16xf32>, vector<16x16xf32>, vector<16x16xf32>, vector<16x16xf32>, vector<16x16xf32> -> vector<256x16xf32>
    %cst_142 = arith.constant dense<0.000000e+00> : vector<32x16xf32>
    %153 = tpu.matmul %103, %152, %cst_142 {dimension_numbers = #tpu.dot_dimension_numbers<[1], [0], [0], [1], [0, 0, 1, 1], [], []>} : vector<32x256xf32>, vector<256x16xf32>, vector<32x16xf32> -> vector<32x16xf32>
    %c0_143 = arith.constant 0 : index
    %c0_144 = arith.constant 0 : index
    %154 = vector.load %arg11[%c0_143, %c0_144] : memref<32x1xf32, #tpu.memory_space<vmem>>, vector<32x1xf32>
    %c0_145 = arith.constant 0 : index
    %c0_146 = arith.constant 0 : index
    %155 = vector.load %arg12[%c0_145, %c0_146] : memref<32x1xf32, #tpu.memory_space<vmem>>, vector<32x1xf32>
    %cst_147 = arith.constant dense<0.000000e+00> : vector<32xf32>
    %156 = vector.multi_reduction <add>, %153, %cst_147 [1] : vector<32x16xf32> to vector<32xf32>
    %157 = vector.shape_cast %156 : vector<32xf32> to vector<32x1xf32>
    %cst_148 = arith.constant 1.600000e+01 : f32
    %158 = vector.broadcast %cst_148 : f32 to vector<32x1xf32>
    %159 = arith.divf %157, %158 : vector<32x1xf32>
    %160 = vector.broadcast %159 : vector<32x1xf32> to vector<32x16xf32>
    %161 = arith.subf %153, %160 : vector<32x16xf32>
    %162 = arith.mulf %161, %161 : vector<32x16xf32>
    %cst_149 = arith.constant dense<0.000000e+00> : vector<32xf32>
    %163 = vector.multi_reduction <add>, %162, %cst_149 [1] : vector<32x16xf32> to vector<32xf32>
    %164 = vector.shape_cast %163 : vector<32xf32> to vector<32x1xf32>
    %cst_150 = arith.constant 1.600000e+01 : f32
    %165 = vector.broadcast %cst_150 : f32 to vector<32x1xf32>
    %166 = arith.divf %164, %165 : vector<32x1xf32>
    %cst_151 = arith.constant 9.99999974E-6 : f32
    %167 = vector.broadcast %cst_151 : f32 to vector<32x1xf32>
    %168 = arith.addf %166, %167 : vector<32x1xf32>
    %169 = math.rsqrt %168 : vector<32x1xf32>
    %170 = vector.broadcast %169 : vector<32x1xf32> to vector<32x16xf32>
    %171 = arith.mulf %161, %170 : vector<32x16xf32>
    %172 = vector.broadcast %154 : vector<32x1xf32> to vector<32x16xf32>
    %173 = arith.mulf %171, %172 : vector<32x16xf32>
    %174 = vector.broadcast %155 : vector<32x1xf32> to vector<32x16xf32>
    %175 = arith.addf %173, %174 : vector<32x16xf32>
    %cst_152 = arith.constant 0.000000e+00 : f32
    %176 = vector.broadcast %cst_152 : f32 to vector<32x16xf32>
    %177 = arith.maximumf %175, %176 : vector<32x16xf32>
    %c0_153 = arith.constant 0 : index
    %c0_154 = arith.constant 0 : index
    %c0_155 = arith.constant 0 : index
    %c0_156 = arith.constant 0 : index
    %178 = vector.load %arg14[%c0_153, %c0_154, %c0_155, %c0_156] : memref<2x2x32x32xf32, #tpu.memory_space<vmem>>, vector<1x1x32x32xf32>
    %179 = vector.shape_cast %178 : vector<1x1x32x32xf32> to vector<32x32xf32>
    %cst_157 = arith.constant dense<0.000000e+00> : vector<32x16xf32>
    %180 = tpu.matmul %179, %177, %cst_157 {dimension_numbers = #tpu.dot_dimension_numbers<[1], [0], [0], [1], [0, 0, 1, 1], [], []>} : vector<32x32xf32>, vector<32x16xf32>, vector<32x16xf32> -> vector<32x16xf32>
    %c0_158 = arith.constant 0 : index
    %c0_159 = arith.constant 0 : index
    %c0_160 = arith.constant 0 : index
    %c0_161 = arith.constant 0 : index
    %181 = vector.load %arg16[%c0_158, %c0_159, %c0_160, %c0_161] : memref<2x3x32x1xf32, #tpu.memory_space<vmem>>, vector<1x1x32x1xf32>
    %182 = vector.shape_cast %181 : vector<1x1x32x1xf32> to vector<32x1xf32>
    %c0_162 = arith.constant 0 : index
    %c0_163 = arith.constant 0 : index
    %c0_164 = arith.constant 0 : index
    %c0_165 = arith.constant 0 : index
    %183 = vector.load %arg17[%c0_162, %c0_163, %c0_164, %c0_165] : memref<2x3x32x1xf32, #tpu.memory_space<vmem>>, vector<1x1x32x1xf32>
    %184 = vector.shape_cast %183 : vector<1x1x32x1xf32> to vector<32x1xf32>
    %cst_166 = arith.constant dense<0.000000e+00> : vector<32xf32>
    %185 = vector.multi_reduction <add>, %180, %cst_166 [1] : vector<32x16xf32> to vector<32xf32>
    %186 = vector.shape_cast %185 : vector<32xf32> to vector<32x1xf32>
    %cst_167 = arith.constant 1.600000e+01 : f32
    %187 = vector.broadcast %cst_167 : f32 to vector<32x1xf32>
    %188 = arith.divf %186, %187 : vector<32x1xf32>
    %189 = vector.broadcast %188 : vector<32x1xf32> to vector<32x16xf32>
    %190 = arith.subf %180, %189 : vector<32x16xf32>
    %191 = arith.mulf %190, %190 : vector<32x16xf32>
    %cst_168 = arith.constant dense<0.000000e+00> : vector<32xf32>
    %192 = vector.multi_reduction <add>, %191, %cst_168 [1] : vector<32x16xf32> to vector<32xf32>
    %193 = vector.shape_cast %192 : vector<32xf32> to vector<32x1xf32>
    %cst_169 = arith.constant 1.600000e+01 : f32
    %194 = vector.broadcast %cst_169 : f32 to vector<32x1xf32>
    %195 = arith.divf %193, %194 : vector<32x1xf32>
    %cst_170 = arith.constant 9.99999974E-6 : f32
    %196 = vector.broadcast %cst_170 : f32 to vector<32x1xf32>
    %197 = arith.addf %195, %196 : vector<32x1xf32>
    %198 = math.rsqrt %197 : vector<32x1xf32>
    %199 = vector.broadcast %198 : vector<32x1xf32> to vector<32x16xf32>
    %200 = arith.mulf %190, %199 : vector<32x16xf32>
    %201 = vector.broadcast %182 : vector<32x1xf32> to vector<32x16xf32>
    %202 = arith.mulf %200, %201 : vector<32x16xf32>
    %203 = vector.broadcast %184 : vector<32x1xf32> to vector<32x16xf32>
    %204 = arith.addf %202, %203 : vector<32x16xf32>
    %cst_171 = arith.constant 0.000000e+00 : f32
    %205 = vector.broadcast %cst_171 : f32 to vector<32x16xf32>
    %206 = arith.maximumf %204, %205 : vector<32x16xf32>
    %c0_172 = arith.constant 0 : index
    %c0_173 = arith.constant 0 : index
    %c0_174 = arith.constant 0 : index
    %207 = vector.load %arg15[%c0_172, %c0_173, %c0_174] : memref<2x32x288xf32, #tpu.memory_space<vmem>>, vector<1x32x288xf32>
    %208 = vector.shape_cast %207 : vector<1x32x288xf32> to vector<32x288xf32>
    %c0_175 = arith.constant 0 : index
    %c0_176 = arith.constant 0 : index
    %c0_177 = arith.constant 0 : index
    %209 = vector.load %arg13[%c0_175, %c0_176, %c0_177] : memref<9x16x16xf32, #tpu.memory_space<vmem>>, vector<1x16x16xf32>
    %210 = vector.shape_cast %209 : vector<1x16x16xf32> to vector<16x16xf32>
    %cst_178 = arith.constant dense<0.000000e+00> : vector<32x16xf32>
    %211 = tpu.matmul %206, %210, %cst_178 {dimension_numbers = #tpu.dot_dimension_numbers<[1], [0], [0], [1], [0, 0, 1, 1], [], []>} : vector<32x16xf32>, vector<16x16xf32>, vector<32x16xf32> -> vector<32x16xf32>
    %c1_179 = arith.constant 1 : index
    %c0_180 = arith.constant 0 : index
    %c0_181 = arith.constant 0 : index
    %212 = vector.load %arg13[%c1_179, %c0_180, %c0_181] : memref<9x16x16xf32, #tpu.memory_space<vmem>>, vector<1x16x16xf32>
    %213 = vector.shape_cast %212 : vector<1x16x16xf32> to vector<16x16xf32>
    %cst_182 = arith.constant dense<0.000000e+00> : vector<32x16xf32>
    %214 = tpu.matmul %206, %213, %cst_182 {dimension_numbers = #tpu.dot_dimension_numbers<[1], [0], [0], [1], [0, 0, 1, 1], [], []>} : vector<32x16xf32>, vector<16x16xf32>, vector<32x16xf32> -> vector<32x16xf32>
    %c2_183 = arith.constant 2 : index
    %c0_184 = arith.constant 0 : index
    %c0_185 = arith.constant 0 : index
    %215 = vector.load %arg13[%c2_183, %c0_184, %c0_185] : memref<9x16x16xf32, #tpu.memory_space<vmem>>, vector<1x16x16xf32>
    %216 = vector.shape_cast %215 : vector<1x16x16xf32> to vector<16x16xf32>
    %cst_186 = arith.constant dense<0.000000e+00> : vector<32x16xf32>
    %217 = tpu.matmul %206, %216, %cst_186 {dimension_numbers = #tpu.dot_dimension_numbers<[1], [0], [0], [1], [0, 0, 1, 1], [], []>} : vector<32x16xf32>, vector<16x16xf32>, vector<32x16xf32> -> vector<32x16xf32>
    %c3_187 = arith.constant 3 : index
    %c0_188 = arith.constant 0 : index
    %c0_189 = arith.constant 0 : index
    %218 = vector.load %arg13[%c3_187, %c0_188, %c0_189] : memref<9x16x16xf32, #tpu.memory_space<vmem>>, vector<1x16x16xf32>
    %219 = vector.shape_cast %218 : vector<1x16x16xf32> to vector<16x16xf32>
    %cst_190 = arith.constant dense<0.000000e+00> : vector<32x16xf32>
    %220 = tpu.matmul %206, %219, %cst_190 {dimension_numbers = #tpu.dot_dimension_numbers<[1], [0], [0], [1], [0, 0, 1, 1], [], []>} : vector<32x16xf32>, vector<16x16xf32>, vector<32x16xf32> -> vector<32x16xf32>
    %c4_191 = arith.constant 4 : index
    %c0_192 = arith.constant 0 : index
    %c0_193 = arith.constant 0 : index
    %221 = vector.load %arg13[%c4_191, %c0_192, %c0_193] : memref<9x16x16xf32, #tpu.memory_space<vmem>>, vector<1x16x16xf32>
    %222 = vector.shape_cast %221 : vector<1x16x16xf32> to vector<16x16xf32>
    %cst_194 = arith.constant dense<0.000000e+00> : vector<32x16xf32>
    %223 = tpu.matmul %206, %222, %cst_194 {dimension_numbers = #tpu.dot_dimension_numbers<[1], [0], [0], [1], [0, 0, 1, 1], [], []>} : vector<32x16xf32>, vector<16x16xf32>, vector<32x16xf32> -> vector<32x16xf32>
    %c5_195 = arith.constant 5 : index
    %c0_196 = arith.constant 0 : index
    %c0_197 = arith.constant 0 : index
    %224 = vector.load %arg13[%c5_195, %c0_196, %c0_197] : memref<9x16x16xf32, #tpu.memory_space<vmem>>, vector<1x16x16xf32>
    %225 = vector.shape_cast %224 : vector<1x16x16xf32> to vector<16x16xf32>
    %cst_198 = arith.constant dense<0.000000e+00> : vector<32x16xf32>
    %226 = tpu.matmul %206, %225, %cst_198 {dimension_numbers = #tpu.dot_dimension_numbers<[1], [0], [0], [1], [0, 0, 1, 1], [], []>} : vector<32x16xf32>, vector<16x16xf32>, vector<32x16xf32> -> vector<32x16xf32>
    %c6_199 = arith.constant 6 : index
    %c0_200 = arith.constant 0 : index
    %c0_201 = arith.constant 0 : index
    %227 = vector.load %arg13[%c6_199, %c0_200, %c0_201] : memref<9x16x16xf32, #tpu.memory_space<vmem>>, vector<1x16x16xf32>
    %228 = vector.shape_cast %227 : vector<1x16x16xf32> to vector<16x16xf32>
    %cst_202 = arith.constant dense<0.000000e+00> : vector<32x16xf32>
    %229 = tpu.matmul %206, %228, %cst_202 {dimension_numbers = #tpu.dot_dimension_numbers<[1], [0], [0], [1], [0, 0, 1, 1], [], []>} : vector<32x16xf32>, vector<16x16xf32>, vector<32x16xf32> -> vector<32x16xf32>
    %c7_203 = arith.constant 7 : index
    %c0_204 = arith.constant 0 : index
    %c0_205 = arith.constant 0 : index
    %230 = vector.load %arg13[%c7_203, %c0_204, %c0_205] : memref<9x16x16xf32, #tpu.memory_space<vmem>>, vector<1x16x16xf32>
    %231 = vector.shape_cast %230 : vector<1x16x16xf32> to vector<16x16xf32>
    %cst_206 = arith.constant dense<0.000000e+00> : vector<32x16xf32>
    %232 = tpu.matmul %206, %231, %cst_206 {dimension_numbers = #tpu.dot_dimension_numbers<[1], [0], [0], [1], [0, 0, 1, 1], [], []>} : vector<32x16xf32>, vector<16x16xf32>, vector<32x16xf32> -> vector<32x16xf32>
    %c8_207 = arith.constant 8 : index
    %c0_208 = arith.constant 0 : index
    %c0_209 = arith.constant 0 : index
    %233 = vector.load %arg13[%c8_207, %c0_208, %c0_209] : memref<9x16x16xf32, #tpu.memory_space<vmem>>, vector<1x16x16xf32>
    %234 = vector.shape_cast %233 : vector<1x16x16xf32> to vector<16x16xf32>
    %cst_210 = arith.constant dense<0.000000e+00> : vector<32x16xf32>
    %235 = tpu.matmul %206, %234, %cst_210 {dimension_numbers = #tpu.dot_dimension_numbers<[1], [0], [0], [1], [0, 0, 1, 1], [], []>} : vector<32x16xf32>, vector<16x16xf32>, vector<32x16xf32> -> vector<32x16xf32>
    %236 = tpu.concatenate %211, %214, %217, %220, %223, %226, %229, %232, %235 in 0 : vector<32x16xf32>, vector<32x16xf32>, vector<32x16xf32>, vector<32x16xf32>, vector<32x16xf32>, vector<32x16xf32>, vector<32x16xf32>, vector<32x16xf32>, vector<32x16xf32> -> vector<288x16xf32>
    %cst_211 = arith.constant dense<0.000000e+00> : vector<32x16xf32>
    %237 = tpu.matmul %208, %236, %cst_211 {dimension_numbers = #tpu.dot_dimension_numbers<[1], [0], [0], [1], [0, 0, 1, 1], [], []>} : vector<32x288xf32>, vector<288x16xf32>, vector<32x16xf32> -> vector<32x16xf32>
    %c0_212 = arith.constant 0 : index
    %c1_213 = arith.constant 1 : index
    %c0_214 = arith.constant 0 : index
    %c0_215 = arith.constant 0 : index
    %238 = vector.load %arg16[%c0_212, %c1_213, %c0_214, %c0_215] : memref<2x3x32x1xf32, #tpu.memory_space<vmem>>, vector<1x1x32x1xf32>
    %239 = vector.shape_cast %238 : vector<1x1x32x1xf32> to vector<32x1xf32>
    %c0_216 = arith.constant 0 : index
    %c1_217 = arith.constant 1 : index
    %c0_218 = arith.constant 0 : index
    %c0_219 = arith.constant 0 : index
    %240 = vector.load %arg17[%c0_216, %c1_217, %c0_218, %c0_219] : memref<2x3x32x1xf32, #tpu.memory_space<vmem>>, vector<1x1x32x1xf32>
    %241 = vector.shape_cast %240 : vector<1x1x32x1xf32> to vector<32x1xf32>
    %cst_220 = arith.constant dense<0.000000e+00> : vector<32xf32>
    %242 = vector.multi_reduction <add>, %237, %cst_220 [1] : vector<32x16xf32> to vector<32xf32>
    %243 = vector.shape_cast %242 : vector<32xf32> to vector<32x1xf32>
    %cst_221 = arith.constant 1.600000e+01 : f32
    %244 = vector.broadcast %cst_221 : f32 to vector<32x1xf32>
    %245 = arith.divf %243, %244 : vector<32x1xf32>
    %246 = vector.broadcast %245 : vector<32x1xf32> to vector<32x16xf32>
    %247 = arith.subf %237, %246 : vector<32x16xf32>
    %248 = arith.mulf %247, %247 : vector<32x16xf32>
    %cst_222 = arith.constant dense<0.000000e+00> : vector<32xf32>
    %249 = vector.multi_reduction <add>, %248, %cst_222 [1] : vector<32x16xf32> to vector<32xf32>
    %250 = vector.shape_cast %249 : vector<32xf32> to vector<32x1xf32>
    %cst_223 = arith.constant 1.600000e+01 : f32
    %251 = vector.broadcast %cst_223 : f32 to vector<32x1xf32>
    %252 = arith.divf %250, %251 : vector<32x1xf32>
    %cst_224 = arith.constant 9.99999974E-6 : f32
    %253 = vector.broadcast %cst_224 : f32 to vector<32x1xf32>
    %254 = arith.addf %252, %253 : vector<32x1xf32>
    %255 = math.rsqrt %254 : vector<32x1xf32>
    %256 = vector.broadcast %255 : vector<32x1xf32> to vector<32x16xf32>
    %257 = arith.mulf %247, %256 : vector<32x16xf32>
    %258 = vector.broadcast %239 : vector<32x1xf32> to vector<32x16xf32>
    %259 = arith.mulf %257, %258 : vector<32x16xf32>
    %260 = vector.broadcast %241 : vector<32x1xf32> to vector<32x16xf32>
    %261 = arith.addf %259, %260 : vector<32x16xf32>
    %cst_225 = arith.constant 0.000000e+00 : f32
    %262 = vector.broadcast %cst_225 : f32 to vector<32x16xf32>
    %263 = arith.maximumf %261, %262 : vector<32x16xf32>
    %c0_226 = arith.constant 0 : index
    %c1_227 = arith.constant 1 : index
    %c0_228 = arith.constant 0 : index
    %c0_229 = arith.constant 0 : index
    %264 = vector.load %arg14[%c0_226, %c1_227, %c0_228, %c0_229] : memref<2x2x32x32xf32, #tpu.memory_space<vmem>>, vector<1x1x32x32xf32>
    %265 = vector.shape_cast %264 : vector<1x1x32x32xf32> to vector<32x32xf32>
    %cst_230 = arith.constant dense<0.000000e+00> : vector<32x16xf32>
    %266 = tpu.matmul %265, %263, %cst_230 {dimension_numbers = #tpu.dot_dimension_numbers<[1], [0], [0], [1], [0, 0, 1, 1], [], []>} : vector<32x32xf32>, vector<32x16xf32>, vector<32x16xf32> -> vector<32x16xf32>
    %c0_231 = arith.constant 0 : index
    %c2_232 = arith.constant 2 : index
    %c0_233 = arith.constant 0 : index
    %c0_234 = arith.constant 0 : index
    %267 = vector.load %arg16[%c0_231, %c2_232, %c0_233, %c0_234] : memref<2x3x32x1xf32, #tpu.memory_space<vmem>>, vector<1x1x32x1xf32>
    %268 = vector.shape_cast %267 : vector<1x1x32x1xf32> to vector<32x1xf32>
    %c0_235 = arith.constant 0 : index
    %c2_236 = arith.constant 2 : index
    %c0_237 = arith.constant 0 : index
    %c0_238 = arith.constant 0 : index
    %269 = vector.load %arg17[%c0_235, %c2_236, %c0_237, %c0_238] : memref<2x3x32x1xf32, #tpu.memory_space<vmem>>, vector<1x1x32x1xf32>
    %270 = vector.shape_cast %269 : vector<1x1x32x1xf32> to vector<32x1xf32>
    %cst_239 = arith.constant dense<0.000000e+00> : vector<32xf32>
    %271 = vector.multi_reduction <add>, %266, %cst_239 [1] : vector<32x16xf32> to vector<32xf32>
    %272 = vector.shape_cast %271 : vector<32xf32> to vector<32x1xf32>
    %cst_240 = arith.constant 1.600000e+01 : f32
    %273 = vector.broadcast %cst_240 : f32 to vector<32x1xf32>
    %274 = arith.divf %272, %273 : vector<32x1xf32>
    %275 = vector.broadcast %274 : vector<32x1xf32> to vector<32x16xf32>
    %276 = arith.subf %266, %275 : vector<32x16xf32>
    %277 = arith.mulf %276, %276 : vector<32x16xf32>
    %cst_241 = arith.constant dense<0.000000e+00> : vector<32xf32>
    %278 = vector.multi_reduction <add>, %277, %cst_241 [1] : vector<32x16xf32> to vector<32xf32>
    %279 = vector.shape_cast %278 : vector<32xf32> to vector<32x1xf32>
    %cst_242 = arith.constant 1.600000e+01 : f32
    %280 = vector.broadcast %cst_242 : f32 to vector<32x1xf32>
    %281 = arith.divf %279, %280 : vector<32x1xf32>
    %cst_243 = arith.constant 9.99999974E-6 : f32
    %282 = vector.broadcast %cst_243 : f32 to vector<32x1xf32>
    %283 = arith.addf %281, %282 : vector<32x1xf32>
    %284 = math.rsqrt %283 : vector<32x1xf32>
    %285 = vector.broadcast %284 : vector<32x1xf32> to vector<32x16xf32>
    %286 = arith.mulf %276, %285 : vector<32x16xf32>
    %287 = vector.broadcast %268 : vector<32x1xf32> to vector<32x16xf32>
    %288 = arith.mulf %286, %287 : vector<32x16xf32>
    %289 = vector.broadcast %270 : vector<32x1xf32> to vector<32x16xf32>
    %290 = arith.addf %288, %289 : vector<32x16xf32>
    %291 = arith.addf %290, %177 : vector<32x16xf32>
    %cst_244 = arith.constant 0.000000e+00 : f32
    %292 = vector.broadcast %cst_244 : f32 to vector<32x16xf32>
    %293 = arith.maximumf %291, %292 : vector<32x16xf32>
    %c1_245 = arith.constant 1 : index
    %c0_246 = arith.constant 0 : index
    %c0_247 = arith.constant 0 : index
    %c0_248 = arith.constant 0 : index
    %294 = vector.load %arg14[%c1_245, %c0_246, %c0_247, %c0_248] : memref<2x2x32x32xf32, #tpu.memory_space<vmem>>, vector<1x1x32x32xf32>
    %295 = vector.shape_cast %294 : vector<1x1x32x32xf32> to vector<32x32xf32>
    %cst_249 = arith.constant dense<0.000000e+00> : vector<32x16xf32>
    %296 = tpu.matmul %295, %293, %cst_249 {dimension_numbers = #tpu.dot_dimension_numbers<[1], [0], [0], [1], [0, 0, 1, 1], [], []>} : vector<32x32xf32>, vector<32x16xf32>, vector<32x16xf32> -> vector<32x16xf32>
    %c1_250 = arith.constant 1 : index
    %c0_251 = arith.constant 0 : index
    %c0_252 = arith.constant 0 : index
    %c0_253 = arith.constant 0 : index
    %297 = vector.load %arg16[%c1_250, %c0_251, %c0_252, %c0_253] : memref<2x3x32x1xf32, #tpu.memory_space<vmem>>, vector<1x1x32x1xf32>
    %298 = vector.shape_cast %297 : vector<1x1x32x1xf32> to vector<32x1xf32>
    %c1_254 = arith.constant 1 : index
    %c0_255 = arith.constant 0 : index
    %c0_256 = arith.constant 0 : index
    %c0_257 = arith.constant 0 : index
    %299 = vector.load %arg17[%c1_254, %c0_255, %c0_256, %c0_257] : memref<2x3x32x1xf32, #tpu.memory_space<vmem>>, vector<1x1x32x1xf32>
    %300 = vector.shape_cast %299 : vector<1x1x32x1xf32> to vector<32x1xf32>
    %cst_258 = arith.constant dense<0.000000e+00> : vector<32xf32>
    %301 = vector.multi_reduction <add>, %296, %cst_258 [1] : vector<32x16xf32> to vector<32xf32>
    %302 = vector.shape_cast %301 : vector<32xf32> to vector<32x1xf32>
    %cst_259 = arith.constant 1.600000e+01 : f32
    %303 = vector.broadcast %cst_259 : f32 to vector<32x1xf32>
    %304 = arith.divf %302, %303 : vector<32x1xf32>
    %305 = vector.broadcast %304 : vector<32x1xf32> to vector<32x16xf32>
    %306 = arith.subf %296, %305 : vector<32x16xf32>
    %307 = arith.mulf %306, %306 : vector<32x16xf32>
    %cst_260 = arith.constant dense<0.000000e+00> : vector<32xf32>
    %308 = vector.multi_reduction <add>, %307, %cst_260 [1] : vector<32x16xf32> to vector<32xf32>
    %309 = vector.shape_cast %308 : vector<32xf32> to vector<32x1xf32>
    %cst_261 = arith.constant 1.600000e+01 : f32
    %310 = vector.broadcast %cst_261 : f32 to vector<32x1xf32>
    %311 = arith.divf %309, %310 : vector<32x1xf32>
    %cst_262 = arith.constant 9.99999974E-6 : f32
    %312 = vector.broadcast %cst_262 : f32 to vector<32x1xf32>
    %313 = arith.addf %311, %312 : vector<32x1xf32>
    %314 = math.rsqrt %313 : vector<32x1xf32>
    %315 = vector.broadcast %314 : vector<32x1xf32> to vector<32x16xf32>
    %316 = arith.mulf %306, %315 : vector<32x16xf32>
    %317 = vector.broadcast %298 : vector<32x1xf32> to vector<32x16xf32>
    %318 = arith.mulf %316, %317 : vector<32x16xf32>
    %319 = vector.broadcast %300 : vector<32x1xf32> to vector<32x16xf32>
    %320 = arith.addf %318, %319 : vector<32x16xf32>
    %cst_263 = arith.constant 0.000000e+00 : f32
    %321 = vector.broadcast %cst_263 : f32 to vector<32x16xf32>
    %322 = arith.maximumf %320, %321 : vector<32x16xf32>
    %c1_264 = arith.constant 1 : index
    %c0_265 = arith.constant 0 : index
    %c0_266 = arith.constant 0 : index
    %323 = vector.load %arg15[%c1_264, %c0_265, %c0_266] : memref<2x32x288xf32, #tpu.memory_space<vmem>>, vector<1x32x288xf32>
    %324 = vector.shape_cast %323 : vector<1x32x288xf32> to vector<32x288xf32>
    %c0_267 = arith.constant 0 : index
    %c0_268 = arith.constant 0 : index
    %c0_269 = arith.constant 0 : index
    %325 = vector.load %arg13[%c0_267, %c0_268, %c0_269] : memref<9x16x16xf32, #tpu.memory_space<vmem>>, vector<1x16x16xf32>
    %326 = vector.shape_cast %325 : vector<1x16x16xf32> to vector<16x16xf32>
    %cst_270 = arith.constant dense<0.000000e+00> : vector<32x16xf32>
    %327 = tpu.matmul %322, %326, %cst_270 {dimension_numbers = #tpu.dot_dimension_numbers<[1], [0], [0], [1], [0, 0, 1, 1], [], []>} : vector<32x16xf32>, vector<16x16xf32>, vector<32x16xf32> -> vector<32x16xf32>
    %c1_271 = arith.constant 1 : index
    %c0_272 = arith.constant 0 : index
    %c0_273 = arith.constant 0 : index
    %328 = vector.load %arg13[%c1_271, %c0_272, %c0_273] : memref<9x16x16xf32, #tpu.memory_space<vmem>>, vector<1x16x16xf32>
    %329 = vector.shape_cast %328 : vector<1x16x16xf32> to vector<16x16xf32>
    %cst_274 = arith.constant dense<0.000000e+00> : vector<32x16xf32>
    %330 = tpu.matmul %322, %329, %cst_274 {dimension_numbers = #tpu.dot_dimension_numbers<[1], [0], [0], [1], [0, 0, 1, 1], [], []>} : vector<32x16xf32>, vector<16x16xf32>, vector<32x16xf32> -> vector<32x16xf32>
    %c2_275 = arith.constant 2 : index
    %c0_276 = arith.constant 0 : index
    %c0_277 = arith.constant 0 : index
    %331 = vector.load %arg13[%c2_275, %c0_276, %c0_277] : memref<9x16x16xf32, #tpu.memory_space<vmem>>, vector<1x16x16xf32>
    %332 = vector.shape_cast %331 : vector<1x16x16xf32> to vector<16x16xf32>
    %cst_278 = arith.constant dense<0.000000e+00> : vector<32x16xf32>
    %333 = tpu.matmul %322, %332, %cst_278 {dimension_numbers = #tpu.dot_dimension_numbers<[1], [0], [0], [1], [0, 0, 1, 1], [], []>} : vector<32x16xf32>, vector<16x16xf32>, vector<32x16xf32> -> vector<32x16xf32>
    %c3_279 = arith.constant 3 : index
    %c0_280 = arith.constant 0 : index
    %c0_281 = arith.constant 0 : index
    %334 = vector.load %arg13[%c3_279, %c0_280, %c0_281] : memref<9x16x16xf32, #tpu.memory_space<vmem>>, vector<1x16x16xf32>
    %335 = vector.shape_cast %334 : vector<1x16x16xf32> to vector<16x16xf32>
    %cst_282 = arith.constant dense<0.000000e+00> : vector<32x16xf32>
    %336 = tpu.matmul %322, %335, %cst_282 {dimension_numbers = #tpu.dot_dimension_numbers<[1], [0], [0], [1], [0, 0, 1, 1], [], []>} : vector<32x16xf32>, vector<16x16xf32>, vector<32x16xf32> -> vector<32x16xf32>
    %c4_283 = arith.constant 4 : index
    %c0_284 = arith.constant 0 : index
    %c0_285 = arith.constant 0 : index
    %337 = vector.load %arg13[%c4_283, %c0_284, %c0_285] : memref<9x16x16xf32, #tpu.memory_space<vmem>>, vector<1x16x16xf32>
    %338 = vector.shape_cast %337 : vector<1x16x16xf32> to vector<16x16xf32>
    %cst_286 = arith.constant dense<0.000000e+00> : vector<32x16xf32>
    %339 = tpu.matmul %322, %338, %cst_286 {dimension_numbers = #tpu.dot_dimension_numbers<[1], [0], [0], [1], [0, 0, 1, 1], [], []>} : vector<32x16xf32>, vector<16x16xf32>, vector<32x16xf32> -> vector<32x16xf32>
    %c5_287 = arith.constant 5 : index
    %c0_288 = arith.constant 0 : index
    %c0_289 = arith.constant 0 : index
    %340 = vector.load %arg13[%c5_287, %c0_288, %c0_289] : memref<9x16x16xf32, #tpu.memory_space<vmem>>, vector<1x16x16xf32>
    %341 = vector.shape_cast %340 : vector<1x16x16xf32> to vector<16x16xf32>
    %cst_290 = arith.constant dense<0.000000e+00> : vector<32x16xf32>
    %342 = tpu.matmul %322, %341, %cst_290 {dimension_numbers = #tpu.dot_dimension_numbers<[1], [0], [0], [1], [0, 0, 1, 1], [], []>} : vector<32x16xf32>, vector<16x16xf32>, vector<32x16xf32> -> vector<32x16xf32>
    %c6_291 = arith.constant 6 : index
    %c0_292 = arith.constant 0 : index
    %c0_293 = arith.constant 0 : index
    %343 = vector.load %arg13[%c6_291, %c0_292, %c0_293] : memref<9x16x16xf32, #tpu.memory_space<vmem>>, vector<1x16x16xf32>
    %344 = vector.shape_cast %343 : vector<1x16x16xf32> to vector<16x16xf32>
    %cst_294 = arith.constant dense<0.000000e+00> : vector<32x16xf32>
    %345 = tpu.matmul %322, %344, %cst_294 {dimension_numbers = #tpu.dot_dimension_numbers<[1], [0], [0], [1], [0, 0, 1, 1], [], []>} : vector<32x16xf32>, vector<16x16xf32>, vector<32x16xf32> -> vector<32x16xf32>
    %c7_295 = arith.constant 7 : index
    %c0_296 = arith.constant 0 : index
    %c0_297 = arith.constant 0 : index
    %346 = vector.load %arg13[%c7_295, %c0_296, %c0_297] : memref<9x16x16xf32, #tpu.memory_space<vmem>>, vector<1x16x16xf32>
    %347 = vector.shape_cast %346 : vector<1x16x16xf32> to vector<16x16xf32>
    %cst_298 = arith.constant dense<0.000000e+00> : vector<32x16xf32>
    %348 = tpu.matmul %322, %347, %cst_298 {dimension_numbers = #tpu.dot_dimension_numbers<[1], [0], [0], [1], [0, 0, 1, 1], [], []>} : vector<32x16xf32>, vector<16x16xf32>, vector<32x16xf32> -> vector<32x16xf32>
    %c8_299 = arith.constant 8 : index
    %c0_300 = arith.constant 0 : index
    %c0_301 = arith.constant 0 : index
    %349 = vector.load %arg13[%c8_299, %c0_300, %c0_301] : memref<9x16x16xf32, #tpu.memory_space<vmem>>, vector<1x16x16xf32>
    %350 = vector.shape_cast %349 : vector<1x16x16xf32> to vector<16x16xf32>
    %cst_302 = arith.constant dense<0.000000e+00> : vector<32x16xf32>
    %351 = tpu.matmul %322, %350, %cst_302 {dimension_numbers = #tpu.dot_dimension_numbers<[1], [0], [0], [1], [0, 0, 1, 1], [], []>} : vector<32x16xf32>, vector<16x16xf32>, vector<32x16xf32> -> vector<32x16xf32>
    %352 = tpu.concatenate %327, %330, %333, %336, %339, %342, %345, %348, %351 in 0 : vector<32x16xf32>, vector<32x16xf32>, vector<32x16xf32>, vector<32x16xf32>, vector<32x16xf32>, vector<32x16xf32>, vector<32x16xf32>, vector<32x16xf32>, vector<32x16xf32> -> vector<288x16xf32>
    %cst_303 = arith.constant dense<0.000000e+00> : vector<32x16xf32>
    %353 = tpu.matmul %324, %352, %cst_303 {dimension_numbers = #tpu.dot_dimension_numbers<[1], [0], [0], [1], [0, 0, 1, 1], [], []>} : vector<32x288xf32>, vector<288x16xf32>, vector<32x16xf32> -> vector<32x16xf32>
    %c1_304 = arith.constant 1 : index
    %c1_305 = arith.constant 1 : index
    %c0_306 = arith.constant 0 : index
    %c0_307 = arith.constant 0 : index
    %354 = vector.load %arg16[%c1_304, %c1_305, %c0_306, %c0_307] : memref<2x3x32x1xf32, #tpu.memory_space<vmem>>, vector<1x1x32x1xf32>
    %355 = vector.shape_cast %354 : vector<1x1x32x1xf32> to vector<32x1xf32>
    %c1_308 = arith.constant 1 : index
    %c1_309 = arith.constant 1 : index
    %c0_310 = arith.constant 0 : index
    %c0_311 = arith.constant 0 : index
    %356 = vector.load %arg17[%c1_308, %c1_309, %c0_310, %c0_311] : memref<2x3x32x1xf32, #tpu.memory_space<vmem>>, vector<1x1x32x1xf32>
    %357 = vector.shape_cast %356 : vector<1x1x32x1xf32> to vector<32x1xf32>
    %cst_312 = arith.constant dense<0.000000e+00> : vector<32xf32>
    %358 = vector.multi_reduction <add>, %353, %cst_312 [1] : vector<32x16xf32> to vector<32xf32>
    %359 = vector.shape_cast %358 : vector<32xf32> to vector<32x1xf32>
    %cst_313 = arith.constant 1.600000e+01 : f32
    %360 = vector.broadcast %cst_313 : f32 to vector<32x1xf32>
    %361 = arith.divf %359, %360 : vector<32x1xf32>
    %362 = vector.broadcast %361 : vector<32x1xf32> to vector<32x16xf32>
    %363 = arith.subf %353, %362 : vector<32x16xf32>
    %364 = arith.mulf %363, %363 : vector<32x16xf32>
    %cst_314 = arith.constant dense<0.000000e+00> : vector<32xf32>
    %365 = vector.multi_reduction <add>, %364, %cst_314 [1] : vector<32x16xf32> to vector<32xf32>
    %366 = vector.shape_cast %365 : vector<32xf32> to vector<32x1xf32>
    %cst_315 = arith.constant 1.600000e+01 : f32
    %367 = vector.broadcast %cst_315 : f32 to vector<32x1xf32>
    %368 = arith.divf %366, %367 : vector<32x1xf32>
    %cst_316 = arith.constant 9.99999974E-6 : f32
    %369 = vector.broadcast %cst_316 : f32 to vector<32x1xf32>
    %370 = arith.addf %368, %369 : vector<32x1xf32>
    %371 = math.rsqrt %370 : vector<32x1xf32>
    %372 = vector.broadcast %371 : vector<32x1xf32> to vector<32x16xf32>
    %373 = arith.mulf %363, %372 : vector<32x16xf32>
    %374 = vector.broadcast %355 : vector<32x1xf32> to vector<32x16xf32>
    %375 = arith.mulf %373, %374 : vector<32x16xf32>
    %376 = vector.broadcast %357 : vector<32x1xf32> to vector<32x16xf32>
    %377 = arith.addf %375, %376 : vector<32x16xf32>
    %cst_317 = arith.constant 0.000000e+00 : f32
    %378 = vector.broadcast %cst_317 : f32 to vector<32x16xf32>
    %379 = arith.maximumf %377, %378 : vector<32x16xf32>
    %c1_318 = arith.constant 1 : index
    %c1_319 = arith.constant 1 : index
    %c0_320 = arith.constant 0 : index
    %c0_321 = arith.constant 0 : index
    %380 = vector.load %arg14[%c1_318, %c1_319, %c0_320, %c0_321] : memref<2x2x32x32xf32, #tpu.memory_space<vmem>>, vector<1x1x32x32xf32>
    %381 = vector.shape_cast %380 : vector<1x1x32x32xf32> to vector<32x32xf32>
    %cst_322 = arith.constant dense<0.000000e+00> : vector<32x16xf32>
    %382 = tpu.matmul %381, %379, %cst_322 {dimension_numbers = #tpu.dot_dimension_numbers<[1], [0], [0], [1], [0, 0, 1, 1], [], []>} : vector<32x32xf32>, vector<32x16xf32>, vector<32x16xf32> -> vector<32x16xf32>
    %c1_323 = arith.constant 1 : index
    %c2_324 = arith.constant 2 : index
    %c0_325 = arith.constant 0 : index
    %c0_326 = arith.constant 0 : index
    %383 = vector.load %arg16[%c1_323, %c2_324, %c0_325, %c0_326] : memref<2x3x32x1xf32, #tpu.memory_space<vmem>>, vector<1x1x32x1xf32>
    %384 = vector.shape_cast %383 : vector<1x1x32x1xf32> to vector<32x1xf32>
    %c1_327 = arith.constant 1 : index
    %c2_328 = arith.constant 2 : index
    %c0_329 = arith.constant 0 : index
    %c0_330 = arith.constant 0 : index
    %385 = vector.load %arg17[%c1_327, %c2_328, %c0_329, %c0_330] : memref<2x3x32x1xf32, #tpu.memory_space<vmem>>, vector<1x1x32x1xf32>
    %386 = vector.shape_cast %385 : vector<1x1x32x1xf32> to vector<32x1xf32>
    %cst_331 = arith.constant dense<0.000000e+00> : vector<32xf32>
    %387 = vector.multi_reduction <add>, %382, %cst_331 [1] : vector<32x16xf32> to vector<32xf32>
    %388 = vector.shape_cast %387 : vector<32xf32> to vector<32x1xf32>
    %cst_332 = arith.constant 1.600000e+01 : f32
    %389 = vector.broadcast %cst_332 : f32 to vector<32x1xf32>
    %390 = arith.divf %388, %389 : vector<32x1xf32>
    %391 = vector.broadcast %390 : vector<32x1xf32> to vector<32x16xf32>
    %392 = arith.subf %382, %391 : vector<32x16xf32>
    %393 = arith.mulf %392, %392 : vector<32x16xf32>
    %cst_333 = arith.constant dense<0.000000e+00> : vector<32xf32>
    %394 = vector.multi_reduction <add>, %393, %cst_333 [1] : vector<32x16xf32> to vector<32xf32>
    %395 = vector.shape_cast %394 : vector<32xf32> to vector<32x1xf32>
    %cst_334 = arith.constant 1.600000e+01 : f32
    %396 = vector.broadcast %cst_334 : f32 to vector<32x1xf32>
    %397 = arith.divf %395, %396 : vector<32x1xf32>
    %cst_335 = arith.constant 9.99999974E-6 : f32
    %398 = vector.broadcast %cst_335 : f32 to vector<32x1xf32>
    %399 = arith.addf %397, %398 : vector<32x1xf32>
    %400 = math.rsqrt %399 : vector<32x1xf32>
    %401 = vector.broadcast %400 : vector<32x1xf32> to vector<32x16xf32>
    %402 = arith.mulf %392, %401 : vector<32x16xf32>
    %403 = vector.broadcast %384 : vector<32x1xf32> to vector<32x16xf32>
    %404 = arith.mulf %402, %403 : vector<32x16xf32>
    %405 = vector.broadcast %386 : vector<32x1xf32> to vector<32x16xf32>
    %406 = arith.addf %404, %405 : vector<32x16xf32>
    %407 = arith.addf %406, %293 : vector<32x16xf32>
    %cst_336 = arith.constant 0.000000e+00 : f32
    %408 = vector.broadcast %cst_336 : f32 to vector<32x16xf32>
    %409 = arith.maximumf %407, %408 : vector<32x16xf32>
    %c0_337 = arith.constant 0 : index
    %c0_338 = arith.constant 0 : index
    %410 = vector.load %arg19[%c0_337, %c0_338] : memref<16x512xf32, #tpu.memory_space<vmem>>, vector<16x512xf32>
    %c0_339 = arith.constant 0 : index
    %c0_340 = arith.constant 0 : index
    %c0_341 = arith.constant 0 : index
    %411 = vector.load %arg18[%c0_339, %c0_340, %c0_341] : memref<16x16x64xf32, #tpu.memory_space<vmem>>, vector<1x16x64xf32>
    %412 = vector.shape_cast %411 : vector<1x16x64xf32> to vector<16x64xf32>
    %cst_342 = arith.constant dense<0.000000e+00> : vector<32x64xf32>
    %413 = tpu.matmul %409, %412, %cst_342 {dimension_numbers = #tpu.dot_dimension_numbers<[1], [0], [0], [1], [0, 0, 1, 1], [], []>} : vector<32x16xf32>, vector<16x64xf32>, vector<32x64xf32> -> vector<32x64xf32>
    %c1_343 = arith.constant 1 : index
    %c0_344 = arith.constant 0 : index
    %c0_345 = arith.constant 0 : index
    %414 = vector.load %arg18[%c1_343, %c0_344, %c0_345] : memref<16x16x64xf32, #tpu.memory_space<vmem>>, vector<1x16x64xf32>
    %415 = vector.shape_cast %414 : vector<1x16x64xf32> to vector<16x64xf32>
    %cst_346 = arith.constant dense<0.000000e+00> : vector<32x64xf32>
    %416 = tpu.matmul %409, %415, %cst_346 {dimension_numbers = #tpu.dot_dimension_numbers<[1], [0], [0], [1], [0, 0, 1, 1], [], []>} : vector<32x16xf32>, vector<16x64xf32>, vector<32x64xf32> -> vector<32x64xf32>
    %c2_347 = arith.constant 2 : index
    %c0_348 = arith.constant 0 : index
    %c0_349 = arith.constant 0 : index
    %417 = vector.load %arg18[%c2_347, %c0_348, %c0_349] : memref<16x16x64xf32, #tpu.memory_space<vmem>>, vector<1x16x64xf32>
    %418 = vector.shape_cast %417 : vector<1x16x64xf32> to vector<16x64xf32>
    %cst_350 = arith.constant dense<0.000000e+00> : vector<32x64xf32>
    %419 = tpu.matmul %409, %418, %cst_350 {dimension_numbers = #tpu.dot_dimension_numbers<[1], [0], [0], [1], [0, 0, 1, 1], [], []>} : vector<32x16xf32>, vector<16x64xf32>, vector<32x64xf32> -> vector<32x64xf32>
    %c3_351 = arith.constant 3 : index
    %c0_352 = arith.constant 0 : index
    %c0_353 = arith.constant 0 : index
    %420 = vector.load %arg18[%c3_351, %c0_352, %c0_353] : memref<16x16x64xf32, #tpu.memory_space<vmem>>, vector<1x16x64xf32>
    %421 = vector.shape_cast %420 : vector<1x16x64xf32> to vector<16x64xf32>
    %cst_354 = arith.constant dense<0.000000e+00> : vector<32x64xf32>
    %422 = tpu.matmul %409, %421, %cst_354 {dimension_numbers = #tpu.dot_dimension_numbers<[1], [0], [0], [1], [0, 0, 1, 1], [], []>} : vector<32x16xf32>, vector<16x64xf32>, vector<32x64xf32> -> vector<32x64xf32>
    %c4_355 = arith.constant 4 : index
    %c0_356 = arith.constant 0 : index
    %c0_357 = arith.constant 0 : index
    %423 = vector.load %arg18[%c4_355, %c0_356, %c0_357] : memref<16x16x64xf32, #tpu.memory_space<vmem>>, vector<1x16x64xf32>
    %424 = vector.shape_cast %423 : vector<1x16x64xf32> to vector<16x64xf32>
    %cst_358 = arith.constant dense<0.000000e+00> : vector<32x64xf32>
    %425 = tpu.matmul %409, %424, %cst_358 {dimension_numbers = #tpu.dot_dimension_numbers<[1], [0], [0], [1], [0, 0, 1, 1], [], []>} : vector<32x16xf32>, vector<16x64xf32>, vector<32x64xf32> -> vector<32x64xf32>
    %c5_359 = arith.constant 5 : index
    %c0_360 = arith.constant 0 : index
    %c0_361 = arith.constant 0 : index
    %426 = vector.load %arg18[%c5_359, %c0_360, %c0_361] : memref<16x16x64xf32, #tpu.memory_space<vmem>>, vector<1x16x64xf32>
    %427 = vector.shape_cast %426 : vector<1x16x64xf32> to vector<16x64xf32>
    %cst_362 = arith.constant dense<0.000000e+00> : vector<32x64xf32>
    %428 = tpu.matmul %409, %427, %cst_362 {dimension_numbers = #tpu.dot_dimension_numbers<[1], [0], [0], [1], [0, 0, 1, 1], [], []>} : vector<32x16xf32>, vector<16x64xf32>, vector<32x64xf32> -> vector<32x64xf32>
    %c6_363 = arith.constant 6 : index
    %c0_364 = arith.constant 0 : index
    %c0_365 = arith.constant 0 : index
    %429 = vector.load %arg18[%c6_363, %c0_364, %c0_365] : memref<16x16x64xf32, #tpu.memory_space<vmem>>, vector<1x16x64xf32>
    %430 = vector.shape_cast %429 : vector<1x16x64xf32> to vector<16x64xf32>
    %cst_366 = arith.constant dense<0.000000e+00> : vector<32x64xf32>
    %431 = tpu.matmul %409, %430, %cst_366 {dimension_numbers = #tpu.dot_dimension_numbers<[1], [0], [0], [1], [0, 0, 1, 1], [], []>} : vector<32x16xf32>, vector<16x64xf32>, vector<32x64xf32> -> vector<32x64xf32>
    %c7_367 = arith.constant 7 : index
    %c0_368 = arith.constant 0 : index
    %c0_369 = arith.constant 0 : index
    %432 = vector.load %arg18[%c7_367, %c0_368, %c0_369] : memref<16x16x64xf32, #tpu.memory_space<vmem>>, vector<1x16x64xf32>
    %433 = vector.shape_cast %432 : vector<1x16x64xf32> to vector<16x64xf32>
    %cst_370 = arith.constant dense<0.000000e+00> : vector<32x64xf32>
    %434 = tpu.matmul %409, %433, %cst_370 {dimension_numbers = #tpu.dot_dimension_numbers<[1], [0], [0], [1], [0, 0, 1, 1], [], []>} : vector<32x16xf32>, vector<16x64xf32>, vector<32x64xf32> -> vector<32x64xf32>
    %c8_371 = arith.constant 8 : index
    %c0_372 = arith.constant 0 : index
    %c0_373 = arith.constant 0 : index
    %435 = vector.load %arg18[%c8_371, %c0_372, %c0_373] : memref<16x16x64xf32, #tpu.memory_space<vmem>>, vector<1x16x64xf32>
    %436 = vector.shape_cast %435 : vector<1x16x64xf32> to vector<16x64xf32>
    %cst_374 = arith.constant dense<0.000000e+00> : vector<32x64xf32>
    %437 = tpu.matmul %409, %436, %cst_374 {dimension_numbers = #tpu.dot_dimension_numbers<[1], [0], [0], [1], [0, 0, 1, 1], [], []>} : vector<32x16xf32>, vector<16x64xf32>, vector<32x64xf32> -> vector<32x64xf32>
    %c9_375 = arith.constant 9 : index
    %c0_376 = arith.constant 0 : index
    %c0_377 = arith.constant 0 : index
    %438 = vector.load %arg18[%c9_375, %c0_376, %c0_377] : memref<16x16x64xf32, #tpu.memory_space<vmem>>, vector<1x16x64xf32>
    %439 = vector.shape_cast %438 : vector<1x16x64xf32> to vector<16x64xf32>
    %cst_378 = arith.constant dense<0.000000e+00> : vector<32x64xf32>
    %440 = tpu.matmul %409, %439, %cst_378 {dimension_numbers = #tpu.dot_dimension_numbers<[1], [0], [0], [1], [0, 0, 1, 1], [], []>} : vector<32x16xf32>, vector<16x64xf32>, vector<32x64xf32> -> vector<32x64xf32>
    %c10_379 = arith.constant 10 : index
    %c0_380 = arith.constant 0 : index
    %c0_381 = arith.constant 0 : index
    %441 = vector.load %arg18[%c10_379, %c0_380, %c0_381] : memref<16x16x64xf32, #tpu.memory_space<vmem>>, vector<1x16x64xf32>
    %442 = vector.shape_cast %441 : vector<1x16x64xf32> to vector<16x64xf32>
    %cst_382 = arith.constant dense<0.000000e+00> : vector<32x64xf32>
    %443 = tpu.matmul %409, %442, %cst_382 {dimension_numbers = #tpu.dot_dimension_numbers<[1], [0], [0], [1], [0, 0, 1, 1], [], []>} : vector<32x16xf32>, vector<16x64xf32>, vector<32x64xf32> -> vector<32x64xf32>
    %c11_383 = arith.constant 11 : index
    %c0_384 = arith.constant 0 : index
    %c0_385 = arith.constant 0 : index
    %444 = vector.load %arg18[%c11_383, %c0_384, %c0_385] : memref<16x16x64xf32, #tpu.memory_space<vmem>>, vector<1x16x64xf32>
    %445 = vector.shape_cast %444 : vector<1x16x64xf32> to vector<16x64xf32>
    %cst_386 = arith.constant dense<0.000000e+00> : vector<32x64xf32>
    %446 = tpu.matmul %409, %445, %cst_386 {dimension_numbers = #tpu.dot_dimension_numbers<[1], [0], [0], [1], [0, 0, 1, 1], [], []>} : vector<32x16xf32>, vector<16x64xf32>, vector<32x64xf32> -> vector<32x64xf32>
    %c12_387 = arith.constant 12 : index
    %c0_388 = arith.constant 0 : index
    %c0_389 = arith.constant 0 : index
    %447 = vector.load %arg18[%c12_387, %c0_388, %c0_389] : memref<16x16x64xf32, #tpu.memory_space<vmem>>, vector<1x16x64xf32>
    %448 = vector.shape_cast %447 : vector<1x16x64xf32> to vector<16x64xf32>
    %cst_390 = arith.constant dense<0.000000e+00> : vector<32x64xf32>
    %449 = tpu.matmul %409, %448, %cst_390 {dimension_numbers = #tpu.dot_dimension_numbers<[1], [0], [0], [1], [0, 0, 1, 1], [], []>} : vector<32x16xf32>, vector<16x64xf32>, vector<32x64xf32> -> vector<32x64xf32>
    %c13_391 = arith.constant 13 : index
    %c0_392 = arith.constant 0 : index
    %c0_393 = arith.constant 0 : index
    %450 = vector.load %arg18[%c13_391, %c0_392, %c0_393] : memref<16x16x64xf32, #tpu.memory_space<vmem>>, vector<1x16x64xf32>
    %451 = vector.shape_cast %450 : vector<1x16x64xf32> to vector<16x64xf32>
    %cst_394 = arith.constant dense<0.000000e+00> : vector<32x64xf32>
    %452 = tpu.matmul %409, %451, %cst_394 {dimension_numbers = #tpu.dot_dimension_numbers<[1], [0], [0], [1], [0, 0, 1, 1], [], []>} : vector<32x16xf32>, vector<16x64xf32>, vector<32x64xf32> -> vector<32x64xf32>
    %c14_395 = arith.constant 14 : index
    %c0_396 = arith.constant 0 : index
    %c0_397 = arith.constant 0 : index
    %453 = vector.load %arg18[%c14_395, %c0_396, %c0_397] : memref<16x16x64xf32, #tpu.memory_space<vmem>>, vector<1x16x64xf32>
    %454 = vector.shape_cast %453 : vector<1x16x64xf32> to vector<16x64xf32>
    %cst_398 = arith.constant dense<0.000000e+00> : vector<32x64xf32>
    %455 = tpu.matmul %409, %454, %cst_398 {dimension_numbers = #tpu.dot_dimension_numbers<[1], [0], [0], [1], [0, 0, 1, 1], [], []>} : vector<32x16xf32>, vector<16x64xf32>, vector<32x64xf32> -> vector<32x64xf32>
    %c15_399 = arith.constant 15 : index
    %c0_400 = arith.constant 0 : index
    %c0_401 = arith.constant 0 : index
    %456 = vector.load %arg18[%c15_399, %c0_400, %c0_401] : memref<16x16x64xf32, #tpu.memory_space<vmem>>, vector<1x16x64xf32>
    %457 = vector.shape_cast %456 : vector<1x16x64xf32> to vector<16x64xf32>
    %cst_402 = arith.constant dense<0.000000e+00> : vector<32x64xf32>
    %458 = tpu.matmul %409, %457, %cst_402 {dimension_numbers = #tpu.dot_dimension_numbers<[1], [0], [0], [1], [0, 0, 1, 1], [], []>} : vector<32x16xf32>, vector<16x64xf32>, vector<32x64xf32> -> vector<32x64xf32>
    %459 = tpu.concatenate %413, %416, %419, %422, %425, %428, %431, %434, %437, %440, %443, %446, %449, %452, %455, %458 in 0 : vector<32x64xf32>, vector<32x64xf32>, vector<32x64xf32>, vector<32x64xf32>, vector<32x64xf32>, vector<32x64xf32>, vector<32x64xf32>, vector<32x64xf32>, vector<32x64xf32>, vector<32x64xf32>, vector<32x64xf32>, vector<32x64xf32>, vector<32x64xf32>, vector<32x64xf32>, vector<32x64xf32>, vector<32x64xf32> -> vector<512x64xf32>
    %cst_403 = arith.constant dense<0.000000e+00> : vector<16x64xf32>
    %460 = tpu.matmul %410, %459, %cst_403 {dimension_numbers = #tpu.dot_dimension_numbers<[1], [0], [0], [1], [0, 0, 1, 1], [], []>} : vector<16x512xf32>, vector<512x64xf32>, vector<16x64xf32> -> vector<16x64xf32>
    %c0_404 = arith.constant 0 : index
    %c0_405 = arith.constant 0 : index
    %461 = vector.load %arg20[%c0_404, %c0_405] : memref<16x1xf32, #tpu.memory_space<vmem>>, vector<16x1xf32>
    %c0_406 = arith.constant 0 : index
    %c0_407 = arith.constant 0 : index
    %462 = vector.load %arg21[%c0_406, %c0_407] : memref<16x1xf32, #tpu.memory_space<vmem>>, vector<16x1xf32>
    %cst_408 = arith.constant dense<0.000000e+00> : vector<16xf32>
    %463 = vector.multi_reduction <add>, %460, %cst_408 [1] : vector<16x64xf32> to vector<16xf32>
    %464 = vector.shape_cast %463 : vector<16xf32> to vector<16x1xf32>
    %cst_409 = arith.constant 6.400000e+01 : f32
    %465 = vector.broadcast %cst_409 : f32 to vector<16x1xf32>
    %466 = arith.divf %464, %465 : vector<16x1xf32>
    %467 = vector.broadcast %466 : vector<16x1xf32> to vector<16x64xf32>
    %468 = arith.subf %460, %467 : vector<16x64xf32>
    %469 = arith.mulf %468, %468 : vector<16x64xf32>
    %cst_410 = arith.constant dense<0.000000e+00> : vector<16xf32>
    %470 = vector.multi_reduction <add>, %469, %cst_410 [1] : vector<16x64xf32> to vector<16xf32>
    %471 = vector.shape_cast %470 : vector<16xf32> to vector<16x1xf32>
    %cst_411 = arith.constant 6.400000e+01 : f32
    %472 = vector.broadcast %cst_411 : f32 to vector<16x1xf32>
    %473 = arith.divf %471, %472 : vector<16x1xf32>
    %cst_412 = arith.constant 9.99999974E-6 : f32
    %474 = vector.broadcast %cst_412 : f32 to vector<16x1xf32>
    %475 = arith.addf %473, %474 : vector<16x1xf32>
    %476 = math.rsqrt %475 : vector<16x1xf32>
    %477 = vector.broadcast %476 : vector<16x1xf32> to vector<16x64xf32>
    %478 = arith.mulf %468, %477 : vector<16x64xf32>
    %479 = vector.broadcast %461 : vector<16x1xf32> to vector<16x64xf32>
    %480 = arith.mulf %478, %479 : vector<16x64xf32>
    %481 = vector.broadcast %462 : vector<16x1xf32> to vector<16x64xf32>
    %482 = arith.addf %480, %481 : vector<16x64xf32>
    %cst_413 = arith.constant 0.000000e+00 : f32
    %483 = vector.broadcast %cst_413 : f32 to vector<16x64xf32>
    %484 = arith.maximumf %482, %483 : vector<16x64xf32>
    %c0_414 = arith.constant 0 : index
    %c0_415 = arith.constant 0 : index
    %485 = vector.load %arg23[%c0_414, %c0_415] : memref<8x256xf32, #tpu.memory_space<vmem>>, vector<8x256xf32>
    %c0_416 = arith.constant 0 : index
    %c0_417 = arith.constant 0 : index
    %c0_418 = arith.constant 0 : index
    %486 = vector.load %arg22[%c0_416, %c0_417, %c0_418] : memref<16x64x256xf32, #tpu.memory_space<vmem>>, vector<1x64x256xf32>
    %487 = vector.shape_cast %486 : vector<1x64x256xf32> to vector<64x256xf32>
    %cst_419 = arith.constant dense<0.000000e+00> : vector<16x256xf32>
    %488 = tpu.matmul %484, %487, %cst_419 {dimension_numbers = #tpu.dot_dimension_numbers<[1], [0], [0], [1], [0, 0, 1, 1], [], []>} : vector<16x64xf32>, vector<64x256xf32>, vector<16x256xf32> -> vector<16x256xf32>
    %c1_420 = arith.constant 1 : index
    %c0_421 = arith.constant 0 : index
    %c0_422 = arith.constant 0 : index
    %489 = vector.load %arg22[%c1_420, %c0_421, %c0_422] : memref<16x64x256xf32, #tpu.memory_space<vmem>>, vector<1x64x256xf32>
    %490 = vector.shape_cast %489 : vector<1x64x256xf32> to vector<64x256xf32>
    %cst_423 = arith.constant dense<0.000000e+00> : vector<16x256xf32>
    %491 = tpu.matmul %484, %490, %cst_423 {dimension_numbers = #tpu.dot_dimension_numbers<[1], [0], [0], [1], [0, 0, 1, 1], [], []>} : vector<16x64xf32>, vector<64x256xf32>, vector<16x256xf32> -> vector<16x256xf32>
    %c2_424 = arith.constant 2 : index
    %c0_425 = arith.constant 0 : index
    %c0_426 = arith.constant 0 : index
    %492 = vector.load %arg22[%c2_424, %c0_425, %c0_426] : memref<16x64x256xf32, #tpu.memory_space<vmem>>, vector<1x64x256xf32>
    %493 = vector.shape_cast %492 : vector<1x64x256xf32> to vector<64x256xf32>
    %cst_427 = arith.constant dense<0.000000e+00> : vector<16x256xf32>
    %494 = tpu.matmul %484, %493, %cst_427 {dimension_numbers = #tpu.dot_dimension_numbers<[1], [0], [0], [1], [0, 0, 1, 1], [], []>} : vector<16x64xf32>, vector<64x256xf32>, vector<16x256xf32> -> vector<16x256xf32>
    %c3_428 = arith.constant 3 : index
    %c0_429 = arith.constant 0 : index
    %c0_430 = arith.constant 0 : index
    %495 = vector.load %arg22[%c3_428, %c0_429, %c0_430] : memref<16x64x256xf32, #tpu.memory_space<vmem>>, vector<1x64x256xf32>
    %496 = vector.shape_cast %495 : vector<1x64x256xf32> to vector<64x256xf32>
    %cst_431 = arith.constant dense<0.000000e+00> : vector<16x256xf32>
    %497 = tpu.matmul %484, %496, %cst_431 {dimension_numbers = #tpu.dot_dimension_numbers<[1], [0], [0], [1], [0, 0, 1, 1], [], []>} : vector<16x64xf32>, vector<64x256xf32>, vector<16x256xf32> -> vector<16x256xf32>
    %c4_432 = arith.constant 4 : index
    %c0_433 = arith.constant 0 : index
    %c0_434 = arith.constant 0 : index
    %498 = vector.load %arg22[%c4_432, %c0_433, %c0_434] : memref<16x64x256xf32, #tpu.memory_space<vmem>>, vector<1x64x256xf32>
    %499 = vector.shape_cast %498 : vector<1x64x256xf32> to vector<64x256xf32>
    %cst_435 = arith.constant dense<0.000000e+00> : vector<16x256xf32>
    %500 = tpu.matmul %484, %499, %cst_435 {dimension_numbers = #tpu.dot_dimension_numbers<[1], [0], [0], [1], [0, 0, 1, 1], [], []>} : vector<16x64xf32>, vector<64x256xf32>, vector<16x256xf32> -> vector<16x256xf32>
    %c5_436 = arith.constant 5 : index
    %c0_437 = arith.constant 0 : index
    %c0_438 = arith.constant 0 : index
    %501 = vector.load %arg22[%c5_436, %c0_437, %c0_438] : memref<16x64x256xf32, #tpu.memory_space<vmem>>, vector<1x64x256xf32>
    %502 = vector.shape_cast %501 : vector<1x64x256xf32> to vector<64x256xf32>
    %cst_439 = arith.constant dense<0.000000e+00> : vector<16x256xf32>
    %503 = tpu.matmul %484, %502, %cst_439 {dimension_numbers = #tpu.dot_dimension_numbers<[1], [0], [0], [1], [0, 0, 1, 1], [], []>} : vector<16x64xf32>, vector<64x256xf32>, vector<16x256xf32> -> vector<16x256xf32>
    %c6_440 = arith.constant 6 : index
    %c0_441 = arith.constant 0 : index
    %c0_442 = arith.constant 0 : index
    %504 = vector.load %arg22[%c6_440, %c0_441, %c0_442] : memref<16x64x256xf32, #tpu.memory_space<vmem>>, vector<1x64x256xf32>
    %505 = vector.shape_cast %504 : vector<1x64x256xf32> to vector<64x256xf32>
    %cst_443 = arith.constant dense<0.000000e+00> : vector<16x256xf32>
    %506 = tpu.matmul %484, %505, %cst_443 {dimension_numbers = #tpu.dot_dimension_numbers<[1], [0], [0], [1], [0, 0, 1, 1], [], []>} : vector<16x64xf32>, vector<64x256xf32>, vector<16x256xf32> -> vector<16x256xf32>
    %c7_444 = arith.constant 7 : index
    %c0_445 = arith.constant 0 : index
    %c0_446 = arith.constant 0 : index
    %507 = vector.load %arg22[%c7_444, %c0_445, %c0_446] : memref<16x64x256xf32, #tpu.memory_space<vmem>>, vector<1x64x256xf32>
    %508 = vector.shape_cast %507 : vector<1x64x256xf32> to vector<64x256xf32>
    %cst_447 = arith.constant dense<0.000000e+00> : vector<16x256xf32>
    %509 = tpu.matmul %484, %508, %cst_447 {dimension_numbers = #tpu.dot_dimension_numbers<[1], [0], [0], [1], [0, 0, 1, 1], [], []>} : vector<16x64xf32>, vector<64x256xf32>, vector<16x256xf32> -> vector<16x256xf32>
    %c8_448 = arith.constant 8 : index
    %c0_449 = arith.constant 0 : index
    %c0_450 = arith.constant 0 : index
    %510 = vector.load %arg22[%c8_448, %c0_449, %c0_450] : memref<16x64x256xf32, #tpu.memory_space<vmem>>, vector<1x64x256xf32>
    %511 = vector.shape_cast %510 : vector<1x64x256xf32> to vector<64x256xf32>
    %cst_451 = arith.constant dense<0.000000e+00> : vector<16x256xf32>
    %512 = tpu.matmul %484, %511, %cst_451 {dimension_numbers = #tpu.dot_dimension_numbers<[1], [0], [0], [1], [0, 0, 1, 1], [], []>} : vector<16x64xf32>, vector<64x256xf32>, vector<16x256xf32> -> vector<16x256xf32>
    %c9_452 = arith.constant 9 : index
    %c0_453 = arith.constant 0 : index
    %c0_454 = arith.constant 0 : index
    %513 = vector.load %arg22[%c9_452, %c0_453, %c0_454] : memref<16x64x256xf32, #tpu.memory_space<vmem>>, vector<1x64x256xf32>
    %514 = vector.shape_cast %513 : vector<1x64x256xf32> to vector<64x256xf32>
    %cst_455 = arith.constant dense<0.000000e+00> : vector<16x256xf32>
    %515 = tpu.matmul %484, %514, %cst_455 {dimension_numbers = #tpu.dot_dimension_numbers<[1], [0], [0], [1], [0, 0, 1, 1], [], []>} : vector<16x64xf32>, vector<64x256xf32>, vector<16x256xf32> -> vector<16x256xf32>
    %c10_456 = arith.constant 10 : index
    %c0_457 = arith.constant 0 : index
    %c0_458 = arith.constant 0 : index
    %516 = vector.load %arg22[%c10_456, %c0_457, %c0_458] : memref<16x64x256xf32, #tpu.memory_space<vmem>>, vector<1x64x256xf32>
    %517 = vector.shape_cast %516 : vector<1x64x256xf32> to vector<64x256xf32>
    %cst_459 = arith.constant dense<0.000000e+00> : vector<16x256xf32>
    %518 = tpu.matmul %484, %517, %cst_459 {dimension_numbers = #tpu.dot_dimension_numbers<[1], [0], [0], [1], [0, 0, 1, 1], [], []>} : vector<16x64xf32>, vector<64x256xf32>, vector<16x256xf32> -> vector<16x256xf32>
    %c11_460 = arith.constant 11 : index
    %c0_461 = arith.constant 0 : index
    %c0_462 = arith.constant 0 : index
    %519 = vector.load %arg22[%c11_460, %c0_461, %c0_462] : memref<16x64x256xf32, #tpu.memory_space<vmem>>, vector<1x64x256xf32>
    %520 = vector.shape_cast %519 : vector<1x64x256xf32> to vector<64x256xf32>
    %cst_463 = arith.constant dense<0.000000e+00> : vector<16x256xf32>
    %521 = tpu.matmul %484, %520, %cst_463 {dimension_numbers = #tpu.dot_dimension_numbers<[1], [0], [0], [1], [0, 0, 1, 1], [], []>} : vector<16x64xf32>, vector<64x256xf32>, vector<16x256xf32> -> vector<16x256xf32>
    %c12_464 = arith.constant 12 : index
    %c0_465 = arith.constant 0 : index
    %c0_466 = arith.constant 0 : index
    %522 = vector.load %arg22[%c12_464, %c0_465, %c0_466] : memref<16x64x256xf32, #tpu.memory_space<vmem>>, vector<1x64x256xf32>
    %523 = vector.shape_cast %522 : vector<1x64x256xf32> to vector<64x256xf32>
    %cst_467 = arith.constant dense<0.000000e+00> : vector<16x256xf32>
    %524 = tpu.matmul %484, %523, %cst_467 {dimension_numbers = #tpu.dot_dimension_numbers<[1], [0], [0], [1], [0, 0, 1, 1], [], []>} : vector<16x64xf32>, vector<64x256xf32>, vector<16x256xf32> -> vector<16x256xf32>
    %c13_468 = arith.constant 13 : index
    %c0_469 = arith.constant 0 : index
    %c0_470 = arith.constant 0 : index
    %525 = vector.load %arg22[%c13_468, %c0_469, %c0_470] : memref<16x64x256xf32, #tpu.memory_space<vmem>>, vector<1x64x256xf32>
    %526 = vector.shape_cast %525 : vector<1x64x256xf32> to vector<64x256xf32>
    %cst_471 = arith.constant dense<0.000000e+00> : vector<16x256xf32>
    %527 = tpu.matmul %484, %526, %cst_471 {dimension_numbers = #tpu.dot_dimension_numbers<[1], [0], [0], [1], [0, 0, 1, 1], [], []>} : vector<16x64xf32>, vector<64x256xf32>, vector<16x256xf32> -> vector<16x256xf32>
    %c14_472 = arith.constant 14 : index
    %c0_473 = arith.constant 0 : index
    %c0_474 = arith.constant 0 : index
    %528 = vector.load %arg22[%c14_472, %c0_473, %c0_474] : memref<16x64x256xf32, #tpu.memory_space<vmem>>, vector<1x64x256xf32>
    %529 = vector.shape_cast %528 : vector<1x64x256xf32> to vector<64x256xf32>
    %cst_475 = arith.constant dense<0.000000e+00> : vector<16x256xf32>
    %530 = tpu.matmul %484, %529, %cst_475 {dimension_numbers = #tpu.dot_dimension_numbers<[1], [0], [0], [1], [0, 0, 1, 1], [], []>} : vector<16x64xf32>, vector<64x256xf32>, vector<16x256xf32> -> vector<16x256xf32>
    %c15_476 = arith.constant 15 : index
    %c0_477 = arith.constant 0 : index
    %c0_478 = arith.constant 0 : index
    %531 = vector.load %arg22[%c15_476, %c0_477, %c0_478] : memref<16x64x256xf32, #tpu.memory_space<vmem>>, vector<1x64x256xf32>
    %532 = vector.shape_cast %531 : vector<1x64x256xf32> to vector<64x256xf32>
    %cst_479 = arith.constant dense<0.000000e+00> : vector<16x256xf32>
    %533 = tpu.matmul %484, %532, %cst_479 {dimension_numbers = #tpu.dot_dimension_numbers<[1], [0], [0], [1], [0, 0, 1, 1], [], []>} : vector<16x64xf32>, vector<64x256xf32>, vector<16x256xf32> -> vector<16x256xf32>
    %534 = tpu.concatenate %488, %491, %494, %497, %500, %503, %506, %509, %512, %515, %518, %521, %524, %527, %530, %533 in 0 : vector<16x256xf32>, vector<16x256xf32>, vector<16x256xf32>, vector<16x256xf32>, vector<16x256xf32>, vector<16x256xf32>, vector<16x256xf32>, vector<16x256xf32>, vector<16x256xf32>, vector<16x256xf32>, vector<16x256xf32>, vector<16x256xf32>, vector<16x256xf32>, vector<16x256xf32>, vector<16x256xf32>, vector<16x256xf32> -> vector<256x256xf32>
    %cst_480 = arith.constant dense<0.000000e+00> : vector<8x256xf32>
    %535 = tpu.matmul %485, %534, %cst_480 {dimension_numbers = #tpu.dot_dimension_numbers<[1], [0], [0], [1], [0, 0, 1, 1], [], []>} : vector<8x256xf32>, vector<256x256xf32>, vector<8x256xf32> -> vector<8x256xf32>
    %c0_481 = arith.constant 0 : index
    %c0_482 = arith.constant 0 : index
    %536 = vector.load %arg24[%c0_481, %c0_482] : memref<8x1xf32, #tpu.memory_space<vmem>>, vector<8x1xf32>
    %c0_483 = arith.constant 0 : index
    %c0_484 = arith.constant 0 : index
    %537 = vector.load %arg25[%c0_483, %c0_484] : memref<8x1xf32, #tpu.memory_space<vmem>>, vector<8x1xf32>
    %cst_485 = arith.constant dense<0.000000e+00> : vector<8xf32>
    %538 = vector.multi_reduction <add>, %535, %cst_485 [1] : vector<8x256xf32> to vector<8xf32>
    %539 = vector.shape_cast %538 : vector<8xf32> to vector<8x1xf32>
    %cst_486 = arith.constant 2.560000e+02 : f32
    %540 = vector.broadcast %cst_486 : f32 to vector<8x1xf32>
    %541 = arith.divf %539, %540 : vector<8x1xf32>
    %542 = vector.broadcast %541 : vector<8x1xf32> to vector<8x256xf32>
    %543 = arith.subf %535, %542 : vector<8x256xf32>
    %544 = arith.mulf %543, %543 : vector<8x256xf32>
    %cst_487 = arith.constant dense<0.000000e+00> : vector<8xf32>
    %545 = vector.multi_reduction <add>, %544, %cst_487 [1] : vector<8x256xf32> to vector<8xf32>
    %546 = vector.shape_cast %545 : vector<8xf32> to vector<8x1xf32>
    %cst_488 = arith.constant 2.560000e+02 : f32
    %547 = vector.broadcast %cst_488 : f32 to vector<8x1xf32>
    %548 = arith.divf %546, %547 : vector<8x1xf32>
    %cst_489 = arith.constant 9.99999974E-6 : f32
    %549 = vector.broadcast %cst_489 : f32 to vector<8x1xf32>
    %550 = arith.addf %548, %549 : vector<8x1xf32>
    %551 = math.rsqrt %550 : vector<8x1xf32>
    %552 = vector.broadcast %551 : vector<8x1xf32> to vector<8x256xf32>
    %553 = arith.mulf %543, %552 : vector<8x256xf32>
    %554 = vector.broadcast %536 : vector<8x1xf32> to vector<8x256xf32>
    %555 = arith.mulf %553, %554 : vector<8x256xf32>
    %556 = vector.broadcast %537 : vector<8x1xf32> to vector<8x256xf32>
    %557 = arith.addf %555, %556 : vector<8x256xf32>
    %cst_490 = arith.constant 0.000000e+00 : f32
    %558 = vector.broadcast %cst_490 : f32 to vector<8x256xf32>
    %559 = arith.maximumf %557, %558 : vector<8x256xf32>
    %c0_491 = arith.constant 0 : index
    %c0_492 = arith.constant 0 : index
    %c0_493 = arith.constant 0 : index
    %560 = vector.load %arg26[%c0_491, %c0_492, %c0_493] : memref<8x256x256xf32, #tpu.memory_space<vmem>>, vector<1x256x256xf32>
    %561 = vector.shape_cast %560 : vector<1x256x256xf32> to vector<256x256xf32>
    %cst_494 = arith.constant dense<0.000000e+00> : vector<8x256xf32>
    %562 = tpu.matmul %559, %561, %cst_494 {dimension_numbers = #tpu.dot_dimension_numbers<[1], [0], [0], [1], [0, 0, 1, 1], [], []>} : vector<8x256xf32>, vector<256x256xf32>, vector<8x256xf32> -> vector<8x256xf32>
    %563 = vector.extract_strided_slice %562 {offsets = [0, 0], sizes = [1, 256], strides = [1, 1]} : vector<8x256xf32> to vector<1x256xf32>
    %c1_495 = arith.constant 1 : index
    %c0_496 = arith.constant 0 : index
    %c0_497 = arith.constant 0 : index
    %564 = vector.load %arg26[%c1_495, %c0_496, %c0_497] : memref<8x256x256xf32, #tpu.memory_space<vmem>>, vector<1x256x256xf32>
    %565 = vector.shape_cast %564 : vector<1x256x256xf32> to vector<256x256xf32>
    %cst_498 = arith.constant dense<0.000000e+00> : vector<8x256xf32>
    %566 = tpu.matmul %559, %565, %cst_498 {dimension_numbers = #tpu.dot_dimension_numbers<[1], [0], [0], [1], [0, 0, 1, 1], [], []>} : vector<8x256xf32>, vector<256x256xf32>, vector<8x256xf32> -> vector<8x256xf32>
    %567 = vector.extract_strided_slice %566 {offsets = [1, 0], sizes = [1, 256], strides = [1, 1]} : vector<8x256xf32> to vector<1x256xf32>
    %568 = arith.addf %563, %567 : vector<1x256xf32>
    %c2_499 = arith.constant 2 : index
    %c0_500 = arith.constant 0 : index
    %c0_501 = arith.constant 0 : index
    %569 = vector.load %arg26[%c2_499, %c0_500, %c0_501] : memref<8x256x256xf32, #tpu.memory_space<vmem>>, vector<1x256x256xf32>
    %570 = vector.shape_cast %569 : vector<1x256x256xf32> to vector<256x256xf32>
    %cst_502 = arith.constant dense<0.000000e+00> : vector<8x256xf32>
    %571 = tpu.matmul %559, %570, %cst_502 {dimension_numbers = #tpu.dot_dimension_numbers<[1], [0], [0], [1], [0, 0, 1, 1], [], []>} : vector<8x256xf32>, vector<256x256xf32>, vector<8x256xf32> -> vector<8x256xf32>
    %572 = vector.extract_strided_slice %571 {offsets = [2, 0], sizes = [1, 256], strides = [1, 1]} : vector<8x256xf32> to vector<1x256xf32>
    %573 = arith.addf %568, %572 : vector<1x256xf32>
    %c3_503 = arith.constant 3 : index
    %c0_504 = arith.constant 0 : index
    %c0_505 = arith.constant 0 : index
    %574 = vector.load %arg26[%c3_503, %c0_504, %c0_505] : memref<8x256x256xf32, #tpu.memory_space<vmem>>, vector<1x256x256xf32>
    %575 = vector.shape_cast %574 : vector<1x256x256xf32> to vector<256x256xf32>
    %cst_506 = arith.constant dense<0.000000e+00> : vector<8x256xf32>
    %576 = tpu.matmul %559, %575, %cst_506 {dimension_numbers = #tpu.dot_dimension_numbers<[1], [0], [0], [1], [0, 0, 1, 1], [], []>} : vector<8x256xf32>, vector<256x256xf32>, vector<8x256xf32> -> vector<8x256xf32>
    %577 = vector.extract_strided_slice %576 {offsets = [3, 0], sizes = [1, 256], strides = [1, 1]} : vector<8x256xf32> to vector<1x256xf32>
    %578 = arith.addf %573, %577 : vector<1x256xf32>
    %c4_507 = arith.constant 4 : index
    %c0_508 = arith.constant 0 : index
    %c0_509 = arith.constant 0 : index
    %579 = vector.load %arg26[%c4_507, %c0_508, %c0_509] : memref<8x256x256xf32, #tpu.memory_space<vmem>>, vector<1x256x256xf32>
    %580 = vector.shape_cast %579 : vector<1x256x256xf32> to vector<256x256xf32>
    %cst_510 = arith.constant dense<0.000000e+00> : vector<8x256xf32>
    %581 = tpu.matmul %559, %580, %cst_510 {dimension_numbers = #tpu.dot_dimension_numbers<[1], [0], [0], [1], [0, 0, 1, 1], [], []>} : vector<8x256xf32>, vector<256x256xf32>, vector<8x256xf32> -> vector<8x256xf32>
    %582 = vector.extract_strided_slice %581 {offsets = [4, 0], sizes = [1, 256], strides = [1, 1]} : vector<8x256xf32> to vector<1x256xf32>
    %583 = arith.addf %578, %582 : vector<1x256xf32>
    %c5_511 = arith.constant 5 : index
    %c0_512 = arith.constant 0 : index
    %c0_513 = arith.constant 0 : index
    %584 = vector.load %arg26[%c5_511, %c0_512, %c0_513] : memref<8x256x256xf32, #tpu.memory_space<vmem>>, vector<1x256x256xf32>
    %585 = vector.shape_cast %584 : vector<1x256x256xf32> to vector<256x256xf32>
    %cst_514 = arith.constant dense<0.000000e+00> : vector<8x256xf32>
    %586 = tpu.matmul %559, %585, %cst_514 {dimension_numbers = #tpu.dot_dimension_numbers<[1], [0], [0], [1], [0, 0, 1, 1], [], []>} : vector<8x256xf32>, vector<256x256xf32>, vector<8x256xf32> -> vector<8x256xf32>
    %587 = vector.extract_strided_slice %586 {offsets = [5, 0], sizes = [1, 256], strides = [1, 1]} : vector<8x256xf32> to vector<1x256xf32>
    %588 = arith.addf %583, %587 : vector<1x256xf32>
    %c6_515 = arith.constant 6 : index
    %c0_516 = arith.constant 0 : index
    %c0_517 = arith.constant 0 : index
    %589 = vector.load %arg26[%c6_515, %c0_516, %c0_517] : memref<8x256x256xf32, #tpu.memory_space<vmem>>, vector<1x256x256xf32>
    %590 = vector.shape_cast %589 : vector<1x256x256xf32> to vector<256x256xf32>
    %cst_518 = arith.constant dense<0.000000e+00> : vector<8x256xf32>
    %591 = tpu.matmul %559, %590, %cst_518 {dimension_numbers = #tpu.dot_dimension_numbers<[1], [0], [0], [1], [0, 0, 1, 1], [], []>} : vector<8x256xf32>, vector<256x256xf32>, vector<8x256xf32> -> vector<8x256xf32>
    %592 = vector.extract_strided_slice %591 {offsets = [6, 0], sizes = [1, 256], strides = [1, 1]} : vector<8x256xf32> to vector<1x256xf32>
    %593 = arith.addf %588, %592 : vector<1x256xf32>
    %c7_519 = arith.constant 7 : index
    %c0_520 = arith.constant 0 : index
    %c0_521 = arith.constant 0 : index
    %594 = vector.load %arg26[%c7_519, %c0_520, %c0_521] : memref<8x256x256xf32, #tpu.memory_space<vmem>>, vector<1x256x256xf32>
    %595 = vector.shape_cast %594 : vector<1x256x256xf32> to vector<256x256xf32>
    %cst_522 = arith.constant dense<0.000000e+00> : vector<8x256xf32>
    %596 = tpu.matmul %559, %595, %cst_522 {dimension_numbers = #tpu.dot_dimension_numbers<[1], [0], [0], [1], [0, 0, 1, 1], [], []>} : vector<8x256xf32>, vector<256x256xf32>, vector<8x256xf32> -> vector<8x256xf32>
    %597 = vector.extract_strided_slice %596 {offsets = [7, 0], sizes = [1, 256], strides = [1, 1]} : vector<8x256xf32> to vector<1x256xf32>
    %598 = arith.addf %593, %597 : vector<1x256xf32>
    %599 = math.tanh %598 : vector<1x256xf32>
    %c0_523 = arith.constant 0 : index
    %c0_524 = arith.constant 0 : index
    %c0_525 = arith.constant 0 : index
    %600 = vector.load %arg27[%c0_523, %c0_524, %c0_525] : memref<1x1x256xf32, #tpu.memory_space<vmem>>, vector<1x1x256xf32>
    %601 = vector.shape_cast %600 : vector<1x1x256xf32> to vector<1x256xf32>
    %602 = vector.shape_cast %599 : vector<1x256xf32> to vector<1x1x256xf32>
    tpu.vector_store %arg27[%c0_523, %c0_524, %c0_525], %602 {strides = array<i32>} : memref<1x1x256xf32, #tpu.memory_space<vmem>>, vector<1x1x256xf32>,
    return
  }
  func.func @transform_0(%arg0: i32) -> (i32, i32, i32) {
    %c0_i32 = arith.constant 0 : i32
    %c0_i32_0 = arith.constant 0 : i32
    %c0_i32_1 = arith.constant 0 : i32
    return %arg0, %c0_i32, %c0_i32_0 : i32, i32, i32
  }
  func.func @transform_1(%arg0: i32) -> (i32, i32) {
    %c0_i32 = arith.constant 0 : i32
    %c0_i32_0 = arith.constant 0 : i32
    %c0_i32_1 = arith.constant 0 : i32
    return %c0_i32, %c0_i32_0 : i32, i32
  }
  func.func @transform_2(%arg0: i32) -> (i32, i32) {
    %c0_i32 = arith.constant 0 : i32
    %c0_i32_0 = arith.constant 0 : i32
    %c0_i32_1 = arith.constant 0 : i32
    return %c0_i32, %c0_i32_0 : i32, i32
  }
  func.func @transform_3(%arg0: i32) -> (i32, i32) {
    %c0_i32 = arith.constant 0 : i32
    %c0_i32_0 = arith.constant 0 : i32
    %c0_i32_1 = arith.constant 0 : i32
    return %c0_i32, %c0_i32_0 : i32, i32
  }
  func.func @transform_4(%arg0: i32) -> (i32, i32, i32) {
    %c0_i32 = arith.constant 0 : i32
    %c0_i32_0 = arith.constant 0 : i32
    %c0_i32_1 = arith.constant 0 : i32
    %c0_i32_2 = arith.constant 0 : i32
    return %c0_i32, %c0_i32_0, %c0_i32_1 : i32, i32, i32
  }
  func.func @transform_5(%arg0: i32) -> (i32, i32) {
    %c0_i32 = arith.constant 0 : i32
    %c0_i32_0 = arith.constant 0 : i32
    %c0_i32_1 = arith.constant 0 : i32
    return %c0_i32, %c0_i32_0 : i32, i32
  }
  func.func @transform_6(%arg0: i32) -> (i32, i32) {
    %c0_i32 = arith.constant 0 : i32
    %c0_i32_0 = arith.constant 0 : i32
    %c0_i32_1 = arith.constant 0 : i32
    return %c0_i32, %c0_i32_0 : i32, i32
  }
  func.func @transform_7(%arg0: i32) -> (i32, i32) {
    %c0_i32 = arith.constant 0 : i32
    %c0_i32_0 = arith.constant 0 : i32
    %c0_i32_1 = arith.constant 0 : i32
    return %c0_i32, %c0_i32_0 : i32, i32
  }
  func.func @transform_8(%arg0: i32) -> (i32, i32, i32) {
    %c0_i32 = arith.constant 0 : i32
    %c0_i32_0 = arith.constant 0 : i32
    %c0_i32_1 = arith.constant 0 : i32
    %c0_i32_2 = arith.constant 0 : i32
    return %c0_i32, %c0_i32_0, %c0_i32_1 : i32, i32, i32
  }
  func.func @transform_9(%arg0: i32) -> (i32, i32) {
    %c0_i32 = arith.constant 0 : i32
    %c0_i32_0 = arith.constant 0 : i32
    %c0_i32_1 = arith.constant 0 : i32
    return %c0_i32, %c0_i32_0 : i32, i32
  }
  func.func @transform_10(%arg0: i32) -> (i32, i32) {
    %c0_i32 = arith.constant 0 : i32
    %c0_i32_0 = arith.constant 0 : i32
    %c0_i32_1 = arith.constant 0 : i32
    return %c0_i32, %c0_i32_0 : i32, i32
  }
  func.func @transform_11(%arg0: i32) -> (i32, i32) {
    %c0_i32 = arith.constant 0 : i32
    %c0_i32_0 = arith.constant 0 : i32
    %c0_i32_1 = arith.constant 0 : i32
    return %c0_i32, %c0_i32_0 : i32, i32
  }
  func.func @transform_12(%arg0: i32) -> (i32, i32, i32) {
    %c0_i32 = arith.constant 0 : i32
    %c0_i32_0 = arith.constant 0 : i32
    %c0_i32_1 = arith.constant 0 : i32
    %c0_i32_2 = arith.constant 0 : i32
    return %c0_i32, %c0_i32_0, %c0_i32_1 : i32, i32, i32
  }
  func.func @transform_13(%arg0: i32) -> (i32, i32, i32, i32) {
    %c0_i32 = arith.constant 0 : i32
    %c0_i32_0 = arith.constant 0 : i32
    %c0_i32_1 = arith.constant 0 : i32
    %c0_i32_2 = arith.constant 0 : i32
    %c0_i32_3 = arith.constant 0 : i32
    return %c0_i32, %c0_i32_0, %c0_i32_1, %c0_i32_2 : i32, i32, i32, i32
  }
  func.func @transform_14(%arg0: i32) -> (i32, i32, i32) {
    %c0_i32 = arith.constant 0 : i32
    %c0_i32_0 = arith.constant 0 : i32
    %c0_i32_1 = arith.constant 0 : i32
    %c0_i32_2 = arith.constant 0 : i32
    return %c0_i32, %c0_i32_0, %c0_i32_1 : i32, i32, i32
  }
  func.func @transform_15(%arg0: i32) -> (i32, i32, i32, i32) {
    %c0_i32 = arith.constant 0 : i32
    %c0_i32_0 = arith.constant 0 : i32
    %c0_i32_1 = arith.constant 0 : i32
    %c0_i32_2 = arith.constant 0 : i32
    %c0_i32_3 = arith.constant 0 : i32
    return %c0_i32, %c0_i32_0, %c0_i32_1, %c0_i32_2 : i32, i32, i32, i32
  }
  func.func @transform_16(%arg0: i32) -> (i32, i32, i32, i32) {
    %c0_i32 = arith.constant 0 : i32
    %c0_i32_0 = arith.constant 0 : i32
    %c0_i32_1 = arith.constant 0 : i32
    %c0_i32_2 = arith.constant 0 : i32
    %c0_i32_3 = arith.constant 0 : i32
    return %c0_i32, %c0_i32_0, %c0_i32_1, %c0_i32_2 : i32, i32, i32, i32
  }
  func.func @transform_17(%arg0: i32) -> (i32, i32, i32) {
    %c0_i32 = arith.constant 0 : i32
    %c0_i32_0 = arith.constant 0 : i32
    %c0_i32_1 = arith.constant 0 : i32
    %c0_i32_2 = arith.constant 0 : i32
    return %c0_i32, %c0_i32_0, %c0_i32_1 : i32, i32, i32
  }
  func.func @transform_18(%arg0: i32) -> (i32, i32) {
    %c0_i32 = arith.constant 0 : i32
    %c0_i32_0 = arith.constant 0 : i32
    %c0_i32_1 = arith.constant 0 : i32
    return %c0_i32, %c0_i32_0 : i32, i32
  }
  func.func @transform_19(%arg0: i32) -> (i32, i32) {
    %c0_i32 = arith.constant 0 : i32
    %c0_i32_0 = arith.constant 0 : i32
    %c0_i32_1 = arith.constant 0 : i32
    return %c0_i32, %c0_i32_0 : i32, i32
  }
  func.func @transform_20(%arg0: i32) -> (i32, i32) {
    %c0_i32 = arith.constant 0 : i32
    %c0_i32_0 = arith.constant 0 : i32
    %c0_i32_1 = arith.constant 0 : i32
    return %c0_i32, %c0_i32_0 : i32, i32
  }
  func.func @transform_21(%arg0: i32) -> (i32, i32, i32) {
    %c0_i32 = arith.constant 0 : i32
    %c0_i32_0 = arith.constant 0 : i32
    %c0_i32_1 = arith.constant 0 : i32
    %c0_i32_2 = arith.constant 0 : i32
    return %c0_i32, %c0_i32_0, %c0_i32_1 : i32, i32, i32
  }
  func.func @transform_22(%arg0: i32) -> (i32, i32) {
    %c0_i32 = arith.constant 0 : i32
    %c0_i32_0 = arith.constant 0 : i32
    %c0_i32_1 = arith.constant 0 : i32
    return %c0_i32, %c0_i32_0 : i32, i32
  }
  func.func @transform_23(%arg0: i32) -> (i32, i32) {
    %c0_i32 = arith.constant 0 : i32
    %c0_i32_0 = arith.constant 0 : i32
    %c0_i32_1 = arith.constant 0 : i32
    return %c0_i32, %c0_i32_0 : i32, i32
  }
  func.func @transform_24(%arg0: i32) -> (i32, i32) {
    %c0_i32 = arith.constant 0 : i32
    %c0_i32_0 = arith.constant 0 : i32
    %c0_i32_1 = arith.constant 0 : i32
    return %c0_i32, %c0_i32_0 : i32, i32
  }
  func.func @transform_25(%arg0: i32) -> (i32, i32, i32) {
    %c0_i32 = arith.constant 0 : i32
    %c0_i32_0 = arith.constant 0 : i32
    %c0_i32_1 = arith.constant 0 : i32
    %c0_i32_2 = arith.constant 0 : i32
    return %c0_i32, %c0_i32_0, %c0_i32_1 : i32, i32, i32
  }
  func.func @transform_26(%arg0: i32) -> (i32, i32, i32) {
    %c0_i32 = arith.constant 0 : i32
    %c0_i32_0 = arith.constant 0 : i32
    %c0_i32_1 = arith.constant 0 : i32
    return %arg0, %c0_i32, %c0_i32_0 : i32, i32, i32
  }
}

</mosaic_0001>

<bundles_post_ra>
// kernel: _run.1
= control target key start
LH: loop header
LB: loop body
LE: loop exit
PB: predicated region body
PF: predicated region fallthrough
CT: control target
= control target key end

     0   :  { %s17661_s27 = smov 0   ;;  %s23322_s0 = inlined_call_operand.vmem [shape: f32[2,147,256], index: 0, kind: input, shape index: {}]   ;;  %s23323_s1 = inlined_call_operand.vmem [shape: f32[8,147], index: 1, kind: input, shape index: {}]   ;;  %s23324_s2 = inlined_call_operand.vmem [shape: f32[8,1], index: 2, kind: input, shape index: {}]   ;;  %s23325_s3 = inlined_call_operand.vmem [shape: f32[8,1], index: 3, kind: input, shape index: {}]   ;;  %s23326_s4 = inlined_call_operand.vmem [shape: f32[16,256,64], index: 4, kind: input, shape index: {}]   ;;  %s23327_s5 = inlined_call_operand.vmem [shape: f32[16,128], index: 5, kind: input, shape index: {}]   ;;  %s23328_s6 = inlined_call_operand.vmem [shape: f32[16,1], index: 6, kind: input, shape index: {}]   ;;  %s23329_s7 = inlined_call_operand.vmem [shape: f32[16,1], index: 7, kind: input, shape index: {}]   ;;  %s23330_s8 = inlined_call_operand.vmem [shape: f32[16,64,16], index: 8, kind: input, shape index: {}]   ;;  %s23331_s9 = inlined_call_operand.vmem [shape: f32[32,256], index: 9, kind: input, shape index: {}]   ;;  %s23332_s10 = inlined_call_operand.vmem [shape: f32[32,1], index: 10, kind: input, shape index: {}]   ;;  %s23333_s11 = inlined_call_operand.vmem [shape: f32[32,1], index: 11, kind: input, shape index: {}]   ;;  %s23334_s12 = inlined_call_operand.vmem [shape: f32[9,16,16], index: 12, kind: input, shape index: {}]   ;;  %s23335_s13 = inlined_call_operand.vmem [shape: f32[2,2,32,32], index: 13, kind: input, shape index: {}]   ;;  %s23336_s14 = inlined_call_operand.vmem [shape: f32[2,32,288], index: 14, kind: input, shape index: {}]   ;;  %s23337_s15 = inlined_call_operand.vmem [shape: f32[2,3,32,1], index: 15, kind: input, shape index: {}]   ;;  %s23338_s16 = inlined_call_operand.vmem [shape: f32[2,3,32,1], index: 16, kind: input, shape index: {}]   ;;  %s23339_s17 = inlined_call_operand.vmem [shape: f32[16,16,64], index: 17, kind: input, shape index: {}]   ;;  %s23340_s18 = inlined_call_operand.vmem [shape: f32[16,512], index: 18, kind: input, shape index: {}]   ;;  %s23341_s19 = inlined_call_operand.vmem [shape: f32[16,1], index: 19, kind: input, shape index: {}]   ;;  %s23342_s20 = inlined_call_operand.vmem [shape: f32[16,1], index: 20, kind: input, shape index: {}]   ;;  %s23343_s21 = inlined_call_operand.vmem [shape: f32[16,64,256], index: 21, kind: input, shape index: {}]   ;;  %s23344_s22 = inlined_call_operand.vmem [shape: f32[8,256], index: 22, kind: input, shape index: {}]   ;;  %s23345_s23 = inlined_call_operand.vmem [shape: f32[8,1], index: 23, kind: input, shape index: {}]   ;;  %s23346_s24 = inlined_call_operand.vmem [shape: f32[8,1], index: 24, kind: input, shape index: {}]   ;;  %s23347_s25 = inlined_call_operand.vmem [shape: f32[8,256,256], index: 25, kind: input, shape index: {}]   ;;  %s23348_s26 = inlined_call_operand.vmem [shape: f32[2,1,256], index: 26, kind: output, shape index: {}]  }
   0x1   :  { %23363 = sst [smem:[#allocation2_spill]] %s23322_s0 }
   0x2   :  { %23364 = sst [smem:[#allocation3_spill]] %s23323_s1 }
   0x3   :  { %23365 = sst [smem:[#allocation4_spill]] %s23324_s2 }
   0x4   :  { %23366 = sst [smem:[#allocation5_spill]] %s23325_s3 }
   0x5   :  { %23367 = sst [smem:[#allocation6_spill]] %s23326_s4 }
   0x6   :  { %23368 = sst [smem:[#allocation7_spill]] %s23327_s5 }
   0x7   :  { %23369 = sst [smem:[#allocation8_spill]] %s23328_s6 }
   0x8   :  { %23370 = sst [smem:[#allocation9_spill]] %s23329_s7 }
   0x9   :  { %23371 = sst [smem:[#allocation10_spill]] %s23330_s8 }
   0xa   :  { %23372 = sst [smem:[#allocation11_spill]] %s23331_s9 }
   0xb   :  { %23373 = sst [smem:[#allocation12_spill]] %s23332_s10 }
   0xc   :  { %23374 = sst [smem:[#allocation13_spill]] %s23333_s11 }
   0xd LB: > { %s11822_s3 = sadd.s32 4294967295, %s17521_s27   ;;  %p11826_p0 = scmp.ge.s32.totalorder %s17521_s27, 1  ;;  %s17521_s27 = sphi %s17661_s27, %s36_s27  }
   0xe   : > { %p712_p1 = scmp.lt.s32.totalorder %s17521_s27, 3 }
  0x10   : > { %p713_p2 = pnand %p11826_p0, %p712_p1 }
  0x11   : > { %p781_p3 = scmp.lt.s32.totalorder (!%p713_p2), %s11822_s3, 1  ;;  %s23375_s8 = sld [smem:[#allocation3_spill]] (!%p713_p2)  ;;  %vm830_vm0 = vcmask (!%p713_p2), 154624   ;;  %vm834_vm1 = vcmask (!%p713_p2), 1042432   ;;  %v17523_v63 = vmov (!%p713_p2), 0   ;;  %vm2675_vm2 = vcmask (!%p713_p2), 523264  }
  0x12   : > { %716 = sbr.rel (%p713_p2) target bundleno = 8426 (0x20ea), region = 124  ;;  %s23376_s9 = sld [smem:[#allocation2_spill]] (!%p713_p2)  ;;  %17441 = vset.pattern.permute.xlu1 (!%p713_p2), %v17523_v63  ;;  %17442 = vset.pattern.permute.xlu0 (!%p713_p2), %v17523_v63  ;;  %vm4179_vm3 = vcmask (!%p713_p2), 130048   ;;  %vm4289_vm4 = vcmask (!%p713_p2), 261120  }
  0x13   : > { %s23377_s1 = sld [smem:[#allocation4_spill]] (!%p713_p2)  ;;  %s23380_s10 = sld [smem:[#allocation7_spill]] (!%p713_p2) }
  0x14   : > { %s23381_s29 = sld [smem:[#allocation8_spill]] (!%p713_p2)  ;;  %s23383_s28 = sld [smem:[#allocation10_spill]] (!%p713_p2) }
  0x15   : > { %s23384_s5 = sld [smem:[#allocation11_spill]] (!%p713_p2)  ;;  %s23386_s11 = sld [smem:[#allocation13_spill]] (!%p713_p2) }
  0x17   : > { %v791_v0 = vld [vmem:[%s23375_s8 + $0x8] sm:$0xff] (!%p713_p2)  ;;  %v790_v57 = vld [vmem:[%s23375_s8] sm:$0xff] (!%p713_p2)  ;;  %s23382_s8 = sld [smem:[#allocation9_spill]] (!%p713_p2) }
  0x18   : > { %11831 = vmatprep.mubr.msk.f32.mxu0 (!%p713_p2), %vm830_vm0, %v791_v0 }
  0x19   : > { %s23388_s3 = smov (!%p781_p3, %s11822_s3), 1  ;;  %v912_v61 = vld [vmem:[%s23377_s1] sm:$0xff] }
  0x1a   : > { %s17429_s4 = smul.u32 304, %s23388_s3  ;;  %933 = vperm.xlu1 %17441, %v912_v61  }
  0x1c   : > { %s17678_s30 = scalar_lea.vmem %s23376_s9, %s17429_s4  ;;  %s23378_s4 = sld [smem:[#allocation6_spill]] }
  0x1d   : > { %v793_v1 = vld [vmem:[%s17678_s30 + $0x8] sm:$0xff]  ;;  %v795_v2 = vld [vmem:[%s17678_s30 + $0x18] sm:$0xff]  ;;  %v792_v3 = vld [vmem:[%s17678_s30] sm:$0xff]  ;;  %s23379_s9 = sld [smem:[#allocation5_spill]] }
  0x1e   : > { %v15417_v4 = vpack.c.bf16 %v795_v2, %v793_v1  ;;  %v794_v5 = vld [vmem:[%s17678_s30 + $0x10] sm:$0xff]  ;;  %v797_v6 = vld [vmem:[%s17678_s30 + $0x28] sm:$0xff]  ;;  %v799_v7 = vld [vmem:[%s17678_s30 + $0x38] sm:$0xff] }
  0x1f   : > { %v15419_v8 = vpack.c.bf16 %v794_v5, %v792_v3  ;;  %v15421_v9 = vpack.c.bf16 %v799_v7, %v797_v6  ;;  %v796_v10 = vld [vmem:[%s17678_s30 + $0x20] sm:$0xff]  ;;  %v798_v11 = vld [vmem:[%s17678_s30 + $0x30] sm:$0xff]  ;;  %v801_v12 = vld [vmem:[%s17678_s30 + $0x48] sm:$0xff] }
  0x20   : > { %15418 = vmatprep.subr.bf16.mxu0 %v15417_v4  ;;  %v803_v13 = vld [vmem:[%s17678_s30 + $0x58] sm:$0xff]  ;;  %v15423_v14 = vpack.c.bf16 %v798_v11, %v796_v10  ;;  %v800_v16 = vld [vmem:[%s17678_s30 + $0x40] sm:$0xff]  ;;  %v802_v17 = vld [vmem:[%s17678_s30 + $0x50] sm:$0xff] }
  0x21   : > { %15420 = vmatpush1.bf16.msra.mxu0 %v15419_v8  ;;  %v15425_v15 = vpack.c.bf16 %v803_v13, %v801_v12  ;;  %v805_v18 = vld [vmem:[%s17678_s30 + $0x68] sm:$0xff]  ;;  %v807_v19 = vld [vmem:[%s17678_s30 + $0x78] sm:$0xff]  ;;  %v15427_v20 = vpack.c.bf16 %v802_v17, %v800_v16  ;;  %v804_v22 = vld [vmem:[%s17678_s30 + $0x60] sm:$0xff] }
  0x22   : > { %15422 = vmatprep.subr.bf16.mxu0 %v15421_v9  ;;  %v15429_v21 = vpack.c.bf16 %v807_v19, %v805_v18  ;;  %v806_v23 = vld [vmem:[%s17678_s30 + $0x70] sm:$0xff]  ;;  %v809_v24 = vld [vmem:[%s17678_s30 + $0x88] sm:$0xff]  ;;  %v811_v25 = vld [vmem:[%s17678_s30 + $0x98] sm:$0xff] }
  0x23   : > { %v15431_v26 = vpack.c.bf16 %v806_v23, %v804_v22  ;;  %v15433_v27 = vpack.c.bf16 %v811_v25, %v809_v24  ;;  %v808_v28 = vld [vmem:[%s17678_s30 + $0x80] sm:$0xff]  ;;  %v810_v29 = vld [vmem:[%s17678_s30 + $0x90] sm:$0xff]  ;;  %v813_v30 = vld [vmem:[%s17678_s30 + $0xa8] sm:$0xff] }
  0x24   : > { %v815_v31 = vld [vmem:[%s17678_s30 + $0xb8] sm:$0xff]  ;;  %v15435_v32 = vpack.c.bf16 %v810_v29, %v808_v28  ;;  %v812_v34 = vld [vmem:[%s17678_s30 + $0xa0] sm:$0xff]  ;;  %v814_v35 = vld [vmem:[%s17678_s30 + $0xb0] sm:$0xff] }
  0x25   : > { %15424 = vmatpush1.bf16.msra.mxu0 %v15423_v14  ;;  %v15437_v33 = vpack.c.bf16 %v815_v31, %v813_v30  ;;  %v817_v36 = vld [vmem:[%s17678_s30 + $0xc8] sm:$0xff]  ;;  %v819_v37 = vld [vmem:[%s17678_s30 + $0xd8] sm:$0xff]  ;;  %v15439_v38 = vpack.c.bf16 %v814_v35, %v812_v34  ;;  %v816_v40 = vld [vmem:[%s17678_s30 + $0xc0] sm:$0xff] }
  0x26   : > { %15426 = vmatprep.subr.bf16.mxu0 %v15425_v15  ;;  %v15441_v39 = vpack.c.bf16 %v819_v37, %v817_v36  ;;  %v818_v41 = vld [vmem:[%s17678_s30 + $0xd0] sm:$0xff]  ;;  %v821_v42 = vld [vmem:[%s17678_s30 + $0xe8] sm:$0xff]  ;;  %v823_v43 = vld [vmem:[%s17678_s30 + $0xf8] sm:$0xff] }
  0x27   : > { %v15443_v44 = vpack.c.bf16 %v818_v41, %v816_v40  ;;  %v15445_v45 = vpack.c.bf16 %v823_v43, %v821_v42  ;;  %v820_v46 = vld [vmem:[%s17678_s30 + $0xe0] sm:$0xff]  ;;  %v822_v47 = vld [vmem:[%s17678_s30 + $0xf0] sm:$0xff]  ;;  %v825_v48 = vld [vmem:[%s17678_s30 + $0x108] sm:$0xff] }
  0x28   : > { %v827_v49 = vld [vmem:[%s17678_s30 + $0x118] sm:$0xff]  ;;  %v15447_v50 = vpack.c.bf16 %v822_v47, %v820_v46  ;;  %v824_v52 = vld [vmem:[%s17678_s30 + $0x100] sm:$0xff]  ;;  %v826_v53 = vld [vmem:[%s17678_s30 + $0x110] sm:$0xff] }
  0x29   : > { %15428 = vmatpush1.bf16.msra.mxu0 %v15427_v20  ;;  %v15449_v51 = vpack.c.bf16 %v827_v49, %v825_v48  ;;  %v15451_v54 = vpack.c.bf16 %v826_v53, %v824_v52  ;;  %v829_v55 = vld [vmem:[%s17678_s30 + $0x128] sm:$0x7]  ;;  %v828_v56 = vld [vmem:[%s17678_s30 + $0x120] sm:$0x7]  ;;  %v967_v11 = vld [vmem:[%s23378_s4 + $0x90] sm:$0xff] }
  0x2a   : > { %15430 = vmatprep.subr.bf16.mxu0 %v15429_v21  ;;  %v965_v62 = vld [vmem:[%s23378_s4 + $0x80] sm:$0xff]  ;;  %v966_v1 = vld [vmem:[%s23378_s4 + $0x88] sm:$0xff]  ;;  %v968_v12 = vld [vmem:[%s23378_s4 + $0x98] sm:$0xff] }
  0x2b   : > { %v913_v0 = vld [vmem:[%s23379_s9] sm:$0xff]  ;;  %v11945_v3 = vld [vmem:[%s23378_s4 + $0x488] sm:$0xff]  ;;  %v15453_v4 = vpack.c.bf16 %v966_v1, %v965_v62  ;;  %v15457_v14 = vpack.c.bf16 %v968_v12, %v967_v11  ;;  %v11946_v15 = vld [vmem:[%s23378_s4 + $0x490] sm:$0xff] }
  0x2c   : > { %v11944_v2 = vld [vmem:[%s23378_s4 + $0x480] sm:$0xff]  ;;  %v950_v7 = vld [vmem:[%s23378_s4 + $0x8] sm:$0xff]  ;;  %v11947_v16 = vld [vmem:[%s23378_s4 + $0x498] sm:$0xff]  ;;  %940 = vperm.xlu1 %17441, %v913_v0  }
  0x2d   : > { %15432 = vmatpush1.bf16.msra.mxu0 %v15431_v26  ;;  %v15581_v5 = vpack.c.bf16 %v11945_v3, %v11944_v2  ;;  %v949_v6 = vld [vmem:[%s23378_s4] sm:$0xff]  ;;  %v11929_v10 = vld [vmem:[%s23378_s4 + $0x408] sm:$0xff]  ;;  %15454 = vmatprep.subr.bf16.mxu1 %v15453_v4  ;;  %v951_v17 = vld [vmem:[%s23378_s4 + $0x10] sm:$0xff]  ;;  %v15585_v18 = vpack.c.bf16 %v11947_v16, %v11946_v15 }
  0x2e   : > { %15434 = vmatprep.subr.bf16.mxu0 %v15433_v27  ;;  %v11928_v8 = vld [vmem:[%s23378_s4 + $0x400] sm:$0xff]  ;;  %v15455_v9 = vpack.c.bf16 %v950_v7, %v949_v6  ;;  %v952_v19 = vld [vmem:[%s23378_s4 + $0x18] sm:$0xff]  ;;  %v11930_v20 = vld [vmem:[%s23378_s4 + $0x410] sm:$0xff] }
  0x2f   : > { %v15583_v13 = vpack.c.bf16 %v11929_v10, %v11928_v8  ;;  %v11931_v21 = vld [vmem:[%s23378_s4 + $0x418] sm:$0xff]  ;;  %v15459_v22 = vpack.c.bf16 %v952_v19, %v951_v17  ;;  %v969_v24 = vld [vmem:[%s23378_s4 + $0xa0] sm:$0xff]  ;;  %v970_v25 = vld [vmem:[%s23378_s4 + $0xa8] sm:$0xff] }
  0x30   : > { %15456 = vmatpush3.bf16.msra.mxu1 %v15455_v9  ;;  %v15587_v23 = vpack.c.bf16 %v11931_v21, %v11930_v20  ;;  %v11948_v26 = vld [vmem:[%s23378_s4 + $0x4a0] sm:$0xff]  ;;  %v15461_v27 = vpack.c.bf16 %v970_v25, %v969_v24  ;;  %v11949_v28 = vld [vmem:[%s23378_s4 + $0x4a8] sm:$0xff]  ;;  %v971_v43 = vld [vmem:[%s23378_s4 + $0xb0] sm:$0xff] }
  0x31   : > { %15436 = vmatpush1.bf16.msra.mxu0 %v15435_v32  ;;  %15458 = vmatprep.subr.bf16.mxu1 %v15457_v14  ;;  %v15589_v29 = vpack.c.bf16 %v11949_v28, %v11948_v26  ;;  %v953_v37 = vld [vmem:[%s23378_s4 + $0x20] sm:$0xff]  ;;  %v11933_v41 = vld [vmem:[%s23378_s4 + $0x428] sm:$0xff]  ;;  %v11951_v47 = vld [vmem:[%s23378_s4 + $0x4b8] sm:$0xff] }
  0x32   : > { %15438 = vmatprep.subr.bf16.mxu0 %v15437_v33  ;;  %v955_v48 = vld [vmem:[%s23378_s4 + $0x30] sm:$0xff]  ;;  %v956_v49 = vld [vmem:[%s23378_s4 + $0x38] sm:$0xff]  ;;  %v958_v61 = vld [vmem:[%s23378_s4 + $0x48] sm:$0xff] }
  0x33   : > { %v11934_v52 = vld [vmem:[%s23378_s4 + $0x430] sm:$0xff]  ;;  %v11935_v53 = vld [vmem:[%s23378_s4 + $0x438] sm:$0xff]  ;;  %v11936_v0 = vld [vmem:[%s23378_s4 + $0x440] sm:$0xff] }
  0x34   : > { %15460 = vmatpush3.bf16.msra.mxu1 %v15459_v22  ;;  %v11937_v1 = vld [vmem:[%s23378_s4 + $0x448] sm:$0xff]  ;;  %v975_v3 = vld [vmem:[%s23378_s4 + $0xd0] sm:$0xff]  ;;  %v976_v4 = vld [vmem:[%s23378_s4 + $0xd8] sm:$0xff] }
  0x35   : > { %15440 = vmatpush1.bf16.msra.mxu0 %v15439_v38  ;;  %15462 = vmatprep.subr.bf16.mxu1 %v15461_v27  ;;  %v954_v38 = vld [vmem:[%s23378_s4 + $0x28] sm:$0xff]  ;;  %v15599_v2 = vpack.c.bf16 %v11937_v1, %v11936_v0  ;;  %v15473_v6 = vpack.c.bf16 %v976_v4, %v975_v3  ;;  %v11955_v7 = vld [vmem:[%s23378_s4 + $0x4d8] sm:$0xff]  ;;  %v959_v8 = vld [vmem:[%s23378_s4 + $0x50] sm:$0xff] }
  0x36   : > { %15442 = vmatprep.subr.bf16.mxu0 %v15441_v39  ;;  %v11932_v39 = vld [vmem:[%s23378_s4 + $0x420] sm:$0xff]  ;;  %v15463_v40 = vpack.c.bf16 %v954_v38, %v953_v37  ;;  %v960_v9 = vld [vmem:[%s23378_s4 + $0x58] sm:$0xff]  ;;  %v11938_v12 = vld [vmem:[%s23378_s4 + $0x450] sm:$0xff] }
  0x37   : > { %v15591_v42 = vpack.c.bf16 %v11933_v41, %v11932_v39  ;;  %v15475_v11 = vpack.c.bf16 %v960_v9, %v959_v8  ;;  %v977_v15 = vld [vmem:[%s23378_s4 + $0xe0] sm:$0xff]  ;;  %v978_v16 = vld [vmem:[%s23378_s4 + $0xe8] sm:$0xff]  ;;  %v979_v27 = vld [vmem:[%s23378_s4 + $0xf0] sm:$0xff] }
  0x38   : > { %15464 = vmatpush3.bf16.msra.mxu1 %v15463_v40  ;;  %v11956_v17 = vld [vmem:[%s23378_s4 + $0x4e0] sm:$0xff]  ;;  %v11957_v19 = vld [vmem:[%s23378_s4 + $0x4e8] sm:$0xff]  ;;  %v980_v28 = vld [vmem:[%s23378_s4 + $0xf8] sm:$0xff] }
  0x39   : > { %15444 = vmatpush1.bf16.msra.mxu0 %v15443_v44  ;;  %v972_v44 = vld [vmem:[%s23378_s4 + $0xb8] sm:$0xff]  ;;  %v961_v20 = vld [vmem:[%s23378_s4 + $0x60] sm:$0xff]  ;;  %v962_v21 = vld [vmem:[%s23378_s4 + $0x68] sm:$0xff]  ;;  %v15605_v22 = vpack.c.bf16 %v11957_v19, %v11956_v17 }
  0x3a   : > { %15446 = vmatprep.subr.bf16.mxu0 %v15445_v45  ;;  %v11950_v45 = vld [vmem:[%s23378_s4 + $0x4b0] sm:$0xff]  ;;  %v15465_v46 = vpack.c.bf16 %v972_v44, %v971_v43  ;;  %v11940_v24 = vld [vmem:[%s23378_s4 + $0x460] sm:$0xff]  ;;  %v11941_v25 = vld [vmem:[%s23378_s4 + $0x468] sm:$0xff] }
  0x3b   : > { %v15607_v26 = vpack.c.bf16 %v11941_v25, %v11940_v24  ;;  %v11942_v38 = vld [vmem:[%s23378_s4 + $0x470] sm:$0xff]  ;;  %v11943_v39 = vld [vmem:[%s23378_s4 + $0x478] sm:$0xff]  ;;  %v11848_v41 = vld [vmem:[%s23378_s4 + $0x180] sm:$0xff] }
  0x3c   : > { %15466 = vmatprep.subr.bf16.mxu1 %v15465_v46  ;;  %v15611_v40 = vpack.c.bf16 %v11943_v39, %v11942_v38  ;;  %v12008_v43 = vld [vmem:[%s23378_s4 + $0x680] sm:$0xff]  ;;  %v12011_v0 = vld [vmem:[%s23378_s4 + $0x698] sm:$0xff]  ;;  %v12014_v25 = vld [vmem:[%s23378_s4 + $0x6b0] sm:$0xff] }
  0x3d   : > { %15448 = vmatpush1.bf16.msra.mxu0 %v15447_v50  ;;  %v15593_v50 = vpack.c.bf16 %v11951_v47, %v11950_v45  ;;  %v12009_v45 = vld [vmem:[%s23378_s4 + $0x688] sm:$0xff]  ;;  %v11995_v8 = vld [vmem:[%s23378_s4 + $0x618] sm:$0xff]  ;;  %v11852_v9 = vld [vmem:[%s23378_s4 + $0x1a0] sm:$0xff] }
  0x3e   : > { %15450 = vmatprep.subr.bf16.mxu0 %v15449_v51  ;;  %v15467_v51 = vpack.c.bf16 %v956_v49, %v955_v48  ;;  %v15645_v46 = vpack.c.bf16 %v12009_v45, %v12008_v43  ;;  %v11836_v17 = vld [vmem:[%s23378_s4 + $0x120] sm:$0xff]  ;;  %v11855_v24 = vld [vmem:[%s23378_s4 + $0x1b8] sm:$0xff]  ;;  %v11857_v38 = vld [vmem:[%s23378_s4 + $0x1c8] sm:$0xff] }
  0x3f   : > { %v12016_v39 = vld [vmem:[%s23378_s4 + $0x6c0] sm:$0xff] }
  0x40   : > { %15468 = vmatpush3.bf16.msra.mxu1 %v15467_v51  ;;  %v11840_v43 = vld [vmem:[%s23378_s4 + $0x140] sm:$0xff] }
  0x41   : > { %15452 = vmatpush1.bf16.msra.mxu0 %v15451_v54  ;;  %v15595_v54 = vpack.c.bf16 %v11935_v53, %v11934_v52 }
  0x42   : > { %11829 = vmatprep.subr.msk.mxu0 %vm834_vm1, %v829_v55  ;;  %v973_v55 = vld [vmem:[%s23378_s4 + $0xc0] sm:$0xff] }
  0x45   : > { %11830 = vmatpush1.msk.msra.mxu0 %vm834_vm1, %v828_v56  ;;  %v974_v56 = vld [vmem:[%s23378_s4 + $0xc8] sm:$0xff] }
  0x46   : > { %906 = vmatmul.mubr.f32.vlgmr.msra.gmra.mrb[0].mxu0 %v790_v57  ;;  %15582 = vmatprep.subr.bf16.mxu0 %v15581_v5  ;;  %v11952_v57 = vld [vmem:[%s23378_s4 + $0x4c0] sm:$0xff]  ;;  %v11954_v5 = vld [vmem:[%s23378_s4 + $0x4d0] sm:$0xff] }
  0x47   : > { %15584 = vmatpush3.bf16.msra.mxu0 %v15583_v13  ;;  %v15601_v10 = vpack.c.bf16 %v11955_v7, %v11954_v5  ;;  %v11939_v13 = vld [vmem:[%s23378_s4 + $0x458] sm:$0xff]  ;;  %v11834_v5 = vld [vmem:[%s23378_s4 + $0x110] sm:$0xff] }
  0x48   : > { %15586 = vmatprep.subr.bf16.mxu0 %v15585_v18  ;;  %v15603_v14 = vpack.c.bf16 %v11939_v13, %v11938_v12  ;;  %v15477_v18 = vpack.c.bf16 %v978_v16, %v977_v15  ;;  %v11994_v7 = vld [vmem:[%s23378_s4 + $0x610] sm:$0xff]  ;;  %v11853_v12 = vld [vmem:[%s23378_s4 + $0x1a8] sm:$0xff]  ;;  %v12012_v13 = vld [vmem:[%s23378_s4 + $0x6a0] sm:$0xff] }
  0x49   : > { %v15651_v16 = vpack.c.bf16 %v11995_v8, %v11994_v7  ;;  %v15493_v19 = vpack.c.bf16 %v11853_v12, %v11852_v9  ;;  %v12004_v7 = vld [vmem:[%s23378_s4 + $0x660] sm:$0xff]  ;;  %v12005_v8 = vld [vmem:[%s23378_s4 + $0x668] sm:$0xff]  ;;  %v11862_v9 = vld [vmem:[%s23378_s4 + $0x1f0] sm:$0xff] }
  0x4a   : > { %v12023_v12 = vld [vmem:[%s23378_s4 + $0x6f8] sm:$0xff] }
  0x4b   : > { %15588 = vmatpush3.bf16.msra.mxu0 %v15587_v23  ;;  %v15479_v23 = vpack.c.bf16 %v962_v21, %v961_v20  ;;  %v11996_v21 = vld [vmem:[%s23378_s4 + $0x620] sm:$0xff] }
  0x4c   : > { %15590 = vmatprep.subr.bf16.mxu0 %v15589_v29  ;;  %v11958_v29 = vld [vmem:[%s23378_s4 + $0x4f0] sm:$0xff] }
  0x4f   : > { %15592 = vmatpush3.bf16.msra.mxu0 %v15591_v42  ;;  %v11849_v42 = vld [vmem:[%s23378_s4 + $0x188] sm:$0xff] }
  0x50   : > { %15594 = vmatprep.subr.bf16.mxu0 %v15593_v50  ;;  %v15485_v44 = vpack.c.bf16 %v11849_v42, %v11848_v41 }
  0x53   : > { %15596 = vmatpush3.bf16.msra.mxu0 %v15595_v54 }
  0x99   : > { %v934_v50 = vpop.permute.xlu1 %933 }
 0x119   : > { %v907_v58 = vpop.f32.mrb[0].mxu0 }
 0x11a   : > { %v909_v59 = vpop.f32.mrb[1].mxu0 }
 0x11b   : > { %v914_v60 = vadd.f32 %v909_v59, %v907_v58 }
 0x11d   : > { %915 = vadd.xlane.f32.xlu0 %v914_v60  ;;  %v957_v60 = vld [vmem:[%s23378_s4 + $0x40] sm:$0xff] }
 0x11e   : > { %v15471_v63 = vpack.c.bf16 %v958_v61, %v957_v60  ;;  %v11850_v61 = vld [vmem:[%s23378_s4 + $0x190] sm:$0xff] }
 0x1aa   : > { %v916_v30 = vpop.xlane.xlu0 %915 }
 0x1ab   : > { %v918_v31 = vmul.f32 0.00390625, %v916_v30  ;;  %v15481_v30 = vpack.c.bf16 %v980_v28, %v979_v27 }
 0x1ad   : > { %v17787_v32 = vsub.f32 %v907_v58, %v918_v31  ;;  %v17789_v33 = vsub.f32 %v909_v59, %v918_v31  ;;  %v15469_v58 = vpack.c.bf16 %v974_v56, %v973_v55  ;;  %v11953_v59 = vld [vmem:[%s23378_s4 + $0x4c8] sm:$0xff]  ;;  %v11959_v31 = vld [vmem:[%s23378_s4 + $0x4f8] sm:$0xff]  ;;  %v11832_v56 = vld [vmem:[%s23378_s4 + $0x100] sm:$0xff] }
 0x1ae   : > { %v15597_v62 = vpack.c.bf16 %v11953_v59, %v11952_v57  ;;  %v941_v57 = vpop.permute.xlu1 %940  ;;  %v11992_v59 = vld [vmem:[%s23378_s4 + $0x600] sm:$0xff] }
 0x1af   : > { %v921_v34 = vmul.f32 %v17787_v32, %v17787_v32  ;;  %v922_v35 = vmul.f32 %v17789_v33, %v17789_v33  ;;  %15470 = vmatprep.subr.bf16.mxu1 %v15469_v58  ;;  %v11833_v58 = vld [vmem:[%s23378_s4 + $0x108] sm:$0xff] }
 0x1b0   : > { %15598 = vmatprep.subr.bf16.mxu0 %v15597_v62  ;;  %15472 = vmatpush3.bf16.msra.mxu1 %v15471_v63  ;;  %v11851_v62 = vld [vmem:[%s23378_s4 + $0x198] sm:$0xff]  ;;  %v12010_v63 = vld [vmem:[%s23378_s4 + $0x690] sm:$0xff]  ;;  %v15487_v3 = vpack.c.bf16 %v11833_v58, %v11832_v56 }
 0x1b1   : > { %v923_v36 = vadd.f32 %v922_v35, %v921_v34  ;;  %15600 = vmatpush3.bf16.msra.mxu0 %v15599_v2  ;;  %15474 = vmatprep.subr.bf16.mxu1 %v15473_v6  ;;  %v963_v34 = vld [vmem:[%s23378_s4 + $0x70] sm:$0xff]  ;;  %v964_v35 = vld [vmem:[%s23378_s4 + $0x78] sm:$0xff] }
 0x1b2   : > { %15602 = vmatprep.subr.bf16.mxu0 %v15601_v10  ;;  %v15483_v37 = vpack.c.bf16 %v964_v35, %v963_v34  ;;  %v11835_v6 = vld [vmem:[%s23378_s4 + $0x118] sm:$0xff]  ;;  %v15489_v10 = vpack.c.bf16 %v11851_v62, %v11850_v61  ;;  %v11998_v35 = vld [vmem:[%s23378_s4 + $0x630] sm:$0xff]  ;;  %v12020_v61 = vld [vmem:[%s23378_s4 + $0x6e0] sm:$0xff] }
 0x1b3   : > { %924 = vadd.xlane.f32.xlu0 %v923_v36  ;;  %v15609_v36 = vpack.c.bf16 %v11959_v31, %v11958_v29  ;;  %v15491_v15 = vpack.c.bf16 %v11835_v6, %v11834_v5  ;;  %v11838_v29 = vld [vmem:[%s23378_s4 + $0x130] sm:$0xff]  ;;  %v11843_v56 = vld [vmem:[%s23378_s4 + $0x158] sm:$0xff]  ;;  %v12021_v62 = vld [vmem:[%s23378_s4 + $0x6e8] sm:$0xff] }
 0x1b4   : > { %15476 = vmatpush3.bf16.msra.mxu1 %v15475_v11  ;;  %v15649_v11 = vpack.c.bf16 %v12011_v0, %v12010_v63  ;;  %v15669_v6 = vpack.c.bf16 %v12021_v62, %v12020_v61 }
 0x1b5   : > { %15604 = vmatpush3.bf16.msra.mxu0 %v15603_v14  ;;  %15478 = vmatprep.subr.bf16.mxu1 %v15477_v18  ;;  %v12013_v14 = vld [vmem:[%s23378_s4 + $0x6a8] sm:$0xff] }
 0x1b6   : > { %15606 = vmatprep.subr.bf16.mxu0 %v15605_v22  ;;  %v11837_v18 = vld [vmem:[%s23378_s4 + $0x128] sm:$0xff]  ;;  %v15653_v20 = vpack.c.bf16 %v12013_v14, %v12012_v13  ;;  %v15671_v14 = vpack.c.bf16 %v12005_v8, %v12004_v7  ;;  %v11888_v7 = vld [vmem:[%s23378_s4 + $0x2c0] sm:$0xff] }
 0x1b7   : > { %v11997_v22 = vld [vmem:[%s23378_s4 + $0x628] sm:$0xff]  ;;  %v15495_v27 = vpack.c.bf16 %v11837_v18, %v11836_v17 }
 0x1b8   : > { %15480 = vmatpush3.bf16.msra.mxu1 %v15479_v23  ;;  %v11854_v23 = vld [vmem:[%s23378_s4 + $0x1b0] sm:$0xff]  ;;  %v15655_v28 = vpack.c.bf16 %v11997_v22, %v11996_v21  ;;  %v11880_v21 = vld [vmem:[%s23378_s4 + $0x280] sm:$0xff]  ;;  %v11881_v22 = vld [vmem:[%s23378_s4 + $0x288] sm:$0xff] }
 0x1b9   : > { %15608 = vmatpush3.bf16.msra.mxu0 %v15607_v26  ;;  %15482 = vmatprep.subr.bf16.mxu1 %v15481_v30  ;;  %v12015_v26 = vld [vmem:[%s23378_s4 + $0x6b8] sm:$0xff]  ;;  %v15497_v31 = vpack.c.bf16 %v11855_v24, %v11854_v23  ;;  %v12072_v23 = vld [vmem:[%s23378_s4 + $0x880] sm:$0xff]  ;;  %v12073_v24 = vld [vmem:[%s23378_s4 + $0x888] sm:$0xff] }
 0x1ba   : > { %15610 = vmatprep.subr.bf16.mxu0 %v15609_v36  ;;  %v11839_v30 = vld [vmem:[%s23378_s4 + $0x138] sm:$0xff]  ;;  %v15657_v34 = vpack.c.bf16 %v12015_v26, %v12014_v25  ;;  %v11889_v8 = vld [vmem:[%s23378_s4 + $0x2c8] sm:$0xff] }
 0x1bb   : > { %v11999_v36 = vld [vmem:[%s23378_s4 + $0x638] sm:$0xff]  ;;  %v15499_v41 = vpack.c.bf16 %v11839_v30, %v11838_v29  ;;  %v11864_v29 = vld [vmem:[%s23378_s4 + $0x200] sm:$0xff]  ;;  %v11865_v30 = vld [vmem:[%s23378_s4 + $0x208] sm:$0xff] }
 0x1bc   : > { %15484 = vmatpush3.bf16.msra.mxu1 %v15483_v37  ;;  %v11856_v37 = vld [vmem:[%s23378_s4 + $0x1c0] sm:$0xff]  ;;  %v15659_v42 = vpack.c.bf16 %v11999_v36, %v11998_v35  ;;  %v11882_v35 = vld [vmem:[%s23378_s4 + $0x290] sm:$0xff]  ;;  %v11883_v36 = vld [vmem:[%s23378_s4 + $0x298] sm:$0xff] }
 0x1bd   : > { %15612 = vmatpush3.bf16.msra.mxu0 %v15611_v40  ;;  %15486 = vmatprep.subr.bf16.mxu1 %v15485_v44  ;;  %v12017_v40 = vld [vmem:[%s23378_s4 + $0x6c8] sm:$0xff]  ;;  %v15501_v45 = vpack.c.bf16 %v11857_v38, %v11856_v37  ;;  %v12074_v37 = vld [vmem:[%s23378_s4 + $0x890] sm:$0xff]  ;;  %v12075_v38 = vld [vmem:[%s23378_s4 + $0x898] sm:$0xff] }
 0x1be   : > { %15646 = vmatprep.subr.bf16.mxu0 %v15645_v46  ;;  %v11841_v44 = vld [vmem:[%s23378_s4 + $0x148] sm:$0xff]  ;;  %v15661_v46 = vpack.c.bf16 %v12017_v40, %v12016_v39  ;;  %v15519_v39 = vpack.c.bf16 %v11865_v30, %v11864_v29  ;;  %v12067_v30 = vld [vmem:[%s23378_s4 + $0x858] sm:$0xff] }
 0x240   : > { %v925_v47 = vpop.xlane.xlu0 %924 }
 0x241   : > { %v926_v48 = vmul.f32 0.00390625, %v925_v47  ;;  %v12000_v47 = vld [vmem:[%s23378_s4 + $0x640] sm:$0xff] }
 0x243   : > { %v927_v49 = vadd.f32 1e-05, %v926_v48  ;;  %v12001_v48 = vld [vmem:[%s23378_s4 + $0x648] sm:$0xff] }
 0x245   : > { %17443 = vrsqrt.f32 %v927_v49  ;;  %v11858_v49 = vld [vmem:[%s23378_s4 + $0x1d0] sm:$0xff] }
 0x24f   : > { %v17444_v51 = vpop.eup %17443 }
 0x250   : > { %v929_v52 = vmul.f32 %v17444_v51, %v17787_v32  ;;  %v930_v53 = vmul.f32 %v17444_v51, %v17789_v33  ;;  %v11993_v32 = vld [vmem:[%s23378_s4 + $0x608] sm:$0xff]  ;;  %v12018_v51 = vld [vmem:[%s23378_s4 + $0x6d0] sm:$0xff] }
 0x251   : > { %v15647_v4 = vpack.c.bf16 %v11993_v32, %v11992_v59  ;;  %v12002_v59 = vld [vmem:[%s23378_s4 + $0x650] sm:$0xff]  ;;  %v12003_v32 = vld [vmem:[%s23378_s4 + $0x658] sm:$0xff] }
 0x252   : > { %v936_v54 = vmul.f32 %v934_v50, %v929_v52  ;;  %v937_v55 = vmul.f32 %v934_v50, %v930_v53  ;;  %v11859_v50 = vld [vmem:[%s23378_s4 + $0x1d8] sm:$0xff]  ;;  %v15503_v53 = vpack.c.bf16 %v11841_v44, %v11840_v43  ;;  %v15667_v0 = vpack.c.bf16 %v12003_v32, %v12002_v59  ;;  %v12058_v43 = vld [vmem:[%s23378_s4 + $0x810] sm:$0xff] }
 0x253   : > { %v12019_v52 = vld [vmem:[%s23378_s4 + $0x6d8] sm:$0xff]  ;;  %v15521_v44 = vpack.c.bf16 %v11883_v36, %v11882_v35  ;;  %v11886_v59 = vld [vmem:[%s23378_s4 + $0x2b0] sm:$0xff]  ;;  %v12084_v35 = vld [vmem:[%s23378_s4 + $0x8e0] sm:$0xff] }
 0x254   : > { %v943_v33 = vadd.f32 %v941_v57, %v936_v54  ;;  %v944_v60 = vadd.f32 %v941_v57, %v937_v55  ;;  %v15663_v54 = vpack.c.bf16 %v12001_v48, %v12000_v47  ;;  %v11842_v55 = vld [vmem:[%s23378_s4 + $0x150] sm:$0xff]  ;;  %v15505_v57 = vpack.c.bf16 %v11859_v50, %v11858_v49  ;;  %v11884_v47 = vld [vmem:[%s23378_s4 + $0x2a0] sm:$0xff]  ;;  %v11885_v48 = vld [vmem:[%s23378_s4 + $0x2a8] sm:$0xff] }
 0x255   : > { %v15665_v58 = vpack.c.bf16 %v12019_v52, %v12018_v51  ;;  %v15507_v63 = vpack.c.bf16 %v11843_v56, %v11842_v55  ;;  %v12076_v49 = vld [vmem:[%s23378_s4 + $0x8a0] sm:$0xff]  ;;  %v12077_v50 = vld [vmem:[%s23378_s4 + $0x8a8] sm:$0xff]  ;;  %v11887_v32 = vld [vmem:[%s23378_s4 + $0x2b8] sm:$0xff] }
 0x256   : > { %v17965_v1 = vmax.f32 %v943_v33, 0.0  ;;  %v17967_v2 = vmax.f32 %v944_v60, 0.0  ;;  %v11860_v33 = vld [vmem:[%s23378_s4 + $0x1e0] sm:$0xff]  ;;  %v11861_v60 = vld [vmem:[%s23378_s4 + $0x1e8] sm:$0xff] }
 0x257   : > { %v15509_v5 = vpack.c.bf16 %v11861_v60, %v11860_v33  ;;  %v11869_v55 = vld [vmem:[%s23378_s4 + $0x228] sm:$0xff]  ;;  %v12060_v56 = vld [vmem:[%s23378_s4 + $0x820] sm:$0xff]  ;;  %v12078_v33 = vld [vmem:[%s23378_s4 + $0x8b0] sm:$0xff] }
 0x258   : > { %1045 = vmatprep.mubr.f32.mxu1 %v17967_v2  ;;  %1457 = vmatprep.mubr.f32.mxu0 %v17967_v2  ;;  %v12079_v60 = vld [vmem:[%s23378_s4 + $0x8b8] sm:$0xff]  ;;  %v12085_v36 = vld [vmem:[%s23378_s4 + $0x8e8] sm:$0xff] }
 0x259   : > { %1046 = vmatmul.mubr.f32.vlgmr.msra.gmra.mrb[0].mxu1 %v17965_v1  ;;  %1458 = vmatmul.mubr.f32.vlgmr.msra.gmra.mrb[2].mxu0 %v17965_v1 }
 0x25a   : > { %15488 = vmatpush3.bf16.msra.mxu1 %v15487_v3  ;;  %15648 = vmatpush3.bf16.msra.mxu0 %v15647_v4  ;;  %v11844_v3 = vld [vmem:[%s23378_s4 + $0x160] sm:$0xff]  ;;  %v11845_v4 = vld [vmem:[%s23378_s4 + $0x168] sm:$0xff] }
 0x25b   : > { %1148 = vmatprep.mubr.f32.mxu1 %v17967_v2  ;;  %1663 = vmatprep.mubr.f32.mxu0 %v17967_v2  ;;  %v15511_v13 = vpack.c.bf16 %v11845_v4, %v11844_v3  ;;  %v11871_v3 = vld [vmem:[%s23378_s4 + $0x238] sm:$0xff]  ;;  %v12062_v4 = vld [vmem:[%s23378_s4 + $0x830] sm:$0xff] }
 0x25c   : > { %15490 = vmatprep.subr.bf16.mxu1 %v15489_v10  ;;  %15650 = vmatprep.subr.bf16.mxu0 %v15649_v11  ;;  %v11863_v10 = vld [vmem:[%s23378_s4 + $0x1f8] sm:$0xff]  ;;  %v12022_v11 = vld [vmem:[%s23378_s4 + $0x6f0] sm:$0xff] }
 0x25d   : > { %v15513_v17 = vpack.c.bf16 %v11863_v10, %v11862_v9  ;;  %v15673_v18 = vpack.c.bf16 %v12023_v12, %v12022_v11  ;;  %v12080_v9 = vld [vmem:[%s23378_s4 + $0x8c0] sm:$0xff]  ;;  %v12081_v10 = vld [vmem:[%s23378_s4 + $0x8c8] sm:$0xff] }
 0x25e   : > { %15492 = vmatpush3.bf16.msra.mxu1 %v15491_v15  ;;  %15652 = vmatpush3.bf16.msra.mxu0 %v15651_v16  ;;  %v11846_v15 = vld [vmem:[%s23378_s4 + $0x170] sm:$0xff]  ;;  %v11847_v16 = vld [vmem:[%s23378_s4 + $0x178] sm:$0xff] }
 0x25f   : > { %15494 = vmatprep.subr.bf16.mxu1 %v15493_v19  ;;  %15654 = vmatprep.subr.bf16.mxu0 %v15653_v20  ;;  %v12006_v19 = vld [vmem:[%s23378_s4 + $0x670] sm:$0xff]  ;;  %v12007_v20 = vld [vmem:[%s23378_s4 + $0x678] sm:$0xff]  ;;  %v15515_v25 = vpack.c.bf16 %v11847_v16, %v11846_v15  ;;  %v11873_v15 = vld [vmem:[%s23378_s4 + $0x248] sm:$0xff] }
 0x260   : > { %v15675_v26 = vpack.c.bf16 %v12007_v20, %v12006_v19  ;;  %v12064_v16 = vld [vmem:[%s23378_s4 + $0x840] sm:$0xff]  ;;  %v11890_v19 = vld [vmem:[%s23378_s4 + $0x2d0] sm:$0xff]  ;;  %v11891_v20 = vld [vmem:[%s23378_s4 + $0x2d8] sm:$0xff] }
 0x262   : > { %15496 = vmatpush3.bf16.msra.mxu1 %v15495_v27  ;;  %15656 = vmatpush3.bf16.msra.mxu0 %v15655_v28  ;;  %v15517_v27 = vpack.c.bf16 %v11881_v22, %v11880_v21  ;;  %v15709_v28 = vpack.c.bf16 %v12073_v24, %v12072_v23  ;;  %v12082_v21 = vld [vmem:[%s23378_s4 + $0x8d0] sm:$0xff]  ;;  %v12083_v22 = vld [vmem:[%s23378_s4 + $0x8d8] sm:$0xff] }
 0x263   : > { %15498 = vmatprep.subr.bf16.mxu1 %v15497_v31  ;;  %15658 = vmatprep.subr.bf16.mxu0 %v15657_v34  ;;  %v12056_v31 = vld [vmem:[%s23378_s4 + $0x800] sm:$0xff]  ;;  %v12057_v34 = vld [vmem:[%s23378_s4 + $0x808] sm:$0xff]  ;;  %v15729_v29 = vpack.c.bf16 %v12083_v22, %v12082_v21 }
 0x264   : > { %v15711_v40 = vpack.c.bf16 %v12057_v34, %v12056_v31  ;;  %v11892_v31 = vld [vmem:[%s23378_s4 + $0x2e0] sm:$0xff]  ;;  %v11893_v34 = vld [vmem:[%s23378_s4 + $0x2e8] sm:$0xff] }
 0x266   : > { %15500 = vmatpush3.bf16.msra.mxu1 %v15499_v41  ;;  %15660 = vmatpush3.bf16.msra.mxu0 %v15659_v42  ;;  %v11866_v41 = vld [vmem:[%s23378_s4 + $0x210] sm:$0xff]  ;;  %v11867_v42 = vld [vmem:[%s23378_s4 + $0x218] sm:$0xff] }
 0x267   : > { %15502 = vmatprep.subr.bf16.mxu1 %v15501_v45  ;;  %15662 = vmatprep.subr.bf16.mxu0 %v15661_v46  ;;  %v15713_v45 = vpack.c.bf16 %v12075_v38, %v12074_v37  ;;  %v12059_v46 = vld [vmem:[%s23378_s4 + $0x818] sm:$0xff]  ;;  %v15523_v51 = vpack.c.bf16 %v11867_v42, %v11866_v41  ;;  %v11877_v41 = vld [vmem:[%s23378_s4 + $0x268] sm:$0xff]  ;;  %v12068_v42 = vld [vmem:[%s23378_s4 + $0x860] sm:$0xff] }
 0x268   : > { %v15715_v52 = vpack.c.bf16 %v12059_v46, %v12058_v43  ;;  %v15733_v43 = vpack.c.bf16 %v12085_v36, %v12084_v35  ;;  %v11895_v46 = vld [vmem:[%s23378_s4 + $0x2f8] sm:$0xff] }
 0x26a   : > { %15504 = vmatpush3.bf16.msra.mxu1 %v15503_v53  ;;  %15664 = vmatpush3.bf16.msra.mxu0 %v15663_v54  ;;  %v15525_v53 = vpack.c.bf16 %v11885_v48, %v11884_v47  ;;  %v11868_v54 = vld [vmem:[%s23378_s4 + $0x220] sm:$0xff]  ;;  %v12086_v47 = vld [vmem:[%s23378_s4 + $0x8f0] sm:$0xff]  ;;  %v12087_v48 = vld [vmem:[%s23378_s4 + $0x8f8] sm:$0xff] }
 0x26b   : > { %15506 = vmatprep.subr.bf16.mxu1 %v15505_v57  ;;  %15666 = vmatprep.subr.bf16.mxu0 %v15665_v58  ;;  %v15717_v57 = vpack.c.bf16 %v12077_v50, %v12076_v49  ;;  %v12061_v58 = vld [vmem:[%s23378_s4 + $0x828] sm:$0xff]  ;;  %v15527_v61 = vpack.c.bf16 %v11869_v55, %v11868_v54  ;;  %v12070_v54 = vld [vmem:[%s23378_s4 + $0x870] sm:$0xff]  ;;  %v15737_v55 = vpack.c.bf16 %v12087_v48, %v12086_v47 }
 0x26c   : > { %v15719_v62 = vpack.c.bf16 %v12061_v58, %v12060_v56  ;;  %v12071_v56 = vld [vmem:[%s23378_s4 + $0x878] sm:$0xff]  ;;  %v11913_v58 = vld [vmem:[%s23378_s4 + $0x388] sm:$0xff] }
 0x26e   : > { %15508 = vmatpush3.bf16.msra.mxu1 %v15507_v63  ;;  %15668 = vmatpush3.bf16.msra.mxu0 %v15667_v0  ;;  %v15529_v63 = vpack.c.bf16 %v11887_v32, %v11886_v59  ;;  %v11870_v0 = vld [vmem:[%s23378_s4 + $0x230] sm:$0xff]  ;;  %v12136_v59 = vld [vmem:[%s23378_s4 + $0xa80] sm:$0xff]  ;;  %v12137_v32 = vld [vmem:[%s23378_s4 + $0xa88] sm:$0xff] }
 0x26f   : > { %15510 = vmatprep.subr.bf16.mxu1 %v15509_v5  ;;  %15670 = vmatprep.subr.bf16.mxu0 %v15669_v6  ;;  %v15721_v5 = vpack.c.bf16 %v12079_v60, %v12078_v33  ;;  %v12063_v6 = vld [vmem:[%s23378_s4 + $0x838] sm:$0xff]  ;;  %v15531_v11 = vpack.c.bf16 %v11871_v3, %v11870_v0  ;;  %v15739_v60 = vpack.c.bf16 %v12071_v56, %v12070_v54  ;;  %v12120_v3 = vld [vmem:[%s23378_s4 + $0xa00] sm:$0xff]  ;;  %v12129_v54 = vld [vmem:[%s23378_s4 + $0xa48] sm:$0xff] }
 0x270   : > { %v15723_v12 = vpack.c.bf16 %v12063_v6, %v12062_v4  ;;  %v15773_v0 = vpack.c.bf16 %v12137_v32, %v12136_v59  ;;  %v12121_v4 = vld [vmem:[%s23378_s4 + $0xa08] sm:$0xff]  ;;  %v11915_v6 = vld [vmem:[%s23378_s4 + $0x398] sm:$0xff] }
 0x271   : > { %v11923_v56 = vld [vmem:[%s23378_s4 + $0x3d8] sm:$0xff] }
 0x272   : > { %15512 = vmatpush3.bf16.msra.mxu1 %v15511_v13  ;;  %15672 = vmatpush3.bf16.msra.mxu0 %v15671_v14  ;;  %v15533_v13 = vpack.c.bf16 %v11889_v8, %v11888_v7  ;;  %v11872_v14 = vld [vmem:[%s23378_s4 + $0x240] sm:$0xff]  ;;  %v12138_v8 = vld [vmem:[%s23378_s4 + $0xa90] sm:$0xff] }
 0x273   : > { %15514 = vmatprep.subr.bf16.mxu1 %v15513_v17  ;;  %15674 = vmatprep.subr.bf16.mxu0 %v15673_v18  ;;  %v15725_v17 = vpack.c.bf16 %v12081_v10, %v12080_v9  ;;  %v12065_v18 = vld [vmem:[%s23378_s4 + $0x848] sm:$0xff]  ;;  %v15535_v23 = vpack.c.bf16 %v11873_v15, %v11872_v14  ;;  %v12139_v9 = vld [vmem:[%s23378_s4 + $0xa98] sm:$0xff]  ;;  %v15775_v10 = vpack.c.bf16 %v12121_v4, %v12120_v3  ;;  %v11924_v3 = vld [vmem:[%s23378_s4 + $0x3e0] sm:$0xff] }
 0x274   : > { %v15727_v24 = vpack.c.bf16 %v12065_v18, %v12064_v16  ;;  %v12123_v15 = vld [vmem:[%s23378_s4 + $0xa18] sm:$0xff]  ;;  %v11916_v16 = vld [vmem:[%s23378_s4 + $0x3a0] sm:$0xff]  ;;  %v15777_v18 = vpack.c.bf16 %v12139_v9, %v12138_v8  ;;  %v11925_v4 = vld [vmem:[%s23378_s4 + $0x3e8] sm:$0xff] }
 0x275   : > { %v15573_v9 = vpack.c.bf16 %v11925_v4, %v11924_v3  ;;  %v12206_v3 = vld [vmem:[%s23378_s4 + $0xcb0] sm:$0xff]  ;;  %v12207_v4 = vld [vmem:[%s23378_s4 + $0xcb8] sm:$0xff] }
 0x276   : > { %15516 = vmatpush3.bf16.msra.mxu1 %v15515_v25  ;;  %15676 = vmatpush3.bf16.msra.mxu0 %v15675_v26  ;;  %v15537_v25 = vpack.c.bf16 %v11891_v20, %v11890_v19  ;;  %v11874_v26 = vld [vmem:[%s23378_s4 + $0x250] sm:$0xff]  ;;  %v12140_v19 = vld [vmem:[%s23378_s4 + $0xaa0] sm:$0xff]  ;;  %v12141_v20 = vld [vmem:[%s23378_s4 + $0xaa8] sm:$0xff] }
 0x277   : > { %15518 = vmatprep.subr.bf16.mxu1 %v15517_v27  ;;  %15710 = vmatprep.subr.bf16.mxu0 %v15709_v28  ;;  %v11875_v27 = vld [vmem:[%s23378_s4 + $0x258] sm:$0xff]  ;;  %v12066_v28 = vld [vmem:[%s23378_s4 + $0x850] sm:$0xff] }
 0x278   : > { %v15539_v37 = vpack.c.bf16 %v11875_v27, %v11874_v26  ;;  %v15731_v38 = vpack.c.bf16 %v12067_v30, %v12066_v28  ;;  %v12124_v26 = vld [vmem:[%s23378_s4 + $0xa20] sm:$0xff]  ;;  %v15781_v27 = vpack.c.bf16 %v12141_v20, %v12140_v19  ;;  %v12125_v28 = vld [vmem:[%s23378_s4 + $0xa28] sm:$0xff]  ;;  %v11919_v30 = vld [vmem:[%s23378_s4 + $0x3b8] sm:$0xff] }
 0x279   : > { %1149 = vmatmul.mubr.f32.vlgmr.msra.gmra.mrb[2].mxu1 %v17965_v1  ;;  %1664 = vmatmul.mubr.f32.vlgmr.msra.gmra.mrb[4].mxu0 %v17965_v1  ;;  %v15783_v36 = vpack.c.bf16 %v12125_v28, %v12124_v26  ;;  %v12135_v26 = vld [vmem:[%s23378_s4 + $0xa78] sm:$0xff]  ;;  %v11977_v28 = vld [vmem:[%s23378_s4 + $0x588] sm:$0xff] }
 0x27a   : > { %15520 = vmatpush3.bf16.msra.mxu1 %v15519_v39  ;;  %1251 = vmatprep.mubr.f32.mxu1 %v17967_v2  ;;  %v15541_v39 = vpack.c.bf16 %v11893_v34, %v11892_v31  ;;  %v12142_v31 = vld [vmem:[%s23378_s4 + $0xab0] sm:$0xff]  ;;  %v12143_v34 = vld [vmem:[%s23378_s4 + $0xab8] sm:$0xff] }
 0x27b   : > { %15712 = vmatpush3.bf16.msra.mxu0 %v15711_v40  ;;  %1869 = vmatprep.mubr.f32.mxu0 %v17967_v2  ;;  %v11876_v40 = vld [vmem:[%s23378_s4 + $0x260] sm:$0xff] }
 0x27c   : > { %15522 = vmatprep.subr.bf16.mxu1 %v15521_v44  ;;  %15714 = vmatprep.subr.bf16.mxu0 %v15713_v45  ;;  %v12069_v44 = vld [vmem:[%s23378_s4 + $0x868] sm:$0xff]  ;;  %v11894_v45 = vld [vmem:[%s23378_s4 + $0x2f0] sm:$0xff]  ;;  %v15543_v49 = vpack.c.bf16 %v11877_v41, %v11876_v40  ;;  %v15785_v41 = vpack.c.bf16 %v12143_v34, %v12142_v31 }
 0x27d   : > { %v15735_v50 = vpack.c.bf16 %v12069_v44, %v12068_v42  ;;  %v12126_v40 = vld [vmem:[%s23378_s4 + $0xa30] sm:$0xff]  ;;  %v12127_v42 = vld [vmem:[%s23378_s4 + $0xa38] sm:$0xff]  ;;  %v11921_v44 = vld [vmem:[%s23378_s4 + $0x3c8] sm:$0xff] }
 0x27e   : > { %15524 = vmatpush3.bf16.msra.mxu1 %v15523_v51  ;;  %v15545_v51 = vpack.c.bf16 %v11895_v46, %v11894_v45  ;;  %v12144_v45 = vld [vmem:[%s23378_s4 + $0xac0] sm:$0xff]  ;;  %v12145_v46 = vld [vmem:[%s23378_s4 + $0xac8] sm:$0xff]  ;;  %v15787_v48 = vpack.c.bf16 %v12127_v42, %v12126_v40  ;;  %v11979_v42 = vld [vmem:[%s23378_s4 + $0x598] sm:$0xff] }
 0x27f   : > { %15716 = vmatpush3.bf16.msra.mxu0 %v15715_v52  ;;  %15526 = vmatprep.subr.bf16.mxu1 %v15525_v53  ;;  %v11878_v52 = vld [vmem:[%s23378_s4 + $0x270] sm:$0xff]  ;;  %v11879_v53 = vld [vmem:[%s23378_s4 + $0x278] sm:$0xff]  ;;  %v12185_v40 = vld [vmem:[%s23378_s4 + $0xc08] sm:$0xff] }
 0x280   : > { %15718 = vmatprep.subr.bf16.mxu0 %v15717_v57  ;;  %v11912_v57 = vld [vmem:[%s23378_s4 + $0x380] sm:$0xff]  ;;  %v15547_v33 = vpack.c.bf16 %v11879_v53, %v11878_v52  ;;  %v15789_v53 = vpack.c.bf16 %v12145_v46, %v12144_v45  ;;  %v12203_v45 = vld [vmem:[%s23378_s4 + $0xc98] sm:$0xff] }
 0x281   : > { %v12128_v52 = vld [vmem:[%s23378_s4 + $0xa40] sm:$0xff] }
 0x282   : > { %15528 = vmatpush3.bf16.msra.mxu1 %v15527_v61  ;;  %v15549_v61 = vpack.c.bf16 %v11913_v58, %v11912_v57  ;;  %v12146_v57 = vld [vmem:[%s23378_s4 + $0xad0] sm:$0xff]  ;;  %v12147_v58 = vld [vmem:[%s23378_s4 + $0xad8] sm:$0xff]  ;;  %v15791_v32 = vpack.c.bf16 %v12129_v54, %v12128_v52  ;;  %v11980_v52 = vld [vmem:[%s23378_s4 + $0x5a0] sm:$0xff] }
 0x283   : > { %15720 = vmatpush3.bf16.msra.mxu0 %v15719_v62  ;;  %15530 = vmatprep.subr.bf16.mxu1 %v15529_v63  ;;  %v11896_v62 = vld [vmem:[%s23378_s4 + $0x300] sm:$0xff]  ;;  %v11897_v63 = vld [vmem:[%s23378_s4 + $0x308] sm:$0xff] }
 0x284   : > { %15722 = vmatprep.subr.bf16.mxu0 %v15721_v5  ;;  %v11914_v5 = vld [vmem:[%s23378_s4 + $0x390] sm:$0xff]  ;;  %v15551_v7 = vpack.c.bf16 %v11897_v63, %v11896_v62  ;;  %v15793_v63 = vpack.c.bf16 %v12147_v58, %v12146_v57 }
 0x285   : > { %v15553_v14 = vpack.c.bf16 %v11915_v6, %v11914_v5  ;;  %v12130_v62 = vld [vmem:[%s23378_s4 + $0xa50] sm:$0xff]  ;;  %v12148_v5 = vld [vmem:[%s23378_s4 + $0xae0] sm:$0xff]  ;;  %v12149_v6 = vld [vmem:[%s23378_s4 + $0xae8] sm:$0xff] }
 0x286   : > { %15532 = vmatpush3.bf16.msra.mxu1 %v15531_v11  ;;  %v11898_v11 = vld [vmem:[%s23378_s4 + $0x310] sm:$0xff] }
 0x287   : > { %15724 = vmatpush3.bf16.msra.mxu0 %v15723_v12  ;;  %15534 = vmatprep.subr.bf16.mxu1 %v15533_v13  ;;  %v11899_v12 = vld [vmem:[%s23378_s4 + $0x318] sm:$0xff]  ;;  %v12122_v13 = vld [vmem:[%s23378_s4 + $0xa10] sm:$0xff] }
 0x288   : > { %15726 = vmatprep.subr.bf16.mxu0 %v15725_v17  ;;  %v11917_v17 = vld [vmem:[%s23378_s4 + $0x3a8] sm:$0xff]  ;;  %v15555_v21 = vpack.c.bf16 %v11899_v12, %v11898_v11  ;;  %v15779_v22 = vpack.c.bf16 %v12123_v15, %v12122_v13  ;;  %v12132_v12 = vld [vmem:[%s23378_s4 + $0xa60] sm:$0xff]  ;;  %v15797_v13 = vpack.c.bf16 %v12149_v6, %v12148_v5  ;;  %v11926_v15 = vld [vmem:[%s23378_s4 + $0x3f0] sm:$0xff] }
 0x289   : > { %v11909_v11 = vld [vmem:[%s23378_s4 + $0x368] sm:$0xff] }
 0x28a   : > { %15536 = vmatpush3.bf16.msra.mxu1 %v15535_v23  ;;  %v15557_v23 = vpack.c.bf16 %v11917_v17, %v11916_v16  ;;  %v11927_v16 = vld [vmem:[%s23378_s4 + $0x3f8] sm:$0xff]  ;;  %v12150_v17 = vld [vmem:[%s23378_s4 + $0xaf0] sm:$0xff] }
 0x28b   : > { %15728 = vmatpush3.bf16.msra.mxu0 %v15727_v24  ;;  %15538 = vmatprep.subr.bf16.mxu1 %v15537_v25  ;;  %v11900_v24 = vld [vmem:[%s23378_s4 + $0x320] sm:$0xff]  ;;  %v11901_v25 = vld [vmem:[%s23378_s4 + $0x328] sm:$0xff] }
 0x28c   : > { %15730 = vmatprep.subr.bf16.mxu0 %v15729_v29  ;;  %v11918_v29 = vld [vmem:[%s23378_s4 + $0x3b0] sm:$0xff]  ;;  %v15559_v35 = vpack.c.bf16 %v11901_v25, %v11900_v24 }
 0x28d   : > { %v12134_v24 = vld [vmem:[%s23378_s4 + $0xa70] sm:$0xff] }
 0x28e   : > { %15540 = vmatpush3.bf16.msra.mxu1 %v15539_v37  ;;  %v15561_v37 = vpack.c.bf16 %v11919_v30, %v11918_v29  ;;  %v12200_v29 = vld [vmem:[%s23378_s4 + $0xc80] sm:$0xff]  ;;  %v12201_v30 = vld [vmem:[%s23378_s4 + $0xc88] sm:$0xff]  ;;  %v15803_v34 = vpack.c.bf16 %v12135_v26, %v12134_v24  ;;  %v11987_v26 = vld [vmem:[%s23378_s4 + $0x5d8] sm:$0xff] }
 0x28f   : > { %15732 = vmatpush3.bf16.msra.mxu0 %v15731_v38  ;;  %15542 = vmatprep.subr.bf16.mxu1 %v15541_v39  ;;  %v11902_v38 = vld [vmem:[%s23378_s4 + $0x330] sm:$0xff]  ;;  %v11903_v39 = vld [vmem:[%s23378_s4 + $0x338] sm:$0xff]  ;;  %v12193_v24 = vld [vmem:[%s23378_s4 + $0xc48] sm:$0xff] }
 0x290   : > { %15734 = vmatprep.subr.bf16.mxu0 %v15733_v43  ;;  %v11920_v43 = vld [vmem:[%s23378_s4 + $0x3c0] sm:$0xff]  ;;  %v15563_v47 = vpack.c.bf16 %v11903_v39, %v11902_v38  ;;  %v15837_v38 = vpack.c.bf16 %v12201_v30, %v12200_v29 }
 0x291   : > { %v12184_v39 = vld [vmem:[%s23378_s4 + $0xc00] sm:$0xff] }
 0x292   : > { %15544 = vmatpush3.bf16.msra.mxu1 %v15543_v49  ;;  %v15565_v49 = vpack.c.bf16 %v11921_v44, %v11920_v43  ;;  %v12202_v44 = vld [vmem:[%s23378_s4 + $0xc90] sm:$0xff]  ;;  %v15839_v46 = vpack.c.bf16 %v12185_v40, %v12184_v39  ;;  %v11988_v39 = vld [vmem:[%s23378_s4 + $0x5e0] sm:$0xff]  ;;  %v11989_v40 = vld [vmem:[%s23378_s4 + $0x5e8] sm:$0xff] }
 0x293   : > { %15736 = vmatpush3.bf16.msra.mxu0 %v15735_v50  ;;  %15546 = vmatprep.subr.bf16.mxu1 %v15545_v51  ;;  %v11904_v50 = vld [vmem:[%s23378_s4 + $0x340] sm:$0xff]  ;;  %v11905_v51 = vld [vmem:[%s23378_s4 + $0x348] sm:$0xff]  ;;  %v15841_v54 = vpack.c.bf16 %v12203_v45, %v12202_v44  ;;  %v15637_v45 = vpack.c.bf16 %v11989_v40, %v11988_v39  ;;  %v12270_v39 = vld [vmem:[%s23378_s4 + $0xeb0] sm:$0xff] }
 0x294   : > { %15738 = vmatprep.subr.bf16.mxu0 %v15737_v55  ;;  %v11922_v55 = vld [vmem:[%s23378_s4 + $0x3d0] sm:$0xff]  ;;  %v15567_v59 = vpack.c.bf16 %v11905_v51, %v11904_v50  ;;  %v12187_v51 = vld [vmem:[%s23378_s4 + $0xc18] sm:$0xff] }
 0x295   : > { %v12271_v40 = vld [vmem:[%s23378_s4 + $0xeb8] sm:$0xff] }
 0x296   : > { %15548 = vmatpush3.bf16.msra.mxu1 %v15547_v33  ;;  %v15569_v33 = vpack.c.bf16 %v11923_v56, %v11922_v55  ;;  %v12204_v55 = vld [vmem:[%s23378_s4 + $0xca0] sm:$0xff]  ;;  %v12205_v56 = vld [vmem:[%s23378_s4 + $0xca8] sm:$0xff] }
 0x297   : > { %15740 = vmatpush3.bf16.msra.mxu0 %v15739_v60  ;;  %15550 = vmatprep.subr.bf16.mxu1 %v15549_v61  ;;  %v11906_v60 = vld [vmem:[%s23378_s4 + $0x350] sm:$0xff]  ;;  %v11907_v61 = vld [vmem:[%s23378_s4 + $0x358] sm:$0xff] }
 0x298   : > { %15774 = vmatprep.subr.bf16.mxu0 %v15773_v0  ;;  %v12131_v0 = vld [vmem:[%s23378_s4 + $0xa58] sm:$0xff] }
 0x299   : > { %1252 = vmatmul.mubr.f32.vlgmr.msra.gmra.mrb[4].mxu1 %v17965_v1  ;;  %v15795_v8 = vpack.c.bf16 %v12131_v0, %v12130_v62  ;;  %v12189_v62 = vld [vmem:[%s23378_s4 + $0xc28] sm:$0xff]  ;;  %v11983_v0 = vld [vmem:[%s23378_s4 + $0x5b8] sm:$0xff] }
 0x29a   : > { %1870 = vmatmul.mubr.f32.vlgmr.msra.gmra.mrb[6].mxu0 %v17965_v1  ;;  %15552 = vmatpush3.bf16.msra.mxu1 %v15551_v7  ;;  %v15571_v7 = vpack.c.bf16 %v11907_v61, %v11906_v60  ;;  %v12188_v60 = vld [vmem:[%s23378_s4 + $0xc20] sm:$0xff]  ;;  %v15845_v61 = vpack.c.bf16 %v12205_v56, %v12204_v55 }
 0x29b   : > { %1354 = vmatprep.mubr.f32.mxu1 %v17967_v2  ;;  %15776 = vmatpush3.bf16.msra.mxu0 %v15775_v10  ;;  %v11908_v10 = vld [vmem:[%s23378_s4 + $0x360] sm:$0xff]  ;;  %v15847_v6 = vpack.c.bf16 %v12189_v62, %v12188_v60  ;;  %v12199_v60 = vld [vmem:[%s23378_s4 + $0xc78] sm:$0xff]  ;;  %v12041_v62 = vld [vmem:[%s23378_s4 + $0x788] sm:$0xff] }
 0x29c   : > { %2075 = vmatprep.mubr.f32.mxu0 %v17967_v2  ;;  %15554 = vmatprep.subr.bf16.mxu1 %v15553_v14  ;;  %v12133_v14 = vld [vmem:[%s23378_s4 + $0xa68] sm:$0xff]  ;;  %v15575_v19 = vpack.c.bf16 %v11909_v11, %v11908_v10  ;;  %v12190_v10 = vld [vmem:[%s23378_s4 + $0xc30] sm:$0xff]  ;;  %v15849_v11 = vpack.c.bf16 %v12207_v4, %v12206_v3 }
 0x29d   : > { %15778 = vmatprep.subr.bf16.mxu0 %v15777_v18  ;;  %v12151_v18 = vld [vmem:[%s23378_s4 + $0xaf8] sm:$0xff]  ;;  %v15799_v20 = vpack.c.bf16 %v12133_v14, %v12132_v12  ;;  %v11985_v14 = vld [vmem:[%s23378_s4 + $0x5c8] sm:$0xff] }
 0x29e   : > { %15556 = vmatpush3.bf16.msra.mxu1 %v15555_v21  ;;  %v15577_v21 = vpack.c.bf16 %v11927_v16, %v11926_v15  ;;  %v15801_v25 = vpack.c.bf16 %v12151_v18, %v12150_v17  ;;  %v12191_v12 = vld [vmem:[%s23378_s4 + $0xc38] sm:$0xff]  ;;  %v12208_v15 = vld [vmem:[%s23378_s4 + $0xcc0] sm:$0xff]  ;;  %v12209_v16 = vld [vmem:[%s23378_s4 + $0xcc8] sm:$0xff] }
 0x29f   : > { %15780 = vmatpush3.bf16.msra.mxu0 %v15779_v22  ;;  %15558 = vmatprep.subr.bf16.mxu1 %v15557_v23  ;;  %v11910_v22 = vld [vmem:[%s23378_s4 + $0x370] sm:$0xff]  ;;  %v11911_v23 = vld [vmem:[%s23378_s4 + $0x378] sm:$0xff]  ;;  %v15851_v18 = vpack.c.bf16 %v12191_v12, %v12190_v10  ;;  %v12249_v10 = vld [vmem:[%s23378_s4 + $0xe08] sm:$0xff] }
 0x2a0   : > { %15782 = vmatprep.subr.bf16.mxu0 %v15781_v27  ;;  %v11976_v27 = vld [vmem:[%s23378_s4 + $0x580] sm:$0xff]  ;;  %v15579_v31 = vpack.c.bf16 %v11911_v23, %v11910_v22  ;;  %v15853_v23 = vpack.c.bf16 %v12209_v16, %v12208_v15  ;;  %v12043_v12 = vld [vmem:[%s23378_s4 + $0x798] sm:$0xff] }
 0x2a1   : > { %v12192_v22 = vld [vmem:[%s23378_s4 + $0xc40] sm:$0xff]  ;;  %v12267_v15 = vld [vmem:[%s23378_s4 + $0xe98] sm:$0xff] }
 0x2a2   : > { %15560 = vmatpush3.bf16.msra.mxu1 %v15559_v35  ;;  %v15613_v35 = vpack.c.bf16 %v11977_v28, %v11976_v27  ;;  %v12210_v27 = vld [vmem:[%s23378_s4 + $0xcd0] sm:$0xff]  ;;  %v12211_v28 = vld [vmem:[%s23378_s4 + $0xcd8] sm:$0xff]  ;;  %v15855_v30 = vpack.c.bf16 %v12193_v24, %v12192_v22  ;;  %v12044_v22 = vld [vmem:[%s23378_s4 + $0x7a0] sm:$0xff] }
 0x2a3   : > { %15784 = vmatpush3.bf16.msra.mxu0 %v15783_v36  ;;  %15562 = vmatprep.subr.bf16.mxu1 %v15561_v37  ;;  %v11960_v36 = vld [vmem:[%s23378_s4 + $0x500] sm:$0xff]  ;;  %v11961_v37 = vld [vmem:[%s23378_s4 + $0x508] sm:$0xff] }
 0x2a4   : > { %15786 = vmatprep.subr.bf16.mxu0 %v15785_v41  ;;  %v11978_v41 = vld [vmem:[%s23378_s4 + $0x590] sm:$0xff]  ;;  %v15615_v43 = vpack.c.bf16 %v11961_v37, %v11960_v36  ;;  %v15857_v37 = vpack.c.bf16 %v12211_v28, %v12210_v27 }
 0x2a5   : > { %v15617_v50 = vpack.c.bf16 %v11979_v42, %v11978_v41  ;;  %v12194_v36 = vld [vmem:[%s23378_s4 + $0xc50] sm:$0xff]  ;;  %v12212_v41 = vld [vmem:[%s23378_s4 + $0xce0] sm:$0xff]  ;;  %v12213_v42 = vld [vmem:[%s23378_s4 + $0xce8] sm:$0xff] }
 0x2a6   : > { %15564 = vmatpush3.bf16.msra.mxu1 %v15563_v47  ;;  %v11962_v47 = vld [vmem:[%s23378_s4 + $0x510] sm:$0xff] }
 0x2a7   : > { %15788 = vmatpush3.bf16.msra.mxu0 %v15787_v48  ;;  %15566 = vmatprep.subr.bf16.mxu1 %v15565_v49  ;;  %v11963_v48 = vld [vmem:[%s23378_s4 + $0x518] sm:$0xff]  ;;  %v12186_v49 = vld [vmem:[%s23378_s4 + $0xc10] sm:$0xff] }
 0x2a8   : > { %15790 = vmatprep.subr.bf16.mxu0 %v15789_v53  ;;  %v11981_v53 = vld [vmem:[%s23378_s4 + $0x5a8] sm:$0xff]  ;;  %v15619_v57 = vpack.c.bf16 %v11963_v48, %v11962_v47  ;;  %v15843_v58 = vpack.c.bf16 %v12187_v51, %v12186_v49  ;;  %v12196_v48 = vld [vmem:[%s23378_s4 + $0xc60] sm:$0xff]  ;;  %v15861_v49 = vpack.c.bf16 %v12213_v42, %v12212_v41  ;;  %v11990_v51 = vld [vmem:[%s23378_s4 + $0x5f0] sm:$0xff] }
 0x2a9   : > { %v11973_v47 = vld [vmem:[%s23378_s4 + $0x568] sm:$0xff] }
 0x2aa   : > { %15568 = vmatpush3.bf16.msra.mxu1 %v15567_v59  ;;  %v15621_v59 = vpack.c.bf16 %v11981_v53, %v11980_v52  ;;  %v11991_v52 = vld [vmem:[%s23378_s4 + $0x5f8] sm:$0xff]  ;;  %v12214_v53 = vld [vmem:[%s23378_s4 + $0xcf0] sm:$0xff] }
 0x2ab   : > { %15792 = vmatpush3.bf16.msra.mxu0 %v15791_v32  ;;  %15570 = vmatprep.subr.bf16.mxu1 %v15569_v33  ;;  %v11964_v32 = vld [vmem:[%s23378_s4 + $0x520] sm:$0xff]  ;;  %v11965_v33 = vld [vmem:[%s23378_s4 + $0x528] sm:$0xff] }
 0x2ac   : > { %15794 = vmatprep.subr.bf16.mxu0 %v15793_v63  ;;  %v11982_v63 = vld [vmem:[%s23378_s4 + $0x5b0] sm:$0xff]  ;;  %v15623_v5 = vpack.c.bf16 %v11965_v33, %v11964_v32 }
 0x2ad   : > { %v12198_v32 = vld [vmem:[%s23378_s4 + $0xc70] sm:$0xff] }
 0x2ae   : > { %15572 = vmatpush3.bf16.msra.mxu1 %v15571_v7  ;;  %v15625_v7 = vpack.c.bf16 %v11983_v0, %v11982_v63  ;;  %v12264_v63 = vld [vmem:[%s23378_s4 + $0xe80] sm:$0xff]  ;;  %v12265_v0 = vld [vmem:[%s23378_s4 + $0xe88] sm:$0xff]  ;;  %v15867_v4 = vpack.c.bf16 %v12199_v60, %v12198_v32  ;;  %v12051_v60 = vld [vmem:[%s23378_s4 + $0x7d8] sm:$0xff] }
 0x2af   : > { %15796 = vmatpush3.bf16.msra.mxu0 %v15795_v8  ;;  %15574 = vmatprep.subr.bf16.mxu1 %v15573_v9  ;;  %v11966_v8 = vld [vmem:[%s23378_s4 + $0x530] sm:$0xff]  ;;  %v11967_v9 = vld [vmem:[%s23378_s4 + $0x538] sm:$0xff]  ;;  %v12257_v32 = vld [vmem:[%s23378_s4 + $0xe48] sm:$0xff] }
 0x2b0   : > { %15798 = vmatprep.subr.bf16.mxu0 %v15797_v13  ;;  %v11984_v13 = vld [vmem:[%s23378_s4 + $0x5c0] sm:$0xff]  ;;  %v15627_v17 = vpack.c.bf16 %v11967_v9, %v11966_v8  ;;  %v15901_v8 = vpack.c.bf16 %v12265_v0, %v12264_v63 }
 0x2b1   : > { %v12248_v9 = vld [vmem:[%s23378_s4 + $0xe00] sm:$0xff] }
 0x2b2   : > { %15576 = vmatpush3.bf16.msra.mxu1 %v15575_v19  ;;  %v15629_v19 = vpack.c.bf16 %v11985_v14, %v11984_v13  ;;  %v12266_v14 = vld [vmem:[%s23378_s4 + $0xe90] sm:$0xff]  ;;  %v15903_v16 = vpack.c.bf16 %v12249_v10, %v12248_v9  ;;  %v12052_v9 = vld [vmem:[%s23378_s4 + $0x7e0] sm:$0xff]  ;;  %v12053_v10 = vld [vmem:[%s23378_s4 + $0x7e8] sm:$0xff] }
 0x2b3   : > { %15800 = vmatpush3.bf16.msra.mxu0 %v15799_v20  ;;  %15578 = vmatprep.subr.bf16.mxu1 %v15577_v21  ;;  %v11968_v20 = vld [vmem:[%s23378_s4 + $0x540] sm:$0xff]  ;;  %v11969_v21 = vld [vmem:[%s23378_s4 + $0x548] sm:$0xff]  ;;  %v15905_v24 = vpack.c.bf16 %v12267_v15, %v12266_v14  ;;  %v15701_v15 = vpack.c.bf16 %v12053_v10, %v12052_v9 }
 0x2b4   : > { %15802 = vmatprep.subr.bf16.mxu0 %v15801_v25  ;;  %v11986_v25 = vld [vmem:[%s23378_s4 + $0x5d0] sm:$0xff]  ;;  %v15631_v29 = vpack.c.bf16 %v11969_v21, %v11968_v20  ;;  %v12251_v21 = vld [vmem:[%s23378_s4 + $0xe18] sm:$0xff]  ;;  %v12117_v9 = vld [vmem:[%s23378_s4 + $0x9e8] sm:$0xff] }
 0x2b6   : > { %15580 = vmatpush3.bf16.msra.mxu1 %v15579_v31  ;;  %v15633_v31 = vpack.c.bf16 %v11987_v26, %v11986_v25  ;;  %v12268_v25 = vld [vmem:[%s23378_s4 + $0xea0] sm:$0xff]  ;;  %v12269_v26 = vld [vmem:[%s23378_s4 + $0xea8] sm:$0xff] }
 0x2b7   : > { %15804 = vmatpush3.bf16.msra.mxu0 %v15803_v34  ;;  %15614 = vmatprep.subr.bf16.mxu1 %v15613_v35  ;;  %v11970_v34 = vld [vmem:[%s23378_s4 + $0x550] sm:$0xff]  ;;  %v11971_v35 = vld [vmem:[%s23378_s4 + $0x558] sm:$0xff] }
 0x2b8   : > { %15838 = vmatprep.subr.bf16.mxu0 %v15837_v38  ;;  %v12195_v38 = vld [vmem:[%s23378_s4 + $0xc58] sm:$0xff] }
 0x2b9   : > { %1355 = vmatmul.mubr.f32.vlgmr.msra.gmra.mrb[6].mxu1 %v17965_v1  ;;  %v15859_v44 = vpack.c.bf16 %v12195_v38, %v12194_v36  ;;  %v12253_v36 = vld [vmem:[%s23378_s4 + $0xe28] sm:$0xff]  ;;  %v12047_v38 = vld [vmem:[%s23378_s4 + $0x7b8] sm:$0xff] }
 0x2ba   : > { %2076 = vmatmul.mubr.f32.vlgmr.msra.gmra.mrb[8].mxu0 %v17965_v1  ;;  %15616 = vmatpush3.bf16.msra.mxu1 %v15615_v43  ;;  %v15635_v43 = vpack.c.bf16 %v11971_v35, %v11970_v34  ;;  %v12252_v34 = vld [vmem:[%s23378_s4 + $0xe20] sm:$0xff]  ;;  %v15909_v35 = vpack.c.bf16 %v12269_v26, %v12268_v25 }
 0x2bb   : > { %1560 = vmatprep.mubr.f32.mxu1 %v17967_v2  ;;  %15840 = vmatpush3.bf16.msra.mxu0 %v15839_v46  ;;  %v11972_v46 = vld [vmem:[%s23378_s4 + $0x560] sm:$0xff]  ;;  %v15911_v42 = vpack.c.bf16 %v12253_v36, %v12252_v34  ;;  %v12263_v34 = vld [vmem:[%s23378_s4 + $0xe78] sm:$0xff]  ;;  %v12105_v36 = vld [vmem:[%s23378_s4 + $0x988] sm:$0xff] }
 0x2bc   : > { %2281 = vmatprep.mubr.f32.mxu0 %v17967_v2  ;;  %15618 = vmatprep.subr.bf16.mxu1 %v15617_v50  ;;  %v12197_v50 = vld [vmem:[%s23378_s4 + $0xc68] sm:$0xff]  ;;  %v15639_v55 = vpack.c.bf16 %v11973_v47, %v11972_v46  ;;  %v12254_v46 = vld [vmem:[%s23378_s4 + $0xe30] sm:$0xff]  ;;  %v15913_v47 = vpack.c.bf16 %v12271_v40, %v12270_v39  ;;  %v12088_v40 = vld [vmem:[%s23378_s4 + $0x900] sm:$0xff] }
 0x2bd   : > { %15842 = vmatprep.subr.bf16.mxu0 %v15841_v54  ;;  %v12215_v54 = vld [vmem:[%s23378_s4 + $0xcf8] sm:$0xff]  ;;  %v15863_v56 = vpack.c.bf16 %v12197_v50, %v12196_v48  ;;  %v12049_v50 = vld [vmem:[%s23378_s4 + $0x7c8] sm:$0xff] }
 0x2be   : > { %15620 = vmatpush3.bf16.msra.mxu1 %v15619_v57  ;;  %v15641_v57 = vpack.c.bf16 %v11991_v52, %v11990_v51  ;;  %v15865_v33 = vpack.c.bf16 %v12215_v54, %v12214_v53  ;;  %v12255_v48 = vld [vmem:[%s23378_s4 + $0xe38] sm:$0xff]  ;;  %v12272_v51 = vld [vmem:[%s23378_s4 + $0xec0] sm:$0xff]  ;;  %v12273_v52 = vld [vmem:[%s23378_s4 + $0xec8] sm:$0xff] }
 0x2bf   : > { %15844 = vmatpush3.bf16.msra.mxu0 %v15843_v58  ;;  %15622 = vmatprep.subr.bf16.mxu1 %v15621_v59  ;;  %v11974_v58 = vld [vmem:[%s23378_s4 + $0x570] sm:$0xff]  ;;  %v11975_v59 = vld [vmem:[%s23378_s4 + $0x578] sm:$0xff]  ;;  %v15915_v54 = vpack.c.bf16 %v12255_v48, %v12254_v46  ;;  %v12108_v48 = vld [vmem:[%s23378_s4 + $0x9a0] sm:$0xff] }
 0x2c0   : > { %15846 = vmatprep.subr.bf16.mxu0 %v15845_v61  ;;  %v12040_v61 = vld [vmem:[%s23378_s4 + $0x780] sm:$0xff]  ;;  %v15643_v3 = vpack.c.bf16 %v11975_v59, %v11974_v58  ;;  %v15917_v59 = vpack.c.bf16 %v12273_v52, %v12272_v51  ;;  %v12090_v46 = vld [vmem:[%s23378_s4 + $0x910] sm:$0xff] }
 0x2c1   : > { %v12256_v58 = vld [vmem:[%s23378_s4 + $0xe40] sm:$0xff] }
 0x2c2   : > { %15624 = vmatpush3.bf16.msra.mxu1 %v15623_v5  ;;  %v15677_v5 = vpack.c.bf16 %v12041_v62, %v12040_v61  ;;  %v12274_v61 = vld [vmem:[%s23378_s4 + $0xed0] sm:$0xff]  ;;  %v12275_v62 = vld [vmem:[%s23378_s4 + $0xed8] sm:$0xff]  ;;  %v15919_v0 = vpack.c.bf16 %v12257_v32, %v12256_v58  ;;  %v12092_v52 = vld [vmem:[%s23378_s4 + $0x920] sm:$0xff] }
 0x2c3   : > { %15848 = vmatpush3.bf16.msra.mxu0 %v15847_v6  ;;  %15626 = vmatprep.subr.bf16.mxu1 %v15625_v7  ;;  %v12024_v6 = vld [vmem:[%s23378_s4 + $0x700] sm:$0xff]  ;;  %v12025_v7 = vld [vmem:[%s23378_s4 + $0x708] sm:$0xff]  ;;  %v12094_v58 = vld [vmem:[%s23378_s4 + $0x930] sm:$0xff] }
 0x2c4   : > { %15850 = vmatprep.subr.bf16.mxu0 %v15849_v11  ;;  %v12042_v11 = vld [vmem:[%s23378_s4 + $0x790] sm:$0xff]  ;;  %v15679_v13 = vpack.c.bf16 %v12025_v7, %v12024_v6  ;;  %v15921_v7 = vpack.c.bf16 %v12275_v62, %v12274_v61  ;;  %v12112_v32 = vld [vmem:[%s23378_s4 + $0x9c0] sm:$0xff] }
 0x2c5   : > { %v15681_v20 = vpack.c.bf16 %v12043_v12, %v12042_v11  ;;  %v12258_v6 = vld [vmem:[%s23378_s4 + $0xe50] sm:$0xff]  ;;  %v12276_v11 = vld [vmem:[%s23378_s4 + $0xee0] sm:$0xff]  ;;  %v12277_v12 = vld [vmem:[%s23378_s4 + $0xee8] sm:$0xff] }
 0x2c6   : > { %15628 = vmatpush3.bf16.msra.mxu1 %v15627_v17  ;;  %v12026_v17 = vld [vmem:[%s23378_s4 + $0x710] sm:$0xff]  ;;  %v12096_v62 = vld [vmem:[%s23378_s4 + $0x940] sm:$0xff] }
 0x2c7   : > { %15852 = vmatpush3.bf16.msra.mxu0 %v15851_v18  ;;  %15630 = vmatprep.subr.bf16.mxu1 %v15629_v19  ;;  %v12027_v18 = vld [vmem:[%s23378_s4 + $0x718] sm:$0xff]  ;;  %v12250_v19 = vld [vmem:[%s23378_s4 + $0xe10] sm:$0xff] }
 0x2c8   : > { %15854 = vmatprep.subr.bf16.mxu0 %v15853_v23  ;;  %v12045_v23 = vld [vmem:[%s23378_s4 + $0x7a8] sm:$0xff]  ;;  %v15683_v27 = vpack.c.bf16 %v12027_v18, %v12026_v17  ;;  %v15907_v28 = vpack.c.bf16 %v12251_v21, %v12250_v19  ;;  %v12260_v18 = vld [vmem:[%s23378_s4 + $0xe60] sm:$0xff]  ;;  %v15925_v19 = vpack.c.bf16 %v12277_v12, %v12276_v11  ;;  %v12054_v21 = vld [vmem:[%s23378_s4 + $0x7f0] sm:$0xff] }
 0x2c9   : > { %v12037_v17 = vld [vmem:[%s23378_s4 + $0x768] sm:$0xff]  ;;  %v12100_v12 = vld [vmem:[%s23378_s4 + $0x960] sm:$0xff] }
 0x2ca   : > { %15632 = vmatpush3.bf16.msra.mxu1 %v15631_v29  ;;  %v15685_v29 = vpack.c.bf16 %v12045_v23, %v12044_v22  ;;  %v12055_v22 = vld [vmem:[%s23378_s4 + $0x7f8] sm:$0xff]  ;;  %v12278_v23 = vld [vmem:[%s23378_s4 + $0xef0] sm:$0xff] }
 0x2cb   : > { %15856 = vmatpush3.bf16.msra.mxu0 %v15855_v30  ;;  %15634 = vmatprep.subr.bf16.mxu1 %v15633_v31  ;;  %v12028_v30 = vld [vmem:[%s23378_s4 + $0x720] sm:$0xff]  ;;  %v12029_v31 = vld [vmem:[%s23378_s4 + $0x728] sm:$0xff] }
 0x2cc   : > { %15858 = vmatprep.subr.bf16.mxu0 %v15857_v37  ;;  %v12046_v37 = vld [vmem:[%s23378_s4 + $0x7b0] sm:$0xff]  ;;  %v15687_v41 = vpack.c.bf16 %v12029_v31, %v12028_v30 }
 0x2cd   : > { %v12262_v30 = vld [vmem:[%s23378_s4 + $0xe70] sm:$0xff] }
 0x2ce   : > { %15636 = vmatpush3.bf16.msra.mxu1 %v15635_v43  ;;  %v15689_v43 = vpack.c.bf16 %v12047_v38, %v12046_v37  ;;  %v15931_v38 = vpack.c.bf16 %v12263_v34, %v12262_v30  ;;  %v12154_v30 = vld [vmem:[%s23378_s4 + $0xb10] sm:$0xff]  ;;  %v12172_v34 = vld [vmem:[%s23378_s4 + $0xba0] sm:$0xff] }
 0x2cf   : > { %15860 = vmatpush3.bf16.msra.mxu0 %v15859_v44  ;;  %15638 = vmatprep.subr.bf16.mxu1 %v15637_v45  ;;  %v12030_v44 = vld [vmem:[%s23378_s4 + $0x730] sm:$0xff]  ;;  %v12031_v45 = vld [vmem:[%s23378_s4 + $0x738] sm:$0xff] }
 0x2d0   : > { %15862 = vmatprep.subr.bf16.mxu0 %v15861_v49  ;;  %v12048_v49 = vld [vmem:[%s23378_s4 + $0x7c0] sm:$0xff]  ;;  %v15691_v53 = vpack.c.bf16 %v12031_v45, %v12030_v44 }
 0x2d2   : > { %15640 = vmatpush3.bf16.msra.mxu1 %v15639_v55  ;;  %v15693_v55 = vpack.c.bf16 %v12049_v50, %v12048_v49  ;;  %v12109_v49 = vld [vmem:[%s23378_s4 + $0x9a8] sm:$0xff] }
 0x2d3   : > { %15864 = vmatpush3.bf16.msra.mxu0 %v15863_v56  ;;  %15642 = vmatprep.subr.bf16.mxu1 %v15641_v57  ;;  %v12032_v56 = vld [vmem:[%s23378_s4 + $0x740] sm:$0xff]  ;;  %v12033_v57 = vld [vmem:[%s23378_s4 + $0x748] sm:$0xff]  ;;  %v15749_v51 = vpack.c.bf16 %v12109_v49, %v12108_v48 }
 0x2d4   : > { %15866 = vmatprep.subr.bf16.mxu0 %v15865_v33  ;;  %v12050_v33 = vld [vmem:[%s23378_s4 + $0x7d0] sm:$0xff]  ;;  %v15695_v63 = vpack.c.bf16 %v12033_v57, %v12032_v56 }
 0x2d6   : > { %15644 = vmatpush3.bf16.msra.mxu1 %v15643_v3  ;;  %v15697_v3 = vpack.c.bf16 %v12051_v60, %v12050_v33  ;;  %v12113_v33 = vld [vmem:[%s23378_s4 + $0x9c8] sm:$0xff] }
 0x2d7   : > { %15868 = vmatpush3.bf16.msra.mxu0 %v15867_v4  ;;  %15678 = vmatprep.subr.bf16.mxu1 %v15677_v5  ;;  %v12034_v4 = vld [vmem:[%s23378_s4 + $0x750] sm:$0xff]  ;;  %v12035_v5 = vld [vmem:[%s23378_s4 + $0x758] sm:$0xff]  ;;  %v15757_v61 = vpack.c.bf16 %v12113_v33, %v12112_v32 }
 0x2d8   : > { %15902 = vmatprep.subr.bf16.mxu0 %v15901_v8  ;;  %v12259_v8 = vld [vmem:[%s23378_s4 + $0xe58] sm:$0xff] }
 0x2d9   : > { %1561 = vmatmul.mubr.f32.vlgmr.msra.gmra.mrb[8].mxu1 %v17965_v1  ;;  %v15923_v14 = vpack.c.bf16 %v12259_v8, %v12258_v6  ;;  %v12098_v6 = vld [vmem:[%s23378_s4 + $0x950] sm:$0xff]  ;;  %v12116_v8 = vld [vmem:[%s23378_s4 + $0x9e0] sm:$0xff] }
 0x2da   : > { %2282 = vmatmul.mubr.f32.vlgmr.msra.gmra.mrb[10].mxu0 %v17965_v1  ;;  %15680 = vmatpush3.bf16.msra.mxu1 %v15679_v13  ;;  %v15699_v13 = vpack.c.bf16 %v12035_v5, %v12034_v4  ;;  %v15765_v11 = vpack.c.bf16 %v12117_v9, %v12116_v8 }
 0x2db   : > { %1766 = vmatprep.mubr.f32.mxu1 %v17967_v2  ;;  %15904 = vmatpush3.bf16.msra.mxu0 %v15903_v16  ;;  %v12036_v16 = vld [vmem:[%s23378_s4 + $0x760] sm:$0xff] }
 0x2dc   : > { %2487 = vmatprep.mubr.f32.mxu0 %v17967_v2  ;;  %15682 = vmatprep.subr.bf16.mxu1 %v15681_v20  ;;  %v12261_v20 = vld [vmem:[%s23378_s4 + $0xe68] sm:$0xff]  ;;  %v15703_v25 = vpack.c.bf16 %v12037_v17, %v12036_v16 }
 0x2dd   : > { %15906 = vmatprep.subr.bf16.mxu0 %v15905_v24  ;;  %v12279_v24 = vld [vmem:[%s23378_s4 + $0xef8] sm:$0xff]  ;;  %v15927_v26 = vpack.c.bf16 %v12261_v20, %v12260_v18  ;;  %v12102_v18 = vld [vmem:[%s23378_s4 + $0x970] sm:$0xff]  ;;  %v12168_v20 = vld [vmem:[%s23378_s4 + $0xb80] sm:$0xff] }
 0x2de   : > { %15684 = vmatpush3.bf16.msra.mxu1 %v15683_v27  ;;  %v15705_v27 = vpack.c.bf16 %v12055_v22, %v12054_v21  ;;  %v15929_v31 = vpack.c.bf16 %v12279_v24, %v12278_v23  ;;  %v12169_v21 = vld [vmem:[%s23378_s4 + $0xb88] sm:$0xff]  ;;  %v12152_v24 = vld [vmem:[%s23378_s4 + $0xb00] sm:$0xff] }
 0x2df   : > { %15908 = vmatpush3.bf16.msra.mxu0 %v15907_v28  ;;  %15686 = vmatprep.subr.bf16.mxu1 %v15685_v29  ;;  %v12038_v28 = vld [vmem:[%s23378_s4 + $0x770] sm:$0xff]  ;;  %v12039_v29 = vld [vmem:[%s23378_s4 + $0x778] sm:$0xff]  ;;  %v15805_v23 = vpack.c.bf16 %v12169_v21, %v12168_v20 }
 0x2e0   : > { %15910 = vmatprep.subr.bf16.mxu0 %v15909_v35  ;;  %v12104_v35 = vld [vmem:[%s23378_s4 + $0x980] sm:$0xff]  ;;  %v15707_v37 = vpack.c.bf16 %v12039_v29, %v12038_v28 }
 0x2e1   : > { %v15741_v39 = vpack.c.bf16 %v12105_v36, %v12104_v35  ;;  %v12173_v35 = vld [vmem:[%s23378_s4 + $0xba8] sm:$0xff] }
 0x2e2   : > { %15688 = vmatpush3.bf16.msra.mxu1 %v15687_v41  ;;  %v12089_v41 = vld [vmem:[%s23378_s4 + $0x908] sm:$0xff] }
 0x2e3   : > { %15912 = vmatpush3.bf16.msra.mxu0 %v15911_v42  ;;  %15690 = vmatprep.subr.bf16.mxu1 %v15689_v43  ;;  %v12106_v42 = vld [vmem:[%s23378_s4 + $0x990] sm:$0xff]  ;;  %v12107_v43 = vld [vmem:[%s23378_s4 + $0x998] sm:$0xff]  ;;  %v15743_v44 = vpack.c.bf16 %v12089_v41, %v12088_v40 }
 0x2e4   : > { %15914 = vmatprep.subr.bf16.mxu0 %v15913_v47  ;;  %v15745_v45 = vpack.c.bf16 %v12107_v43, %v12106_v42  ;;  %v12091_v47 = vld [vmem:[%s23378_s4 + $0x918] sm:$0xff]  ;;  %v12174_v40 = vld [vmem:[%s23378_s4 + $0xbb0] sm:$0xff] }
 0x2e5   : > { %v15747_v50 = vpack.c.bf16 %v12091_v47, %v12090_v46  ;;  %v12175_v41 = vld [vmem:[%s23378_s4 + $0xbb8] sm:$0xff]  ;;  %v12176_v46 = vld [vmem:[%s23378_s4 + $0xbc0] sm:$0xff]  ;;  %v12177_v47 = vld [vmem:[%s23378_s4 + $0xbc8] sm:$0xff] }
 0x2e6   : > { %15692 = vmatpush3.bf16.msra.mxu1 %v15691_v53  ;;  %v12093_v53 = vld [vmem:[%s23378_s4 + $0x928] sm:$0xff]  ;;  %v15817_v43 = vpack.c.bf16 %v12175_v41, %v12174_v40  ;;  %v15821_v49 = vpack.c.bf16 %v12177_v47, %v12176_v46 }
 0x2e7   : > { %15916 = vmatpush3.bf16.msra.mxu0 %v15915_v54  ;;  %15694 = vmatprep.subr.bf16.mxu1 %v15693_v55  ;;  %v12110_v54 = vld [vmem:[%s23378_s4 + $0x9b0] sm:$0xff]  ;;  %v12111_v55 = vld [vmem:[%s23378_s4 + $0x9b8] sm:$0xff]  ;;  %v15751_v56 = vpack.c.bf16 %v12093_v53, %v12092_v52 }
 0x2e8   : > { %15918 = vmatprep.subr.bf16.mxu0 %v15917_v59  ;;  %v15753_v57 = vpack.c.bf16 %v12111_v55, %v12110_v54  ;;  %v12095_v59 = vld [vmem:[%s23378_s4 + $0x938] sm:$0xff]  ;;  %v12178_v52 = vld [vmem:[%s23378_s4 + $0xbd0] sm:$0xff] }
 0x2e9   : > { %v15755_v60 = vpack.c.bf16 %v12095_v59, %v12094_v58  ;;  %v12179_v53 = vld [vmem:[%s23378_s4 + $0xbd8] sm:$0xff]  ;;  %v12180_v58 = vld [vmem:[%s23378_s4 + $0xbe0] sm:$0xff]  ;;  %v12181_v59 = vld [vmem:[%s23378_s4 + $0xbe8] sm:$0xff] }
 0x2ea   : > { %15696 = vmatpush3.bf16.msra.mxu1 %v15695_v63  ;;  %v12097_v63 = vld [vmem:[%s23378_s4 + $0x948] sm:$0xff]  ;;  %v15825_v55 = vpack.c.bf16 %v12179_v53, %v12178_v52  ;;  %v15829_v33 = vpack.c.bf16 %v12181_v59, %v12180_v58  ;;  %v12246_v58 = vld [vmem:[%s23378_s4 + $0xdf0] sm:$0xff]  ;;  %v12247_v59 = vld [vmem:[%s23378_s4 + $0xdf8] sm:$0xff] }
 0x2eb   : > { %15920 = vmatpush3.bf16.msra.mxu0 %v15919_v0  ;;  %15698 = vmatprep.subr.bf16.mxu1 %v15697_v3  ;;  %v12114_v0 = vld [vmem:[%s23378_s4 + $0x9d0] sm:$0xff]  ;;  %v12115_v3 = vld [vmem:[%s23378_s4 + $0x9d8] sm:$0xff]  ;;  %v15759_v4 = vpack.c.bf16 %v12097_v63, %v12096_v62 }
 0x2ec   : > { %15922 = vmatprep.subr.bf16.mxu0 %v15921_v7  ;;  %v15761_v5 = vpack.c.bf16 %v12115_v3, %v12114_v0  ;;  %v12099_v7 = vld [vmem:[%s23378_s4 + $0x958] sm:$0xff]  ;;  %v12182_v0 = vld [vmem:[%s23378_s4 + $0xbf0] sm:$0xff] }
 0x2ed   : > { %v15763_v10 = vpack.c.bf16 %v12099_v7, %v12098_v6  ;;  %v12183_v3 = vld [vmem:[%s23378_s4 + $0xbf8] sm:$0xff] }
 0x2ee   : > { %15700 = vmatpush3.bf16.msra.mxu1 %v15699_v13  ;;  %v12101_v13 = vld [vmem:[%s23378_s4 + $0x968] sm:$0xff]  ;;  %v15833_v9 = vpack.c.bf16 %v12183_v3, %v12182_v0  ;;  %v12230_v0 = vld [vmem:[%s23378_s4 + $0xd70] sm:$0xff]  ;;  %v12231_v3 = vld [vmem:[%s23378_s4 + $0xd78] sm:$0xff] }
 0x2ef   : > { %15924 = vmatpush3.bf16.msra.mxu0 %v15923_v14  ;;  %15702 = vmatprep.subr.bf16.mxu1 %v15701_v15  ;;  %v12118_v14 = vld [vmem:[%s23378_s4 + $0x9f0] sm:$0xff]  ;;  %v12119_v15 = vld [vmem:[%s23378_s4 + $0x9f8] sm:$0xff]  ;;  %v15767_v16 = vpack.c.bf16 %v12101_v13, %v12100_v12  ;;  %v12232_v12 = vld [vmem:[%s23378_s4 + $0xd80] sm:$0xff] }
 0x2f0   : > { %15926 = vmatprep.subr.bf16.mxu0 %v15925_v19  ;;  %v15769_v17 = vpack.c.bf16 %v12119_v15, %v12118_v14  ;;  %v12103_v19 = vld [vmem:[%s23378_s4 + $0x978] sm:$0xff]  ;;  %v12233_v13 = vld [vmem:[%s23378_s4 + $0xd88] sm:$0xff] }
 0x2f1   : > { %v15771_v22 = vpack.c.bf16 %v12103_v19, %v12102_v18  ;;  %v15869_v15 = vpack.c.bf16 %v12233_v13, %v12232_v12  ;;  %v12234_v18 = vld [vmem:[%s23378_s4 + $0xd90] sm:$0xff]  ;;  %v12235_v19 = vld [vmem:[%s23378_s4 + $0xd98] sm:$0xff] }
 0x2f2   : > { %15704 = vmatpush3.bf16.msra.mxu1 %v15703_v25  ;;  %v12153_v25 = vld [vmem:[%s23378_s4 + $0xb08] sm:$0xff]  ;;  %v15873_v21 = vpack.c.bf16 %v12235_v19, %v12234_v18  ;;  %v12298_v12 = vld [vmem:[%s23378_s4 + $0xf90] sm:$0xff]  ;;  %v12299_v13 = vld [vmem:[%s23378_s4 + $0xf98] sm:$0xff] }
 0x2f3   : > { %15928 = vmatpush3.bf16.msra.mxu0 %v15927_v26  ;;  %15706 = vmatprep.subr.bf16.mxu1 %v15705_v27  ;;  %v12170_v26 = vld [vmem:[%s23378_s4 + $0xb90] sm:$0xff]  ;;  %v12171_v27 = vld [vmem:[%s23378_s4 + $0xb98] sm:$0xff]  ;;  %v15807_v28 = vpack.c.bf16 %v12153_v25, %v12152_v24  ;;  %v12236_v24 = vld [vmem:[%s23378_s4 + $0xda0] sm:$0xff] }
 0x2f4   : > { %15930 = vmatprep.subr.bf16.mxu0 %v15929_v31  ;;  %v15809_v29 = vpack.c.bf16 %v12171_v27, %v12170_v26  ;;  %v12155_v31 = vld [vmem:[%s23378_s4 + $0xb18] sm:$0xff]  ;;  %v12237_v25 = vld [vmem:[%s23378_s4 + $0xda8] sm:$0xff]  ;;  %v12300_v18 = vld [vmem:[%s23378_s4 + $0xfa0] sm:$0xff] }
 0x2f5   : > { %v15811_v36 = vpack.c.bf16 %v12155_v31, %v12154_v30  ;;  %v15877_v27 = vpack.c.bf16 %v12237_v25, %v12236_v24  ;;  %v12238_v30 = vld [vmem:[%s23378_s4 + $0xdb0] sm:$0xff]  ;;  %v12239_v31 = vld [vmem:[%s23378_s4 + $0xdb8] sm:$0xff]  ;;  %v12301_v19 = vld [vmem:[%s23378_s4 + $0xfa8] sm:$0xff] }
 0x2f6   : > { %15708 = vmatpush3.bf16.msra.mxu1 %v15707_v37  ;;  %v15813_v37 = vpack.c.bf16 %v12173_v35, %v12172_v34  ;;  %v15881_v35 = vpack.c.bf16 %v12239_v31, %v12238_v30  ;;  %v12302_v24 = vld [vmem:[%s23378_s4 + $0xfb0] sm:$0xff]  ;;  %v12303_v25 = vld [vmem:[%s23378_s4 + $0xfb8] sm:$0xff]  ;;  %v12305_v30 = vld [vmem:[%s23378_s4 + $0xfc8] sm:$0xff] }
 0x2f7   : > { %15932 = vmatpush3.bf16.msra.mxu0 %v15931_v38  ;;  %15742 = vmatprep.subr.bf16.mxu1 %v15741_v39  ;;  %v12156_v38 = vld [vmem:[%s23378_s4 + $0xb20] sm:$0xff]  ;;  %v12157_v39 = vld [vmem:[%s23378_s4 + $0xb28] sm:$0xff] }
 0x2f8   : > { %v15815_v42 = vpack.c.bf16 %v12157_v39, %v12156_v38  ;;  %v12240_v38 = vld [vmem:[%s23378_s4 + $0xdc0] sm:$0xff]  ;;  %v12241_v39 = vld [vmem:[%s23378_s4 + $0xdc8] sm:$0xff] }
 0x2f9   : > { %1767 = vmatmul.mubr.f32.vlgmr.msra.gmra.mrb[10].mxu1 %v17965_v1  ;;  %v15885_v41 = vpack.c.bf16 %v12241_v39, %v12240_v38  ;;  %v12307_v38 = vld [vmem:[%s23378_s4 + $0xfd8] sm:$0xff] }
 0x2fa   : > { %2488 = vmatmul.mubr.f32.vlgmr.msra.gmra.mrb[12].mxu0 %v17965_v1  ;;  %15744 = vmatpush3.bf16.msra.mxu1 %v15743_v44  ;;  %v12158_v44 = vld [vmem:[%s23378_s4 + $0xb30] sm:$0xff] }
 0x2fb   : > { %1972 = vmatprep.mubr.f32.mxu1 %v17967_v2  ;;  %15746 = vmatprep.subr.bf16.mxu1 %v15745_v45  ;;  %v12159_v45 = vld [vmem:[%s23378_s4 + $0xb38] sm:$0xff] }
 0x2fc   : > { %v15819_v48 = vpack.c.bf16 %v12159_v45, %v12158_v44  ;;  %v12242_v44 = vld [vmem:[%s23378_s4 + $0xdd0] sm:$0xff]  ;;  %v12243_v45 = vld [vmem:[%s23378_s4 + $0xdd8] sm:$0xff] }
 0x2fd   : > { %v15889_v47 = vpack.c.bf16 %v12243_v45, %v12242_v44  ;;  %v12309_v44 = vld [vmem:[%s23378_s4 + $0xfe8] sm:$0xff] }
 0x2fe   : > { %15748 = vmatpush3.bf16.msra.mxu1 %v15747_v50  ;;  %v12160_v50 = vld [vmem:[%s23378_s4 + $0xb40] sm:$0xff] }
 0x2ff   : > { %15750 = vmatprep.subr.bf16.mxu1 %v15749_v51  ;;  %v12161_v51 = vld [vmem:[%s23378_s4 + $0xb48] sm:$0xff] }
 0x300   : > { %v15823_v54 = vpack.c.bf16 %v12161_v51, %v12160_v50  ;;  %v12244_v50 = vld [vmem:[%s23378_s4 + $0xde0] sm:$0xff]  ;;  %v12245_v51 = vld [vmem:[%s23378_s4 + $0xde8] sm:$0xff] }
 0x301   : > { %v15893_v53 = vpack.c.bf16 %v12245_v51, %v12244_v50  ;;  %v12310_v50 = vld [vmem:[%s23378_s4 + $0xff0] sm:$0xff]  ;;  %v12311_v51 = vld [vmem:[%s23378_s4 + $0xff8] sm:$0xff] }
 0x302   : > { %15752 = vmatpush3.bf16.msra.mxu1 %v15751_v56  ;;  %v12162_v56 = vld [vmem:[%s23378_s4 + $0xb50] sm:$0xff] }
 0x303   : > { %15754 = vmatprep.subr.bf16.mxu1 %v15753_v57  ;;  %v12163_v57 = vld [vmem:[%s23378_s4 + $0xb58] sm:$0xff] }
 0x304   : > { %v15827_v32 = vpack.c.bf16 %v12163_v57, %v12162_v56 }
 0x306   : > { %15756 = vmatpush3.bf16.msra.mxu1 %v15755_v60  ;;  %v12164_v60 = vld [vmem:[%s23378_s4 + $0xb60] sm:$0xff] }
 0x307   : > { %15758 = vmatprep.subr.bf16.mxu1 %v15757_v61  ;;  %v12165_v61 = vld [vmem:[%s23378_s4 + $0xb68] sm:$0xff] }
 0x308   : > { %v15831_v8 = vpack.c.bf16 %v12165_v61, %v12164_v60 }
 0x30a   : > { %15760 = vmatpush3.bf16.msra.mxu1 %v15759_v4 }
 0x30b   : > { %15762 = vmatprep.subr.bf16.mxu1 %v15761_v5 }
 0x30e   : > { %15764 = vmatpush3.bf16.msra.mxu1 %v15763_v10  ;;  %v12166_v10 = vld [vmem:[%s23378_s4 + $0xb70] sm:$0xff] }
 0x30f   : > { %15766 = vmatprep.subr.bf16.mxu1 %v15765_v11  ;;  %v12167_v11 = vld [vmem:[%s23378_s4 + $0xb78] sm:$0xff] }
 0x310   : > { %v15835_v14 = vpack.c.bf16 %v12167_v11, %v12166_v10  ;;  %v12280_v11 = vld [vmem:[%s23378_s4 + $0xf00] sm:$0xff] }
 0x312   : > { %15768 = vmatpush3.bf16.msra.mxu1 %v15767_v16  ;;  %v12216_v16 = vld [vmem:[%s23378_s4 + $0xd00] sm:$0xff] }
 0x313   : > { %15770 = vmatprep.subr.bf16.mxu1 %v15769_v17  ;;  %v12217_v17 = vld [vmem:[%s23378_s4 + $0xd08] sm:$0xff] }
 0x314   : > { %v15871_v20 = vpack.c.bf16 %v12217_v17, %v12216_v16  ;;  %v12282_v16 = vld [vmem:[%s23378_s4 + $0xf10] sm:$0xff]  ;;  %v12283_v17 = vld [vmem:[%s23378_s4 + $0xf18] sm:$0xff] }
 0x316   : > { %15772 = vmatpush3.bf16.msra.mxu1 %v15771_v22  ;;  %v12218_v22 = vld [vmem:[%s23378_s4 + $0xd10] sm:$0xff] }
 0x317   : > { %15806 = vmatprep.subr.bf16.mxu1 %v15805_v23  ;;  %v12219_v23 = vld [vmem:[%s23378_s4 + $0xd18] sm:$0xff] }
 0x318   : > { %v15875_v26 = vpack.c.bf16 %v12219_v23, %v12218_v22  ;;  %v12284_v22 = vld [vmem:[%s23378_s4 + $0xf20] sm:$0xff]  ;;  %v12285_v23 = vld [vmem:[%s23378_s4 + $0xf28] sm:$0xff] }
 0x319   : > { %1973 = vmatmul.mubr.f32.vlgmr.msra.gmra.mrb[12].mxu1 %v17965_v1 }
 0x31a   : > { %15808 = vmatpush3.bf16.msra.mxu1 %v15807_v28  ;;  %2178 = vmatprep.mubr.f32.mxu1 %v17967_v2  ;;  %v12220_v28 = vld [vmem:[%s23378_s4 + $0xd20] sm:$0xff] }
 0x31b   : > { %15810 = vmatprep.subr.bf16.mxu1 %v15809_v29  ;;  %v12221_v29 = vld [vmem:[%s23378_s4 + $0xd28] sm:$0xff] }
 0x31c   : > { %v15879_v34 = vpack.c.bf16 %v12221_v29, %v12220_v28  ;;  %v12287_v28 = vld [vmem:[%s23378_s4 + $0xf38] sm:$0xff]  ;;  %v12304_v29 = vld [vmem:[%s23378_s4 + $0xfc0] sm:$0xff] }
 0x31e   : > { %15812 = vmatpush3.bf16.msra.mxu1 %v15811_v36  ;;  %v12222_v36 = vld [vmem:[%s23378_s4 + $0xd30] sm:$0xff] }
 0x31f   : > { %15814 = vmatprep.subr.bf16.mxu1 %v15813_v37  ;;  %v12223_v37 = vld [vmem:[%s23378_s4 + $0xd38] sm:$0xff] }
 0x320   : > { %v15883_v40 = vpack.c.bf16 %v12223_v37, %v12222_v36  ;;  %v12289_v36 = vld [vmem:[%s23378_s4 + $0xf48] sm:$0xff]  ;;  %v12306_v37 = vld [vmem:[%s23378_s4 + $0xfd0] sm:$0xff] }
 0x322   : > { %15816 = vmatpush3.bf16.msra.mxu1 %v15815_v42  ;;  %v12224_v42 = vld [vmem:[%s23378_s4 + $0xd40] sm:$0xff] }
 0x323   : > { %15818 = vmatprep.subr.bf16.mxu1 %v15817_v43  ;;  %v12225_v43 = vld [vmem:[%s23378_s4 + $0xd48] sm:$0xff] }
 0x324   : > { %v15887_v46 = vpack.c.bf16 %v12225_v43, %v12224_v42  ;;  %v12291_v42 = vld [vmem:[%s23378_s4 + $0xf58] sm:$0xff]  ;;  %v12308_v43 = vld [vmem:[%s23378_s4 + $0xfe0] sm:$0xff] }
 0x326   : > { %15820 = vmatpush3.bf16.msra.mxu1 %v15819_v48  ;;  %v12226_v48 = vld [vmem:[%s23378_s4 + $0xd50] sm:$0xff] }
 0x327   : > { %15822 = vmatprep.subr.bf16.mxu1 %v15821_v49  ;;  %v12227_v49 = vld [vmem:[%s23378_s4 + $0xd58] sm:$0xff] }
 0x328   : > { %v15891_v52 = vpack.c.bf16 %v12227_v49, %v12226_v48  ;;  %v12293_v48 = vld [vmem:[%s23378_s4 + $0xf68] sm:$0xff] }
 0x32a   : > { %15824 = vmatpush3.bf16.msra.mxu1 %v15823_v54  ;;  %v12228_v54 = vld [vmem:[%s23378_s4 + $0xd60] sm:$0xff] }
 0x32b   : > { %15826 = vmatprep.subr.bf16.mxu1 %v15825_v55  ;;  %v12229_v55 = vld [vmem:[%s23378_s4 + $0xd68] sm:$0xff] }
 0x32c   : > { %v13488_v62 = vpop.f32.mrb[0].mxu1  ;;  %v13628_v63 = vpop.f32.mrb[2].mxu0 }
 0x32d   : > { %v13489_v4 = vpop.f32.mrb[1].mxu1  ;;  %v13629_v5 = vpop.f32.mrb[3].mxu0 }
 0x32e   : > { %v19106_v6 = vadd.f32 %v13489_v4, %v13488_v62  ;;  %v19108_v7 = vadd.f32 %v13629_v5, %v13628_v63  ;;  %15828 = vmatpush3.bf16.msra.mxu1 %v15827_v32  ;;  %v15895_v62 = vpack.c.bf16 %v12229_v55, %v12228_v54  ;;  %v15897_v63 = vpack.c.bf16 %v12247_v59, %v12246_v58  ;;  %v12296_v5 = vld [vmem:[%s23378_s4 + $0xf80] sm:$0xff]  ;;  %v12294_v59 = vld [vmem:[%s23378_s4 + $0xf70] sm:$0xff] }
 0x32f   : > { %15830 = vmatprep.subr.bf16.mxu1 %v15829_v33  ;;  %v15961_v58 = vpack.c.bf16 %v12311_v51, %v12310_v50 }
 0x332   : > { %15832 = vmatpush3.bf16.msra.mxu1 %v15831_v8  ;;  %v12297_v8 = vld [vmem:[%s23378_s4 + $0xf88] sm:$0xff] }
 0x333   : > { %15834 = vmatprep.subr.bf16.mxu1 %v15833_v9  ;;  %v15899_v9 = vpack.c.bf16 %v12231_v3, %v12230_v0  ;;  %v15933_v10 = vpack.c.bf16 %v12297_v8, %v12296_v5 }
 0x336   : > { %15836 = vmatpush3.bf16.msra.mxu1 %v15835_v14 }
 0x337   : > { %15870 = vmatprep.subr.bf16.mxu1 %v15869_v15  ;;  %v15937_v15 = vpack.c.bf16 %v12299_v13, %v12298_v12 }
 0x339   : > { %2179 = vmatmul.mubr.f32.vlgmr.msra.gmra.mrb[14].mxu1 %v17965_v1 }
 0x33a   : > { %15872 = vmatpush3.bf16.msra.mxu1 %v15871_v20  ;;  %2384 = vmatprep.mubr.f32.mxu1 %v17967_v2  ;;  %v15939_v20 = vpack.c.bf16 %v12283_v17, %v12282_v16 }
 0x33b   : > { %15874 = vmatprep.subr.bf16.mxu1 %v15873_v21  ;;  %v15941_v21 = vpack.c.bf16 %v12301_v19, %v12300_v18 }
 0x33e   : > { %15876 = vmatpush3.bf16.msra.mxu1 %v15875_v26  ;;  %v15945_v26 = vpack.c.bf16 %v12303_v25, %v12302_v24 }
 0x33f   : > { %15878 = vmatprep.subr.bf16.mxu1 %v15877_v27  ;;  %v12286_v27 = vld [vmem:[%s23378_s4 + $0xf30] sm:$0xff] }
 0x340   : > { %v15947_v31 = vpack.c.bf16 %v12287_v28, %v12286_v27 }
 0x342   : > { %15880 = vmatpush3.bf16.msra.mxu1 %v15879_v34  ;;  %v15949_v34 = vpack.c.bf16 %v12305_v30, %v12304_v29 }
 0x343   : > { %15882 = vmatprep.subr.bf16.mxu1 %v15881_v35  ;;  %v12288_v35 = vld [vmem:[%s23378_s4 + $0xf40] sm:$0xff] }
 0x344   : > { %v15951_v39 = vpack.c.bf16 %v12289_v36, %v12288_v35  ;;  %v948_v36 = vld [vmem:[%s23380_s10 + $0x8] sm:$0xff] }
 0x346   : > { %15884 = vmatpush3.bf16.msra.mxu1 %v15883_v40  ;;  %v15953_v40 = vpack.c.bf16 %v12307_v38, %v12306_v37 }
 0x347   : > { %15886 = vmatprep.subr.bf16.mxu1 %v15885_v41  ;;  %v12290_v41 = vld [vmem:[%s23378_s4 + $0xf50] sm:$0xff] }
 0x348   : > { %v15955_v45 = vpack.c.bf16 %v12291_v42, %v12290_v41  ;;  %v2672_v41 = vld [vmem:[%s23381_s29 + $0x8] sm:$0xff]  ;;  %v2673_v42 = vld [vmem:[%s23382_s8] sm:$0xff] }
 0x34a   : > { %15888 = vmatpush3.bf16.msra.mxu1 %v15887_v46  ;;  %v15957_v46 = vpack.c.bf16 %v12309_v44, %v12308_v43  ;;  %v2671_v43 = vld [vmem:[%s23381_s29] sm:$0xff] }
 0x34b   : > { %15890 = vmatprep.subr.bf16.mxu1 %v15889_v47  ;;  %v12292_v47 = vld [vmem:[%s23378_s4 + $0xf60] sm:$0xff] }
 0x34c   : > { %v13523_v56 = vpop.f32.mrb[2].mxu1  ;;  %v13698_v57 = vpop.f32.mrb[4].mxu0 }
 0x34d   : > { %v13524_v32 = vpop.f32.mrb[3].mxu1  ;;  %v13699_v33 = vpop.f32.mrb[5].mxu0 }
 0x34e   : > { %v13525_v60 = vadd.f32 %v13524_v32, %v13523_v56  ;;  %v19208_v61 = vadd.f32 %v13699_v33, %v13698_v57  ;;  %15892 = vmatpush3.bf16.msra.mxu1 %v15891_v52  ;;  %v15959_v56 = vpack.c.bf16 %v12293_v48, %v12292_v47  ;;  %v12295_v32 = vld [vmem:[%s23378_s4 + $0xf78] sm:$0xff] }
 0x34f   : > { %15894 = vmatprep.subr.bf16.mxu1 %v15893_v53  ;;  %v15963_v33 = vpack.c.bf16 %v12295_v32, %v12294_v59  ;;  %v12315_v59 = vld [vmem:[%s23383_s28 + $0x48] sm:$0xff] }
 0x350   : > { %v15965_v4 = vpack.c.bf16 %v13525_v60, %v19106_v6  ;;  %v12281_v6 = vld [vmem:[%s23378_s4 + $0xf08] sm:$0xff]  ;;  %s23385_s4 = sld [smem:[#allocation12_spill]] }
 0x351   : > { %v15935_v14 = vpack.c.bf16 %v12281_v6, %v12280_v11 }
 0x352   : > { %15896 = vmatpush3.bf16.msra.mxu1 %v15895_v62  ;;  %15966 = vmatprep.subr.bf16.mxu0 %v15965_v4 }
 0x353   : > { %15968 = vmatpush3.bf16.msra.mxu0 %v15965_v4  ;;  %15898 = vmatprep.subr.bf16.mxu1 %v15897_v63 }
 0x356   : > { %15900 = vmatpush3.bf16.msra.mxu1 %v15899_v9 }
 0x357   : > { %15934 = vmatprep.subr.bf16.mxu1 %v15933_v10 }
 0x359   : > { %2385 = vmatmul.mubr.f32.vlgmr.msra.gmra.mrb[16].mxu1 %v17965_v1 }
 0x35a   : > { %15936 = vmatpush3.bf16.msra.mxu1 %v15935_v14  ;;  %2590 = vmatprep.mubr.f32.mxu1 %v17967_v2  ;;  %v15943_v2 = vpack.c.bf16 %v12285_v23, %v12284_v22 }
 0x35b   : > { %15938 = vmatprep.subr.bf16.mxu1 %v15937_v15 }
 0x35e   : > { %15940 = vmatpush3.bf16.msra.mxu1 %v15939_v20  ;;  %v947_v20 = vld [vmem:[%s23380_s10] sm:$0xff]  ;;  %s11828_s10 = sshll.u32 %s23388_s3, 1 }
 0x35f   : > { %15942 = vmatprep.subr.bf16.mxu1 %v15941_v21  ;;  %14686 = vmatprep.mubr.f32.mxu0 %v947_v20  ;;  %v12335_v20 = vld [vmem:[%s23383_s28 + $0xc8] sm:$0xff]  ;;  %s789_s6 = scalar_lea.vmem %s23348_s26, %s11828_s10 }
 0x362   : > { %15944 = vmatpush3.bf16.msra.mxu1 %v15943_v2 }
 0x363   : > { %15946 = vmatprep.subr.bf16.mxu1 %v15945_v26 }
 0x366   : > { %15948 = vmatpush3.bf16.msra.mxu1 %v15947_v31 }
 0x367   : > { %15950 = vmatprep.subr.bf16.mxu1 %v15949_v34 }
 0x36a   : > { %15952 = vmatpush3.bf16.msra.mxu1 %v15951_v39 }
 0x36b   : > { %15954 = vmatprep.subr.bf16.mxu1 %v15953_v40 }
 0x36c   : > { %v13558_v49 = vpop.f32.mrb[4].mxu1 }
 0x36d   : > { %v13768_v52 = vpop.f32.mrb[6].mxu0  ;;  %v13559_v53 = vpop.f32.mrb[5].mxu1 }
 0x36e   : > { %v13560_v54 = vadd.f32 %v13559_v53, %v13558_v49  ;;  %v13769_v55 = vpop.f32.mrb[7].mxu0  ;;  %15956 = vmatpush3.bf16.msra.mxu1 %v15955_v45 }
 0x36f   : > { %v13770_v57 = vadd.f32 %v13769_v55, %v13768_v52  ;;  %15958 = vmatprep.subr.bf16.mxu1 %v15957_v46  ;;  %v2737_v55 = vld [vmem:[%s23383_s28] sm:$0xff] }
 0x372   : > { %15960 = vmatpush3.bf16.msra.mxu1 %v15959_v56  ;;  %v2738_v56 = vld [vmem:[%s23383_s28 + $0x8] sm:$0xff] }
 0x373   : > { %15962 = vmatprep.subr.bf16.mxu1 %v15961_v58  ;;  %v15997_v58 = vpack.c.bf16 %v2738_v56, %v2737_v55  ;;  %v12340_v55 = vld [vmem:[%s23383_s28 + $0xf0] sm:$0xff]  ;;  %v12341_v56 = vld [vmem:[%s23383_s28 + $0xf8] sm:$0xff] }
 0x376   : > { %15964 = vmatpush3.bf16.msra.mxu1 %v15963_v33  ;;  %v2739_v33 = vld [vmem:[%s23383_s28 + $0x10] sm:$0xff] }
 0x377   : > { %15998 = vmatprep.subr.bf16.mxu1 %v15997_v58 }
 0x379   : > { %2591 = vmatmul.mubr.f32.vlgmr.msra.gmra.mrb[18].mxu1 %v17965_v1 }
 0x37a   : > { %16000 = vmatpush3.bf16.msra.mxu1 %v15997_v58  ;;  %v16057_v58 = vpack.c.bf16 %v12341_v56, %v12340_v55  ;;  %v12388_v56 = vld [vmem:[%s23383_s28 + $0x220] sm:$0xff] }
 0x38c   : > { %v13593_v60 = vpop.f32.mrb[6].mxu1 }
 0x38d   : > { %v13838_v62 = vpop.f32.mrb[8].mxu0  ;;  %v13594_v63 = vpop.f32.mrb[7].mxu1 }
 0x38e   : > { %v13595_v0 = vadd.f32 %v13594_v63, %v13593_v60  ;;  %v13839_v3 = vpop.f32.mrb[9].mxu0  ;;  %v2740_v60 = vld [vmem:[%s23383_s28 + $0x18] sm:$0xff] }
 0x38f   : > { %v13840_v4 = vadd.f32 %v13839_v3, %v13838_v62  ;;  %v12316_v62 = vld [vmem:[%s23383_s28 + $0x50] sm:$0xff]  ;;  %v16001_v63 = vpack.c.bf16 %v2740_v60, %v2739_v33  ;;  %v12354_v33 = vld [vmem:[%s23383_s28 + $0x140] sm:$0xff]  ;;  %v12355_v60 = vld [vmem:[%s23383_s28 + $0x148] sm:$0xff] }
 0x390   : > { %v15969_v5 = vpack.c.bf16 %v13595_v0, %v13560_v54  ;;  %v2674_v54 = vld [vmem:[%s23382_s8 + $0x8] sm:$0xff]  ;;  %v12317_v0 = vld [vmem:[%s23383_s28 + $0x58] sm:$0xff] }
 0x391   : > { %v16017_v3 = vpack.c.bf16 %v12317_v0, %v12316_v62  ;;  %16002 = vmatprep.subr.bf16.mxu1 %v16001_v63  ;;  %v12346_v0 = vld [vmem:[%s23383_s28 + $0x110] sm:$0xff] }
 0x392   : > { %15970 = vmatprep.subr.bf16.mxu0 %v15969_v5  ;;  %16004 = vmatpush3.bf16.msra.mxu1 %v16001_v63  ;;  %v16077_v63 = vpack.c.bf16 %v12355_v60, %v12354_v33 }
 0x393   : > { %15972 = vmatpush3.bf16.msra.mxu0 %v15969_v5  ;;  %v2742_v5 = vld [vmem:[%s23383_s28 + $0x28] sm:$0xff] }
 0x3ac   : > { %v13663_v8 = vpop.f32.mrb[8].mxu1 }
 0x3ad   : > { %v13908_v9 = vpop.f32.mrb[10].mxu0  ;;  %v13664_v10 = vpop.f32.mrb[9].mxu1 }
 0x3ae   : > { %v13665_v11 = vadd.f32 %v13664_v10, %v13663_v8  ;;  %v13909_v6 = vpop.f32.mrb[11].mxu0  ;;  %v12318_v8 = vld [vmem:[%s23383_s28 + $0x60] sm:$0xff]  ;;  %v12319_v10 = vld [vmem:[%s23383_s28 + $0x68] sm:$0xff] }
 0x3af   : > { %v13910_v12 = vadd.f32 %v13909_v6, %v13908_v9  ;;  %v2743_v6 = vld [vmem:[%s23383_s28 + $0x30] sm:$0xff] }
 0x3b0   : > { %v15973_v13 = vpack.c.bf16 %v13665_v11, %v19108_v7  ;;  %v16021_v11 = vpack.c.bf16 %v12319_v10, %v12318_v8  ;;  %v12348_v10 = vld [vmem:[%s23383_s28 + $0x120] sm:$0xff] }
 0x3b2   : > { %15974 = vmatprep.subr.bf16.mxu0 %v15973_v13 }
 0x3b3   : > { %15976 = vmatpush3.bf16.msra.mxu0 %v15973_v13  ;;  %v12320_v13 = vld [vmem:[%s23383_s28 + $0x70] sm:$0xff] }
 0x3cc   : > { %v13733_v1 = vpop.f32.mrb[10].mxu1 }
 0x3cd   : > { %v13978_v14 = vpop.f32.mrb[12].mxu0  ;;  %v13734_v15 = vpop.f32.mrb[11].mxu1 }
 0x3ce   : > { %v13735_v16 = vadd.f32 %v13734_v15, %v13733_v1  ;;  %v13979_v17 = vpop.f32.mrb[13].mxu0 }
 0x3cf   : > { %v13980_v18 = vadd.f32 %v13979_v17, %v13978_v14  ;;  %v12321_v14 = vld [vmem:[%s23383_s28 + $0x78] sm:$0xff]  ;;  %v12325_v17 = vld [vmem:[%s23383_s28 + $0x88] sm:$0xff] }
 0x3d0   : > { %v15977_v19 = vpack.c.bf16 %v13735_v16, %v19208_v61  ;;  %v16025_v15 = vpack.c.bf16 %v12321_v14, %v12320_v13  ;;  %v12324_v16 = vld [vmem:[%s23383_s28 + $0x80] sm:$0xff]  ;;  %v12350_v14 = vld [vmem:[%s23383_s28 + $0x130] sm:$0xff] }
 0x3d2   : > { %15978 = vmatprep.subr.bf16.mxu0 %v15977_v19 }
 0x3d3   : > { %15980 = vmatpush3.bf16.msra.mxu0 %v15977_v19  ;;  %v16029_v19 = vpack.c.bf16 %v12325_v17, %v12324_v16  ;;  %v12360_v16 = vld [vmem:[%s23383_s28 + $0x170] sm:$0xff]  ;;  %v12361_v17 = vld [vmem:[%s23383_s28 + $0x178] sm:$0xff] }
 0x3ec   : > { %v13803_v21 = vpop.f32.mrb[12].mxu1 }
 0x3ed   : > { %v13804_v22 = vpop.f32.mrb[13].mxu1 }
 0x3ee   : > { %v13805_v7 = vadd.f32 %v13804_v22, %v13803_v21 }
 0x3f0   : > { %v15981_v23 = vpack.c.bf16 %v13805_v7, %v13770_v57  ;;  %v12314_v57 = vld [vmem:[%s23383_s28 + $0x40] sm:$0xff] }
 0x3f1   : > { %v16013_v32 = vpack.c.bf16 %v12315_v59, %v12314_v57  ;;  %v12344_v59 = vld [vmem:[%s23383_s28 + $0x100] sm:$0xff] }
 0x3f2   : > { %15982 = vmatprep.subr.bf16.mxu0 %v15981_v23 }
 0x3f3   : > { %15984 = vmatpush3.bf16.msra.mxu0 %v15981_v23 }
 0x40c   : > { %v13873_v24 = vpop.f32.mrb[14].mxu1 }
 0x40d   : > { %v13874_v25 = vpop.f32.mrb[15].mxu1 }
 0x40e   : > { %v13875_v2 = vadd.f32 %v13874_v25, %v13873_v24 }
 0x410   : > { %v15985_v26 = vpack.c.bf16 %v13875_v2, %v13840_v4  ;;  %v2741_v4 = vld [vmem:[%s23383_s28 + $0x20] sm:$0xff] }
 0x411   : > { %v16005_v9 = vpack.c.bf16 %v2742_v5, %v2741_v4  ;;  %v12356_v4 = vld [vmem:[%s23383_s28 + $0x150] sm:$0xff]  ;;  %v12357_v5 = vld [vmem:[%s23383_s28 + $0x158] sm:$0xff] }
 0x412   : > { %15986 = vmatprep.subr.bf16.mxu0 %v15985_v26 }
 0x413   : > { %15988 = vmatpush3.bf16.msra.mxu0 %v15985_v26  ;;  %16006 = vmatprep.subr.bf16.mxu1 %v16005_v9 }
 0x414   : > { %16008 = vmatpush3.bf16.msra.mxu1 %v16005_v9  ;;  %v16081_v9 = vpack.c.bf16 %v12357_v5, %v12356_v4 }
 0x42c   : > { %v13943_v61 = vpop.f32.mrb[16].mxu1 }
 0x42d   : > { %v13944_v27 = vpop.f32.mrb[17].mxu1 }
 0x42e   : > { %v13945_v28 = vadd.f32 %v13944_v27, %v13943_v61 }
 0x430   : > { %v15989_v29 = vpack.c.bf16 %v13945_v28, %v13910_v12  ;;  %v2744_v12 = vld [vmem:[%s23383_s28 + $0x38] sm:$0xff] }
 0x431   : > { %v16009_v1 = vpack.c.bf16 %v2744_v12, %v2743_v6  ;;  %v12358_v6 = vld [vmem:[%s23383_s28 + $0x160] sm:$0xff]  ;;  %v12359_v12 = vld [vmem:[%s23383_s28 + $0x168] sm:$0xff] }
 0x432   : > { %15990 = vmatprep.subr.bf16.mxu0 %v15989_v29 }
 0x433   : > { %15992 = vmatpush3.bf16.msra.mxu0 %v15989_v29  ;;  %16010 = vmatprep.subr.bf16.mxu1 %v16009_v1 }
 0x434   : > { %16012 = vmatpush3.bf16.msra.mxu1 %v16009_v1  ;;  %v16085_v1 = vpack.c.bf16 %v12359_v12, %v12358_v6 }
 0x435   : > { %16030 = vmatprep.subr.bf16.mxu1 %v16029_v19 }
 0x44c   : > { %v14013_v30 = vpop.f32.mrb[18].mxu1 }
 0x44d   : > { %v14014_v31 = vpop.f32.mrb[19].mxu1 }
 0x44e   : > { %v14015_v34 = vadd.f32 %v14014_v31, %v14013_v30 }
 0x450   : > { %v15993_v35 = vpack.c.bf16 %v14015_v34, %v13980_v18  ;;  %v12334_v18 = vld [vmem:[%s23383_s28 + $0xc0] sm:$0xff] }
 0x451   : > { %v16045_v21 = vpack.c.bf16 %v12335_v20, %v12334_v18  ;;  %v12364_v20 = vld [vmem:[%s23383_s28 + $0x180] sm:$0xff] }
 0x452   : > { %15994 = vmatprep.subr.bf16.mxu0 %v15993_v35 }
 0x453   : > { %15996 = vmatpush3.bf16.msra.mxu0 %v15993_v35 }
 0x454   : > { %16014 = vmatprep.subr.bf16.mxu0 %v16013_v32 }
 0x456   : > { %14687 = vmatmul.mubr.f32.vlgmr.msra.gmra.mrb[14].mxu0 %v948_v36 }
 0x457   : > { %16016 = vmatpush3.bf16.msra.mxu0 %v16013_v32  ;;  %v12345_v32 = vld [vmem:[%s23383_s28 + $0x108] sm:$0xff] }
 0x458   : > { %16018 = vmatprep.subr.bf16.mxu0 %v16017_v3  ;;  %v16061_v62 = vpack.c.bf16 %v12345_v32, %v12344_v59  ;;  %v12398_v59 = vld [vmem:[%s23383_s28 + $0x260] sm:$0xff]  ;;  %v12399_v32 = vld [vmem:[%s23383_s28 + $0x268] sm:$0xff] }
 0x459   : > { %v16149_v60 = vpack.c.bf16 %v12399_v32, %v12398_v59 }
 0x45b   : > { %16020 = vmatpush3.bf16.msra.mxu0 %v16017_v3  ;;  %v12347_v3 = vld [vmem:[%s23383_s28 + $0x118] sm:$0xff] }
 0x45c   : > { %16022 = vmatprep.subr.bf16.mxu0 %v16021_v11  ;;  %v16065_v8 = vpack.c.bf16 %v12347_v3, %v12346_v0  ;;  %v12400_v0 = vld [vmem:[%s23383_s28 + $0x270] sm:$0xff]  ;;  %v12401_v3 = vld [vmem:[%s23383_s28 + $0x278] sm:$0xff] }
 0x45d   : > { %v16153_v5 = vpack.c.bf16 %v12401_v3, %v12400_v0  ;;  %v12448_v3 = vld [vmem:[%s23383_s28 + $0x3a0] sm:$0xff] }
 0x45f   : > { %16024 = vmatpush3.bf16.msra.mxu0 %v16021_v11  ;;  %v12349_v11 = vld [vmem:[%s23383_s28 + $0x128] sm:$0xff] }
 0x460   : > { %16026 = vmatprep.subr.bf16.mxu0 %v16025_v15  ;;  %v16069_v13 = vpack.c.bf16 %v12349_v11, %v12348_v10  ;;  %v12414_v10 = vld [vmem:[%s23383_s28 + $0x2c0] sm:$0xff]  ;;  %v12415_v11 = vld [vmem:[%s23383_s28 + $0x2c8] sm:$0xff] }
 0x461   : > { %v16173_v12 = vpack.c.bf16 %v12415_v11, %v12414_v10 }
 0x463   : > { %16028 = vmatpush3.bf16.msra.mxu0 %v16025_v15  ;;  %v12351_v15 = vld [vmem:[%s23383_s28 + $0x138] sm:$0xff] }
 0x464   : > { %16046 = vmatprep.subr.bf16.mxu0 %v16045_v21  ;;  %v16073_v18 = vpack.c.bf16 %v12351_v15, %v12350_v14  ;;  %v12416_v14 = vld [vmem:[%s23383_s28 + $0x2d0] sm:$0xff]  ;;  %v12417_v15 = vld [vmem:[%s23383_s28 + $0x2d8] sm:$0xff] }
 0x529   : > { %v14688_v37 = vpop.f32.mrb[14].mxu0 }
 0x52a   : > { %v2662_v38 = vpop.f32.mrb[15].mxu0  ;;  %v2679_v39 = vsel %vm2675_vm2, %v14688_v37, 0.0 }
 0x52b   : > { %2680 = vadd.xlane.f32.xlu1 %v2679_v39  ;;  %v2676_v40 = vsel %vm2675_vm2, %v2662_v38, 0.0  ;;  %v12326_v39 = vld [vmem:[%s23383_s28 + $0x90] sm:$0xff] }
 0x52c   : > { %2677 = vadd.xlane.f32.xlu0 %v2676_v40  ;;  %v12327_v40 = vld [vmem:[%s23383_s28 + $0x98] sm:$0xff] }
 0x53c   : > { %2710 = vperm.xlu1 %17441, %v2672_v41   ;;  %v12336_v41 = vld [vmem:[%s23383_s28 + $0xd0] sm:$0xff] }
 0x540   : > { %2717 = vperm.xlu1 %17441, %v2673_v42   ;;  %v12337_v42 = vld [vmem:[%s23383_s28 + $0xd8] sm:$0xff] }
 0x542   : > { %2705 = vperm.xlu0 %17442, %v2671_v43  }
 0x5b8   : > { %v2681_v44 = vpop.xlane.xlu1 %2680 }
 0x5b9   : > { %v2684_v45 = vmul.f32 0.015625, %v2681_v44  ;;  %v2678_v46 = vpop.xlane.xlu0 %2677 }
 0x5ba   : > { %v2683_v47 = vmul.f32 0.015625, %v2678_v46  ;;  %v16033_v46 = vpack.c.bf16 %v12327_v40, %v12326_v39  ;;  %v12380_v39 = vld [vmem:[%s23383_s28 + $0x1f0] sm:$0xff]  ;;  %v12381_v40 = vld [vmem:[%s23383_s28 + $0x1f8] sm:$0xff] }
 0x5bb   : > { %v19335_v48 = vsub.f32 %v14688_v37, %v2684_v45  ;;  %v12328_v45 = vld [vmem:[%s23383_s28 + $0xa0] sm:$0xff] }
 0x5bc   : > { %v19337_v49 = vsub.f32 %v2662_v38, %v2683_v47  ;;  %v2711_v28 = vpop.permute.xlu1 %2710  ;;  %v16049_v47 = vpack.c.bf16 %v12337_v42, %v12336_v41  ;;  %v16121_v42 = vpack.c.bf16 %v12381_v40, %v12380_v39  ;;  %v12428_v40 = vld [vmem:[%s23383_s28 + $0x320] sm:$0xff] }
 0x5bd   : > { %v2688_v50 = vmul.f32 %v19335_v48, %v19335_v48 }
 0x5be   : > { %v2687_v52 = vmul.f32 %v19337_v49, %v19337_v49 }
 0x5bf   : > { %v2692_v51 = vsel %vm2675_vm2, %v2688_v50, 0.0  ;;  %v12339_v50 = vld [vmem:[%s23383_s28 + $0xe8] sm:$0xff] }
 0x5c0   : > { %2693 = vadd.xlane.f32.xlu0 %v2692_v51  ;;  %v2689_v53 = vsel %vm2675_vm2, %v2687_v52, 0.0  ;;  %v2718_v36 = vpop.permute.xlu1 %2717 }
 0x5c1   : > { %v2706_v22 = vpop.permute.xlu0 %2705 }
 0x5c4   : > { %2690 = vadd.xlane.f32.xlu0 %v2689_v53  ;;  %v12330_v53 = vld [vmem:[%s23383_s28 + $0xb0] sm:$0xff] }
 0x5da   : > { %2722 = vperm.xlu0 %17442, %v2674_v54   ;;  %v12331_v54 = vld [vmem:[%s23383_s28 + $0xb8] sm:$0xff] }
 0x5db   : > { %v16041_v57 = vpack.c.bf16 %v12331_v54, %v12330_v53  ;;  %v12396_v53 = vld [vmem:[%s23383_s28 + $0x250] sm:$0xff]  ;;  %v12397_v54 = vld [vmem:[%s23383_s28 + $0x258] sm:$0xff] }
 0x64d   : > { %v2694_v7 = vpop.xlane.xlu0 %2693 }
 0x64e   : > { %v2696_v23 = vmul.f32 0.015625, %v2694_v7  ;;  %v12375_v7 = vld [vmem:[%s23383_s28 + $0x1c8] sm:$0xff] }
 0x650   : > { %v2698_v24 = vadd.f32 1e-05, %v2696_v23 }
 0x651   : > { %v2691_v25 = vpop.xlane.xlu0 %2690 }
 0x652   : > { %17445 = vrsqrt.f32 %v2698_v24  ;;  %v2695_v2 = vmul.f32 0.015625, %v2691_v25  ;;  %v12366_v25 = vld [vmem:[%s23383_s28 + $0x190] sm:$0xff] }
 0x654   : > { %v2697_v26 = vadd.f32 1e-05, %v2695_v2  ;;  %v12367_v2 = vld [vmem:[%s23383_s28 + $0x198] sm:$0xff] }
 0x656   : > { %17447 = vrsqrt.f32 %v2697_v26  ;;  %v12376_v26 = vld [vmem:[%s23383_s28 + $0x1d0] sm:$0xff] }
 0x659   : > { %v2723_v35 = vpop.permute.xlu0 %2722 }
 0x65c   : > { %v17446_v61 = vpop.eup %17445 }
 0x65d   : > { %v2702_v27 = vmul.f32 %v17446_v61, %v19335_v48  ;;  %v12329_v48 = vld [vmem:[%s23383_s28 + $0xa8] sm:$0xff]  ;;  %v12377_v61 = vld [vmem:[%s23383_s28 + $0x1d8] sm:$0xff] }
 0x65e   : > { %v16037_v51 = vpack.c.bf16 %v12329_v48, %v12328_v45  ;;  %v12384_v45 = vld [vmem:[%s23383_s28 + $0x200] sm:$0xff]  ;;  %v12395_v48 = vld [vmem:[%s23383_s28 + $0x248] sm:$0xff] }
 0x65f   : > { %v2714_v30 = vmul.f32 %v2711_v28, %v2702_v27  ;;  %v16097_v27 = vpack.c.bf16 %v12367_v2, %v12366_v25  ;;  %v12368_v28 = vld [vmem:[%s23383_s28 + $0x1a0] sm:$0xff]  ;;  %v12420_v25 = vld [vmem:[%s23383_s28 + $0x2f0] sm:$0xff]  ;;  %v12421_v2 = vld [vmem:[%s23383_s28 + $0x2f8] sm:$0xff] }
 0x660   : > { %v17448_v29 = vpop.eup %17447 }
 0x661   : > { %v2701_v31 = vmul.f32 %v17448_v29, %v19337_v49  ;;  %v2726_v37 = vadd.f32 %v2723_v35, %v2714_v30  ;;  %v12338_v49 = vld [vmem:[%s23383_s28 + $0xe0] sm:$0xff]  ;;  %v12369_v29 = vld [vmem:[%s23383_s28 + $0x1a8] sm:$0xff]  ;;  %v16113_v30 = vpack.c.bf16 %v12377_v61, %v12376_v26  ;;  %v16185_v61 = vpack.c.bf16 %v12421_v2, %v12420_v25 }
 0x662   : > { %v16053_v52 = vpack.c.bf16 %v12339_v50, %v12338_v49  ;;  %v16101_v35 = vpack.c.bf16 %v12369_v29, %v12368_v28  ;;  %v12425_v28 = vld [vmem:[%s23383_s28 + $0x308] sm:$0xff]  ;;  %v12434_v29 = vld [vmem:[%s23383_s28 + $0x340] sm:$0xff] }
 0x663   : > { %v2713_v34 = vmul.f32 %v2706_v22, %v2701_v31  ;;  %v19424_v44 = vmax.f32 %v2726_v37, 0.0  ;;  %v12374_v22 = vld [vmem:[%s23383_s28 + $0x1c0] sm:$0xff]  ;;  %v12370_v37 = vld [vmem:[%s23383_s28 + $0x1b0] sm:$0xff] }
 0x664   : > { %v16109_v24 = vpack.c.bf16 %v12375_v7, %v12374_v22  ;;  %v12378_v31 = vld [vmem:[%s23383_s28 + $0x1e0] sm:$0xff] }
 0x665   : > { %v2725_v38 = vadd.f32 %v2718_v36, %v2713_v34  ;;  %v12379_v34 = vld [vmem:[%s23383_s28 + $0x1e8] sm:$0xff] }
 0x666   : > { %v16117_v36 = vpack.c.bf16 %v12379_v34, %v12378_v31 }
 0x667   : > { %v19422_v43 = vmax.f32 %v2725_v38, 0.0  ;;  %v12371_v38 = vld [vmem:[%s23383_s28 + $0x1b8] sm:$0xff] }
 0x668   : > { %v16105_v41 = vpack.c.bf16 %v12371_v38, %v12370_v37  ;;  %v12436_v37 = vld [vmem:[%s23383_s28 + $0x350] sm:$0xff]  ;;  %v12437_v38 = vld [vmem:[%s23383_s28 + $0x358] sm:$0xff] }
 0x669   : > { %14705 = vmatprep.mubr.msk.f32.mxu1 %vm2675_vm2, %v19422_v43  ;;  %14724 = vmatprep.mubr.msk.f32.mxu0 %vm2675_vm2, %v19422_v43 }
 0x66a   : > { %14706 = vmatmul.mubr.msk.f32.vlgmr.msra.gmra.mrb[20].mxu1 %vm2675_vm2, %v19424_v44  ;;  %14725 = vmatmul.mubr.msk.f32.vlgmr.msra.gmra.mrb[16].mxu0 %vm2675_vm2, %v19424_v44 }
 0x66b   : > { %16032 = vmatpush3.bf16.msra.mxu1 %v16029_v19  ;;  %16048 = vmatpush3.bf16.msra.mxu0 %v16045_v21  ;;  %v16089_v19 = vpack.c.bf16 %v12361_v17, %v12360_v16  ;;  %v12365_v21 = vld [vmem:[%s23383_s28 + $0x188] sm:$0xff]  ;;  %v12408_v17 = vld [vmem:[%s23383_s28 + $0x2a0] sm:$0xff] }
 0x66c   : > { %14743 = vmatprep.mubr.msk.f32.mxu1 %vm2675_vm2, %v19422_v43  ;;  %14762 = vmatprep.mubr.msk.f32.mxu0 %vm2675_vm2, %v19422_v43  ;;  %v16093_v23 = vpack.c.bf16 %v12365_v21, %v12364_v20  ;;  %v12418_v20 = vld [vmem:[%s23383_s28 + $0x2e0] sm:$0xff]  ;;  %v12419_v21 = vld [vmem:[%s23383_s28 + $0x2e8] sm:$0xff] }
 0x66d   : > { %16034 = vmatprep.subr.bf16.mxu1 %v16033_v46  ;;  %16050 = vmatprep.subr.bf16.mxu0 %v16049_v47  ;;  %v16181_v7 = vpack.c.bf16 %v12419_v21, %v12418_v20 }
 0x66f   : > { %16036 = vmatpush3.bf16.msra.mxu1 %v16033_v46  ;;  %16052 = vmatpush3.bf16.msra.mxu0 %v16049_v47  ;;  %v12385_v46 = vld [vmem:[%s23383_s28 + $0x208] sm:$0xff]  ;;  %v12394_v47 = vld [vmem:[%s23383_s28 + $0x240] sm:$0xff] }
 0x670   : > { %16038 = vmatprep.subr.bf16.mxu1 %v16037_v51  ;;  %16054 = vmatprep.subr.bf16.mxu0 %v16053_v52  ;;  %v16125_v49 = vpack.c.bf16 %v12385_v46, %v12384_v45  ;;  %v16141_v50 = vpack.c.bf16 %v12395_v48, %v12394_v47  ;;  %v12438_v45 = vld [vmem:[%s23383_s28 + $0x360] sm:$0xff]  ;;  %v12439_v46 = vld [vmem:[%s23383_s28 + $0x368] sm:$0xff] }
 0x671   : > { %v16213_v48 = vpack.c.bf16 %v12439_v46, %v12438_v45 }
 0x673   : > { %16040 = vmatpush3.bf16.msra.mxu1 %v16037_v51  ;;  %16056 = vmatpush3.bf16.msra.mxu0 %v16053_v52  ;;  %v12386_v51 = vld [vmem:[%s23383_s28 + $0x210] sm:$0xff]  ;;  %v12387_v52 = vld [vmem:[%s23383_s28 + $0x218] sm:$0xff] }
 0x674   : > { %16042 = vmatprep.subr.bf16.mxu1 %v16041_v57  ;;  %16058 = vmatprep.subr.bf16.mxu0 %v16057_v58  ;;  %v16129_v55 = vpack.c.bf16 %v12387_v52, %v12386_v51  ;;  %v12440_v51 = vld [vmem:[%s23383_s28 + $0x370] sm:$0xff]  ;;  %v12441_v52 = vld [vmem:[%s23383_s28 + $0x378] sm:$0xff] }
 0x677   : > { %16044 = vmatpush3.bf16.msra.mxu1 %v16041_v57  ;;  %16060 = vmatpush3.bf16.msra.mxu0 %v16057_v58  ;;  %v12389_v57 = vld [vmem:[%s23383_s28 + $0x228] sm:$0xff]  ;;  %v16145_v58 = vpack.c.bf16 %v12397_v54, %v12396_v53  ;;  %v16217_v54 = vpack.c.bf16 %v12441_v52, %v12440_v51 }
 0x678   : > { %16062 = vmatprep.subr.bf16.mxu1 %v16061_v62  ;;  %16078 = vmatprep.subr.bf16.mxu0 %v16077_v63  ;;  %v16133_v33 = vpack.c.bf16 %v12389_v57, %v12388_v56  ;;  %v12445_v56 = vld [vmem:[%s23383_s28 + $0x388] sm:$0xff]  ;;  %v12454_v57 = vld [vmem:[%s23383_s28 + $0x3c0] sm:$0xff] }
 0x67a   : > { %14744 = vmatmul.mubr.msk.f32.vlgmr.msra.gmra.mrb[22].mxu1 %vm2675_vm2, %v19424_v44  ;;  %14763 = vmatmul.mubr.msk.f32.vlgmr.msra.gmra.mrb[18].mxu0 %vm2675_vm2, %v19424_v44 }
 0x67b   : > { %16064 = vmatpush3.bf16.msra.mxu1 %v16061_v62  ;;  %14781 = vmatprep.mubr.msk.f32.mxu1 %vm2675_vm2, %v19422_v43  ;;  %v12390_v62 = vld [vmem:[%s23383_s28 + $0x230] sm:$0xff] }
 0x67c   : > { %16080 = vmatpush3.bf16.msra.mxu0 %v16077_v63  ;;  %14800 = vmatprep.mubr.msk.f32.mxu0 %vm2675_vm2, %v19422_v43  ;;  %v12391_v63 = vld [vmem:[%s23383_s28 + $0x238] sm:$0xff] }
 0x67d   : > { %16066 = vmatprep.subr.bf16.mxu1 %v16065_v8  ;;  %16082 = vmatprep.subr.bf16.mxu0 %v16081_v9  ;;  %v16137_v4 = vpack.c.bf16 %v12391_v63, %v12390_v62  ;;  %v12456_v62 = vld [vmem:[%s23383_s28 + $0x3d0] sm:$0xff]  ;;  %v12457_v63 = vld [vmem:[%s23383_s28 + $0x3d8] sm:$0xff] }
 0x67f   : > { %16068 = vmatpush3.bf16.msra.mxu1 %v16065_v8  ;;  %v12404_v8 = vld [vmem:[%s23383_s28 + $0x280] sm:$0xff] }
 0x680   : > { %16084 = vmatpush3.bf16.msra.mxu0 %v16081_v9  ;;  %16070 = vmatprep.subr.bf16.mxu1 %v16069_v13  ;;  %v12405_v9 = vld [vmem:[%s23383_s28 + $0x288] sm:$0xff] }
 0x681   : > { %16086 = vmatprep.subr.bf16.mxu0 %v16085_v1  ;;  %v16157_v6 = vpack.c.bf16 %v12405_v9, %v12404_v8  ;;  %v12458_v8 = vld [vmem:[%s23383_s28 + $0x3e0] sm:$0xff]  ;;  %v12459_v9 = vld [vmem:[%s23383_s28 + $0x3e8] sm:$0xff] }
 0x682   : > { %v16245_v11 = vpack.c.bf16 %v12459_v9, %v12458_v8  ;;  %v2736_v8 = vld [vmem:[%s23384_s5 + $0x38] sm:$0xff]  ;;  %v2735_v9 = vld [vmem:[%s23384_s5 + $0x30] sm:$0xff] }
 0x683   : > { %16072 = vmatpush3.bf16.msra.mxu1 %v16069_v13  ;;  %v12406_v13 = vld [vmem:[%s23383_s28 + $0x290] sm:$0xff] }
 0x684   : > { %16088 = vmatpush3.bf16.msra.mxu0 %v16085_v1  ;;  %16074 = vmatprep.subr.bf16.mxu1 %v16073_v18  ;;  %v12407_v1 = vld [vmem:[%s23383_s28 + $0x298] sm:$0xff] }
 0x685   : > { %16090 = vmatprep.subr.bf16.mxu0 %v16089_v19  ;;  %v16161_v16 = vpack.c.bf16 %v12407_v1, %v12406_v13  ;;  %v12460_v13 = vld [vmem:[%s23383_s28 + $0x3f0] sm:$0xff]  ;;  %v12461_v1 = vld [vmem:[%s23383_s28 + $0x3f8] sm:$0xff] }
 0x687   : > { %16076 = vmatpush3.bf16.msra.mxu1 %v16073_v18  ;;  %v12409_v18 = vld [vmem:[%s23383_s28 + $0x2a8] sm:$0xff] }
 0x688   : > { %16092 = vmatpush3.bf16.msra.mxu0 %v16089_v19  ;;  %16094 = vmatprep.subr.bf16.mxu1 %v16093_v23  ;;  %v16177_v19 = vpack.c.bf16 %v12417_v15, %v12416_v14  ;;  %v16165_v22 = vpack.c.bf16 %v12409_v18, %v12408_v17  ;;  %v16249_v14 = vpack.c.bf16 %v12461_v1, %v12460_v13  ;;  %v2730_v15 = vld [vmem:[%s23384_s5 + $0x8] sm:$0xff] }
 0x689   : > { %16110 = vmatprep.subr.bf16.mxu0 %v16109_v24 }
 0x68a   : > { %14782 = vmatmul.mubr.msk.f32.vlgmr.msra.gmra.mrb[24].mxu1 %vm2675_vm2, %v19424_v44 }
 0x68b   : > { %14801 = vmatmul.mubr.msk.f32.vlgmr.msra.gmra.mrb[20].mxu0 %vm2675_vm2, %v19424_v44  ;;  %16096 = vmatpush3.bf16.msra.mxu1 %v16093_v23  ;;  %v12410_v23 = vld [vmem:[%s23383_s28 + $0x2b0] sm:$0xff] }
 0x68c   : > { %14819 = vmatprep.mubr.msk.f32.mxu1 %vm2675_vm2, %v19422_v43  ;;  %16112 = vmatpush3.bf16.msra.mxu0 %v16109_v24  ;;  %v12411_v24 = vld [vmem:[%s23383_s28 + $0x2b8] sm:$0xff] }
 0x68d   : > { %14838 = vmatprep.mubr.msk.f32.mxu0 %vm2675_vm2, %v19422_v43  ;;  %16098 = vmatprep.subr.bf16.mxu1 %v16097_v27  ;;  %v16169_v26 = vpack.c.bf16 %v12411_v24, %v12410_v23 }
 0x68e   : > { %16114 = vmatprep.subr.bf16.mxu0 %v16113_v30 }
 0x68f   : > { %16100 = vmatpush3.bf16.msra.mxu1 %v16097_v27  ;;  %v12424_v27 = vld [vmem:[%s23383_s28 + $0x300] sm:$0xff] }
 0x690   : > { %16116 = vmatpush3.bf16.msra.mxu0 %v16113_v30  ;;  %16102 = vmatprep.subr.bf16.mxu1 %v16101_v35  ;;  %v12435_v30 = vld [vmem:[%s23383_s28 + $0x348] sm:$0xff]  ;;  %v16189_v31 = vpack.c.bf16 %v12425_v28, %v12424_v27 }
 0x691   : > { %16118 = vmatprep.subr.bf16.mxu0 %v16117_v36  ;;  %v16205_v34 = vpack.c.bf16 %v12435_v30, %v12434_v29 }
 0x693   : > { %16104 = vmatpush3.bf16.msra.mxu1 %v16101_v35  ;;  %v12426_v35 = vld [vmem:[%s23383_s28 + $0x310] sm:$0xff] }
 0x694   : > { %16120 = vmatpush3.bf16.msra.mxu0 %v16117_v36  ;;  %16106 = vmatprep.subr.bf16.mxu1 %v16105_v41  ;;  %v12427_v36 = vld [vmem:[%s23383_s28 + $0x318] sm:$0xff] }
 0x695   : > { %16122 = vmatprep.subr.bf16.mxu0 %v16121_v42  ;;  %v16193_v39 = vpack.c.bf16 %v12427_v36, %v12426_v35 }
 0x697   : > { %16108 = vmatpush3.bf16.msra.mxu1 %v16105_v41  ;;  %v12429_v41 = vld [vmem:[%s23383_s28 + $0x328] sm:$0xff] }
 0x698   : > { %16124 = vmatpush3.bf16.msra.mxu0 %v16121_v42  ;;  %16126 = vmatprep.subr.bf16.mxu1 %v16125_v49  ;;  %v16209_v42 = vpack.c.bf16 %v12437_v38, %v12436_v37  ;;  %v16197_v47 = vpack.c.bf16 %v12429_v41, %v12428_v40 }
 0x699   : > { %16142 = vmatprep.subr.bf16.mxu0 %v16141_v50 }
 0x69a   : > { %14820 = vmatmul.mubr.msk.f32.vlgmr.msra.gmra.mrb[26].mxu1 %vm2675_vm2, %v19424_v44 }
 0x69b   : > { %14839 = vmatmul.mubr.msk.f32.vlgmr.msra.gmra.mrb[22].mxu0 %vm2675_vm2, %v19424_v44  ;;  %16128 = vmatpush3.bf16.msra.mxu1 %v16125_v49  ;;  %v12430_v49 = vld [vmem:[%s23383_s28 + $0x330] sm:$0xff] }
 0x69c   : > { %14857 = vmatprep.mubr.msk.f32.mxu1 %vm2675_vm2, %v19422_v43  ;;  %16144 = vmatpush3.bf16.msra.mxu0 %v16141_v50  ;;  %v12431_v50 = vld [vmem:[%s23383_s28 + $0x338] sm:$0xff] }
 0x69d   : > { %14876 = vmatprep.mubr.msk.f32.mxu0 %vm2675_vm2, %v19422_v43  ;;  %16130 = vmatprep.subr.bf16.mxu1 %v16129_v55  ;;  %v16201_v53 = vpack.c.bf16 %v12431_v50, %v12430_v49 }
 0x69e   : > { %16146 = vmatprep.subr.bf16.mxu0 %v16145_v58 }
 0x69f   : > { %16132 = vmatpush3.bf16.msra.mxu1 %v16129_v55  ;;  %v12444_v55 = vld [vmem:[%s23383_s28 + $0x380] sm:$0xff] }
 0x6a0   : > { %16148 = vmatpush3.bf16.msra.mxu0 %v16145_v58  ;;  %16134 = vmatprep.subr.bf16.mxu1 %v16133_v33  ;;  %v12455_v58 = vld [vmem:[%s23383_s28 + $0x3c8] sm:$0xff]  ;;  %v16221_v59 = vpack.c.bf16 %v12445_v56, %v12444_v55 }
 0x6a1   : > { %16150 = vmatprep.subr.bf16.mxu0 %v16149_v60  ;;  %v16237_v32 = vpack.c.bf16 %v12455_v58, %v12454_v57 }
 0x6a3   : > { %16136 = vmatpush3.bf16.msra.mxu1 %v16133_v33  ;;  %v12446_v33 = vld [vmem:[%s23383_s28 + $0x390] sm:$0xff] }
 0x6a4   : > { %16152 = vmatpush3.bf16.msra.mxu0 %v16149_v60  ;;  %16138 = vmatprep.subr.bf16.mxu1 %v16137_v4  ;;  %v12447_v60 = vld [vmem:[%s23383_s28 + $0x398] sm:$0xff] }
 0x6a5   : > { %16154 = vmatprep.subr.bf16.mxu0 %v16153_v5  ;;  %v16225_v0 = vpack.c.bf16 %v12447_v60, %v12446_v33 }
 0x6a7   : > { %16140 = vmatpush3.bf16.msra.mxu1 %v16137_v4  ;;  %v12449_v4 = vld [vmem:[%s23383_s28 + $0x3a8] sm:$0xff] }
 0x6a8   : > { %16156 = vmatpush3.bf16.msra.mxu0 %v16153_v5  ;;  %16158 = vmatprep.subr.bf16.mxu1 %v16157_v6  ;;  %v16241_v5 = vpack.c.bf16 %v12457_v63, %v12456_v62  ;;  %v16229_v10 = vpack.c.bf16 %v12449_v4, %v12448_v3  ;;  %v2729_v63 = vld [vmem:[%s23384_s5] sm:$0xff]  ;;  %v2731_v3 = vld [vmem:[%s23384_s5 + $0x10] sm:$0xff]  ;;  %v2734_v4 = vld [vmem:[%s23384_s5 + $0x28] sm:$0xff] }
 0x6a9   : > { %16174 = vmatprep.subr.bf16.mxu0 %v16173_v12 }
 0x6aa   : > { %14858 = vmatmul.mubr.msk.f32.vlgmr.msra.gmra.mrb[28].mxu1 %vm2675_vm2, %v19424_v44 }
 0x6ab   : > { %14877 = vmatmul.mubr.msk.f32.vlgmr.msra.gmra.mrb[24].mxu0 %vm2675_vm2, %v19424_v44  ;;  %16160 = vmatpush3.bf16.msra.mxu1 %v16157_v6  ;;  %v12450_v6 = vld [vmem:[%s23383_s28 + $0x3b0] sm:$0xff] }
 0x6ac   : > { %14895 = vmatprep.mubr.msk.f32.mxu1 %vm2675_vm2, %v19422_v43  ;;  %16176 = vmatpush3.bf16.msra.mxu0 %v16173_v12  ;;  %v12451_v12 = vld [vmem:[%s23383_s28 + $0x3b8] sm:$0xff] }
 0x6ad   : > { %14914 = vmatprep.mubr.msk.f32.mxu0 %vm2675_vm2, %v19422_v43  ;;  %16162 = vmatprep.subr.bf16.mxu1 %v16161_v16 }
 0x6ae   : > { %16178 = vmatprep.subr.bf16.mxu0 %v16177_v19 }
 0x6af   : > { %16164 = vmatpush3.bf16.msra.mxu1 %v16161_v16 }
 0x6b0   : > { %16180 = vmatpush3.bf16.msra.mxu0 %v16177_v19  ;;  %16166 = vmatprep.subr.bf16.mxu1 %v16165_v22 }
 0x6b1   : > { %16182 = vmatprep.subr.bf16.mxu0 %v16181_v7 }
 0x6b3   : > { %16168 = vmatpush3.bf16.msra.mxu1 %v16165_v22 }
 0x6b4   : > { %16184 = vmatpush3.bf16.msra.mxu0 %v16181_v7  ;;  %16170 = vmatprep.subr.bf16.mxu1 %v16169_v26 }
 0x6b5   : > { %16186 = vmatprep.subr.bf16.mxu0 %v16185_v61 }
 0x6b7   : > { %16172 = vmatpush3.bf16.msra.mxu1 %v16169_v26 }
 0x6b8   : > { %16188 = vmatpush3.bf16.msra.mxu0 %v16185_v61  ;;  %16190 = vmatprep.subr.bf16.mxu1 %v16189_v31 }
 0x6b9   : > { %16206 = vmatprep.subr.bf16.mxu0 %v16205_v34 }
 0x6ba   : > { %14896 = vmatmul.mubr.msk.f32.vlgmr.msra.gmra.mrb[30].mxu1 %vm2675_vm2, %v19424_v44 }
 0x6bb   : > { %14915 = vmatmul.mubr.msk.f32.vlgmr.msra.gmra.mrb[26].mxu0 %vm2675_vm2, %v19424_v44  ;;  %16192 = vmatpush3.bf16.msra.mxu1 %v16189_v31 }
 0x6bc   : > { %14933 = vmatprep.mubr.msk.f32.mxu1 %vm2675_vm2, %v19422_v43  ;;  %16208 = vmatpush3.bf16.msra.mxu0 %v16205_v34 }
 0x6bd   : > { %14952 = vmatprep.mubr.msk.f32.mxu0 %vm2675_vm2, %v19422_v43  ;;  %16194 = vmatprep.subr.bf16.mxu1 %v16193_v39 }
 0x6be   : > { %16210 = vmatprep.subr.bf16.mxu0 %v16209_v42 }
 0x6bf   : > { %16196 = vmatpush3.bf16.msra.mxu1 %v16193_v39 }
 0x6c0   : > { %16212 = vmatpush3.bf16.msra.mxu0 %v16209_v42  ;;  %16198 = vmatprep.subr.bf16.mxu1 %v16197_v47 }
 0x6c1   : > { %16214 = vmatprep.subr.bf16.mxu0 %v16213_v48 }
 0x6c3   : > { %16200 = vmatpush3.bf16.msra.mxu1 %v16197_v47 }
 0x6c4   : > { %16216 = vmatpush3.bf16.msra.mxu0 %v16213_v48  ;;  %16202 = vmatprep.subr.bf16.mxu1 %v16201_v53 }
 0x6c5   : > { %16218 = vmatprep.subr.bf16.mxu0 %v16217_v54 }
 0x6c7   : > { %16204 = vmatpush3.bf16.msra.mxu1 %v16201_v53 }
 0x6c8   : > { %16220 = vmatpush3.bf16.msra.mxu0 %v16217_v54  ;;  %16222 = vmatprep.subr.bf16.mxu1 %v16221_v59 }
 0x6c9   : > { %16238 = vmatprep.subr.bf16.mxu0 %v16237_v32 }
 0x6ca   : > { %14934 = vmatmul.mubr.msk.f32.vlgmr.msra.gmra.mrb[32].mxu1 %vm2675_vm2, %v19424_v44 }
 0x6cb   : > { %14953 = vmatmul.mubr.msk.f32.vlgmr.msra.gmra.mrb[28].mxu0 %vm2675_vm2, %v19424_v44  ;;  %16224 = vmatpush3.bf16.msra.mxu1 %v16221_v59 }
 0x6cc   : > { %14971 = vmatprep.mubr.msk.f32.mxu1 %vm2675_vm2, %v19422_v43  ;;  %16240 = vmatpush3.bf16.msra.mxu0 %v16237_v32 }
 0x6cd   : > { %14990 = vmatprep.mubr.msk.f32.mxu0 %vm2675_vm2, %v19422_v43  ;;  %16226 = vmatprep.subr.bf16.mxu1 %v16225_v0  ;;  %v16233_v43 = vpack.c.bf16 %v12451_v12, %v12450_v6 }
 0x6ce   : > { %16242 = vmatprep.subr.bf16.mxu0 %v16241_v5 }
 0x6cf   : > { %16228 = vmatpush3.bf16.msra.mxu1 %v16225_v0  ;;  %v2732_v0 = vld [vmem:[%s23384_s5 + $0x18] sm:$0xff] }
 0x6d0   : > { %16244 = vmatpush3.bf16.msra.mxu0 %v16241_v5  ;;  %16230 = vmatprep.subr.bf16.mxu1 %v16229_v10  ;;  %v2733_v5 = vld [vmem:[%s23384_s5 + $0x20] sm:$0xff] }
 0x6d1   : > { %16246 = vmatprep.subr.bf16.mxu0 %v16245_v11 }
 0x6d3   : > { %16232 = vmatpush3.bf16.msra.mxu1 %v16229_v10 }
 0x6d4   : > { %16248 = vmatpush3.bf16.msra.mxu0 %v16245_v11  ;;  %16234 = vmatprep.subr.bf16.mxu1 %v16233_v43 }
 0x6d5   : > { %16250 = vmatprep.subr.bf16.mxu0 %v16249_v14 }
 0x6d7   : > { %16236 = vmatpush3.bf16.msra.mxu1 %v16233_v43 }
 0x6d8   : > { %16252 = vmatpush3.bf16.msra.mxu0 %v16249_v14 }
 0x6da   : > { %14972 = vmatmul.mubr.msk.f32.vlgmr.msra.gmra.mrb[34].mxu1 %vm2675_vm2, %v19424_v44 }
 0x6db   : > { %14991 = vmatmul.mubr.msk.f32.vlgmr.msra.gmra.mrb[30].mxu0 %vm2675_vm2, %v19424_v44  ;;  %4150 = vmatprep.mubr.f32.mxu1 %v2730_v15 }
 0x73d   : > { %v14707_v16 = vpop.f32.mrb[20].mxu1  ;;  %v14726_v17 = vpop.f32.mrb[16].mxu0 }
 0x73e   : > { %v2817_v18 = vpop.f32.mrb[21].mxu1  ;;  %v2901_v19 = vpop.f32.mrb[17].mxu0 }
 0x73f   : > { %v16255_v20 = vpack.c.bf16 %v14707_v16, %v2817_v18  ;;  %v16259_v21 = vpack.c.bf16 %v14726_v17, %v2901_v19 }
 0x74d   : > { %v14745_v22 = vpop.f32.mrb[22].mxu1  ;;  %v14764_v7 = vpop.f32.mrb[18].mxu0 }
 0x74e   : > { %v2985_v23 = vpop.f32.mrb[23].mxu1  ;;  %v3069_v24 = vpop.f32.mrb[19].mxu0 }
 0x74f   : > { %v16263_v25 = vpack.c.bf16 %v14745_v22, %v2985_v23  ;;  %v16267_v2 = vpack.c.bf16 %v14764_v7, %v3069_v24  ;;  %v4172_v7 = vld [vmem:[%s23385_s4 + $0x8] sm:$0xff]  ;;  %v4171_v23 = vld [vmem:[%s23385_s4] sm:$0xff] }
 0x750   : > { %v4175_v24 = vld [vmem:[%s23386_s11] sm:$0xff] }
 0x75d   : > { %v14783_v26 = vpop.f32.mrb[24].mxu1 }
 0x75e   : > { %v14802_v61 = vpop.f32.mrb[20].mxu0  ;;  %v3153_v44 = vpop.f32.mrb[25].mxu1 }
 0x75f   : > { %v16271_v27 = vpack.c.bf16 %v14783_v26, %v3153_v44  ;;  %v3237_v28 = vpop.f32.mrb[21].mxu0  ;;  %v4174_v26 = vld [vmem:[%s23385_s4 + $0x18] sm:$0xff] }
 0x760   : > { %v16275_v29 = vpack.c.bf16 %v14802_v61, %v3237_v28 }
 0x76d   : > { %v14821_v30 = vpop.f32.mrb[26].mxu1 }
 0x76e   : > { %v14840_v31 = vpop.f32.mrb[22].mxu0  ;;  %v3321_v34 = vpop.f32.mrb[27].mxu1 }
 0x76f   : > { %v16279_v35 = vpack.c.bf16 %v14821_v30, %v3321_v34  ;;  %v3405_v36 = vpop.f32.mrb[23].mxu0 }
 0x770   : > { %v16283_v37 = vpack.c.bf16 %v14840_v31, %v3405_v36 }
 0x77d   : > { %v14859_v38 = vpop.f32.mrb[28].mxu1 }
 0x77e   : > { %v14878_v39 = vpop.f32.mrb[24].mxu0  ;;  %v3489_v40 = vpop.f32.mrb[29].mxu1 }
 0x77f   : > { %v16253_v41 = vpack.c.bf16 %v14859_v38, %v3489_v40  ;;  %v3573_v42 = vpop.f32.mrb[25].mxu0 }
 0x780   : > { %v16257_v45 = vpack.c.bf16 %v14878_v39, %v3573_v42 }
 0x781   : > { %16254 = vmatprep.subr.bf16.mxu1 %v16253_v41 }
 0x782   : > { %16256 = vmatpush3.bf16.msra.mxu1 %v16255_v20 }
 0x783   : > { %16258 = vmatprep.subr.bf16.mxu1 %v16257_v45 }
 0x786   : > { %16260 = vmatpush3.bf16.msra.mxu1 %v16259_v21 }
 0x78d   : > { %v14897_v46 = vpop.f32.mrb[30].mxu1 }
 0x78e   : > { %v14916_v47 = vpop.f32.mrb[26].mxu0  ;;  %v3657_v48 = vpop.f32.mrb[31].mxu1 }
 0x78f   : > { %v16261_v49 = vpack.c.bf16 %v14897_v46, %v3657_v48  ;;  %v3741_v50 = vpop.f32.mrb[27].mxu0 }
 0x790   : > { %v16265_v51 = vpack.c.bf16 %v14916_v47, %v3741_v50  ;;  %v4178_v50 = vld [vmem:[%s23386_s11 + $0x18] sm:$0xff] }
 0x791   : > { %16262 = vmatprep.subr.bf16.mxu1 %v16261_v49  ;;  %v4177_v49 = vld [vmem:[%s23386_s11 + $0x10] sm:$0xff] }
 0x792   : > { %16264 = vmatpush3.bf16.msra.mxu1 %v16263_v25  ;;  %v4176_v25 = vld [vmem:[%s23386_s11 + $0x8] sm:$0xff] }
 0x793   : > { %16266 = vmatprep.subr.bf16.mxu1 %v16265_v51  ;;  %v4285_v51 = vld [vmem:[%s23335_s13] sm:$0xff] }
 0x794   : > { %15001 = vmatprep.mubr.msk.f32.mxu0 %vm4289_vm4, %v4285_v51 }
 0x796   : > { %16268 = vmatpush3.bf16.msra.mxu1 %v16267_v2  ;;  %v4173_v2 = vld [vmem:[%s23385_s4 + $0x10] sm:$0xff] }
 0x79d   : > { %v14935_v52 = vpop.f32.mrb[32].mxu1 }
 0x79e   : > { %v14954_v53 = vpop.f32.mrb[28].mxu0  ;;  %v3825_v54 = vpop.f32.mrb[33].mxu1 }
 0x79f   : > { %v16269_v55 = vpack.c.bf16 %v14935_v52, %v3825_v54  ;;  %v3909_v56 = vpop.f32.mrb[29].mxu0 }
 0x7a0   : > { %v16273_v57 = vpack.c.bf16 %v14954_v53, %v3909_v56 }
 0x7a1   : > { %16270 = vmatprep.subr.bf16.mxu1 %v16269_v55 }
 0x7a2   : > { %16272 = vmatpush3.bf16.msra.mxu1 %v16271_v27 }
 0x7a3   : > { %16274 = vmatprep.subr.bf16.mxu1 %v16273_v57 }
 0x7a6   : > { %16276 = vmatpush3.bf16.msra.mxu1 %v16275_v29 }
 0x7ad   : > { %v14973_v58 = vpop.f32.mrb[34].mxu1 }
 0x7ae   : > { %v14992_v59 = vpop.f32.mrb[30].mxu0  ;;  %v3993_v32 = vpop.f32.mrb[35].mxu1 }
 0x7af   : > { %v16277_v33 = vpack.c.bf16 %v14973_v58, %v3993_v32  ;;  %v4077_v60 = vpop.f32.mrb[31].mxu0 }
 0x7b0   : > { %v16281_v62 = vpack.c.bf16 %v14992_v59, %v4077_v60 }
 0x7b1   : > { %16278 = vmatprep.subr.bf16.mxu1 %v16277_v33 }
 0x7b2   : > { %16280 = vmatpush3.bf16.msra.mxu1 %v16279_v35 }
 0x7b3   : > { %16282 = vmatprep.subr.bf16.mxu1 %v16281_v62 }
 0x7b6   : > { %16284 = vmatpush3.bf16.msra.mxu1 %v16283_v37 }
 0x7b9   : > { %4151 = vmatmul.mubr.f32.vlgmr.msra.gmra.mrb[36].mxu1 %v2729_v63 }
 0x7ba   : > { %4155 = vmatprep.mubr.f32.mxu1 %v2732_v0 }
 0x7bd   : > { %4156 = vmatmul.mubr.f32.gmra.mrb[38].mxu1 %v2731_v3 }
 0x7be   : > { %4160 = vmatprep.mubr.f32.mxu1 %v2734_v4 }
 0x7c1   : > { %4161 = vmatmul.mubr.f32.gmra.mrb[40].mxu1 %v2733_v5 }
 0x7c2   : > { %4165 = vmatprep.mubr.f32.mxu1 %v2736_v8 }
 0x7c5   : > { %4166 = vmatmul.mubr.f32.gmra.mrb[42].mxu1 %v2735_v9 }
 0x88c   : > { %v14226_v10 = vpop.f32.mrb[36].mxu1 }
 0x88d   : > { %v14227_v11 = vpop.f32.mrb[37].mxu1 }
 0x88e   : > { %v14228_v6 = vadd.f32 %v14227_v11, %v14226_v10 }
 0x890   : > { %v14229_v12 = vpop.f32.mrb[38].mxu1  ;;  %v4180_v13 = vsel %vm4179_vm3, %v14228_v6, 0.0 }
 0x891   : > { %v14230_v1 = vpop.f32.mrb[39].mxu1  ;;  %4181 = vadd.xlane.f32.xlu1 %v4180_v13 }
 0x892   : > { %v14231_v43 = vadd.f32 %v14230_v1, %v14229_v12 }
 0x894   : > { %v14232_v14 = vpop.f32.mrb[40].mxu1  ;;  %v4183_v15 = vsel %vm4179_vm3, %v14231_v43, 0.0 }
 0x895   : > { %v14233_v16 = vpop.f32.mrb[41].mxu1  ;;  %4184 = vadd.xlane.f32.xlu0 %v4183_v15 }
 0x896   : > { %v14234_v17 = vadd.f32 %v14233_v16, %v14232_v14 }
 0x898   : > { %v14235_v18 = vpop.f32.mrb[42].mxu1  ;;  %v4186_v19 = vsel %vm4179_vm3, %v14234_v17, 0.0 }
 0x899   : > { %v14236_v20 = vpop.f32.mrb[43].mxu1  ;;  %4187 = vadd.xlane.f32.xlu0 %v4186_v19 }
 0x89a   : > { %v14237_v21 = vadd.f32 %v14236_v20, %v14235_v18 }
 0x89c   : > { %v4189_v22 = vsel %vm4179_vm3, %v14237_v21, 0.0 }
 0x89d   : > { %4190 = vadd.xlane.f32.xlu1 %v4189_v22 }
 0x8ae   : > { %4240 = vperm.xlu1 %17441, %v4172_v7  }
 0x8af   : > { %4235 = vperm.xlu0 %17442, %v4171_v23  }
 0x8b2   : > { %4259 = vperm.xlu1 %17441, %v4175_v24  }
 0x8b3   : > { %4264 = vperm.xlu0 %17442, %v4176_v25  }
 0x8b6   : > { %4245 = vperm.xlu1 %17441, %v4173_v2  }
 0x8b7   : > { %4250 = vperm.xlu0 %17442, %v4174_v26  }
 0x91e   : > { %v4182_v61 = vpop.xlane.xlu1 %4181 }
 0x91f   : > { %v4193_v44 = vmul.f32 0.0625, %v4182_v61 }
 0x921   : > { %v4197_v27 = vsub.f32 %v14228_v6, %v4193_v44  ;;  %v4286_v44 = vld [vmem:[%s23335_s13 + $0x8] sm:$0xff] }
 0x922   : > { %v4185_v28 = vpop.xlane.xlu0 %4184 }
 0x923   : > { %v4194_v29 = vmul.f32 0.0625, %v4185_v28  ;;  %v4201_v30 = vmul.f32 %v4197_v27, %v4197_v27  ;;  %v4288_v28 = vld [vmem:[%s23335_s13 + $0x18] sm:$0xff] }
 0x925   : > { %v4198_v31 = vsub.f32 %v14231_v43, %v4194_v29  ;;  %v4205_v34 = vsel %vm4179_vm3, %v4201_v30, 0.0 }
 0x926   : > { %v4188_v35 = vpop.xlane.xlu0 %4187  ;;  %4206 = vadd.xlane.f32.xlu0 %v4205_v34 }
 0x927   : > { %v4195_v36 = vmul.f32 0.0625, %v4188_v35  ;;  %v4202_v37 = vmul.f32 %v4198_v31, %v4198_v31 }
 0x929   : > { %v4199_v38 = vsub.f32 %v14234_v17, %v4195_v36  ;;  %v4208_v39 = vsel %vm4179_vm3, %v4202_v37, 0.0 }
 0x92a   : > { %4209 = vadd.xlane.f32.xlu1 %v4208_v39  ;;  %v4191_v40 = vpop.xlane.xlu1 %4190  ;;  %v4388_v39 = vld [vmem:[%s23337_s15 + $0x8] sm:$0xff] }
 0x92b   : > { %v4196_v41 = vmul.f32 0.0625, %v4191_v40  ;;  %v4203_v42 = vmul.f32 %v4199_v38, %v4199_v38  ;;  %v4391_v40 = vld [vmem:[%s23338_s16] sm:$0xff] }
 0x92d   : > { %v4200_v45 = vsub.f32 %v14237_v21, %v4196_v41  ;;  %v4211_v46 = vsel %vm4179_vm3, %v4203_v42, 0.0  ;;  %v4387_v41 = vld [vmem:[%s23337_s15] sm:$0xff]  ;;  %v4389_v42 = vld [vmem:[%s23337_s15 + $0x10] sm:$0xff] }
 0x92e   : > { %4212 = vadd.xlane.f32.xlu0 %v4211_v46  ;;  %v4236_v52 = vpop.permute.xlu0 %4235  ;;  %v4241_v53 = vpop.permute.xlu1 %4240  ;;  %v4390_v46 = vld [vmem:[%s23337_s15 + $0x18] sm:$0xff] }
 0x92f   : > { %v4204_v47 = vmul.f32 %v4200_v45, %v4200_v45 }
 0x931   : > { %v4214_v48 = vsel %vm4179_vm3, %v4204_v47, 0.0 }
 0x932   : > { %4215 = vadd.xlane.f32.xlu1 %v4214_v48  ;;  %v4265_v54 = vpop.permute.xlu0 %4264  ;;  %v4260_v55 = vpop.permute.xlu1 %4259 }
 0x936   : > { %v4251_v56 = vpop.permute.xlu0 %4250  ;;  %v4246_v57 = vpop.permute.xlu1 %4245 }
 0x943   : > { %4269 = vperm.xlu1 %17441, %v4177_v49  }
 0x944   : > { %4274 = vperm.xlu0 %17442, %v4178_v50  }
 0x9b3   : > { %v4207_v58 = vpop.xlane.xlu0 %4206 }
 0x9b4   : > { %v4217_v59 = vmul.f32 0.0625, %v4207_v58 }
 0x9b6   : > { %v4221_v32 = vadd.f32 1e-05, %v4217_v59 }
 0x9b7   : > { %v4210_v33 = vpop.xlane.xlu1 %4209 }
 0x9b8   : > { %17449 = vrsqrt.f32 %v4221_v32  ;;  %v4218_v60 = vmul.f32 0.0625, %v4210_v33 }
 0x9ba   : > { %v4222_v62 = vadd.f32 1e-05, %v4218_v60 }
 0x9bb   : > { %v4213_v63 = vpop.xlane.xlu0 %4212 }
 0x9bc   : > { %17451 = vrsqrt.f32 %v4222_v62  ;;  %v4219_v0 = vmul.f32 0.0625, %v4213_v63 }
 0x9be   : > { %v4223_v3 = vadd.f32 1e-05, %v4219_v0 }
 0x9bf   : > { %v4216_v4 = vpop.xlane.xlu1 %4215 }
 0x9c0   : > { %17453 = vrsqrt.f32 %v4223_v3  ;;  %v4220_v5 = vmul.f32 0.0625, %v4216_v4  ;;  %v4393_v4 = vld [vmem:[%s23338_s16 + $0x10] sm:$0xff] }
 0x9c2   : > { %v17450_v8 = vpop.eup %17449  ;;  %v4224_v9 = vadd.f32 1e-05, %v4220_v5  ;;  %v4394_v5 = vld [vmem:[%s23338_s16 + $0x18] sm:$0xff] }
 0x9c3   : > { %v4229_v10 = vmul.f32 %v17450_v8, %v4197_v27  ;;  %v4270_v22 = vpop.permute.xlu1 %4269  ;;  %v4275_v24 = vpop.permute.xlu0 %4274  ;;  %v4287_v27 = vld [vmem:[%s23335_s13 + $0x10] sm:$0xff]  ;;  %v4511_v8 = vld [vmem:[%s23334_s12] sm:$0xff] }
 0x9c4   : > { %17455 = vrsqrt.f32 %v4224_v9  ;;  %v4512_v9 = vld [vmem:[%s23334_s12 + $0x8] sm:$0xff] }
 0x9c5   : > { %v4253_v11 = vmul.f32 %v4236_v52, %v4229_v10  ;;  %v12490_v10 = vld [vmem:[%s23334_s12 + $0x40] sm:$0xff] }
 0x9c6   : > { %v17452_v6 = vpop.eup %17451 }
 0x9c7   : > { %v4230_v12 = vmul.f32 %v17452_v6, %v4198_v31  ;;  %v19862_v1 = vadd.f32 %v4260_v55, %v4253_v11  ;;  %v19951_v11 = vpack.c.bf16 %v4512_v9, %v4511_v8  ;;  %v12491_v6 = vld [vmem:[%s23334_s12 + $0x48] sm:$0xff] }
 0x9c9   : > { %v4254_v13 = vmul.f32 %v4241_v53, %v4230_v12  ;;  %v4281_v17 = vmax.f32 %v19862_v1, 0.0  ;;  %v19956_v12 = vpack.c.bf16 %v12491_v6, %v12490_v10  ;;  %v12484_v10 = vld [vmem:[%s23334_s12 + $0x30] sm:$0xff]  ;;  %v12485_v6 = vld [vmem:[%s23334_s12 + $0x38] sm:$0xff] }
 0x9ca   : > { %v17454_v43 = vpop.eup %17453 }
 0x9cb   : > { %v4231_v14 = vmul.f32 %v17454_v43, %v4199_v38  ;;  %v19864_v15 = vadd.f32 %v4265_v54, %v4254_v13  ;;  %16310 = vmatprep.subr.bf16.mxu1 %v19956_v12  ;;  %v12472_v13 = vld [vmem:[%s23334_s12 + $0x10] sm:$0xff]  ;;  %v12473_v43 = vld [vmem:[%s23334_s12 + $0x18] sm:$0xff] }
 0x9cc   : > { %16312 = vmatpush3.bf16.msra.mxu1 %v19956_v12 }
 0x9cd   : > { %v4255_v16 = vmul.f32 %v4246_v57, %v4231_v14  ;;  %v4282_v18 = vmax.f32 %v19864_v15, 0.0  ;;  %v19968_v14 = vpack.c.bf16 %v12473_v43, %v12472_v13  ;;  %v20030_v13 = vpack.c.bf16 %v12485_v6, %v12484_v10  ;;  %v12496_v43 = vld [vmem:[%s23334_s12 + $0x50] sm:$0xff]  ;;  %v4507_v6 = vld [vmem:[%s23336_s14 + $0x40] sm:$0xff] }
 0x9ce   : > { %v17456_v19 = vpop.eup %17455 }
 0x9cf   : > { %v4232_v20 = vmul.f32 %v17456_v19, %v4200_v45  ;;  %v16285_v21 = vpack.c.bf16 %v4282_v18, %v4281_v17  ;;  %v19872_v23 = vadd.f32 %v4270_v22, %v4255_v16  ;;  %v4392_v45 = vld [vmem:[%s23338_s16 + $0x8] sm:$0xff]  ;;  %v12502_v16 = vld [vmem:[%s23334_s12 + $0x60] sm:$0xff] }
 0x9d0   : > { %v12503_v19 = vld [vmem:[%s23334_s12 + $0x68] sm:$0xff] }
 0x9d1   : > { %v4256_v7 = vmul.f32 %v4251_v56, %v4232_v20  ;;  %16286 = vmatprep.subr.bf16.mxu0 %v16285_v21  ;;  %v4283_v26 = vmax.f32 %v19872_v23, 0.0  ;;  %v19976_v20 = vpack.c.bf16 %v12503_v19, %v12502_v16  ;;  %v12497_v16 = vld [vmem:[%s23334_s12 + $0x58] sm:$0xff]  ;;  %v12550_v23 = vld [vmem:[%s23335_s13 + $0x50] sm:$0xff] }
 0x9d2   : > { %16288 = vmatpush3.bf16.msra.mxu0 %v16285_v21  ;;  %v20053_v19 = vpack.c.bf16 %v12497_v16, %v12496_v43 }
 0x9d3   : > { %v19874_v25 = vadd.f32 %v4275_v24, %v4256_v7  ;;  %16318 = vmatprep.subr.bf16.mxu1 %v19976_v20 }
 0x9d5   : > { %v4284_v2 = vmax.f32 %v19874_v25, 0.0 }
 0x9d7   : > { %v16289_v61 = vpack.c.bf16 %v4284_v2, %v4283_v26 }
 0x9d9   : > { %16290 = vmatprep.subr.bf16.mxu0 %v16289_v61 }
 0x9da   : > { %16292 = vmatpush3.bf16.msra.mxu0 %v16289_v61 }
 0x9db   : > { %16294 = vmatprep.subr.bf16.mxu0 %v19951_v11 }
 0x9dd   : > { %15002 = vmatmul.mubr.msk.f32.vlgmr.msra.gmra.mrb[32].mxu0 %vm4289_vm4, %v4286_v44 }
 0x9de   : > { %15004 = vmatprep.mubr.msk.f32.mxu0 %vm4289_vm4, %v4287_v27  ;;  %16296 = vmatpush3.bf16.msra.mxu0 %v19951_v11 }
 0x9df   : > { %16298 = vmatprep.subr.bf16.mxu0 %v19968_v14 }
 0x9e1   : > { %15005 = vmatmul.mubr.msk.f32.gmra.mrb[34].mxu0 %vm4289_vm4, %v4288_v28 }
 0xab0   : > { %v15003_v29 = vpop.f32.mrb[32].mxu0 }
 0xab1   : > { %v4368_v30 = vpop.f32.mrb[33].mxu0  ;;  %v4398_v31 = vsel %vm4179_vm3, %v15003_v29, 0.0 }
 0xab2   : > { %4399 = vadd.xlane.f32.xlu0 %v4398_v31  ;;  %v4395_v34 = vsel %vm4179_vm3, %v4368_v30, 0.0 }
 0xab3   : > { %4396 = vadd.xlane.f32.xlu1 %v4395_v34 }
 0xab4   : > { %v15006_v35 = vpop.f32.mrb[34].mxu0 }
 0xab5   : > { %v4378_v36 = vpop.f32.mrb[35].mxu0  ;;  %v4404_v37 = vsel %vm4179_vm3, %v15006_v35, 0.0 }
 0xab6   : > { %v4401_v38 = vsel %vm4179_vm3, %v4378_v36, 0.0 }
 0xab7   : > { %4405 = vadd.xlane.f32.xlu1 %v4404_v37  ;;  %4402 = vadd.xlane.f32.xlu0 %v4401_v38 }
 0xac8   : > { %4454 = vperm.xlu1 %17441, %v4388_v39  }
 0xacc   : > { %4473 = vperm.xlu1 %17441, %v4391_v40  }
 0xacd   : > { %4449 = vperm.xlu0 %17442, %v4387_v41  }
 0xad0   : > { %4459 = vperm.xlu1 %17441, %v4389_v42  }
 0xad1   : > { %4478 = vperm.xlu0 %17442, %v4392_v45  }
 0xad5   : > { %4464 = vperm.xlu0 %17442, %v4390_v46  }
 0xb3f   : > { %v4400_v47 = vpop.xlane.xlu0 %4399 }
 0xb40   : > { %v4408_v48 = vmul.f32 0.0625, %v4400_v47  ;;  %v4397_v49 = vpop.xlane.xlu1 %4396 }
 0xb41   : > { %v4407_v50 = vmul.f32 0.0625, %v4397_v49 }
 0xb42   : > { %v19916_v51 = vsub.f32 %v15003_v29, %v4408_v48 }
 0xb43   : > { %v19918_v52 = vsub.f32 %v4368_v30, %v4407_v50 }
 0xb44   : > { %v4406_v53 = vpop.xlane.xlu1 %4405  ;;  %v4403_v54 = vpop.xlane.xlu0 %4402  ;;  %v4416_v55 = vmul.f32 %v19916_v51, %v19916_v51 }
 0xb45   : > { %v4410_v56 = vmul.f32 0.0625, %v4406_v53  ;;  %v4409_v57 = vmul.f32 0.0625, %v4403_v54  ;;  %v4415_v58 = vmul.f32 %v19918_v52, %v19918_v52  ;;  %v12478_v53 = vld [vmem:[%s23334_s12 + $0x20] sm:$0xff] }
 0xb46   : > { %v4422_v59 = vsel %vm4179_vm3, %v4416_v55, 0.0 }
 0xb47   : > { %v19925_v32 = vsub.f32 %v15006_v35, %v4410_v56  ;;  %v19927_v33 = vsub.f32 %v4378_v36, %v4409_v57  ;;  %4423 = vadd.xlane.f32.xlu1 %v4422_v59  ;;  %v4419_v60 = vsel %vm4179_vm3, %v4415_v58, 0.0  ;;  %v12479_v57 = vld [vmem:[%s23334_s12 + $0x28] sm:$0xff] }
 0xb48   : > { %4420 = vadd.xlane.f32.xlu0 %v4419_v60  ;;  %v4455_v21 = vpop.permute.xlu1 %4454 }
 0xb49   : > { %v4418_v62 = vmul.f32 %v19925_v32, %v19925_v32  ;;  %v4417_v63 = vmul.f32 %v19927_v33, %v19927_v33 }
 0xb4b   : > { %v4428_v0 = vsel %vm4179_vm3, %v4418_v62, 0.0  ;;  %v4425_v3 = vsel %vm4179_vm3, %v4417_v63, 0.0 }
 0xb4c   : > { %4429 = vadd.xlane.f32.xlu1 %v4428_v0  ;;  %4426 = vadd.xlane.f32.xlu0 %v4425_v3  ;;  %v4450_v22 = vpop.permute.xlu0 %4449  ;;  %v4474_v7 = vpop.permute.xlu1 %4473  ;;  %v20000_v0 = vpack.c.bf16 %v12479_v57, %v12478_v53 }
 0xb50   : > { %v4479_v24 = vpop.permute.xlu0 %4478  ;;  %v4460_v61 = vpop.permute.xlu1 %4459 }
 0xb54   : > { %v4465_v44 = vpop.permute.xlu0 %4464 }
 0xb5d   : > { %4483 = vperm.xlu1 %17441, %v4393_v4  }
 0xb62   : > { %4488 = vperm.xlu0 %17442, %v4394_v5  }
 0xbd4   : > { %v4424_v27 = vpop.xlane.xlu1 %4423 }
 0xbd5   : > { %v4432_v28 = vmul.f32 0.0625, %v4424_v27  ;;  %v4421_v29 = vpop.xlane.xlu0 %4420 }
 0xbd6   : > { %v4431_v30 = vmul.f32 0.0625, %v4421_v29 }
 0xbd7   : > { %v4436_v31 = vadd.f32 1e-05, %v4432_v28 }
 0xbd8   : > { %v4435_v34 = vadd.f32 1e-05, %v4431_v30 }
 0xbd9   : > { %17457 = vrsqrt.f32 %v4436_v31  ;;  %v4430_v35 = vpop.xlane.xlu1 %4429  ;;  %v4427_v36 = vpop.xlane.xlu0 %4426 }
 0xbda   : > { %17459 = vrsqrt.f32 %v4435_v34  ;;  %v4434_v37 = vmul.f32 0.0625, %v4430_v35  ;;  %v4433_v38 = vmul.f32 0.0625, %v4427_v36 }
 0xbdc   : > { %v4438_v39 = vadd.f32 1e-05, %v4434_v37  ;;  %v4437_v40 = vadd.f32 1e-05, %v4433_v38 }
 0xbdd   : > { %v4484_v4 = vpop.permute.xlu1 %4483 }
 0xbde   : > { %17461 = vrsqrt.f32 %v4438_v39 }
 0xbdf   : > { %17463 = vrsqrt.f32 %v4437_v40 }
 0xbe1   : > { %v4489_v63 = vpop.permute.xlu0 %4488 }
 0xbe3   : > { %v17458_v41 = vpop.eup %17457 }
 0xbe4   : > { %v17460_v42 = vpop.eup %17459  ;;  %v4444_v45 = vmul.f32 %v17458_v41, %v19916_v51  ;;  %v12514_v51 = vld [vmem:[%s23334_s12 + $0x80] sm:$0xff] }
 0xbe5   : > { %v4443_v46 = vmul.f32 %v17460_v42, %v19918_v52  ;;  %v12515_v52 = vld [vmem:[%s23334_s12 + $0x88] sm:$0xff] }
 0xbe6   : > { %v4468_v47 = vmul.f32 %v4455_v21, %v4444_v45  ;;  %v20002_v3 = vpack.c.bf16 %v12515_v52, %v12514_v51  ;;  %v12508_v21 = vld [vmem:[%s23334_s12 + $0x70] sm:$0xff] }
 0xbe7   : > { %v4467_v48 = vmul.f32 %v4450_v22, %v4443_v46  ;;  %v12509_v22 = vld [vmem:[%s23334_s12 + $0x78] sm:$0xff] }
 0xbe8   : > { %v17462_v49 = vpop.eup %17461  ;;  %v4492_v50 = vadd.f32 %v4479_v24, %v4468_v47  ;;  %v4500_v24 = vld [vmem:[%s23336_s14 + $0x8] sm:$0xff] }
 0xbe9   : > { %v17464_v54 = vpop.eup %17463  ;;  %v4491_v55 = vadd.f32 %v4474_v7, %v4467_v48  ;;  %v4446_v56 = vmul.f32 %v17462_v49, %v19925_v32  ;;  %v20073_v7 = vpack.c.bf16 %v12509_v22, %v12508_v21  ;;  %v4510_v21 = vld [vmem:[%s23336_s14 + $0x58] sm:$0xff] }
 0xbea   : > { %v4445_v58 = vmul.f32 %v17464_v54, %v19927_v33  ;;  %v19998_v62 = vmax.f32 %v4492_v50, 0.0 }
 0xbeb   : > { %v19996_v59 = vmax.f32 %v4491_v55, 0.0  ;;  %v4470_v60 = vmul.f32 %v4465_v44, %v4446_v56 }
 0xbec   : > { %v4469_v32 = vmul.f32 %v4460_v61, %v4445_v58  ;;  %v4501_v61 = vld [vmem:[%s23336_s14 + $0x10] sm:$0xff] }
 0xbed   : > { %v4494_v5 = vadd.f32 %v4489_v63, %v4470_v60  ;;  %15011 = vmatprep.mubr.msk.f32.mxu0 %vm4179_vm3, %v19996_v59  ;;  %15051 = vmatprep.mubr.msk.f32.mxu1 %vm4179_vm3, %v19996_v59 }
 0xbee   : > { %v4493_v33 = vadd.f32 %v4484_v4, %v4469_v32  ;;  %15012 = vmatmul.mubr.msk.f32.vlgmr.msra.gmra.mrb[36].mxu0 %vm4179_vm3, %v19998_v62  ;;  %15052 = vmatmul.mubr.msk.f32.vlgmr.msra.gmra.mrb[44].mxu1 %vm4179_vm3, %v19998_v62 }
 0xbef   : > { %v4498_v8 = vmax.f32 %v4494_v5, 0.0  ;;  %16300 = vmatpush3.bf16.msra.mxu0 %v19968_v14  ;;  %16320 = vmatpush3.bf16.msra.mxu1 %v19976_v20 }
 0xbf0   : > { %v4497_v9 = vmax.f32 %v4493_v33, 0.0  ;;  %16302 = vmatprep.subr.bf16.mxu0 %v20000_v0  ;;  %16326 = vmatprep.subr.bf16.mxu1 %v20002_v3 }
 0xbf2   : > { %15014 = vmatprep.mubr.msk.f32.mxu0 %vm4179_vm3, %v4497_v9  ;;  %15054 = vmatprep.mubr.msk.f32.mxu1 %vm4179_vm3, %v4497_v9 }
 0xbf3   : > { %15015 = vmatmul.mubr.msk.f32.gmra.mrb[38].mxu0 %vm4179_vm3, %v4498_v8  ;;  %15055 = vmatmul.mubr.msk.f32.gmra.mrb[46].mxu1 %vm4179_vm3, %v4498_v8 }
 0xbf4   : > { %15021 = vmatprep.mubr.msk.f32.mxu0 %vm4179_vm3, %v19996_v59  ;;  %15071 = vmatprep.mubr.msk.f32.mxu1 %vm4179_vm3, %v19996_v59 }
 0xbf7   : > { %15022 = vmatmul.mubr.msk.f32.vlgmr.msra.gmra.mrb[40].mxu0 %vm4179_vm3, %v19998_v62  ;;  %15072 = vmatmul.mubr.msk.f32.vlgmr.msra.gmra.mrb[48].mxu1 %vm4179_vm3, %v19998_v62 }
 0xbf8   : > { %15024 = vmatprep.mubr.msk.f32.mxu0 %vm4179_vm3, %v4497_v9  ;;  %16304 = vmatpush3.bf16.msra.mxu0 %v20000_v0 }
 0xbf9   : > { %15074 = vmatprep.mubr.msk.f32.mxu1 %vm4179_vm3, %v4497_v9  ;;  %16328 = vmatpush3.bf16.msra.mxu1 %v20002_v3 }
 0xbfa   : > { %16306 = vmatprep.subr.bf16.mxu0 %v20030_v13 }
 0xbfb   : > { %15025 = vmatmul.mubr.msk.f32.gmra.mrb[42].mxu0 %vm4179_vm3, %v4498_v8  ;;  %15075 = vmatmul.mubr.msk.f32.gmra.mrb[50].mxu1 %vm4179_vm3, %v4498_v8 }
 0xbfc   : > { %15031 = vmatprep.mubr.msk.f32.mxu0 %vm4179_vm3, %v19996_v59  ;;  %15091 = vmatprep.mubr.msk.f32.mxu1 %vm4179_vm3, %v19996_v59 }
 0xbff   : > { %15032 = vmatmul.mubr.msk.f32.vlgmr.msra.gmra.mrb[44].mxu0 %vm4179_vm3, %v19998_v62  ;;  %15092 = vmatmul.mubr.msk.f32.vlgmr.msra.gmra.mrb[52].mxu1 %vm4179_vm3, %v19998_v62 }
 0xc00   : > { %15034 = vmatprep.mubr.msk.f32.mxu0 %vm4179_vm3, %v4497_v9  ;;  %16308 = vmatpush3.bf16.msra.mxu0 %v20030_v13 }
 0xc01   : > { %15094 = vmatprep.mubr.msk.f32.mxu1 %vm4179_vm3, %v4497_v9  ;;  %16314 = vmatprep.subr.bf16.mxu0 %v20053_v19 }
 0xc03   : > { %15035 = vmatmul.mubr.msk.f32.gmra.mrb[46].mxu0 %vm4179_vm3, %v4498_v8  ;;  %15095 = vmatmul.mubr.msk.f32.gmra.mrb[54].mxu1 %vm4179_vm3, %v4498_v8 }
 0xc04   : > { %15041 = vmatprep.mubr.msk.f32.mxu0 %vm4179_vm3, %v19996_v59  ;;  %15105 = vmatprep.mubr.msk.f32.mxu1 %vm4289_vm4, %v4501_v61 }
 0xc07   : > { %15042 = vmatmul.mubr.msk.f32.vlgmr.msra.gmra.mrb[48].mxu0 %vm4179_vm3, %v19998_v62 }
 0xc08   : > { %15044 = vmatprep.mubr.msk.f32.mxu0 %vm4179_vm3, %v4497_v9  ;;  %16316 = vmatpush3.bf16.msra.mxu0 %v20053_v19 }
 0xc09   : > { %16322 = vmatprep.subr.bf16.mxu0 %v20073_v7 }
 0xc0b   : > { %15045 = vmatmul.mubr.msk.f32.gmra.mrb[50].mxu0 %vm4179_vm3, %v4498_v8 }
 0xc0c   : > { %15061 = vmatprep.mubr.msk.f32.mxu0 %vm4179_vm3, %v19996_v59 }
 0xc0f   : > { %15062 = vmatmul.mubr.msk.f32.vlgmr.msra.gmra.mrb[52].mxu0 %vm4179_vm3, %v19998_v62 }
 0xc10   : > { %15064 = vmatprep.mubr.msk.f32.mxu0 %vm4179_vm3, %v4497_v9  ;;  %16324 = vmatpush3.bf16.msra.mxu0 %v20073_v7 }
 0xc13   : > { %15065 = vmatmul.mubr.msk.f32.gmra.mrb[54].mxu0 %vm4179_vm3, %v4498_v8 }
 0xc14   : > { %15081 = vmatprep.mubr.msk.f32.mxu0 %vm4179_vm3, %v19996_v59 }
 0xc17   : > { %15082 = vmatmul.mubr.msk.f32.vlgmr.msra.gmra.mrb[56].mxu0 %vm4179_vm3, %v19998_v62 }
 0xc18   : > { %15084 = vmatprep.mubr.msk.f32.mxu0 %vm4179_vm3, %v4497_v9  ;;  %v4504_v9 = vld [vmem:[%s23336_s14 + $0x28] sm:$0xff] }
 0xc1b   : > { %15085 = vmatmul.mubr.msk.f32.gmra.mrb[58].mxu0 %vm4179_vm3, %v4498_v8 }
 0xc1c   : > { %5390 = vmatprep.mubr.f32.mxu0 %v4500_v24 }
 0xcc1   : > { %v15013_v44 = vpop.f32.mrb[36].mxu0  ;;  %v15053_v27 = vpop.f32.mrb[44].mxu1 }
 0xcc2   : > { %v4591_v28 = vpop.f32.mrb[37].mxu0  ;;  %v4943_v29 = vpop.f32.mrb[45].mxu1 }
 0xcc3   : > { %v16331_v30 = vpack.c.bf16 %v15013_v44, %v4591_v28  ;;  %v16329_v31 = vpack.c.bf16 %v15053_v27, %v4943_v29 }
 0xcc5   : > { %16330 = vmatprep.subr.bf16.mxu0 %v16329_v31 }
 0xcc6   : > { %v15016_v34 = vpop.f32.mrb[38].mxu0  ;;  %v15056_v35 = vpop.f32.mrb[46].mxu1  ;;  %16332 = vmatpush3.bf16.msra.mxu0 %v16331_v30 }
 0xcc7   : > { %v4601_v36 = vpop.f32.mrb[39].mxu0  ;;  %v4953_v37 = vpop.f32.mrb[47].mxu1 }
 0xcc8   : > { %v16335_v38 = vpack.c.bf16 %v15016_v34, %v4601_v36  ;;  %v16333_v39 = vpack.c.bf16 %v15056_v35, %v4953_v37 }
 0xcca   : > { %v15023_v40 = vpop.f32.mrb[40].mxu0  ;;  %v15073_v41 = vpop.f32.mrb[48].mxu1  ;;  %16334 = vmatprep.subr.bf16.mxu0 %v16333_v39  ;;  %v4503_v39 = vld [vmem:[%s23336_s14 + $0x20] sm:$0xff] }
 0xccb   : > { %v4679_v42 = vpop.f32.mrb[41].mxu0  ;;  %v5119_v45 = vpop.f32.mrb[49].mxu1  ;;  %16336 = vmatpush3.bf16.msra.mxu0 %v16335_v38  ;;  %v4499_v38 = vld [vmem:[%s23336_s14] sm:$0xff] }
 0xccc   : > { %v16339_v46 = vpack.c.bf16 %v15023_v40, %v4679_v42  ;;  %v16345_v47 = vpack.c.bf16 %v15073_v41, %v5119_v45  ;;  %v4502_v40 = vld [vmem:[%s23336_s14 + $0x18] sm:$0xff]  ;;  %v4505_v42 = vld [vmem:[%s23336_s14 + $0x30] sm:$0xff] }
 0xccd   : > { %v4506_v41 = vld [vmem:[%s23336_s14 + $0x38] sm:$0xff]  ;;  %v4509_v45 = vld [vmem:[%s23336_s14 + $0x50] sm:$0xff] }
 0xcce   : > { %v15026_v48 = vpop.f32.mrb[42].mxu0  ;;  %v15076_v49 = vpop.f32.mrb[50].mxu1 }
 0xccf   : > { %v4689_v50 = vpop.f32.mrb[43].mxu0  ;;  %v5129_v53 = vpop.f32.mrb[51].mxu1 }
 0xcd0   : > { %v16343_v54 = vpack.c.bf16 %v15026_v48, %v4689_v50  ;;  %v16349_v55 = vpack.c.bf16 %v15076_v49, %v5129_v53 }
 0xcd2   : > { %v15033_v56 = vpop.f32.mrb[44].mxu0  ;;  %v15093_v57 = vpop.f32.mrb[52].mxu1 }
 0xcd3   : > { %v4767_v51 = vpop.f32.mrb[45].mxu0  ;;  %v5295_v52 = vpop.f32.mrb[53].mxu1 }
 0xcd4   : > { %v16347_v58 = vpack.c.bf16 %v15033_v56, %v4767_v51  ;;  %v16361_v59 = vpack.c.bf16 %v15093_v57, %v5295_v52 }
 0xcd6   : > { %v15036_v60 = vpop.f32.mrb[46].mxu0  ;;  %v15096_v62 = vpop.f32.mrb[54].mxu1  ;;  %16362 = vmatprep.subr.bf16.mxu1 %v16361_v59 }
 0xcd7   : > { %v4777_v32 = vpop.f32.mrb[47].mxu0  ;;  %v5305_v63 = vpop.f32.mrb[55].mxu1  ;;  %16364 = vmatpush3.bf16.msra.mxu1 %v16361_v59 }
 0xcd8   : > { %v16351_v4 = vpack.c.bf16 %v15036_v60, %v4777_v32  ;;  %v16365_v5 = vpack.c.bf16 %v15096_v62, %v5305_v63 }
 0xcda   : > { %v15043_v33 = vpop.f32.mrb[48].mxu0  ;;  %16366 = vmatprep.subr.bf16.mxu1 %v16365_v5 }
 0xcdb   : > { %v4855_v8 = vpop.f32.mrb[49].mxu0  ;;  %16368 = vmatpush3.bf16.msra.mxu1 %v16365_v5 }
 0xcdc   : > { %v16355_v10 = vpack.c.bf16 %v15043_v33, %v4855_v8 }
 0xcde   : > { %v15046_v43 = vpop.f32.mrb[50].mxu0  ;;  %15106 = vmatmul.mubr.msk.f32.vlgmr.msra.gmra.mrb[56].mxu1 %vm4289_vm4, %v4504_v9 }
 0xcdf   : > { %v4865_v16 = vpop.f32.mrb[51].mxu0  ;;  %15108 = vmatprep.mubr.msk.f32.mxu1 %vm4289_vm4, %v4507_v6  ;;  %v12525_v6 = vld [vmem:[%s23337_s15 + $0x28] sm:$0xff] }
 0xce0   : > { %v16359_v22 = vpack.c.bf16 %v15046_v43, %v4865_v16  ;;  %v12524_v43 = vld [vmem:[%s23337_s15 + $0x20] sm:$0xff] }
 0xce1   : > { %v12528_v16 = vld [vmem:[%s23338_s16 + $0x20] sm:$0xff] }
 0xce2   : > { %v15063_v24 = vpop.f32.mrb[52].mxu0  ;;  %15109 = vmatmul.mubr.msk.f32.gmra.mrb[58].mxu1 %vm4289_vm4, %v4510_v21  ;;  %v12529_v21 = vld [vmem:[%s23338_s16 + $0x28] sm:$0xff] }
 0xce3   : > { %v5031_v61 = vpop.f32.mrb[53].mxu0 }
 0xce4   : > { %v16337_v44 = vpack.c.bf16 %v15063_v24, %v5031_v61  ;;  %v12527_v24 = vld [vmem:[%s23337_s15 + $0x38] sm:$0xff] }
 0xce6   : > { %v15066_v27 = vpop.f32.mrb[54].mxu0  ;;  %16338 = vmatprep.subr.bf16.mxu0 %v16337_v44 }
 0xce7   : > { %v5041_v28 = vpop.f32.mrb[55].mxu0  ;;  %16340 = vmatpush3.bf16.msra.mxu0 %v16339_v46 }
 0xce8   : > { %v16341_v29 = vpack.c.bf16 %v15066_v27, %v5041_v28 }
 0xcea   : > { %v15083_v30 = vpop.f32.mrb[56].mxu0  ;;  %16342 = vmatprep.subr.bf16.mxu0 %v16341_v29 }
 0xceb   : > { %v5207_v31 = vpop.f32.mrb[57].mxu0  ;;  %16344 = vmatpush3.bf16.msra.mxu0 %v16343_v54 }
 0xcec   : > { %v16353_v34 = vpack.c.bf16 %v15083_v30, %v5207_v31  ;;  %16346 = vmatprep.subr.bf16.mxu0 %v16345_v47 }
 0xcee   : > { %v15086_v35 = vpop.f32.mrb[58].mxu0 }
 0xcef   : > { %v5217_v36 = vpop.f32.mrb[59].mxu0  ;;  %16348 = vmatpush3.bf16.msra.mxu0 %v16347_v58 }
 0xcf0   : > { %v16357_v37 = vpack.c.bf16 %v15086_v35, %v5217_v36  ;;  %16350 = vmatprep.subr.bf16.mxu0 %v16349_v55 }
 0xcf3   : > { %16352 = vmatpush3.bf16.msra.mxu0 %v16351_v4 }
 0xcf4   : > { %16354 = vmatprep.subr.bf16.mxu0 %v16353_v34 }
 0xcf7   : > { %16356 = vmatpush3.bf16.msra.mxu0 %v16355_v10 }
 0xcf8   : > { %16358 = vmatprep.subr.bf16.mxu0 %v16357_v37 }
 0xcfb   : > { %16360 = vmatpush3.bf16.msra.mxu0 %v16359_v22  ;;  %v12526_v22 = vld [vmem:[%s23337_s15 + $0x30] sm:$0xff] }
 0xcfc   : > { %16394 = vmatprep.subr.bf16.mxu0 %v20000_v0 }
 0xcfe   : > { %5391 = vmatmul.mubr.f32.vlgmr.msra.gmra.mrb[60].mxu0 %v4499_v38 }
 0xcff   : > { %5395 = vmatprep.mubr.f32.mxu0 %v4503_v39  ;;  %16396 = vmatpush3.bf16.msra.mxu0 %v20000_v0  ;;  %v4508_v0 = vld [vmem:[%s23336_s14 + $0x48] sm:$0xff] }
 0xd00   : > { %16402 = vmatprep.subr.bf16.mxu0 %v19956_v12 }
 0xd02   : > { %5396 = vmatmul.mubr.f32.gmra.mrb[62].mxu0 %v4502_v40 }
 0xd03   : > { %5400 = vmatprep.mubr.f32.mxu0 %v4506_v41 }
 0xd06   : > { %5401 = vmatmul.mubr.f32.gmra.mrb[64].mxu0 %v4505_v42 }
 0xd07   : > { %5405 = vmatprep.mubr.f32.mxu0 %v4509_v45 }
 0xd0a   : > { %5406 = vmatmul.mubr.f32.gmra.mrb[66].mxu0 %v4508_v0 }
 0xdb1   : > { %v15107_v46 = vpop.f32.mrb[56].mxu1 }
 0xdb2   : > { %v5477_v47 = vpop.f32.mrb[57].mxu1 }
 0xdb5   : > { %v15110_v48 = vpop.f32.mrb[58].mxu1 }
 0xdb6   : > { %v5487_v49 = vpop.f32.mrb[59].mxu1 }
 0xdd1   : > { %v14332_v50 = vpop.f32.mrb[60].mxu0 }
 0xdd2   : > { %v14333_v53 = vpop.f32.mrb[61].mxu0 }
 0xdd3   : > { %v14334_v54 = vadd.f32 %v14333_v53, %v14332_v50  ;;  %v12532_v50 = vld [vmem:[%s23335_s13 + $0x20] sm:$0xff] }
 0xdd4   : > { %15119 = vmatprep.mubr.msk.f32.mxu1 %vm4289_vm4, %v12532_v50 }
 0xdd5   : > { %v5478_v55 = vadd.f32 %v14334_v54, %v5477_v47  ;;  %v14335_v56 = vpop.f32.mrb[62].mxu0 }
 0xdd6   : > { %v14336_v57 = vpop.f32.mrb[63].mxu0 }
 0xdd7   : > { %v14337_v51 = vadd.f32 %v14336_v57, %v14335_v56  ;;  %v5506_v52 = vsel %vm4179_vm3, %v5478_v55, 0.0 }
 0xdd8   : > { %5507 = vadd.xlane.f32.xlu1 %v5506_v52 }
 0xdd9   : > { %v14338_v58 = vpop.f32.mrb[64].mxu0  ;;  %v5483_v59 = vadd.f32 %v15107_v46, %v14337_v51 }
 0xdda   : > { %v14339_v60 = vpop.f32.mrb[65].mxu0 }
 0xddb   : > { %v14340_v62 = vadd.f32 %v14339_v60, %v14338_v58  ;;  %v5509_v32 = vsel %vm4179_vm3, %v5483_v59, 0.0 }
 0xddc   : > { %5510 = vadd.xlane.f32.xlu0 %v5509_v32 }
 0xddd   : > { %v5488_v63 = vadd.f32 %v14340_v62, %v5487_v49  ;;  %v14341_v4 = vpop.f32.mrb[66].mxu0  ;;  %v12531_v49 = vld [vmem:[%s23338_s16 + $0x38] sm:$0xff] }
 0xdde   : > { %v14342_v5 = vpop.f32.mrb[67].mxu0 }
 0xddf   : > { %v14343_v33 = vadd.f32 %v14342_v5, %v14341_v4  ;;  %v5512_v8 = vsel %vm4179_vm3, %v5488_v63, 0.0 }
 0xde0   : > { %5513 = vadd.xlane.f32.xlu0 %v5512_v8 }
 0xde1   : > { %v5493_v9 = vadd.f32 %v15110_v48, %v14343_v33  ;;  %v12530_v48 = vld [vmem:[%s23338_s16 + $0x30] sm:$0xff] }
 0xde3   : > { %v5515_v10 = vsel %vm4179_vm3, %v5493_v9, 0.0 }
 0xde4   : > { %5516 = vadd.xlane.f32.xlu1 %v5515_v10 }
 0xdf5   : > { %5565 = vperm.xlu1 %17441, %v12525_v6  }
 0xdf6   : > { %5560 = vperm.xlu0 %17442, %v12524_v43  }
 0xdf9   : > { %5584 = vperm.xlu1 %17441, %v12528_v16  }
 0xdfa   : > { %5589 = vperm.xlu0 %17442, %v12529_v21  }
 0xdfd   : > { %5570 = vperm.xlu1 %17441, %v12526_v22  }
 0xdfe   : > { %5575 = vperm.xlu0 %17442, %v12527_v24  }
 0xe65   : > { %v5508_v61 = vpop.xlane.xlu1 %5507 }
 0xe66   : > { %v5518_v44 = vmul.f32 0.0625, %v5508_v61 }
 0xe68   : > { %v5522_v27 = vsub.f32 %v5478_v55, %v5518_v44 }
 0xe69   : > { %v5511_v28 = vpop.xlane.xlu0 %5510 }
 0xe6a   : > { %v5519_v29 = vmul.f32 0.0625, %v5511_v28  ;;  %v5526_v30 = vmul.f32 %v5522_v27, %v5522_v27 }
 0xe6c   : > { %v5523_v31 = vsub.f32 %v5483_v59, %v5519_v29  ;;  %v5530_v34 = vsel %vm4179_vm3, %v5526_v30, 0.0 }
 0xe6d   : > { %v5514_v35 = vpop.xlane.xlu0 %5513  ;;  %5531 = vadd.xlane.f32.xlu0 %v5530_v34 }
 0xe6e   : > { %v5520_v36 = vmul.f32 0.0625, %v5514_v35  ;;  %v5527_v37 = vmul.f32 %v5523_v31, %v5523_v31 }
 0xe70   : > { %v5524_v38 = vsub.f32 %v5488_v63, %v5520_v36  ;;  %v5533_v39 = vsel %vm4179_vm3, %v5527_v37, 0.0 }
 0xe71   : > { %5534 = vadd.xlane.f32.xlu1 %v5533_v39  ;;  %v5517_v40 = vpop.xlane.xlu1 %5516 }
 0xe72   : > { %v5521_v41 = vmul.f32 0.0625, %v5517_v40  ;;  %v5528_v42 = vmul.f32 %v5524_v38, %v5524_v38 }
 0xe74   : > { %v5525_v45 = vsub.f32 %v5493_v9, %v5521_v41  ;;  %v5536_v0 = vsel %vm4179_vm3, %v5528_v42, 0.0 }
 0xe75   : > { %5537 = vadd.xlane.f32.xlu0 %v5536_v0  ;;  %v5561_v53 = vpop.permute.xlu0 %5560  ;;  %v5566_v54 = vpop.permute.xlu1 %5565 }
 0xe76   : > { %v5529_v46 = vmul.f32 %v5525_v45, %v5525_v45 }
 0xe78   : > { %v5539_v47 = vsel %vm4179_vm3, %v5529_v46, 0.0 }
 0xe79   : > { %5540 = vadd.xlane.f32.xlu1 %v5539_v47  ;;  %v5590_v55 = vpop.permute.xlu0 %5589  ;;  %v5585_v56 = vpop.permute.xlu1 %5584  ;;  %v12535_v47 = vld [vmem:[%s23335_s13 + $0x38] sm:$0xff] }
 0xe7d   : > { %v5576_v57 = vpop.permute.xlu0 %5575  ;;  %v5571_v51 = vpop.permute.xlu1 %5570 }
 0xe8a   : > { %5594 = vperm.xlu1 %17441, %v12530_v48  }
 0xe8b   : > { %5599 = vperm.xlu0 %17442, %v12531_v49  }
 0xefa   : > { %v5532_v52 = vpop.xlane.xlu0 %5531 }
 0xefb   : > { %v5542_v58 = vmul.f32 0.0625, %v5532_v52  ;;  %v12544_v52 = vld [vmem:[%s23338_s16 + $0x40] sm:$0xff] }
 0xefd   : > { %v5546_v59 = vadd.f32 1e-05, %v5542_v58  ;;  %v12540_v58 = vld [vmem:[%s23337_s15 + $0x40] sm:$0xff] }
 0xefe   : > { %v5535_v60 = vpop.xlane.xlu1 %5534 }
 0xeff   : > { %17465 = vrsqrt.f32 %v5546_v59  ;;  %v5543_v62 = vmul.f32 0.0625, %v5535_v60  ;;  %v12542_v59 = vld [vmem:[%s23337_s15 + $0x50] sm:$0xff]  ;;  %v12545_v60 = vld [vmem:[%s23338_s16 + $0x48] sm:$0xff] }
 0xf01   : > { %v5547_v32 = vadd.f32 1e-05, %v5543_v62  ;;  %v12543_v62 = vld [vmem:[%s23337_s15 + $0x58] sm:$0xff] }
 0xf02   : > { %v5538_v63 = vpop.xlane.xlu0 %5537 }
 0xf03   : > { %17467 = vrsqrt.f32 %v5547_v32  ;;  %v5544_v4 = vmul.f32 0.0625, %v5538_v63 }
 0xf05   : > { %v5548_v5 = vadd.f32 1e-05, %v5544_v4 }
 0xf06   : > { %v5541_v33 = vpop.xlane.xlu1 %5540 }
 0xf07   : > { %17469 = vrsqrt.f32 %v5548_v5  ;;  %v5545_v8 = vmul.f32 0.0625, %v5541_v33 }
 0xf09   : > { %v17466_v9 = vpop.eup %17465  ;;  %v5549_v10 = vadd.f32 1e-05, %v5545_v8 }
 0xf0a   : > { %v5554_v6 = vmul.f32 %v17466_v9, %v5522_v27  ;;  %v5595_v39 = vpop.permute.xlu1 %5594  ;;  %v5600_v27 = vpop.permute.xlu0 %5599 }
 0xf0b   : > { %17471 = vrsqrt.f32 %v5549_v10 }
 0xf0c   : > { %v5578_v43 = vmul.f32 %v5561_v53, %v5554_v6 }
 0xf0d   : > { %v17468_v16 = vpop.eup %17467 }
 0xf0e   : > { %v5555_v21 = vmul.f32 %v17468_v16, %v5523_v31  ;;  %v5602_v24 = vadd.f32 %v5585_v56, %v5578_v43 }
 0xf10   : > { %v5579_v22 = vmul.f32 %v5566_v54, %v5555_v21  ;;  %v5606_v30 = vmax.f32 %v5602_v24, 0.0 }
 0xf11   : > { %v17470_v61 = vpop.eup %17469 }
 0xf12   : > { %v5556_v44 = vmul.f32 %v17470_v61, %v5524_v38  ;;  %v5603_v28 = vadd.f32 %v5590_v55, %v5579_v22  ;;  %v12533_v38 = vld [vmem:[%s23335_s13 + $0x28] sm:$0xff] }
 0xf14   : > { %v5580_v29 = vmul.f32 %v5571_v51, %v5556_v44  ;;  %v5607_v34 = vmax.f32 %v5603_v28, 0.0  ;;  %v12541_v51 = vld [vmem:[%s23337_s15 + $0x48] sm:$0xff] }
 0xf15   : > { %v17472_v35 = vpop.eup %17471 }
 0xf16   : > { %v5557_v36 = vmul.f32 %v17472_v35, %v5525_v45  ;;  %v16369_v37 = vpack.c.bf16 %v5607_v34, %v5606_v30  ;;  %v5604_v41 = vadd.f32 %v5595_v39, %v5580_v29  ;;  %v12534_v45 = vld [vmem:[%s23335_s13 + $0x30] sm:$0xff] }
 0xf17   : > { %v12546_v35 = vld [vmem:[%s23338_s16 + $0x50] sm:$0xff] }
 0xf18   : > { %v5581_v40 = vmul.f32 %v5576_v57, %v5557_v36  ;;  %16370 = vmatprep.subr.bf16.mxu1 %v16369_v37  ;;  %v5608_v31 = vmax.f32 %v5604_v41, 0.0  ;;  %v12547_v36 = vld [vmem:[%s23338_s16 + $0x58] sm:$0xff] }
 0xf19   : > { %16372 = vmatpush3.bf16.msra.mxu1 %v16369_v37  ;;  %v12548_v37 = vld [vmem:[%s23335_s13 + $0x40] sm:$0xff] }
 0xf1a   : > { %v5605_v42 = vadd.f32 %v5600_v27, %v5581_v40 }
 0xf1c   : > { %v5609_v0 = vmax.f32 %v5605_v42, 0.0 }
 0xf1e   : > { %v16373_v46 = vpack.c.bf16 %v5609_v0, %v5608_v31 }
 0xf20   : > { %16374 = vmatprep.subr.bf16.mxu1 %v16373_v46 }
 0xf21   : > { %16376 = vmatpush3.bf16.msra.mxu1 %v16373_v46 }
 0xf24   : > { %15120 = vmatmul.mubr.msk.f32.vlgmr.msra.gmra.mrb[60].mxu1 %vm4289_vm4, %v12533_v38 }
 0xf25   : > { %15122 = vmatprep.mubr.msk.f32.mxu1 %vm4289_vm4, %v12534_v45 }
 0xf28   : > { %15123 = vmatmul.mubr.msk.f32.gmra.mrb[62].mxu1 %vm4289_vm4, %v12535_v47 }
 0xf29   : > { %15133 = vmatprep.mubr.msk.f32.mxu1 %vm4289_vm4, %v12548_v37 }
 0xff7   : > { %v15121_v48 = vpop.f32.mrb[60].mxu1 }
 0xff8   : > { %v5693_v49 = vpop.f32.mrb[61].mxu1  ;;  %v5725_v50 = vsel %vm4179_vm3, %v15121_v48, 0.0 }
 0xff9   : > { %5726 = vadd.xlane.f32.xlu0 %v5725_v50  ;;  %v5722_v53 = vsel %vm4179_vm3, %v5693_v49, 0.0 }
 0xffa   : > { %5723 = vadd.xlane.f32.xlu1 %v5722_v53 }
 0xffb   : > { %v15124_v54 = vpop.f32.mrb[62].mxu1 }
 0xffc   : > { %v5703_v55 = vpop.f32.mrb[63].mxu1  ;;  %v5731_v56 = vsel %vm4179_vm3, %v15124_v54, 0.0 }
 0xffd   : > { %v5728_v57 = vsel %vm4179_vm3, %v5703_v55, 0.0 }
 0xffe   : > { %5732 = vadd.xlane.f32.xlu1 %v5731_v56  ;;  %5729 = vadd.xlane.f32.xlu0 %v5728_v57 }
0x100f   : > { %5781 = vperm.xlu1 %17441, %v12541_v51  }
0x1013   : > { %5800 = vperm.xlu1 %17441, %v12544_v52  }
0x1014   : > { %5776 = vperm.xlu0 %17442, %v12540_v58  }
0x1017   : > { %5786 = vperm.xlu1 %17441, %v12542_v59  }
0x1018   : > { %5805 = vperm.xlu0 %17442, %v12545_v60  }
0x101c   : > { %5791 = vperm.xlu0 %17442, %v12543_v62  }
0x1086   : > { %v5727_v32 = vpop.xlane.xlu0 %5726 }
0x1087   : > { %v5735_v63 = vmul.f32 0.0625, %v5727_v32  ;;  %v5724_v4 = vpop.xlane.xlu1 %5723 }
0x1088   : > { %v5734_v5 = vmul.f32 0.0625, %v5724_v4 }
0x1089   : > { %v5739_v33 = vsub.f32 %v15121_v48, %v5735_v63 }
0x108a   : > { %v5738_v8 = vsub.f32 %v5693_v49, %v5734_v5 }
0x108b   : > { %v5733_v9 = vpop.xlane.xlu1 %5732  ;;  %v5730_v10 = vpop.xlane.xlu0 %5729  ;;  %v5743_v6 = vmul.f32 %v5739_v33, %v5739_v33 }
0x108c   : > { %v5737_v43 = vmul.f32 0.0625, %v5733_v9  ;;  %v5736_v16 = vmul.f32 0.0625, %v5730_v10  ;;  %v5742_v21 = vmul.f32 %v5738_v8, %v5738_v8 }
0x108d   : > { %v5749_v22 = vsel %vm4179_vm3, %v5743_v6, 0.0 }
0x108e   : > { %v5741_v24 = vsub.f32 %v15124_v54, %v5737_v43  ;;  %v5740_v61 = vsub.f32 %v5703_v55, %v5736_v16  ;;  %5750 = vadd.xlane.f32.xlu1 %v5749_v22  ;;  %v5746_v44 = vsel %vm4179_vm3, %v5742_v21, 0.0 }
0x108f   : > { %5747 = vadd.xlane.f32.xlu0 %v5746_v44  ;;  %v5782_v39 = vpop.permute.xlu1 %5781 }
0x1090   : > { %v5745_v28 = vmul.f32 %v5741_v24, %v5741_v24  ;;  %v5744_v29 = vmul.f32 %v5740_v61, %v5740_v61 }
0x1092   : > { %v5755_v30 = vsel %vm4179_vm3, %v5745_v28, 0.0  ;;  %v5752_v34 = vsel %vm4179_vm3, %v5744_v29, 0.0 }
0x1093   : > { %5756 = vadd.xlane.f32.xlu1 %v5755_v30  ;;  %5753 = vadd.xlane.f32.xlu0 %v5752_v34  ;;  %v5777_v40 = vpop.permute.xlu0 %5776  ;;  %v5801_v41 = vpop.permute.xlu1 %5800 }
0x1097   : > { %v5806_v27 = vpop.permute.xlu0 %5805  ;;  %v5787_v42 = vpop.permute.xlu1 %5786 }
0x109b   : > { %v5792_v0 = vpop.permute.xlu0 %5791 }
0x10a4   : > { %5810 = vperm.xlu1 %17441, %v12546_v35  }
0x10a9   : > { %5815 = vperm.xlu0 %17442, %v12547_v36  }
0x111b   : > { %v5751_v31 = vpop.xlane.xlu1 %5750 }
0x111c   : > { %v5759_v46 = vmul.f32 0.0625, %v5751_v31  ;;  %v5748_v38 = vpop.xlane.xlu0 %5747 }
0x111d   : > { %v5758_v45 = vmul.f32 0.0625, %v5748_v38 }
0x111e   : > { %v5763_v47 = vadd.f32 1e-05, %v5759_v46 }
0x111f   : > { %v5762_v48 = vadd.f32 1e-05, %v5758_v45 }
0x1120   : > { %17473 = vrsqrt.f32 %v5763_v47  ;;  %v5757_v49 = vpop.xlane.xlu1 %5756  ;;  %v5754_v50 = vpop.xlane.xlu0 %5753 }
0x1121   : > { %17475 = vrsqrt.f32 %v5762_v48  ;;  %v5761_v53 = vmul.f32 0.0625, %v5757_v49  ;;  %v5760_v54 = vmul.f32 0.0625, %v5754_v50 }
0x1123   : > { %v5765_v55 = vadd.f32 1e-05, %v5761_v53  ;;  %v5764_v56 = vadd.f32 1e-05, %v5760_v54 }
0x1124   : > { %v5811_v21 = vpop.permute.xlu1 %5810 }
0x1125   : > { %17477 = vrsqrt.f32 %v5765_v55 }
0x1126   : > { %17479 = vrsqrt.f32 %v5764_v56 }
0x112a   : > { %v17474_v57 = vpop.eup %17473 }
0x112b   : > { %v17476_v51 = vpop.eup %17475  ;;  %v5771_v52 = vmul.f32 %v17474_v57, %v5739_v33  ;;  %v5816_v33 = vpop.permute.xlu0 %5815 }
0x112c   : > { %v5770_v58 = vmul.f32 %v17476_v51, %v5738_v8 }
0x112d   : > { %v5795_v59 = vmul.f32 %v5782_v39, %v5771_v52 }
0x112e   : > { %v5794_v60 = vmul.f32 %v5777_v40, %v5770_v58  ;;  %v12560_v40 = vld [vmem:[%s23338_s16 + $0x60] sm:$0xff] }
0x112f   : > { %v17478_v62 = vpop.eup %17477  ;;  %v5819_v32 = vadd.f32 %v5806_v27, %v5795_v59  ;;  %v12558_v27 = vld [vmem:[%s23337_s15 + $0x70] sm:$0xff] }
0x1130   : > { %v17480_v63 = vpop.eup %17479  ;;  %v5773_v4 = vmul.f32 %v17478_v62, %v5741_v24  ;;  %v5818_v5 = vadd.f32 %v5801_v41, %v5794_v60  ;;  %v12556_v41 = vld [vmem:[%s23337_s15 + $0x60] sm:$0xff] }
0x1131   : > { %v5772_v9 = vmul.f32 %v17480_v63, %v5740_v61  ;;  %v20223_v10 = vadd.f32 %v5819_v32, %v4282_v18  ;;  %v12562_v63 = vld [vmem:[%s23338_s16 + $0x70] sm:$0xff] }
0x1132   : > { %v5797_v6 = vmul.f32 %v5792_v0, %v5773_v4  ;;  %v20227_v43 = vadd.f32 %v5818_v5, %v4281_v17  ;;  %v12559_v0 = vld [vmem:[%s23337_s15 + $0x78] sm:$0xff] }
0x1133   : > { %v5796_v16 = vmul.f32 %v5787_v42, %v5772_v9  ;;  %v5827_v8 = vmax.f32 %v20223_v10, 0.0  ;;  %v12561_v42 = vld [vmem:[%s23338_s16 + $0x68] sm:$0xff]  ;;  %v12563_v4 = vld [vmem:[%s23338_s16 + $0x78] sm:$0xff] }
0x1134   : > { %v5821_v22 = vadd.f32 %v5816_v33, %v5797_v6  ;;  %v5826_v44 = vmax.f32 %v20227_v43, 0.0  ;;  %v12681_v10 = vld [vmem:[%s23339_s17 + $0x78] sm:$0xff] }
0x1135   : > { %v5820_v24 = vadd.f32 %v5811_v21, %v5796_v16 }
0x1136   : > { %v20233_v61 = vadd.f32 %v5821_v22, %v4284_v2  ;;  %v16377_v1 = vpack.c.bf16 %v5827_v8, %v5826_v44  ;;  %v12549_v2 = vld [vmem:[%s23335_s13 + $0x48] sm:$0xff] }
0x1137   : > { %v20241_v15 = vadd.f32 %v5820_v24, %v4283_v26  ;;  %v12551_v26 = vld [vmem:[%s23335_s13 + $0x58] sm:$0xff] }
0x1138   : > { %v5829_v17 = vmax.f32 %v20233_v61, 0.0  ;;  %16378 = vmatprep.subr.bf16.mxu1 %v16377_v1 }
0x1139   : > { %v5828_v18 = vmax.f32 %v20241_v15, 0.0  ;;  %16380 = vmatpush3.bf16.msra.mxu1 %v16377_v1  ;;  %v12662_v15 = vld [vmem:[%s23339_s17 + $0x40] sm:$0xff] }
0x113b   : > { %v16381_v25 = vpack.c.bf16 %v5829_v17, %v5828_v18 }
0x113d   : > { %16382 = vmatprep.subr.bf16.mxu1 %v16381_v25 }
0x113e   : > { %16384 = vmatpush3.bf16.msra.mxu1 %v16381_v25 }
0x113f   : > { %16386 = vmatprep.subr.bf16.mxu1 %v19951_v11 }
0x1141   : > { %15134 = vmatmul.mubr.msk.f32.vlgmr.msra.gmra.mrb[64].mxu1 %vm4289_vm4, %v12549_v2 }
0x1142   : > { %15136 = vmatprep.mubr.msk.f32.mxu1 %vm4289_vm4, %v12550_v23  ;;  %16388 = vmatpush3.bf16.msra.mxu1 %v19951_v11  ;;  %v12557_v11 = vld [vmem:[%s23337_s15 + $0x68] sm:$0xff] }
0x1143   : > { %16390 = vmatprep.subr.bf16.mxu1 %v19968_v14 }
0x1145   : > { %15137 = vmatmul.mubr.msk.f32.gmra.mrb[66].mxu1 %vm4289_vm4, %v12551_v26 }
0x1214   : > { %v15135_v28 = vpop.f32.mrb[64].mxu1 }
0x1215   : > { %v5913_v29 = vpop.f32.mrb[65].mxu1  ;;  %v5945_v30 = vsel %vm4179_vm3, %v15135_v28, 0.0 }
0x1216   : > { %5946 = vadd.xlane.f32.xlu0 %v5945_v30  ;;  %v5942_v34 = vsel %vm4179_vm3, %v5913_v29, 0.0 }
0x1217   : > { %5943 = vadd.xlane.f32.xlu1 %v5942_v34 }
0x1218   : > { %v15138_v35 = vpop.f32.mrb[66].mxu1 }
0x1219   : > { %v5923_v36 = vpop.f32.mrb[67].mxu1  ;;  %v5951_v37 = vsel %vm4179_vm3, %v15138_v35, 0.0 }
0x121a   : > { %v5948_v39 = vsel %vm4179_vm3, %v5923_v36, 0.0 }
0x121b   : > { %5952 = vadd.xlane.f32.xlu1 %v5951_v37  ;;  %5949 = vadd.xlane.f32.xlu0 %v5948_v39 }
0x122c   : > { %6001 = vperm.xlu1 %17441, %v12557_v11  }
0x1230   : > { %6020 = vperm.xlu1 %17441, %v12560_v40  }
0x1231   : > { %5996 = vperm.xlu0 %17442, %v12556_v41  }
0x1234   : > { %6006 = vperm.xlu1 %17441, %v12558_v27  }
0x1235   : > { %6025 = vperm.xlu0 %17442, %v12561_v42  }
0x1239   : > { %6011 = vperm.xlu0 %17442, %v12559_v0  }
0x12a3   : > { %v5947_v31 = vpop.xlane.xlu0 %5946 }
0x12a4   : > { %v5955_v46 = vmul.f32 0.0625, %v5947_v31  ;;  %v5944_v38 = vpop.xlane.xlu1 %5943 }
0x12a5   : > { %v5954_v45 = vmul.f32 0.0625, %v5944_v38 }
0x12a6   : > { %v5959_v47 = vsub.f32 %v15135_v28, %v5955_v46 }
0x12a7   : > { %v5958_v48 = vsub.f32 %v5913_v29, %v5954_v45 }
0x12a8   : > { %v5953_v49 = vpop.xlane.xlu1 %5952  ;;  %v5950_v50 = vpop.xlane.xlu0 %5949  ;;  %v5963_v53 = vmul.f32 %v5959_v47, %v5959_v47 }
0x12a9   : > { %v5957_v54 = vmul.f32 0.0625, %v5953_v49  ;;  %v5956_v55 = vmul.f32 0.0625, %v5950_v50  ;;  %v5962_v56 = vmul.f32 %v5958_v48, %v5958_v48 }
0x12aa   : > { %v5969_v57 = vsel %vm4179_vm3, %v5963_v53, 0.0 }
0x12ab   : > { %v5961_v51 = vsub.f32 %v15138_v35, %v5957_v54  ;;  %v5960_v52 = vsub.f32 %v5923_v36, %v5956_v55  ;;  %5970 = vadd.xlane.f32.xlu1 %v5969_v57  ;;  %v5966_v58 = vsel %vm4179_vm3, %v5962_v56, 0.0 }
0x12ac   : > { %5967 = vadd.xlane.f32.xlu0 %v5966_v58  ;;  %v6002_v5 = vpop.permute.xlu1 %6001 }
0x12ad   : > { %v5965_v59 = vmul.f32 %v5961_v51, %v5961_v51  ;;  %v5964_v60 = vmul.f32 %v5960_v52, %v5960_v52 }
0x12af   : > { %v5975_v62 = vsel %vm4179_vm3, %v5965_v59, 0.0  ;;  %v5972_v32 = vsel %vm4179_vm3, %v5964_v60, 0.0 }
0x12b0   : > { %5976 = vadd.xlane.f32.xlu1 %v5975_v62  ;;  %5973 = vadd.xlane.f32.xlu0 %v5972_v32  ;;  %v5997_v9 = vpop.permute.xlu0 %5996  ;;  %v6021_v6 = vpop.permute.xlu1 %6020 }
0x12b4   : > { %v6026_v16 = vpop.permute.xlu0 %6025  ;;  %v6007_v33 = vpop.permute.xlu1 %6006 }
0x12b8   : > { %v6012_v21 = vpop.permute.xlu0 %6011 }
0x12c1   : > { %6030 = vperm.xlu1 %17441, %v12562_v63  }
0x12c6   : > { %6035 = vperm.xlu0 %17442, %v12563_v4  }
0x1338   : > { %v5971_v22 = vpop.xlane.xlu1 %5970 }
0x1339   : > { %v5979_v24 = vmul.f32 0.0625, %v5971_v22  ;;  %v5968_v1 = vpop.xlane.xlu0 %5967 }
0x133a   : > { %v5978_v25 = vmul.f32 0.0625, %v5968_v1 }
0x133b   : > { %v5983_v2 = vadd.f32 1e-05, %v5979_v24 }
0x133c   : > { %v5982_v23 = vadd.f32 1e-05, %v5978_v25 }
0x133d   : > { %17481 = vrsqrt.f32 %v5983_v2  ;;  %v5977_v26 = vpop.xlane.xlu1 %5976  ;;  %v5974_v28 = vpop.xlane.xlu0 %5973 }
0x133e   : > { %17483 = vrsqrt.f32 %v5982_v23  ;;  %v5981_v29 = vmul.f32 0.0625, %v5977_v26  ;;  %v5980_v30 = vmul.f32 0.0625, %v5974_v28 }
0x1340   : > { %v5985_v34 = vadd.f32 1e-05, %v5981_v29  ;;  %v5984_v35 = vadd.f32 1e-05, %v5980_v30 }
0x1341   : > { %v6031_v55 = vpop.permute.xlu1 %6030 }
0x1342   : > { %17485 = vrsqrt.f32 %v5985_v34 }
0x1343   : > { %17487 = vrsqrt.f32 %v5984_v35 }
0x1345   : > { %v6036_v54 = vpop.permute.xlu0 %6035 }
0x1347   : > { %v17482_v36 = vpop.eup %17481 }
0x1348   : > { %v17484_v37 = vpop.eup %17483  ;;  %v5991_v39 = vmul.f32 %v17482_v36, %v5959_v47 }
0x1349   : > { %v5990_v11 = vmul.f32 %v17484_v37, %v5958_v48 }
0x134a   : > { %v6015_v40 = vmul.f32 %v6002_v5, %v5991_v39 }
0x134b   : > { %v6014_v41 = vmul.f32 %v5997_v9, %v5990_v11 }
0x134c   : > { %v17486_v27 = vpop.eup %17485  ;;  %v6039_v42 = vadd.f32 %v6026_v16, %v6015_v40 }
0x134d   : > { %v17488_v0 = vpop.eup %17487  ;;  %v6038_v31 = vadd.f32 %v6021_v6, %v6014_v41  ;;  %v5993_v46 = vmul.f32 %v17486_v27, %v5961_v51 }
0x134e   : > { %v5992_v38 = vmul.f32 %v17488_v0, %v5960_v52  ;;  %v6043_v50 = vmax.f32 %v6039_v42, 0.0 }
0x134f   : > { %v6042_v45 = vmax.f32 %v6038_v31, 0.0  ;;  %v6017_v49 = vmul.f32 %v6012_v21, %v5993_v46 }
0x1350   : > { %v6016_v53 = vmul.f32 %v6007_v33, %v5992_v38 }
0x1351   : > { %v6041_v56 = vadd.f32 %v6036_v54, %v6017_v49  ;;  %15143 = vmatprep.mubr.msk.f32.mxu1 %vm4179_vm3, %v6042_v45  ;;  %15163 = vmatprep.mubr.msk.f32.mxu0 %vm4179_vm3, %v6042_v45 }
0x1352   : > { %v6040_v47 = vadd.f32 %v6031_v55, %v6016_v53  ;;  %15144 = vmatmul.mubr.msk.f32.vlgmr.msra.gmra.mrb[68].mxu1 %vm4179_vm3, %v6043_v50  ;;  %15164 = vmatmul.mubr.msk.f32.vlgmr.msra.gmra.mrb[68].mxu0 %vm4179_vm3, %v6043_v50 }
0x1353   : > { %v6045_v48 = vmax.f32 %v6041_v56, 0.0  ;;  %16392 = vmatpush3.bf16.msra.mxu1 %v19968_v14  ;;  %16404 = vmatpush3.bf16.msra.mxu0 %v19956_v12  ;;  %v12565_v12 = vld [vmem:[%s23336_s14 + $0x68] sm:$0xff]  ;;  %v12566_v14 = vld [vmem:[%s23336_s14 + $0x70] sm:$0xff] }
0x1354   : > { %v6044_v57 = vmax.f32 %v6040_v47, 0.0  ;;  %16398 = vmatprep.subr.bf16.mxu1 %v20030_v13  ;;  %16410 = vmatprep.subr.bf16.mxu0 %v19976_v20  ;;  %v12569_v56 = vld [vmem:[%s23336_s14 + $0x88] sm:$0xff] }
0x1356   : > { %15146 = vmatprep.mubr.msk.f32.mxu1 %vm4179_vm3, %v6044_v57  ;;  %15166 = vmatprep.mubr.msk.f32.mxu0 %vm4179_vm3, %v6044_v57 }
0x1357   : > { %15147 = vmatmul.mubr.msk.f32.gmra.mrb[70].mxu1 %vm4179_vm3, %v6045_v48  ;;  %15167 = vmatmul.mubr.msk.f32.gmra.mrb[70].mxu0 %vm4179_vm3, %v6045_v48 }
0x1358   : > { %15153 = vmatprep.mubr.msk.f32.mxu1 %vm4179_vm3, %v6042_v45  ;;  %15183 = vmatprep.mubr.msk.f32.mxu0 %vm4179_vm3, %v6042_v45 }
0x135b   : > { %15154 = vmatmul.mubr.msk.f32.vlgmr.msra.gmra.mrb[72].mxu1 %vm4179_vm3, %v6043_v50  ;;  %15184 = vmatmul.mubr.msk.f32.vlgmr.msra.gmra.mrb[72].mxu0 %vm4179_vm3, %v6043_v50 }
0x135c   : > { %15156 = vmatprep.mubr.msk.f32.mxu1 %vm4179_vm3, %v6044_v57  ;;  %16400 = vmatpush3.bf16.msra.mxu1 %v20030_v13 }
0x135d   : > { %15186 = vmatprep.mubr.msk.f32.mxu0 %vm4179_vm3, %v6044_v57  ;;  %16412 = vmatpush3.bf16.msra.mxu0 %v19976_v20 }
0x135e   : > { %16406 = vmatprep.subr.bf16.mxu1 %v20053_v19  ;;  %16418 = vmatprep.subr.bf16.mxu0 %v20002_v3 }
0x135f   : > { %15157 = vmatmul.mubr.msk.f32.gmra.mrb[74].mxu1 %vm4179_vm3, %v6045_v48  ;;  %15187 = vmatmul.mubr.msk.f32.gmra.mrb[74].mxu0 %vm4179_vm3, %v6045_v48 }
0x1360   : > { %15173 = vmatprep.mubr.msk.f32.mxu1 %vm4179_vm3, %v6042_v45  ;;  %15203 = vmatprep.mubr.msk.f32.mxu0 %vm4179_vm3, %v6042_v45 }
0x1363   : > { %15174 = vmatmul.mubr.msk.f32.vlgmr.msra.gmra.mrb[76].mxu1 %vm4179_vm3, %v6043_v50  ;;  %15204 = vmatmul.mubr.msk.f32.vlgmr.msra.gmra.mrb[76].mxu0 %vm4179_vm3, %v6043_v50 }
0x1364   : > { %15176 = vmatprep.mubr.msk.f32.mxu1 %vm4179_vm3, %v6044_v57  ;;  %16408 = vmatpush3.bf16.msra.mxu1 %v20053_v19 }
0x1365   : > { %15206 = vmatprep.mubr.msk.f32.mxu0 %vm4179_vm3, %v6044_v57  ;;  %16420 = vmatpush3.bf16.msra.mxu0 %v20002_v3 }
0x1366   : > { %16414 = vmatprep.subr.bf16.mxu1 %v20073_v7 }
0x1367   : > { %15177 = vmatmul.mubr.msk.f32.gmra.mrb[78].mxu1 %vm4179_vm3, %v6045_v48  ;;  %15207 = vmatmul.mubr.msk.f32.gmra.mrb[78].mxu0 %vm4179_vm3, %v6045_v48 }
0x1368   : > { %15193 = vmatprep.mubr.msk.f32.mxu1 %vm4179_vm3, %v6042_v45  ;;  %15223 = vmatprep.mubr.msk.f32.mxu0 %vm4179_vm3, %v6042_v45 }
0x136b   : > { %15194 = vmatmul.mubr.msk.f32.vlgmr.msra.gmra.mrb[80].mxu1 %vm4179_vm3, %v6043_v50  ;;  %15224 = vmatmul.mubr.msk.f32.vlgmr.msra.gmra.mrb[80].mxu0 %vm4179_vm3, %v6043_v50 }
0x136c   : > { %15196 = vmatprep.mubr.msk.f32.mxu1 %vm4179_vm3, %v6044_v57  ;;  %15226 = vmatprep.mubr.msk.f32.mxu0 %vm4179_vm3, %v6044_v57 }
0x136d   : > { %16416 = vmatpush3.bf16.msra.mxu1 %v20073_v7 }
0x136f   : > { %15197 = vmatmul.mubr.msk.f32.gmra.mrb[82].mxu1 %vm4179_vm3, %v6045_v48  ;;  %15227 = vmatmul.mubr.msk.f32.gmra.mrb[82].mxu0 %vm4179_vm3, %v6045_v48 }
0x1370   : > { %15213 = vmatprep.mubr.msk.f32.mxu1 %vm4179_vm3, %v6042_v45  ;;  %15237 = vmatprep.mubr.msk.f32.mxu0 %vm4289_vm4, %v12566_v14  ;;  %v12575_v14 = vld [vmem:[%s23336_s14 + $0xb8] sm:$0xff] }
0x1373   : > { %15214 = vmatmul.mubr.msk.f32.vlgmr.msra.gmra.mrb[84].mxu1 %vm4179_vm3, %v6043_v50 }
0x1374   : > { %15216 = vmatprep.mubr.msk.f32.mxu1 %vm4179_vm3, %v6044_v57 }
0x1377   : > { %15217 = vmatmul.mubr.msk.f32.gmra.mrb[86].mxu1 %vm4179_vm3, %v6045_v48  ;;  %v12572_v48 = vld [vmem:[%s23336_s14 + $0xa0] sm:$0xff] }
0x1378   : > { %6912 = vmatprep.mubr.f32.mxu1 %v12565_v12 }
0x1425   : > { %v15145_v20 = vpop.f32.mrb[68].mxu1  ;;  %v20351_v3 = vpop.f32.mrb[68].mxu0 }
0x1426   : > { %v6137_v13 = vpop.f32.mrb[69].mxu1  ;;  %v20353_v19 = vpop.f32.mrb[69].mxu0 }
0x1427   : > { %v16423_v7 = vpack.c.bf16 %v15145_v20, %v6137_v13  ;;  %v16439_v51 = vpack.c.bf16 %v20351_v3, %v20353_v19  ;;  %v12564_v3 = vld [vmem:[%s23336_s14 + $0x60] sm:$0xff]  ;;  %v12567_v19 = vld [vmem:[%s23336_s14 + $0x78] sm:$0xff] }
0x1428   : > { %v12568_v13 = vld [vmem:[%s23336_s14 + $0x80] sm:$0xff] }
0x142a   : > { %v15148_v52 = vpop.f32.mrb[70].mxu1  ;;  %v20357_v58 = vpop.f32.mrb[70].mxu0 }
0x142b   : > { %v6147_v59 = vpop.f32.mrb[71].mxu1  ;;  %v20359_v60 = vpop.f32.mrb[71].mxu0 }
0x142c   : > { %v16427_v62 = vpack.c.bf16 %v15148_v52, %v6147_v59  ;;  %v16443_v32 = vpack.c.bf16 %v20357_v58, %v20359_v60  ;;  %v12574_v52 = vld [vmem:[%s23336_s14 + $0xb0] sm:$0xff]  ;;  %v12573_v58 = vld [vmem:[%s23336_s14 + $0xa8] sm:$0xff] }
0x142e   : > { %v15155_v63 = vpop.f32.mrb[72].mxu1  ;;  %v15185_v4 = vpop.f32.mrb[72].mxu0 }
0x142f   : > { %v6222_v5 = vpop.f32.mrb[73].mxu1  ;;  %v6477_v9 = vpop.f32.mrb[73].mxu0 }
0x1430   : > { %v16431_v6 = vpack.c.bf16 %v15155_v63, %v6222_v5  ;;  %v16421_v16 = vpack.c.bf16 %v15185_v4, %v6477_v9 }
0x1432   : > { %v15158_v33 = vpop.f32.mrb[74].mxu1  ;;  %v15188_v21 = vpop.f32.mrb[74].mxu0  ;;  %16422 = vmatprep.subr.bf16.mxu1 %v16421_v16 }
0x1433   : > { %v6232_v22 = vpop.f32.mrb[75].mxu1  ;;  %v6487_v24 = vpop.f32.mrb[75].mxu0  ;;  %16424 = vmatpush3.bf16.msra.mxu1 %v16423_v7  ;;  %v12571_v7 = vld [vmem:[%s23336_s14 + $0x98] sm:$0xff] }
0x1434   : > { %v16435_v1 = vpack.c.bf16 %v15158_v33, %v6232_v22  ;;  %v16425_v25 = vpack.c.bf16 %v15188_v21, %v6487_v24 }
0x1436   : > { %v15175_v2 = vpop.f32.mrb[76].mxu1  ;;  %v15205_v23 = vpop.f32.mrb[76].mxu0  ;;  %16426 = vmatprep.subr.bf16.mxu1 %v16425_v25 }
0x1437   : > { %v6392_v26 = vpop.f32.mrb[77].mxu1  ;;  %v6647_v28 = vpop.f32.mrb[77].mxu0  ;;  %16428 = vmatpush3.bf16.msra.mxu1 %v16427_v62 }
0x1438   : > { %v16447_v29 = vpack.c.bf16 %v15175_v2, %v6392_v26  ;;  %v16437_v30 = vpack.c.bf16 %v15205_v23, %v6647_v28 }
0x143a   : > { %v15178_v34 = vpop.f32.mrb[78].mxu1  ;;  %v15208_v35 = vpop.f32.mrb[78].mxu0 }
0x143b   : > { %v6402_v36 = vpop.f32.mrb[79].mxu1  ;;  %v6657_v37 = vpop.f32.mrb[79].mxu0 }
0x143c   : > { %v16451_v39 = vpack.c.bf16 %v15178_v34, %v6402_v36  ;;  %v16441_v11 = vpack.c.bf16 %v15208_v35, %v6657_v37  ;;  %v12617_v36 = vld [vmem:[%s23337_s15 + $0x88] sm:$0xff]  ;;  %v12616_v37 = vld [vmem:[%s23337_s15 + $0x80] sm:$0xff] }
0x143e   : > { %v15195_v40 = vpop.f32.mrb[80].mxu1  ;;  %v15225_v41 = vpop.f32.mrb[80].mxu0 }
0x143f   : > { %v6562_v27 = vpop.f32.mrb[81].mxu1  ;;  %v6817_v42 = vpop.f32.mrb[81].mxu0 }
0x1440   : > { %v16429_v0 = vpack.c.bf16 %v15195_v40, %v6562_v27  ;;  %v16453_v31 = vpack.c.bf16 %v15225_v41, %v6817_v42  ;;  %v12618_v40 = vld [vmem:[%s23337_s15 + $0x90] sm:$0xff]  ;;  %v12619_v41 = vld [vmem:[%s23337_s15 + $0x98] sm:$0xff] }
0x1442   : > { %v15198_v46 = vpop.f32.mrb[82].mxu1  ;;  %v15228_v38 = vpop.f32.mrb[82].mxu0  ;;  %16430 = vmatprep.subr.bf16.mxu1 %v16429_v0  ;;  %16454 = vmatprep.subr.bf16.mxu0 %v16453_v31 }
0x1443   : > { %v6572_v45 = vpop.f32.mrb[83].mxu1  ;;  %v6827_v49 = vpop.f32.mrb[83].mxu0  ;;  %16432 = vmatpush3.bf16.msra.mxu1 %v16431_v6  ;;  %16456 = vmatpush3.bf16.msra.mxu0 %v16453_v31 }
0x1444   : > { %v16433_v50 = vpack.c.bf16 %v15198_v46, %v6572_v45  ;;  %v16457_v53 = vpack.c.bf16 %v15228_v38, %v6827_v49 }
0x1446   : > { %v15215_v54 = vpop.f32.mrb[84].mxu1  ;;  %16434 = vmatprep.subr.bf16.mxu1 %v16433_v50  ;;  %16458 = vmatprep.subr.bf16.mxu0 %v16457_v53 }
0x1447   : > { %v6732_v55 = vpop.f32.mrb[85].mxu1  ;;  %16436 = vmatpush3.bf16.msra.mxu1 %v16435_v1  ;;  %16460 = vmatpush3.bf16.msra.mxu0 %v16457_v53 }
0x1448   : > { %v16445_v47 = vpack.c.bf16 %v15215_v54, %v6732_v55  ;;  %16438 = vmatprep.subr.bf16.mxu1 %v16437_v30 }
0x144a   : > { %v15218_v57 = vpop.f32.mrb[86].mxu1  ;;  %15238 = vmatmul.mubr.msk.f32.vlgmr.msra.gmra.mrb[84].mxu0 %vm4289_vm4, %v12569_v56 }
0x144b   : > { %v6742_v12 = vpop.f32.mrb[87].mxu1  ;;  %16440 = vmatpush3.bf16.msra.mxu1 %v16439_v51  ;;  %15240 = vmatprep.mubr.msk.f32.mxu0 %vm4289_vm4, %v12572_v48  ;;  %v12570_v51 = vld [vmem:[%s23336_s14 + $0x90] sm:$0xff] }
0x144c   : > { %v16449_v20 = vpack.c.bf16 %v15218_v57, %v6742_v12  ;;  %16442 = vmatprep.subr.bf16.mxu1 %v16441_v11  ;;  %v12621_v11 = vld [vmem:[%s23338_s16 + $0x88] sm:$0xff] }
0x144e   : > { %15241 = vmatmul.mubr.msk.f32.gmra.mrb[86].mxu0 %vm4289_vm4, %v12575_v14 }
0x144f   : > { %16444 = vmatpush3.bf16.msra.mxu1 %v16443_v32 }
0x1450   : > { %16446 = vmatprep.subr.bf16.mxu1 %v16445_v47 }
0x1453   : > { %16448 = vmatpush3.bf16.msra.mxu1 %v16447_v29 }
0x1454   : > { %16450 = vmatprep.subr.bf16.mxu1 %v16449_v20 }
0x1457   : > { %16452 = vmatpush3.bf16.msra.mxu1 %v16451_v39  ;;  %v12620_v39 = vld [vmem:[%s23338_s16 + $0x80] sm:$0xff] }
0x145a   : > { %6913 = vmatmul.mubr.f32.vlgmr.msra.gmra.mrb[88].mxu1 %v12564_v3 }
0x145b   : > { %6917 = vmatprep.mubr.f32.mxu1 %v12568_v13  ;;  %v12622_v13 = vld [vmem:[%s23338_s16 + $0x90] sm:$0xff] }
0x145e   : > { %6918 = vmatmul.mubr.f32.gmra.mrb[90].mxu1 %v12567_v19  ;;  %v12623_v19 = vld [vmem:[%s23338_s16 + $0x98] sm:$0xff] }
0x145f   : > { %6922 = vmatprep.mubr.f32.mxu1 %v12571_v7  ;;  %v12624_v7 = vld [vmem:[%s23335_s13 + $0x60] sm:$0xff] }
0x1460   : > { %15251 = vmatprep.mubr.msk.f32.mxu0 %vm4289_vm4, %v12624_v7  ;;  %v12632_v7 = vld [vmem:[%s23337_s15 + $0xa0] sm:$0xff] }
0x1462   : > { %6923 = vmatmul.mubr.f32.gmra.mrb[92].mxu1 %v12570_v51 }
0x1463   : > { %6927 = vmatprep.mubr.f32.mxu1 %v12574_v52 }
0x1466   : > { %6928 = vmatmul.mubr.f32.gmra.mrb[94].mxu1 %v12573_v58 }
0x151d   : > { %v15239_v59 = vpop.f32.mrb[84].mxu0 }
0x151e   : > { %v6999_v60 = vpop.f32.mrb[85].mxu0 }
0x1521   : > { %v15242_v62 = vpop.f32.mrb[86].mxu0 }
0x1522   : > { %v7009_v32 = vpop.f32.mrb[87].mxu0 }
0x152d   : > { %v14454_v63 = vpop.f32.mrb[88].mxu1 }
0x152e   : > { %v14455_v4 = vpop.f32.mrb[89].mxu1 }
0x152f   : > { %v14456_v5 = vadd.f32 %v14455_v4, %v14454_v63 }
0x1531   : > { %v7000_v9 = vadd.f32 %v14456_v5, %v6999_v60  ;;  %v14457_v6 = vpop.f32.mrb[90].mxu1 }
0x1532   : > { %v14458_v16 = vpop.f32.mrb[91].mxu1 }
0x1533   : > { %v14459_v33 = vadd.f32 %v14458_v16, %v14457_v6  ;;  %v7028_v21 = vsel %vm4179_vm3, %v7000_v9, 0.0 }
0x1534   : > { %7029 = vadd.xlane.f32.xlu1 %v7028_v21 }
0x1535   : > { %v14460_v22 = vpop.f32.mrb[92].mxu1  ;;  %v7005_v24 = vadd.f32 %v15239_v59, %v14459_v33 }
0x1536   : > { %v14461_v1 = vpop.f32.mrb[93].mxu1 }
0x1537   : > { %v14462_v25 = vadd.f32 %v14461_v1, %v14460_v22  ;;  %v7031_v2 = vsel %vm4179_vm3, %v7005_v24, 0.0 }
0x1538   : > { %7032 = vadd.xlane.f32.xlu0 %v7031_v2 }
0x1539   : > { %v7010_v23 = vadd.f32 %v14462_v25, %v7009_v32  ;;  %v14463_v26 = vpop.f32.mrb[94].mxu1 }
0x153a   : > { %v14464_v28 = vpop.f32.mrb[95].mxu1 }
0x153b   : > { %v14465_v29 = vadd.f32 %v14464_v28, %v14463_v26  ;;  %v7034_v30 = vsel %vm4179_vm3, %v7010_v23, 0.0 }
0x153c   : > { %7035 = vadd.xlane.f32.xlu0 %v7034_v30 }
0x153d   : > { %v7015_v34 = vadd.f32 %v15242_v62, %v14465_v29 }
0x153f   : > { %v7037_v35 = vsel %vm4179_vm3, %v7015_v34, 0.0 }
0x1540   : > { %7038 = vadd.xlane.f32.xlu1 %v7037_v35 }
0x1551   : > { %7087 = vperm.xlu1 %17441, %v12617_v36  }
0x1552   : > { %7082 = vperm.xlu0 %17442, %v12616_v37  }
0x1555   : > { %7106 = vperm.xlu1 %17441, %v12620_v39  }
0x1556   : > { %7111 = vperm.xlu0 %17442, %v12621_v11  }
0x1559   : > { %7092 = vperm.xlu1 %17441, %v12618_v40  }
0x155a   : > { %7097 = vperm.xlu0 %17442, %v12619_v41  }
0x15c1   : > { %v7030_v27 = vpop.xlane.xlu1 %7029 }
0x15c2   : > { %v7040_v42 = vmul.f32 0.0625, %v7030_v27 }
0x15c4   : > { %v7044_v0 = vsub.f32 %v7000_v9, %v7040_v42 }
0x15c5   : > { %v7033_v31 = vpop.xlane.xlu0 %7032 }
0x15c6   : > { %v7041_v46 = vmul.f32 0.0625, %v7033_v31  ;;  %v7048_v38 = vmul.f32 %v7044_v0, %v7044_v0 }
0x15c8   : > { %v7045_v45 = vsub.f32 %v7005_v24, %v7041_v46  ;;  %v7052_v49 = vsel %vm4179_vm3, %v7048_v38, 0.0 }
0x15c9   : > { %v7036_v50 = vpop.xlane.xlu0 %7035  ;;  %7053 = vadd.xlane.f32.xlu0 %v7052_v49 }
0x15ca   : > { %v7042_v53 = vmul.f32 0.0625, %v7036_v50  ;;  %v7049_v54 = vmul.f32 %v7045_v45, %v7045_v45 }
0x15cc   : > { %v7046_v55 = vsub.f32 %v7010_v23, %v7042_v53  ;;  %v7055_v56 = vsel %vm4179_vm3, %v7049_v54, 0.0  ;;  %v12625_v53 = vld [vmem:[%s23335_s13 + $0x68] sm:$0xff]  ;;  %v12626_v54 = vld [vmem:[%s23335_s13 + $0x70] sm:$0xff] }
0x15cd   : > { %7056 = vadd.xlane.f32.xlu1 %v7055_v56  ;;  %v7039_v47 = vpop.xlane.xlu1 %7038 }
0x15ce   : > { %v7043_v48 = vmul.f32 0.0625, %v7039_v47  ;;  %v7050_v57 = vmul.f32 %v7046_v55, %v7046_v55 }
0x15d0   : > { %v7047_v12 = vsub.f32 %v7015_v34, %v7043_v48  ;;  %v7058_v14 = vsel %vm4179_vm3, %v7050_v57, 0.0 }
0x15d1   : > { %7059 = vadd.xlane.f32.xlu0 %v7058_v14  ;;  %v7083_v51 = vpop.permute.xlu0 %7082  ;;  %v7088_v52 = vpop.permute.xlu1 %7087 }
0x15d2   : > { %v7051_v20 = vmul.f32 %v7047_v12, %v7047_v12 }
0x15d4   : > { %v7061_v3 = vsel %vm4179_vm3, %v7051_v20, 0.0 }
0x15d5   : > { %7062 = vadd.xlane.f32.xlu1 %v7061_v3  ;;  %v7112_v58 = vpop.permute.xlu0 %7111  ;;  %v7107_v59 = vpop.permute.xlu1 %7106 }
0x15d9   : > { %v7098_v60 = vpop.permute.xlu0 %7097  ;;  %v7093_v62 = vpop.permute.xlu1 %7092 }
0x15e6   : > { %7116 = vperm.xlu1 %17441, %v12622_v13   ;;  %v12633_v13 = vld [vmem:[%s23337_s15 + $0xa8] sm:$0xff] }
0x15e7   : > { %7121 = vperm.xlu0 %17442, %v12623_v19   ;;  %v12636_v19 = vld [vmem:[%s23338_s16 + $0xa0] sm:$0xff] }
0x1656   : > { %v7054_v32 = vpop.xlane.xlu0 %7053 }
0x1657   : > { %v7064_v63 = vmul.f32 0.0625, %v7054_v32 }
0x1659   : > { %v7068_v4 = vadd.f32 1e-05, %v7064_v63 }
0x165a   : > { %v7057_v5 = vpop.xlane.xlu1 %7056 }
0x165b   : > { %17489 = vrsqrt.f32 %v7068_v4  ;;  %v7065_v9 = vmul.f32 0.0625, %v7057_v5 }
0x165d   : > { %v7069_v6 = vadd.f32 1e-05, %v7065_v9 }
0x165e   : > { %v7060_v16 = vpop.xlane.xlu0 %7059 }
0x165f   : > { %17491 = vrsqrt.f32 %v7069_v6  ;;  %v7066_v33 = vmul.f32 0.0625, %v7060_v16 }
0x1661   : > { %v7070_v21 = vadd.f32 1e-05, %v7066_v33 }
0x1662   : > { %v7063_v22 = vpop.xlane.xlu1 %7062 }
0x1663   : > { %17493 = vrsqrt.f32 %v7070_v21  ;;  %v7067_v24 = vmul.f32 0.0625, %v7063_v22 }
0x1665   : > { %v17490_v1 = vpop.eup %17489  ;;  %v7071_v25 = vadd.f32 1e-05, %v7067_v24 }
0x1666   : > { %v7076_v2 = vmul.f32 %v17490_v1, %v7044_v0  ;;  %v7117_v42 = vpop.permute.xlu1 %7116  ;;  %v7122_v0 = vpop.permute.xlu0 %7121 }
0x1667   : > { %17495 = vrsqrt.f32 %v7071_v25 }
0x1668   : > { %v7100_v23 = vmul.f32 %v7083_v51, %v7076_v2  ;;  %v12634_v51 = vld [vmem:[%s23337_s15 + $0xb0] sm:$0xff] }
0x1669   : > { %v17492_v26 = vpop.eup %17491 }
0x166a   : > { %v7077_v28 = vmul.f32 %v17492_v26, %v7045_v45  ;;  %v7124_v30 = vadd.f32 %v7107_v59, %v7100_v23 }
0x166c   : > { %v7101_v29 = vmul.f32 %v7088_v52, %v7077_v28  ;;  %v7128_v39 = vmax.f32 %v7124_v30, 0.0  ;;  %v12637_v52 = vld [vmem:[%s23338_s16 + $0xa8] sm:$0xff]  ;;  %v12639_v30 = vld [vmem:[%s23338_s16 + $0xb8] sm:$0xff] }
0x166d   : > { %v17494_v34 = vpop.eup %17493 }
0x166e   : > { %v7078_v35 = vmul.f32 %v17494_v34, %v7046_v55  ;;  %v7125_v36 = vadd.f32 %v7112_v58, %v7101_v29  ;;  %v12627_v55 = vld [vmem:[%s23335_s13 + $0x78] sm:$0xff]  ;;  %v12638_v29 = vld [vmem:[%s23338_s16 + $0xb0] sm:$0xff]  ;;  %v7360_v34 = vld [vmem:[%s23339_s17] sm:$0xff] }
0x166f   : > { %v12635_v58 = vld [vmem:[%s23337_s15 + $0xb8] sm:$0xff] }
0x1670   : > { %v7102_v37 = vmul.f32 %v7093_v62, %v7078_v35  ;;  %v7129_v11 = vmax.f32 %v7125_v36, 0.0  ;;  %v7361_v35 = vld [vmem:[%s23339_s17 + $0x8] sm:$0xff]  ;;  %v12656_v36 = vld [vmem:[%s23339_s17 + $0x30] sm:$0xff] }
0x1671   : > { %v17496_v40 = vpop.eup %17495 }
0x1672   : > { %v7079_v41 = vmul.f32 %v17496_v40, %v7047_v12  ;;  %v16461_v27 = vpack.c.bf16 %v7129_v11, %v7128_v39  ;;  %v7126_v46 = vadd.f32 %v7117_v42, %v7102_v37  ;;  %v16469_v37 = vpack.c.bf16 %v7361_v35, %v7360_v34  ;;  %v12657_v39 = vld [vmem:[%s23339_s17 + $0x38] sm:$0xff]  ;;  %v12644_v40 = vld [vmem:[%s23339_s17 + $0x10] sm:$0xff] }
0x1673   : > { %v16481_v11 = vpack.c.bf16 %v12657_v39, %v12656_v36  ;;  %v12693_v35 = vld [vmem:[%s23339_s17 + $0x98] sm:$0xff]  ;;  %v12674_v39 = vld [vmem:[%s23339_s17 + $0x60] sm:$0xff] }
0x1674   : > { %v7103_v31 = vmul.f32 %v7098_v60, %v7079_v41  ;;  %16462 = vmatprep.subr.bf16.mxu0 %v16461_v27  ;;  %v7130_v45 = vmax.f32 %v7126_v46, 0.0  ;;  %v12645_v41 = vld [vmem:[%s23339_s17 + $0x18] sm:$0xff] }
0x1675   : > { %16464 = vmatpush3.bf16.msra.mxu0 %v16461_v27  ;;  %16482 = vmatprep.subr.bf16.mxu1 %v16481_v11  ;;  %v12668_v27 = vld [vmem:[%s23339_s17 + $0x50] sm:$0xff]  ;;  %v16473_v42 = vpack.c.bf16 %v12645_v41, %v12644_v40  ;;  %v12705_v41 = vld [vmem:[%s23339_s17 + $0xb8] sm:$0xff] }
0x1676   : > { %v7127_v38 = vadd.f32 %v7122_v0, %v7103_v31  ;;  %16484 = vmatpush3.bf16.msra.mxu1 %v16481_v11  ;;  %v12669_v31 = vld [vmem:[%s23339_s17 + $0x58] sm:$0xff]  ;;  %v12675_v11 = vld [vmem:[%s23339_s17 + $0x68] sm:$0xff]  ;;  %v12704_v40 = vld [vmem:[%s23339_s17 + $0xb0] sm:$0xff] }
0x1677   : > { %v16489_v46 = vpack.c.bf16 %v12669_v31, %v12668_v27  ;;  %v16493_v27 = vpack.c.bf16 %v12675_v11, %v12674_v39  ;;  %v12686_v31 = vld [vmem:[%s23339_s17 + $0x80] sm:$0xff] }
0x1678   : > { %v7131_v49 = vmax.f32 %v7127_v38, 0.0 }
0x1679   : > { %16490 = vmatprep.subr.bf16.mxu1 %v16489_v46 }
0x167a   : > { %v16465_v50 = vpack.c.bf16 %v7131_v49, %v7130_v45 }
0x167c   : > { %16466 = vmatprep.subr.bf16.mxu0 %v16465_v50 }
0x167d   : > { %16468 = vmatpush3.bf16.msra.mxu0 %v16465_v50 }
0x167e   : > { %16470 = vmatprep.subr.bf16.mxu0 %v16469_v37 }
0x1680   : > { %15252 = vmatmul.mubr.msk.f32.vlgmr.msra.gmra.mrb[88].mxu0 %vm4289_vm4, %v12625_v53 }
0x1681   : > { %15254 = vmatprep.mubr.msk.f32.mxu0 %vm4289_vm4, %v12626_v54  ;;  %16472 = vmatpush3.bf16.msra.mxu0 %v16469_v37 }
0x1682   : > { %16474 = vmatprep.subr.bf16.mxu0 %v16473_v42 }
0x1684   : > { %15255 = vmatmul.mubr.msk.f32.gmra.mrb[90].mxu0 %vm4289_vm4, %v12627_v55 }
0x1753   : > { %v15253_v56 = vpop.f32.mrb[88].mxu0 }
0x1754   : > { %v7215_v47 = vpop.f32.mrb[89].mxu0  ;;  %v7247_v48 = vsel %vm4179_vm3, %v15253_v56, 0.0 }
0x1755   : > { %7248 = vadd.xlane.f32.xlu0 %v7247_v48  ;;  %v7244_v57 = vsel %vm4179_vm3, %v7215_v47, 0.0 }
0x1756   : > { %7245 = vadd.xlane.f32.xlu1 %v7244_v57 }
0x1757   : > { %v15256_v12 = vpop.f32.mrb[90].mxu0 }
0x1758   : > { %v7225_v14 = vpop.f32.mrb[91].mxu0  ;;  %v7253_v20 = vsel %vm4179_vm3, %v15256_v12, 0.0 }
0x1759   : > { %v7250_v3 = vsel %vm4179_vm3, %v7225_v14, 0.0 }
0x175a   : > { %7254 = vadd.xlane.f32.xlu1 %v7253_v20  ;;  %7251 = vadd.xlane.f32.xlu0 %v7250_v3 }
0x176b   : > { %7303 = vperm.xlu1 %17441, %v12633_v13  }
0x176f   : > { %7322 = vperm.xlu1 %17441, %v12636_v19  }
0x1770   : > { %7298 = vperm.xlu0 %17442, %v12632_v7  }
0x1773   : > { %7308 = vperm.xlu1 %17441, %v12634_v51  }
0x1774   : > { %7327 = vperm.xlu0 %17442, %v12637_v52  }
0x1778   : > { %7313 = vperm.xlu0 %17442, %v12635_v58  }
0x17e2   : > { %v7249_v59 = vpop.xlane.xlu0 %7248 }
0x17e3   : > { %v7257_v60 = vmul.f32 0.0625, %v7249_v59  ;;  %v7246_v62 = vpop.xlane.xlu1 %7245 }
0x17e4   : > { %v7256_v32 = vmul.f32 0.0625, %v7246_v62 }
0x17e5   : > { %v20472_v63 = vsub.f32 %v15253_v56, %v7257_v60 }
0x17e6   : > { %v20474_v4 = vsub.f32 %v7215_v47, %v7256_v32 }
0x17e7   : > { %v7255_v5 = vpop.xlane.xlu1 %7254  ;;  %v7252_v9 = vpop.xlane.xlu0 %7251  ;;  %v7265_v6 = vmul.f32 %v20472_v63, %v20472_v63 }
0x17e8   : > { %v7259_v16 = vmul.f32 0.0625, %v7255_v5  ;;  %v7258_v33 = vmul.f32 0.0625, %v7252_v9  ;;  %v7264_v21 = vmul.f32 %v20474_v4, %v20474_v4 }
0x17e9   : > { %v7271_v22 = vsel %vm4179_vm3, %v7265_v6, 0.0 }
0x17ea   : > { %v20481_v24 = vsub.f32 %v15256_v12, %v7259_v16  ;;  %v20483_v1 = vsub.f32 %v7225_v14, %v7258_v33  ;;  %7272 = vadd.xlane.f32.xlu1 %v7271_v22  ;;  %v7268_v25 = vsel %vm4179_vm3, %v7264_v21, 0.0  ;;  %v12650_v21 = vld [vmem:[%s23339_s17 + $0x20] sm:$0xff]  ;;  %v12651_v22 = vld [vmem:[%s23339_s17 + $0x28] sm:$0xff] }
0x17eb   : > { %7269 = vadd.xlane.f32.xlu0 %v7268_v25  ;;  %v7304_v0 = vpop.permute.xlu1 %7303 }
0x17ec   : > { %v7267_v2 = vmul.f32 %v20481_v24, %v20481_v24  ;;  %v7266_v23 = vmul.f32 %v20483_v1, %v20483_v1 }
0x17ee   : > { %v7277_v26 = vsel %vm4179_vm3, %v7267_v2, 0.0  ;;  %v7274_v28 = vsel %vm4179_vm3, %v7266_v23, 0.0 }
0x17ef   : > { %7278 = vadd.xlane.f32.xlu1 %v7277_v26  ;;  %7275 = vadd.xlane.f32.xlu0 %v7274_v28  ;;  %v7299_v38 = vpop.permute.xlu0 %7298  ;;  %v7323_v49 = vpop.permute.xlu1 %7322  ;;  %v16477_v26 = vpack.c.bf16 %v12651_v22, %v12650_v21 }
0x17f3   : > { %v7328_v45 = vpop.permute.xlu0 %7327  ;;  %v7309_v50 = vpop.permute.xlu1 %7308 }
0x17f7   : > { %v7314_v53 = vpop.permute.xlu0 %7313 }
0x1800   : > { %7332 = vperm.xlu1 %17441, %v12638_v29  }
0x1805   : > { %7337 = vperm.xlu0 %17442, %v12639_v30  }
0x1877   : > { %v7273_v54 = vpop.xlane.xlu1 %7272 }
0x1878   : > { %v7281_v55 = vmul.f32 0.0625, %v7273_v54  ;;  %v7270_v56 = vpop.xlane.xlu0 %7269  ;;  %v12728_v54 = vld [vmem:[%s23339_s17 + $0xf0] sm:$0xff] }
0x1879   : > { %v7280_v47 = vmul.f32 0.0625, %v7270_v56 }
0x187a   : > { %v7285_v48 = vadd.f32 1e-05, %v7281_v55  ;;  %v12729_v55 = vld [vmem:[%s23339_s17 + $0xf8] sm:$0xff] }
0x187b   : > { %v7284_v57 = vadd.f32 1e-05, %v7280_v47  ;;  %v16529_v47 = vpack.c.bf16 %v12729_v55, %v12728_v54 }
0x187c   : > { %17497 = vrsqrt.f32 %v7285_v48  ;;  %v7279_v12 = vpop.xlane.xlu1 %7278  ;;  %v7276_v14 = vpop.xlane.xlu0 %7275  ;;  %v12710_v48 = vld [vmem:[%s23339_s17 + $0xc0] sm:$0xff] }
0x187d   : > { %17499 = vrsqrt.f32 %v7284_v57  ;;  %v7283_v20 = vmul.f32 0.0625, %v7279_v12  ;;  %v7282_v3 = vmul.f32 0.0625, %v7276_v14  ;;  %v12711_v57 = vld [vmem:[%s23339_s17 + $0xc8] sm:$0xff]  ;;  %v12722_v14 = vld [vmem:[%s23339_s17 + $0xe0] sm:$0xff] }
0x187e   : > { %v16517_v12 = vpack.c.bf16 %v12711_v57, %v12710_v48 }
0x187f   : > { %v7287_v13 = vadd.f32 1e-05, %v7283_v20  ;;  %v7286_v19 = vadd.f32 1e-05, %v7282_v3  ;;  %v12723_v20 = vld [vmem:[%s23339_s17 + $0xe8] sm:$0xff] }
0x1880   : > { %v7333_v2 = vpop.permute.xlu1 %7332  ;;  %v16525_v3 = vpack.c.bf16 %v12723_v20, %v12722_v14 }
0x1881   : > { %17501 = vrsqrt.f32 %v7287_v13  ;;  %v7353_v13 = vld [vmem:[%s23340_s18 + $0x8] sm:$0xff] }
0x1882   : > { %17503 = vrsqrt.f32 %v7286_v19  ;;  %v7355_v19 = vld [vmem:[%s23340_s18 + $0x18] sm:$0xff] }
0x1886   : > { %v17498_v7 = vpop.eup %17497 }
0x1887   : > { %v17500_v51 = vpop.eup %17499  ;;  %v7293_v52 = vmul.f32 %v17498_v7, %v20472_v63 }
0x1888   : > { %v7292_v58 = vmul.f32 %v17500_v51, %v20474_v4 }
0x1889   : > { %v7317_v59 = vmul.f32 %v7304_v0, %v7293_v52  ;;  %v12716_v0 = vld [vmem:[%s23339_s17 + $0xd0] sm:$0xff] }
0x188a   : > { %v7316_v60 = vmul.f32 %v7299_v38, %v7292_v58  ;;  %v12717_v38 = vld [vmem:[%s23339_s17 + $0xd8] sm:$0xff] }
0x188b   : > { %v17502_v62 = vpop.eup %17501  ;;  %v7341_v32 = vadd.f32 %v7328_v45, %v7317_v59  ;;  %v16521_v45 = vpack.c.bf16 %v12717_v38, %v12716_v0 }
0x188c   : > { %v17504_v5 = vpop.eup %17503  ;;  %v7340_v9 = vadd.f32 %v7323_v49, %v7316_v60  ;;  %v7295_v6 = vmul.f32 %v17502_v62, %v20481_v24  ;;  %v12680_v24 = vld [vmem:[%s23339_s17 + $0x70] sm:$0xff] }
0x188d   : > { %v7345_v16 = vadd.f32 %v7341_v32, %v5827_v8  ;;  %v7294_v33 = vmul.f32 %v17504_v5, %v20483_v1  ;;  %v7338_v1 = vpop.permute.xlu0 %7337  ;;  %v16497_v28 = vpack.c.bf16 %v12681_v10, %v12680_v24 }
0x188e   : > { %v7344_v63 = vadd.f32 %v7340_v9, %v5826_v44  ;;  %v7319_v4 = vmul.f32 %v7314_v53, %v7295_v6  ;;  %v12699_v53 = vld [vmem:[%s23339_s17 + $0xa8] sm:$0xff] }
0x188f   : > { %v7318_v8 = vmul.f32 %v7309_v50, %v7294_v33  ;;  %v20544_v44 = vmax.f32 %v7345_v16, 0.0  ;;  %v12698_v50 = vld [vmem:[%s23339_s17 + $0xa0] sm:$0xff] }
0x1890   : > { %v20542_v25 = vmax.f32 %v7344_v63, 0.0  ;;  %v7343_v43 = vadd.f32 %v7338_v1, %v7319_v4  ;;  %v16509_v56 = vpack.c.bf16 %v12699_v53, %v12698_v50 }
0x1891   : > { %v7342_v23 = vadd.f32 %v7333_v2, %v7318_v8 }
0x1892   : > { %v7347_v29 = vadd.f32 %v7343_v43, %v5829_v17  ;;  %15261 = vmatprep.mubr.msk.f32.mxu0 %vm4179_vm3, %v20542_v25  ;;  %15291 = vmatprep.mubr.msk.f32.mxu1 %vm4179_vm3, %v20542_v25  ;;  %v12663_v17 = vld [vmem:[%s23339_s17 + $0x48] sm:$0xff] }
0x1893   : > { %v7346_v30 = vadd.f32 %v7342_v23, %v5828_v18  ;;  %15262 = vmatmul.mubr.msk.f32.vlgmr.msra.gmra.mrb[92].mxu0 %vm4179_vm3, %v20544_v44  ;;  %15292 = vmatmul.mubr.msk.f32.vlgmr.msra.gmra.mrb[96].mxu1 %vm4179_vm3, %v20544_v44  ;;  %v12692_v18 = vld [vmem:[%s23339_s17 + $0x90] sm:$0xff]  ;;  %v16485_v36 = vpack.c.bf16 %v12663_v17, %v12662_v15 }
0x1894   : > { %v20558_v34 = vmax.f32 %v7347_v29, 0.0  ;;  %16476 = vmatpush3.bf16.msra.mxu0 %v16473_v42  ;;  %16492 = vmatpush3.bf16.msra.mxu1 %v16489_v46  ;;  %v16505_v37 = vpack.c.bf16 %v12693_v35, %v12692_v18  ;;  %v16513_v42 = vpack.c.bf16 %v12705_v41, %v12704_v40  ;;  %v12687_v46 = vld [vmem:[%s23339_s17 + $0x88] sm:$0xff] }
0x1895   : > { %v20560_v61 = vmax.f32 %v7346_v30, 0.0  ;;  %16478 = vmatprep.subr.bf16.mxu0 %v16477_v26  ;;  %16498 = vmatprep.subr.bf16.mxu1 %v16497_v28  ;;  %v16501_v49 = vpack.c.bf16 %v12687_v46, %v12686_v31 }
0x1897   : > { %15264 = vmatprep.mubr.msk.f32.mxu0 %vm4179_vm3, %v20560_v61  ;;  %15294 = vmatprep.mubr.msk.f32.mxu1 %vm4179_vm3, %v20560_v61 }
0x1898   : > { %15265 = vmatmul.mubr.msk.f32.gmra.mrb[94].mxu0 %vm4179_vm3, %v20558_v34  ;;  %15295 = vmatmul.mubr.msk.f32.gmra.mrb[98].mxu1 %vm4179_vm3, %v20558_v34 }
0x1899   : > { %15271 = vmatprep.mubr.msk.f32.mxu0 %vm4179_vm3, %v20542_v25  ;;  %15311 = vmatprep.mubr.msk.f32.mxu1 %vm4179_vm3, %v20542_v25 }
0x189c   : > { %15272 = vmatmul.mubr.msk.f32.vlgmr.msra.gmra.mrb[96].mxu0 %vm4179_vm3, %v20544_v44  ;;  %15312 = vmatmul.mubr.msk.f32.vlgmr.msra.gmra.mrb[100].mxu1 %vm4179_vm3, %v20544_v44 }
0x189d   : > { %15274 = vmatprep.mubr.msk.f32.mxu0 %vm4179_vm3, %v20560_v61  ;;  %16480 = vmatpush3.bf16.msra.mxu0 %v16477_v26 }
0x189e   : > { %15314 = vmatprep.mubr.msk.f32.mxu1 %vm4179_vm3, %v20560_v61  ;;  %16500 = vmatpush3.bf16.msra.mxu1 %v16497_v28 }
0x189f   : > { %16486 = vmatprep.subr.bf16.mxu0 %v16485_v36  ;;  %16506 = vmatprep.subr.bf16.mxu1 %v16505_v37 }
0x18a0   : > { %15275 = vmatmul.mubr.msk.f32.gmra.mrb[98].mxu0 %vm4179_vm3, %v20558_v34  ;;  %15315 = vmatmul.mubr.msk.f32.gmra.mrb[102].mxu1 %vm4179_vm3, %v20558_v34 }
0x18a1   : > { %15281 = vmatprep.mubr.msk.f32.mxu0 %vm4179_vm3, %v20542_v25  ;;  %15331 = vmatprep.mubr.msk.f32.mxu1 %vm4179_vm3, %v20542_v25 }
0x18a4   : > { %15282 = vmatmul.mubr.msk.f32.vlgmr.msra.gmra.mrb[100].mxu0 %vm4179_vm3, %v20544_v44  ;;  %15332 = vmatmul.mubr.msk.f32.vlgmr.msra.gmra.mrb[104].mxu1 %vm4179_vm3, %v20544_v44 }
0x18a5   : > { %15284 = vmatprep.mubr.msk.f32.mxu0 %vm4179_vm3, %v20560_v61  ;;  %16488 = vmatpush3.bf16.msra.mxu0 %v16485_v36 }
0x18a6   : > { %15334 = vmatprep.mubr.msk.f32.mxu1 %vm4179_vm3, %v20560_v61  ;;  %16508 = vmatpush3.bf16.msra.mxu1 %v16505_v37 }
0x18a7   : > { %16494 = vmatprep.subr.bf16.mxu0 %v16493_v27  ;;  %16514 = vmatprep.subr.bf16.mxu1 %v16513_v42 }
0x18a8   : > { %15285 = vmatmul.mubr.msk.f32.gmra.mrb[102].mxu0 %vm4179_vm3, %v20558_v34  ;;  %15335 = vmatmul.mubr.msk.f32.gmra.mrb[106].mxu1 %vm4179_vm3, %v20558_v34 }
0x18a9   : > { %15301 = vmatprep.mubr.msk.f32.mxu0 %vm4179_vm3, %v20542_v25  ;;  %15351 = vmatprep.mubr.msk.f32.mxu1 %vm4179_vm3, %v20542_v25 }
0x18ac   : > { %15302 = vmatmul.mubr.msk.f32.vlgmr.msra.gmra.mrb[104].mxu0 %vm4179_vm3, %v20544_v44  ;;  %15352 = vmatmul.mubr.msk.f32.vlgmr.msra.gmra.mrb[108].mxu1 %vm4179_vm3, %v20544_v44 }
0x18ad   : > { %15304 = vmatprep.mubr.msk.f32.mxu0 %vm4179_vm3, %v20560_v61  ;;  %16496 = vmatpush3.bf16.msra.mxu0 %v16493_v27 }
0x18ae   : > { %15354 = vmatprep.mubr.msk.f32.mxu1 %vm4179_vm3, %v20560_v61  ;;  %16516 = vmatpush3.bf16.msra.mxu1 %v16513_v42 }
0x18af   : > { %16502 = vmatprep.subr.bf16.mxu0 %v16501_v49  ;;  %16522 = vmatprep.subr.bf16.mxu1 %v16521_v45 }
0x18b0   : > { %15305 = vmatmul.mubr.msk.f32.gmra.mrb[106].mxu0 %vm4179_vm3, %v20558_v34  ;;  %15355 = vmatmul.mubr.msk.f32.gmra.mrb[110].mxu1 %vm4179_vm3, %v20558_v34 }
0x18b1   : > { %15321 = vmatprep.mubr.msk.f32.mxu0 %vm4179_vm3, %v20542_v25  ;;  %15371 = vmatprep.mubr.msk.f32.mxu1 %vm4179_vm3, %v20542_v25 }
0x18b4   : > { %15322 = vmatmul.mubr.msk.f32.vlgmr.msra.gmra.mrb[108].mxu0 %vm4179_vm3, %v20544_v44  ;;  %15372 = vmatmul.mubr.msk.f32.vlgmr.msra.gmra.mrb[112].mxu1 %vm4179_vm3, %v20544_v44 }
0x18b5   : > { %15324 = vmatprep.mubr.msk.f32.mxu0 %vm4179_vm3, %v20560_v61  ;;  %16504 = vmatpush3.bf16.msra.mxu0 %v16501_v49 }
0x18b6   : > { %15374 = vmatprep.mubr.msk.f32.mxu1 %vm4179_vm3, %v20560_v61  ;;  %16524 = vmatpush3.bf16.msra.mxu1 %v16521_v45 }
0x18b7   : > { %16510 = vmatprep.subr.bf16.mxu0 %v16509_v56  ;;  %16530 = vmatprep.subr.bf16.mxu1 %v16529_v47 }
0x18b8   : > { %15325 = vmatmul.mubr.msk.f32.gmra.mrb[110].mxu0 %vm4179_vm3, %v20558_v34  ;;  %15375 = vmatmul.mubr.msk.f32.gmra.mrb[114].mxu1 %vm4179_vm3, %v20558_v34 }
0x18b9   : > { %15341 = vmatprep.mubr.msk.f32.mxu0 %vm4179_vm3, %v20542_v25  ;;  %15391 = vmatprep.mubr.msk.f32.mxu1 %vm4179_vm3, %v20542_v25 }
0x18bc   : > { %15342 = vmatmul.mubr.msk.f32.vlgmr.msra.gmra.mrb[112].mxu0 %vm4179_vm3, %v20544_v44  ;;  %15392 = vmatmul.mubr.msk.f32.vlgmr.msra.gmra.mrb[116].mxu1 %vm4179_vm3, %v20544_v44 }
0x18bd   : > { %15344 = vmatprep.mubr.msk.f32.mxu0 %vm4179_vm3, %v20560_v61  ;;  %16512 = vmatpush3.bf16.msra.mxu0 %v16509_v56 }
0x18be   : > { %15394 = vmatprep.mubr.msk.f32.mxu1 %vm4179_vm3, %v20560_v61  ;;  %16532 = vmatpush3.bf16.msra.mxu1 %v16529_v47 }
0x18bf   : > { %16518 = vmatprep.subr.bf16.mxu0 %v16517_v12 }
0x18c0   : > { %15345 = vmatmul.mubr.msk.f32.gmra.mrb[114].mxu0 %vm4179_vm3, %v20558_v34  ;;  %15395 = vmatmul.mubr.msk.f32.gmra.mrb[118].mxu1 %vm4179_vm3, %v20558_v34 }
0x18c1   : > { %15361 = vmatprep.mubr.msk.f32.mxu0 %vm4179_vm3, %v20542_v25  ;;  %15411 = vmatprep.mubr.msk.f32.mxu1 %vm4179_vm3, %v20542_v25 }
0x18c4   : > { %15362 = vmatmul.mubr.msk.f32.vlgmr.msra.gmra.mrb[116].mxu0 %vm4179_vm3, %v20544_v44  ;;  %15412 = vmatmul.mubr.msk.f32.vlgmr.msra.gmra.mrb[120].mxu1 %vm4179_vm3, %v20544_v44 }
0x18c5   : > { %15364 = vmatprep.mubr.msk.f32.mxu0 %vm4179_vm3, %v20560_v61  ;;  %16520 = vmatpush3.bf16.msra.mxu0 %v16517_v12 }
0x18c6   : > { %15414 = vmatprep.mubr.msk.f32.mxu1 %vm4179_vm3, %v20560_v61  ;;  %16526 = vmatprep.subr.bf16.mxu0 %v16525_v3 }
0x18c8   : > { %15365 = vmatmul.mubr.msk.f32.gmra.mrb[118].mxu0 %vm4179_vm3, %v20558_v34  ;;  %15415 = vmatmul.mubr.msk.f32.gmra.mrb[122].mxu1 %vm4179_vm3, %v20558_v34 }
0x18c9   : > { %15381 = vmatprep.mubr.msk.f32.mxu0 %vm4179_vm3, %v20542_v25  ;;  %8918 = vmatprep.mubr.f32.mxu1 %v7355_v19 }
0x18cc   : > { %15382 = vmatmul.mubr.msk.f32.vlgmr.msra.gmra.mrb[120].mxu0 %vm4179_vm3, %v20544_v44 }
0x18cd   : > { %15384 = vmatprep.mubr.msk.f32.mxu0 %vm4179_vm3, %v20560_v61  ;;  %16528 = vmatpush3.bf16.msra.mxu0 %v16525_v3 }
0x18d0   : > { %15385 = vmatmul.mubr.msk.f32.gmra.mrb[122].mxu0 %vm4179_vm3, %v20558_v34 }
0x18d1   : > { %15401 = vmatprep.mubr.msk.f32.mxu0 %vm4179_vm3, %v20542_v25 }
0x18d4   : > { %15402 = vmatmul.mubr.msk.f32.vlgmr.msra.gmra.mrb[124].mxu0 %vm4179_vm3, %v20544_v44 }
0x18d5   : > { %15404 = vmatprep.mubr.msk.f32.mxu0 %vm4179_vm3, %v20560_v61 }
0x18d8   : > { %15405 = vmatmul.mubr.msk.f32.gmra.mrb[126].mxu0 %vm4179_vm3, %v20558_v34 }
0x18d9   : > { %8843 = vmatprep.mubr.f32.mxu0 %v7353_v13 }
0x1966   : > { %v15263_v7 = vpop.f32.mrb[92].mxu0  ;;  %v20748_v51 = vpop.f32.mrb[96].mxu1 }
0x1967   : > { %v7440_v52 = vpop.f32.mrb[93].mxu0  ;;  %v20750_v58 = vpop.f32.mrb[97].mxu1 }
0x1968   : > { %v16535_v59 = vpack.c.bf16 %v15263_v7, %v7440_v52  ;;  %v16559_v60 = vpack.c.bf16 %v20748_v51, %v20750_v58  ;;  %v7357_v51 = vld [vmem:[%s23340_s18 + $0x28] sm:$0xff] }
0x196b   : > { %v15266_v62 = vpop.f32.mrb[94].mxu0  ;;  %v20754_v32 = vpop.f32.mrb[98].mxu1 }
0x196c   : > { %v7450_v5 = vpop.f32.mrb[95].mxu0  ;;  %v20756_v9 = vpop.f32.mrb[99].mxu1 }
0x196d   : > { %v16539_v6 = vpack.c.bf16 %v15266_v62, %v7450_v5  ;;  %v16563_v16 = vpack.c.bf16 %v20754_v32, %v20756_v9  ;;  %v7356_v32 = vld [vmem:[%s23340_s18 + $0x20] sm:$0xff] }
0x196f   : > { %v15273_v33 = vpop.f32.mrb[96].mxu0  ;;  %v15313_v21 = vpop.f32.mrb[100].mxu1 }
0x1970   : > { %v7528_v63 = vpop.f32.mrb[97].mxu0  ;;  %v7880_v4 = vpop.f32.mrb[101].mxu1 }
0x1971   : > { %v16543_v22 = vpack.c.bf16 %v15273_v33, %v7528_v63  ;;  %v16541_v24 = vpack.c.bf16 %v15313_v21, %v7880_v4 }
0x1973   : > { %v15276_v10 = vpop.f32.mrb[98].mxu0  ;;  %v15316_v8 = vpop.f32.mrb[102].mxu1 }
0x1974   : > { %v7538_v1 = vpop.f32.mrb[99].mxu0  ;;  %v7890_v25 = vpop.f32.mrb[103].mxu1 }
0x1975   : > { %v16547_v2 = vpack.c.bf16 %v15276_v10, %v7538_v1  ;;  %v16545_v43 = vpack.c.bf16 %v15316_v8, %v7890_v25 }
0x1977   : > { %v15283_v44 = vpop.f32.mrb[100].mxu0  ;;  %v20760_v23 = vpop.f32.mrb[104].mxu1 }
0x1978   : > { %v7616_v26 = vpop.f32.mrb[101].mxu0  ;;  %v20762_v28 = vpop.f32.mrb[105].mxu1 }
0x1979   : > { %v16551_v29 = vpack.c.bf16 %v15283_v44, %v7616_v26  ;;  %v16557_v30 = vpack.c.bf16 %v20760_v23, %v20762_v28 }
0x197b   : > { %v15286_v34 = vpop.f32.mrb[102].mxu0  ;;  %v20766_v61 = vpop.f32.mrb[106].mxu1 }
0x197c   : > { %v7626_v15 = vpop.f32.mrb[103].mxu0  ;;  %v20768_v17 = vpop.f32.mrb[107].mxu1 }
0x197d   : > { %v16555_v18 = vpack.c.bf16 %v15286_v34, %v7626_v15  ;;  %v16561_v35 = vpack.c.bf16 %v20766_v61, %v20768_v17 }
0x197f   : > { %v15303_v36 = vpop.f32.mrb[104].mxu0  ;;  %v20772_v37 = vpop.f32.mrb[108].mxu1 }
0x1980   : > { %v7792_v39 = vpop.f32.mrb[105].mxu0  ;;  %v20774_v11 = vpop.f32.mrb[109].mxu1 }
0x1981   : > { %v16533_v40 = vpack.c.bf16 %v15303_v36, %v7792_v39  ;;  %v16575_v41 = vpack.c.bf16 %v20772_v37, %v20774_v11  ;;  %v7359_v36 = vld [vmem:[%s23340_s18 + $0x38] sm:$0xff]  ;;  %v7358_v37 = vld [vmem:[%s23340_s18 + $0x30] sm:$0xff] }
0x1983   : > { %v15306_v27 = vpop.f32.mrb[106].mxu0  ;;  %v20778_v42 = vpop.f32.mrb[110].mxu1  ;;  %16534 = vmatprep.subr.bf16.mxu0 %v16533_v40 }
0x1984   : > { %v7802_v31 = vpop.f32.mrb[107].mxu0  ;;  %v20780_v46 = vpop.f32.mrb[111].mxu1  ;;  %16536 = vmatpush3.bf16.msra.mxu0 %v16535_v59 }
0x1985   : > { %v16537_v0 = vpack.c.bf16 %v15306_v27, %v7802_v31  ;;  %v16579_v38 = vpack.c.bf16 %v20778_v42, %v20780_v46 }
0x1987   : > { %v15323_v49 = vpop.f32.mrb[108].mxu0  ;;  %v20784_v45 = vpop.f32.mrb[112].mxu1  ;;  %16538 = vmatprep.subr.bf16.mxu0 %v16537_v0 }
0x1988   : > { %v7968_v50 = vpop.f32.mrb[109].mxu0  ;;  %v20786_v53 = vpop.f32.mrb[113].mxu1  ;;  %16540 = vmatpush3.bf16.msra.mxu0 %v16539_v6 }
0x1989   : > { %v16549_v54 = vpack.c.bf16 %v15323_v49, %v7968_v50  ;;  %v16591_v55 = vpack.c.bf16 %v20784_v45, %v20786_v53  ;;  %16542 = vmatprep.subr.bf16.mxu0 %v16541_v24 }
0x198b   : > { %v15326_v56 = vpop.f32.mrb[110].mxu0  ;;  %v20790_v47 = vpop.f32.mrb[114].mxu1 }
0x198c   : > { %v7978_v48 = vpop.f32.mrb[111].mxu0  ;;  %v20792_v57 = vpop.f32.mrb[115].mxu1  ;;  %16544 = vmatpush3.bf16.msra.mxu0 %v16543_v22 }
0x198d   : > { %v16553_v12 = vpack.c.bf16 %v15326_v56, %v7978_v48  ;;  %v16595_v14 = vpack.c.bf16 %v20790_v47, %v20792_v57  ;;  %16546 = vmatprep.subr.bf16.mxu0 %v16545_v43  ;;  %v8931_v56 = vld [vmem:[%s23342_s20] sm:$0xff] }
0x198f   : > { %v15343_v20 = vpop.f32.mrb[112].mxu0  ;;  %v15393_v3 = vpop.f32.mrb[116].mxu1 }
0x1990   : > { %v8144_v13 = vpop.f32.mrb[113].mxu0  ;;  %v8584_v19 = vpop.f32.mrb[117].mxu1  ;;  %16548 = vmatpush3.bf16.msra.mxu0 %v16547_v2 }
0x1991   : > { %v16567_v7 = vpack.c.bf16 %v15343_v20, %v8144_v13  ;;  %v16573_v52 = vpack.c.bf16 %v15393_v3, %v8584_v19  ;;  %16550 = vmatprep.subr.bf16.mxu0 %v16549_v54 }
0x1993   : > { %v15346_v59 = vpop.f32.mrb[114].mxu0  ;;  %v15396_v62 = vpop.f32.mrb[118].mxu1 }
0x1994   : > { %v8154_v5 = vpop.f32.mrb[115].mxu0  ;;  %v8594_v6 = vpop.f32.mrb[119].mxu1  ;;  %16552 = vmatpush3.bf16.msra.mxu0 %v16551_v29  ;;  %v7352_v29 = vld [vmem:[%s23340_s18] sm:$0xff] }
0x1995   : > { %v16571_v33 = vpack.c.bf16 %v15346_v59, %v8154_v5  ;;  %v16577_v21 = vpack.c.bf16 %v15396_v62, %v8594_v6  ;;  %16554 = vmatprep.subr.bf16.mxu0 %v16553_v12  ;;  %v8929_v59 = vld [vmem:[%s23341_s19] sm:$0xff]  ;;  %v8988_v62 = vld [vmem:[%s23343_s21 + $0x8] sm:$0xff]  ;;  %v8990_v5 = vld [vmem:[%s23343_s21 + $0x18] sm:$0xff] }
0x1996   : > { %v12737_v6 = vld [vmem:[%s23343_s21 + $0x88] sm:$0xff] }
0x1997   : > { %v15363_v63 = vpop.f32.mrb[116].mxu0  ;;  %v15413_v4 = vpop.f32.mrb[120].mxu1 }
0x1998   : > { %v8320_v22 = vpop.f32.mrb[117].mxu0  ;;  %v8760_v24 = vpop.f32.mrb[121].mxu1  ;;  %16556 = vmatpush3.bf16.msra.mxu0 %v16555_v18 }
0x1999   : > { %v16583_v10 = vpack.c.bf16 %v15363_v63, %v8320_v22  ;;  %v16589_v8 = vpack.c.bf16 %v15413_v4, %v8760_v24  ;;  %16558 = vmatprep.subr.bf16.mxu0 %v16557_v30  ;;  %v8987_v63 = vld [vmem:[%s23343_s21] sm:$0xff]  ;;  %v8989_v4 = vld [vmem:[%s23343_s21 + $0x10] sm:$0xff] }
0x199a   : > { %v16599_v24 = vpack.c.bf16 %v8989_v4, %v8987_v63  ;;  %v12756_v4 = vld [vmem:[%s23343_s21 + $0x110] sm:$0xff] }
0x199b   : > { %v15366_v1 = vpop.f32.mrb[118].mxu0  ;;  %v15416_v25 = vpop.f32.mrb[122].mxu1 }
0x199c   : > { %v8330_v2 = vpop.f32.mrb[119].mxu0  ;;  %v8770_v43 = vpop.f32.mrb[123].mxu1  ;;  %16560 = vmatpush3.bf16.msra.mxu0 %v16559_v60 }
0x199d   : > { %v16587_v44 = vpack.c.bf16 %v15366_v1, %v8330_v2  ;;  %v16593_v23 = vpack.c.bf16 %v15416_v25, %v8770_v43  ;;  %16562 = vmatprep.subr.bf16.mxu0 %v16561_v35  ;;  %v7354_v35 = vld [vmem:[%s23340_s18 + $0x10] sm:$0xff]  ;;  %v8932_v1 = vld [vmem:[%s23342_s20 + $0x8] sm:$0xff]  ;;  %v8994_v43 = vld [vmem:[%s23343_s21 + $0x38] sm:$0xff] }
0x199e   : > { %v8992_v2 = vld [vmem:[%s23343_s21 + $0x28] sm:$0xff] }
0x199f   : > { %v15383_v26 = vpop.f32.mrb[120].mxu0 }
0x19a0   : > { %v8496_v28 = vpop.f32.mrb[121].mxu0  ;;  %16564 = vmatpush3.bf16.msra.mxu0 %v16563_v16 }
0x19a1   : > { %v16565_v30 = vpack.c.bf16 %v15383_v26, %v8496_v28  ;;  %v12743_v26 = vld [vmem:[%s23343_s21 + $0xb8] sm:$0xff]  ;;  %v8991_v28 = vld [vmem:[%s23343_s21 + $0x20] sm:$0xff] }
0x19a3   : > { %v15386_v58 = vpop.f32.mrb[122].mxu0  ;;  %16566 = vmatprep.subr.bf16.mxu1 %v16565_v30  ;;  %8844 = vmatmul.mubr.f32.vlgmr.msra.gmra.mrb[128].mxu0 %v7352_v29  ;;  %v8993_v29 = vld [vmem:[%s23343_s21 + $0x30] sm:$0xff] }
0x19a4   : > { %v8506_v60 = vpop.f32.mrb[123].mxu0  ;;  %16568 = vmatpush3.bf16.msra.mxu1 %v16567_v7  ;;  %8848 = vmatprep.mubr.f32.mxu0 %v7357_v51  ;;  %v16603_v51 = vpack.c.bf16 %v8993_v29, %v8991_v28  ;;  %v12758_v28 = vld [vmem:[%s23343_s21 + $0x120] sm:$0xff] }
0x19a5   : > { %v16569_v9 = vpack.c.bf16 %v15386_v58, %v8506_v60  ;;  %v12740_v58 = vld [vmem:[%s23343_s21 + $0xa0] sm:$0xff]  ;;  %v12742_v60 = vld [vmem:[%s23343_s21 + $0xb0] sm:$0xff] }
0x19a7   : > { %v15403_v16 = vpop.f32.mrb[124].mxu0  ;;  %16570 = vmatprep.subr.bf16.mxu1 %v16569_v9  ;;  %8849 = vmatmul.mubr.f32.gmra.mrb[130].mxu0 %v7356_v32  ;;  %v16619_v32 = vpack.c.bf16 %v12742_v60, %v12740_v58  ;;  %v8996_v9 = vld [vmem:[%s23343_s21 + $0x48] sm:$0xff]  ;;  %v12778_v58 = vld [vmem:[%s23343_s21 + $0x1b0] sm:$0xff] }
0x19a8   : > { %v8672_v34 = vpop.f32.mrb[125].mxu0  ;;  %16572 = vmatpush3.bf16.msra.mxu1 %v16571_v33  ;;  %v16597_v33 = vpack.c.bf16 %v8990_v5, %v8988_v62  ;;  %v12763_v60 = vld [vmem:[%s23343_s21 + $0x148] sm:$0xff] }
0x19a9   : > { %v16581_v61 = vpack.c.bf16 %v15403_v16, %v8672_v34  ;;  %16574 = vmatprep.subr.bf16.mxu1 %v16573_v52  ;;  %v8930_v52 = vld [vmem:[%s23341_s19 + $0x8] sm:$0xff]  ;;  %v8998_v16 = vld [vmem:[%s23343_s21 + $0x58] sm:$0xff] }
0x19aa   : > { %16598 = vmatprep.subr.bf16.mxu0 %v16597_v33  ;;  %v12745_v34 = vld [vmem:[%s23343_s21 + $0xc8] sm:$0xff] }
0x19ab   : > { %v15406_v15 = vpop.f32.mrb[126].mxu0  ;;  %16600 = vmatpush1.bf16.msra.mxu0 %v16599_v24  ;;  %v12774_v24 = vld [vmem:[%s23343_s21 + $0x190] sm:$0xff] }
0x19ac   : > { %v8682_v17 = vpop.f32.mrb[127].mxu0  ;;  %16576 = vmatpush3.bf16.msra.mxu1 %v16575_v41 }
0x19ad   : > { %v16585_v18 = vpack.c.bf16 %v15406_v15, %v8682_v17  ;;  %16578 = vmatprep.subr.bf16.mxu1 %v16577_v21  ;;  %v12739_v21 = vld [vmem:[%s23343_s21 + $0x98] sm:$0xff]  ;;  %v8995_v17 = vld [vmem:[%s23343_s21 + $0x40] sm:$0xff] }
0x19ae   : > { %v16613_v22 = vpack.c.bf16 %v12739_v21, %v12737_v6  ;;  %v12747_v15 = vld [vmem:[%s23343_s21 + $0xd8] sm:$0xff]  ;;  %v12754_v21 = vld [vmem:[%s23343_s21 + $0x100] sm:$0xff] }
0x19b0   : > { %16580 = vmatpush3.bf16.msra.mxu1 %v16579_v38 }
0x19b1   : > { %16582 = vmatprep.subr.bf16.mxu1 %v16581_v61  ;;  %v16605_v61 = vpack.c.bf16 %v8998_v16, %v8996_v9 }
0x19b4   : > { %16584 = vmatpush3.bf16.msra.mxu1 %v16583_v10  ;;  %v12736_v10 = vld [vmem:[%s23343_s21 + $0x80] sm:$0xff] }
0x19b5   : > { %16586 = vmatprep.subr.bf16.mxu1 %v16585_v18  ;;  %v8997_v18 = vld [vmem:[%s23343_s21 + $0x50] sm:$0xff] }
0x19b8   : > { %16588 = vmatpush3.bf16.msra.mxu1 %v16587_v44  ;;  %v12741_v44 = vld [vmem:[%s23343_s21 + $0xa8] sm:$0xff] }
0x19b9   : > { %16590 = vmatprep.subr.bf16.mxu1 %v16589_v8  ;;  %v12738_v8 = vld [vmem:[%s23343_s21 + $0x90] sm:$0xff]  ;;  %v16617_v30 = vpack.c.bf16 %v12743_v26, %v12741_v44 }
0x19ba   : > { %v16615_v25 = vpack.c.bf16 %v12738_v8, %v12736_v10 }
0x19bc   : > { %16592 = vmatpush3.bf16.msra.mxu1 %v16591_v55 }
0x19bd   : > { %16594 = vmatprep.subr.bf16.mxu1 %v16593_v23  ;;  %v16601_v23 = vpack.c.bf16 %v8994_v43, %v8992_v2  ;;  %v12777_v2 = vld [vmem:[%s23343_s21 + $0x1a8] sm:$0xff]  ;;  %v12779_v43 = vld [vmem:[%s23343_s21 + $0x1b8] sm:$0xff] }
0x19be   : > { %v16649_v16 = vpack.c.bf16 %v12779_v43, %v12777_v2 }
0x19bf   : > { %16602 = vmatprep.subr.bf16.mxu0 %v16601_v23  ;;  %v16631_v23 = vpack.c.bf16 %v12756_v4, %v12754_v21  ;;  %v12797_v21 = vld [vmem:[%s23343_s21 + $0x238] sm:$0xff] }
0x19c0   : > { %16596 = vmatpush3.bf16.msra.mxu1 %v16595_v14  ;;  %16604 = vmatpush1.bf16.msra.mxu0 %v16603_v51  ;;  %v12776_v51 = vld [vmem:[%s23343_s21 + $0x1a0] sm:$0xff]  ;;  %v12815_v4 = vld [vmem:[%s23343_s21 + $0x2b8] sm:$0xff] }
0x19c1   : > { %16614 = vmatprep.subr.bf16.mxu1 %v16613_v22  ;;  %16606 = vmatprep.subr.bf16.mxu0 %v16605_v61  ;;  %v12772_v22 = vld [vmem:[%s23343_s21 + $0x180] sm:$0xff]  ;;  %v12781_v61 = vld [vmem:[%s23343_s21 + $0x1c8] sm:$0xff] }
0x19c2   : > { %v16647_v26 = vpack.c.bf16 %v12774_v24, %v12772_v22 }
0x19c3   : > { %8919 = vmatmul.mubr.f32.vlgmr.msra.gmra.mrb[124].mxu1 %v7354_v35  ;;  %v16621_v35 = vpack.c.bf16 %v12747_v15, %v12745_v34  ;;  %v12765_v34 = vld [vmem:[%s23343_s21 + $0x158] sm:$0xff] }
0x19c4   : > { %8923 = vmatprep.mubr.f32.mxu1 %v7359_v36  ;;  %16616 = vmatpush1.bf16.msra.mxu1 %v16615_v25  ;;  %v16607_v36 = vpack.c.bf16 %v8997_v18, %v8995_v17  ;;  %v12761_v25 = vld [vmem:[%s23343_s21 + $0x138] sm:$0xff] }
0x19c5   : > { %16618 = vmatprep.subr.bf16.mxu1 %v16617_v30  ;;  %v12783_v15 = vld [vmem:[%s23343_s21 + $0x1d8] sm:$0xff] }
0x19c6   : > { %16608 = vmatpush1.bf16.msra.mxu0 %v16607_v36  ;;  %v12762_v36 = vld [vmem:[%s23343_s21 + $0x140] sm:$0xff] }
0x19c7   : > { %8924 = vmatmul.mubr.f32.gmra.mrb[126].mxu1 %v7358_v37  ;;  %v12744_v37 = vld [vmem:[%s23343_s21 + $0xc0] sm:$0xff] }
0x19c8   : > { %16620 = vmatpush1.bf16.msra.mxu1 %v16619_v32 }
0x19c9   : > { %16622 = vmatprep.subr.bf16.mxu1 %v16621_v35  ;;  %v16651_v35 = vpack.c.bf16 %v12778_v58, %v12776_v51  ;;  %v12800_v51 = vld [vmem:[%s23343_s21 + $0x250] sm:$0xff] }
0x1a76   : > { %v14610_v39 = vpop.f32.mrb[128].mxu0 }
0x1a77   : > { %v14611_v11 = vpop.f32.mrb[129].mxu0 }
0x1a78   : > { %v14612_v40 = vadd.f32 %v14611_v11, %v14610_v39  ;;  %v12746_v39 = vld [vmem:[%s23343_s21 + $0xd0] sm:$0xff] }
0x1a79   : > { %v16623_v11 = vpack.c.bf16 %v12746_v39, %v12744_v37  ;;  %v12764_v37 = vld [vmem:[%s23343_s21 + $0x150] sm:$0xff] }
0x1a7a   : > { %v14613_v41 = vpop.f32.mrb[130].mxu0 }
0x1a7b   : > { %v14614_v27 = vpop.f32.mrb[131].mxu0  ;;  %16624 = vmatpush1.bf16.msra.mxu1 %v16623_v11  ;;  %v16637_v11 = vpack.c.bf16 %v12765_v34, %v12763_v60  ;;  %v12805_v34 = vld [vmem:[%s23343_s21 + $0x278] sm:$0xff] }
0x1a7c   : > { %v14615_v42 = vadd.f32 %v14614_v27, %v14613_v41  ;;  %v9002_v41 = vld [vmem:[%s23343_s21 + $0x78] sm:$0xff]  ;;  %v12749_v27 = vld [vmem:[%s23343_s21 + $0xe8] sm:$0xff] }
0x1a96   : > { %v14648_v31 = vpop.f32.mrb[124].mxu1 }
0x1a97   : > { %v14649_v46 = vpop.f32.mrb[125].mxu1 }
0x1a98   : > { %v14650_v0 = vadd.f32 %v14649_v46, %v14648_v31  ;;  %v12751_v31 = vld [vmem:[%s23343_s21 + $0xf8] sm:$0xff]  ;;  %v8999_v46 = vld [vmem:[%s23343_s21 + $0x60] sm:$0xff] }
0x1a9a   : > { %v8921_v38 = vadd.f32 %v14650_v0, %v14612_v40  ;;  %v14651_v49 = vpop.f32.mrb[126].mxu1  ;;  %v9000_v40 = vld [vmem:[%s23343_s21 + $0x68] sm:$0xff]  ;;  %v9001_v0 = vld [vmem:[%s23343_s21 + $0x70] sm:$0xff] }
0x1a9b   : > { %v14652_v45 = vpop.f32.mrb[127].mxu1 }
0x1a9c   : > { %v14653_v50 = vadd.f32 %v14652_v45, %v14651_v49  ;;  %v8933_v53 = vsel %vm2675_vm2, %v8921_v38, 0.0  ;;  %v16611_v49 = vpack.c.bf16 %v9001_v0, %v8999_v46  ;;  %v12748_v45 = vld [vmem:[%s23343_s21 + $0xe0] sm:$0xff]  ;;  %v12785_v46 = vld [vmem:[%s23343_s21 + $0x1e8] sm:$0xff]  ;;  %v12787_v0 = vld [vmem:[%s23343_s21 + $0x1f8] sm:$0xff] }
0x1a9d   : > { %8934 = vadd.xlane.f32.xlu1 %v8933_v53 }
0x1a9e   : > { %v8926_v54 = vadd.f32 %v14653_v50, %v14615_v42  ;;  %v16609_v42 = vpack.c.bf16 %v9002_v41, %v9000_v40  ;;  %v12750_v50 = vld [vmem:[%s23343_s21 + $0xf0] sm:$0xff]  ;;  %v16653_v40 = vpack.c.bf16 %v12783_v15, %v12781_v61  ;;  %v12780_v41 = vld [vmem:[%s23343_s21 + $0x1c0] sm:$0xff]  ;;  %v12821_v61 = vld [vmem:[%s23343_s21 + $0x2e8] sm:$0xff] }
0x1a9f   : > { %v16627_v53 = vpack.c.bf16 %v12750_v50, %v12748_v45  ;;  %v12766_v45 = vld [vmem:[%s23343_s21 + $0x160] sm:$0xff]  ;;  %v12768_v50 = vld [vmem:[%s23343_s21 + $0x170] sm:$0xff]  ;;  %v12823_v15 = vld [vmem:[%s23343_s21 + $0x2f8] sm:$0xff] }
0x1aa0   : > { %v8936_v55 = vsel %vm2675_vm2, %v8926_v54, 0.0  ;;  %16610 = vmatprep.subr.bf16.mxu0 %v16609_v42  ;;  %v12767_v42 = vld [vmem:[%s23343_s21 + $0x168] sm:$0xff] }
0x1aa1   : > { %8937 = vadd.xlane.f32.xlu0 %v8936_v55  ;;  %v12757_v55 = vld [vmem:[%s23343_s21 + $0x118] sm:$0xff]  ;;  %16612 = vmatpush1.bf16.msra.mxu0 %v16611_v49 }
0x1aae   : > { %8973 = vperm.xlu1 %17441, %v8931_v56   ;;  %v12773_v56 = vld [vmem:[%s23343_s21 + $0x188] sm:$0xff] }
0x1b2a   : > { %v8935_v47 = vpop.xlane.xlu1 %8934 }
0x1b2b   : > { %v8939_v48 = vmul.f32 0.015625, %v8935_v47 }
0x1b2d   : > { %v20840_v57 = vsub.f32 %v8921_v38, %v8939_v48  ;;  %v16625_v38 = vpack.c.bf16 %v12751_v31, %v12749_v27  ;;  %v12775_v48 = vld [vmem:[%s23343_s21 + $0x198] sm:$0xff]  ;;  %v12782_v27 = vld [vmem:[%s23343_s21 + $0x1d0] sm:$0xff] }
0x1b2e   : > { %v8938_v12 = vpop.xlane.xlu0 %8937  ;;  %v12769_v31 = vld [vmem:[%s23343_s21 + $0x178] sm:$0xff]  ;;  %v16655_v49 = vpack.c.bf16 %v12782_v27, %v12780_v41  ;;  %v12822_v41 = vld [vmem:[%s23343_s21 + $0x2f0] sm:$0xff]  ;;  %v12827_v27 = vld [vmem:[%s23343_s21 + $0x308] sm:$0xff] }
0x1b2f   : > { %v8940_v14 = vmul.f32 0.015625, %v8938_v12  ;;  %v8943_v20 = vmul.f32 %v20840_v57, %v20840_v57  ;;  %16626 = vmatprep.subr.bf16.mxu1 %v16625_v38  ;;  %v16645_v12 = vpack.c.bf16 %v12775_v48, %v12773_v56  ;;  %v16639_v38 = vpack.c.bf16 %v12764_v37, %v12762_v36  ;;  %v12786_v56 = vld [vmem:[%s23343_s21 + $0x1f0] sm:$0xff]  ;;  %v12793_v48 = vld [vmem:[%s23343_s21 + $0x218] sm:$0xff] }
0x1b30   : > { %16628 = vmatpush1.bf16.msra.mxu1 %v16627_v53  ;;  %v16641_v53 = vpack.c.bf16 %v12769_v31, %v12767_v42  ;;  %v12804_v36 = vld [vmem:[%s23343_s21 + $0x270] sm:$0xff]  ;;  %v12829_v42 = vld [vmem:[%s23343_s21 + $0x318] sm:$0xff]  ;;  %v12845_v31 = vld [vmem:[%s23343_s21 + $0x388] sm:$0xff] }
0x1b31   : > { %v20844_v3 = vsub.f32 %v8926_v54, %v8940_v14  ;;  %v8945_v13 = vsel %vm2675_vm2, %v8943_v20, 0.0  ;;  %v12755_v54 = vld [vmem:[%s23343_s21 + $0x108] sm:$0xff]  ;;  %v17524_v14 = vmov 0.0   ;;  %16646 = vmatprep.subr.bf16.mxu1 %v16645_v12  ;;  %v8974_v20 = vpop.permute.xlu1 %8973 }
0x1b32   : > { %8946 = vadd.xlane.f32.xlu0 %v8945_v13  ;;  %v16629_v47 = vpack.c.bf16 %v12757_v55, %v12755_v54  ;;  %9073 = vmatprep.mubr.f32.mxu0 %v17524_v14  ;;  %v16657_v54 = vpack.c.bf16 %v12787_v0, %v12785_v46  ;;  %v12784_v55 = vld [vmem:[%s23343_s21 + $0x1e0] sm:$0xff]  ;;  %v12809_v12 = vld [vmem:[%s23343_s21 + $0x288] sm:$0xff]  ;;  %v12847_v46 = vld [vmem:[%s23343_s21 + $0x398] sm:$0xff] }
0x1b33   : > { %v8944_v19 = vmul.f32 %v20844_v3, %v20844_v3  ;;  %9167 = vmatprep.mubr.f32.mxu1 %v17524_v14 }
0x1b34   : > { %16630 = vmatprep.subr.bf16.mxu0 %v16629_v47  ;;  %v12791_v47 = vld [vmem:[%s23343_s21 + $0x208] sm:$0xff] }
0x1b35   : > { %v8948_v7 = vsel %vm2675_vm2, %v8944_v19, 0.0 }
0x1b36   : > { %8949 = vadd.xlane.f32.xlu1 %v8948_v7 }
0x1b47   : > { %8966 = vperm.xlu1 %17441, %v8930_v52  }
0x1b48   : > { %8961 = vperm.xlu0 %17442, %v8929_v59  }
0x1b4c   : > { %8978 = vperm.xlu0 %17442, %v8932_v1  }
0x1bbf   : > { %v8947_v13 = vpop.xlane.xlu0 %8946 }
0x1bc0   : > { %v8951_v19 = vmul.f32 0.015625, %v8947_v13  ;;  %v16643_v13 = vpack.c.bf16 %v12768_v50, %v12766_v45  ;;  %v16693_v45 = vpack.c.bf16 %v12829_v42, %v12827_v27  ;;  %v16709_v50 = vpack.c.bf16 %v12847_v46, %v12845_v31  ;;  %v12869_v27 = vld [vmem:[%s23343_s21 + $0x438] sm:$0xff]  ;;  %v12885_v42 = vld [vmem:[%s23343_s21 + $0x4a8] sm:$0xff] }
0x1bc1   : > { %v12887_v31 = vld [vmem:[%s23343_s21 + $0x4b8] sm:$0xff] }
0x1bc2   : > { %v8953_v7 = vadd.f32 1e-05, %v8951_v19  ;;  %v16659_v19 = vpack.c.bf16 %v12786_v56, %v12784_v55  ;;  %v12846_v55 = vld [vmem:[%s23343_s21 + $0x390] sm:$0xff]  ;;  %v12831_v56 = vld [vmem:[%s23343_s21 + $0x328] sm:$0xff] }
0x1bc3   : > { %v8950_v52 = vpop.xlane.xlu1 %8949 }
0x1bc4   : > { %17505 = vrsqrt.f32 %v8953_v7  ;;  %v8952_v59 = vmul.f32 0.015625, %v8950_v52  ;;  %v12790_v7 = vld [vmem:[%s23343_s21 + $0x200] sm:$0xff]  ;;  %v16661_v52 = vpack.c.bf16 %v12793_v48, %v12791_v47  ;;  %v12833_v47 = vld [vmem:[%s23343_s21 + $0x338] sm:$0xff]  ;;  %v12849_v48 = vld [vmem:[%s23343_s21 + $0x3a8] sm:$0xff] }
0x1bc6   : > { %v8954_v62 = vadd.f32 1e-05, %v8952_v59 }
0x1bc7   : > { %v8962_v33 = vpop.permute.xlu0 %8961  ;;  %v8967_v44 = vpop.permute.xlu1 %8966 }
0x1bc8   : > { %17507 = vrsqrt.f32 %v8954_v62  ;;  %v12792_v62 = vld [vmem:[%s23343_s21 + $0x210] sm:$0xff] }
0x1bc9   : > { %v16663_v22 = vpack.c.bf16 %v12792_v62, %v12790_v7  ;;  %v12832_v7 = vld [vmem:[%s23343_s21 + $0x330] sm:$0xff]  ;;  %v12835_v62 = vld [vmem:[%s23343_s21 + $0x348] sm:$0xff] }
0x1bcb   : > { %v8979_v32 = vpop.permute.xlu0 %8978 }
0x1bce   : > { %v17506_v5 = vpop.eup %17505 }
0x1bcf   : > { %v8957_v6 = vmul.f32 %v17506_v5, %v20840_v57  ;;  %v12759_v57 = vld [vmem:[%s23343_s21 + $0x128] sm:$0xff]  ;;  %v12808_v5 = vld [vmem:[%s23343_s21 + $0x280] sm:$0xff] }
0x1bd0   : > { %v16633_v9 = vpack.c.bf16 %v12761_v25, %v12759_v57  ;;  %v12796_v57 = vld [vmem:[%s23343_s21 + $0x230] sm:$0xff]  ;;  %v12799_v25 = vld [vmem:[%s23343_s21 + $0x248] sm:$0xff] }
0x1bd1   : > { %v8969_v63 = vmul.f32 %v8962_v33, %v8957_v6  ;;  %v12810_v6 = vld [vmem:[%s23343_s21 + $0x290] sm:$0xff]  ;;  %v12795_v33 = vld [vmem:[%s23343_s21 + $0x228] sm:$0xff] }
0x1bd2   : > { %v17508_v10 = vpop.eup %17507  ;;  %v16679_v24 = vpack.c.bf16 %v12810_v6, %v12808_v5  ;;  %v16665_v2 = vpack.c.bf16 %v12797_v21, %v12795_v33  ;;  %v16697_v5 = vpack.c.bf16 %v12833_v47, %v12831_v56  ;;  %v12837_v33 = vld [vmem:[%s23343_s21 + $0x358] sm:$0xff]  ;;  %v12853_v21 = vld [vmem:[%s23343_s21 + $0x3c8] sm:$0xff] }
0x1bd3   : > { %v8981_v8 = vadd.f32 %v8974_v20, %v8969_v63  ;;  %v8958_v1 = vmul.f32 %v17508_v10, %v20844_v3  ;;  %v12760_v3 = vld [vmem:[%s23343_s21 + $0x130] sm:$0xff]  ;;  %v12811_v20 = vld [vmem:[%s23343_s21 + $0x298] sm:$0xff]  ;;  %v12813_v63 = vld [vmem:[%s23343_s21 + $0x2a8] sm:$0xff] }
0x1bd4   : > { %v16635_v18 = vpack.c.bf16 %v12760_v3, %v12758_v28  ;;  %v16677_v59 = vpack.c.bf16 %v12811_v20, %v12809_v12  ;;  %v12794_v10 = vld [vmem:[%s23343_s21 + $0x220] sm:$0xff]  ;;  %v16681_v43 = vpack.c.bf16 %v12815_v4, %v12813_v63  ;;  %v12851_v12 = vld [vmem:[%s23343_s21 + $0x3b8] sm:$0xff]  ;;  %v12889_v47 = vld [vmem:[%s23343_s21 + $0x4c8] sm:$0xff] }
0x1bd5   : > { %v21001_v29 = vmax.f32 %v8981_v8, 0.0  ;;  %v8970_v30 = vmul.f32 %v8967_v44, %v8958_v1  ;;  %v12812_v8 = vld [vmem:[%s23343_s21 + $0x2a0] sm:$0xff]  ;;  %v12814_v1 = vld [vmem:[%s23343_s21 + $0x2b0] sm:$0xff]  ;;  %v12801_v44 = vld [vmem:[%s23343_s21 + $0x258] sm:$0xff]  ;;  %v16667_v28 = vpack.c.bf16 %v12796_v57, %v12794_v10  ;;  %v16713_v6 = vpack.c.bf16 %v12851_v12, %v12849_v48 }
0x1bd6   : > { %v16683_v3 = vpack.c.bf16 %v12814_v1, %v12812_v8  ;;  %v16669_v58 = vpack.c.bf16 %v12801_v44, %v12799_v25  ;;  %v12855_v63 = vld [vmem:[%s23343_s21 + $0x3d8] sm:$0xff]  ;;  %v12836_v10 = vld [vmem:[%s23343_s21 + $0x350] sm:$0xff]  ;;  %v16701_v57 = vpack.c.bf16 %v12837_v33, %v12835_v62  ;;  %v12852_v1 = vld [vmem:[%s23343_s21 + $0x3c0] sm:$0xff] }
0x1bd7   : > { %v8982_v17 = vadd.f32 %v8979_v32, %v8970_v30  ;;  %12734 = vmatmul.mubr.msk.f32.vlgmr.msra.gmra.mrb[132].mxu0 %vm2675_vm2, %v21001_v29  ;;  %12752 = vmatmul.mubr.msk.f32.vlgmr.msra.gmra.mrb[128].mxu1 %vm2675_vm2, %v21001_v29  ;;  %v12798_v30 = vld [vmem:[%s23343_s21 + $0x240] sm:$0xff]  ;;  %v16717_v8 = vpack.c.bf16 %v12855_v63, %v12853_v21  ;;  %v12854_v25 = vld [vmem:[%s23343_s21 + $0x3d0] sm:$0xff]  ;;  %v12857_v44 = vld [vmem:[%s23343_s21 + $0x3e8] sm:$0xff] }
0x1bd8   : > { %16632 = vmatpush1.bf16.msra.mxu0 %v16631_v23  ;;  %16648 = vmatpush1.bf16.msra.mxu1 %v16647_v26  ;;  %v12817_v23 = vld [vmem:[%s23343_s21 + $0x2c8] sm:$0xff]  ;;  %v12819_v26 = vld [vmem:[%s23343_s21 + $0x2d8] sm:$0xff]  ;;  %v12816_v32 = vld [vmem:[%s23343_s21 + $0x2c0] sm:$0xff] }
0x1bd9   : > { %v21031_v39 = vmax.f32 %v8982_v17, 0.0  ;;  %9079 = vmatprep.mubr.f32.mxu0 %v17524_v14  ;;  %9173 = vmatprep.mubr.f32.mxu1 %v17524_v14  ;;  %v16685_v60 = vpack.c.bf16 %v12819_v26, %v12817_v23  ;;  %v16671_v17 = vpack.c.bf16 %v12800_v51, %v12798_v30  ;;  %v12859_v23 = vld [vmem:[%s23343_s21 + $0x3f8] sm:$0xff]  ;;  %v12840_v30 = vld [vmem:[%s23343_s21 + $0x370] sm:$0xff]  ;;  %v12893_v33 = vld [vmem:[%s23343_s21 + $0x4e8] sm:$0xff] }
0x1bda   : > { %16634 = vmatprep.subr.bf16.mxu0 %v16633_v9  ;;  %16650 = vmatprep.subr.bf16.mxu1 %v16649_v16  ;;  %v12818_v9 = vld [vmem:[%s23343_s21 + $0x2d0] sm:$0xff]  ;;  %v12803_v16 = vld [vmem:[%s23343_s21 + $0x268] sm:$0xff]  ;;  %v12873_v56 = vld [vmem:[%s23343_s21 + $0x458] sm:$0xff] }
0x1bdb   : > { %12735 = vmatmul.mubr.msk.f32.gmra.mrb[134].mxu0 %vm2675_vm2, %v21031_v39  ;;  %12753 = vmatmul.mubr.msk.f32.gmra.mrb[130].mxu1 %vm2675_vm2, %v21031_v39  ;;  %v16673_v37 = vpack.c.bf16 %v12805_v34, %v12803_v16  ;;  %v12865_v16 = vld [vmem:[%s23343_s21 + $0x418] sm:$0xff]  ;;  %v12881_v34 = vld [vmem:[%s23343_s21 + $0x488] sm:$0xff]  ;;  %v12890_v62 = vld [vmem:[%s23343_s21 + $0x4d0] sm:$0xff] }
0x1bdc   : > { %16636 = vmatpush1.bf16.msra.mxu0 %v16635_v18  ;;  %16652 = vmatpush1.bf16.msra.mxu1 %v16651_v35  ;;  %v16687_v18 = vpack.c.bf16 %v12818_v9, %v12816_v32  ;;  %v12802_v35 = vld [vmem:[%s23343_s21 + $0x260] sm:$0xff]  ;;  %v12858_v32 = vld [vmem:[%s23343_s21 + $0x3f0] sm:$0xff]  ;;  %v12863_v9 = vld [vmem:[%s23343_s21 + $0x408] sm:$0xff] }
0x1bdd   : > { %16638 = vmatprep.subr.bf16.mxu0 %v16637_v11  ;;  %16654 = vmatprep.subr.bf16.mxu1 %v16653_v40  ;;  %v16689_v11 = vpack.c.bf16 %v12823_v15, %v12821_v61  ;;  %v12820_v40 = vld [vmem:[%s23343_s21 + $0x2e0] sm:$0xff]  ;;  %v16675_v0 = vpack.c.bf16 %v12804_v36, %v12802_v35  ;;  %v12883_v61 = vld [vmem:[%s23343_s21 + $0x498] sm:$0xff]  ;;  %v16725_v35 = vpack.c.bf16 %v12865_v16, %v12863_v9  ;;  %v12921_v16 = vld [vmem:[%s23343_s21 + $0x5a8] sm:$0xff] }
0x1bde   : > { %9261 = vmatprep.mubr.f32.mxu0 %v17524_v14  ;;  %9355 = vmatprep.mubr.f32.mxu1 %v17524_v14  ;;  %v16741_v36 = vpack.c.bf16 %v12883_v61, %v12881_v34  ;;  %v12891_v48 = vld [vmem:[%s23343_s21 + $0x4d8] sm:$0xff] }
0x1bdf   : > { %v12895_v21 = vld [vmem:[%s23343_s21 + $0x4f8] sm:$0xff] }
0x1be0   : > { %16640 = vmatpush1.bf16.msra.mxu0 %v16639_v38  ;;  %16656 = vmatpush1.bf16.msra.mxu1 %v16655_v49  ;;  %v16691_v38 = vpack.c.bf16 %v12822_v41, %v12820_v40  ;;  %v12826_v49 = vld [vmem:[%s23343_s21 + $0x300] sm:$0xff]  ;;  %v12882_v40 = vld [vmem:[%s23343_s21 + $0x490] sm:$0xff]  ;;  %v12867_v41 = vld [vmem:[%s23343_s21 + $0x428] sm:$0xff] }
0x1be1   : > { %16642 = vmatprep.subr.bf16.mxu0 %v16641_v53  ;;  %16658 = vmatprep.subr.bf16.mxu1 %v16657_v54  ;;  %v12828_v53 = vld [vmem:[%s23343_s21 + $0x310] sm:$0xff]  ;;  %v12844_v54 = vld [vmem:[%s23343_s21 + $0x380] sm:$0xff]  ;;  %v12905_v9 = vld [vmem:[%s23343_s21 + $0x538] sm:$0xff] }
0x1be2   : > { %v16695_v20 = vpack.c.bf16 %v12828_v53, %v12826_v49  ;;  %v12868_v49 = vld [vmem:[%s23343_s21 + $0x430] sm:$0xff]  ;;  %v12871_v53 = vld [vmem:[%s23343_s21 + $0x448] sm:$0xff]  ;;  %v12923_v34 = vld [vmem:[%s23343_s21 + $0x5b8] sm:$0xff] }
0x1be4   : > { %16644 = vmatpush1.bf16.msra.mxu0 %v16643_v13  ;;  %16660 = vmatpush1.bf16.msra.mxu1 %v16659_v19  ;;  %v16711_v13 = vpack.c.bf16 %v12846_v55, %v12844_v54  ;;  %v12830_v19 = vld [vmem:[%s23343_s21 + $0x320] sm:$0xff]  ;;  %v16729_v54 = vpack.c.bf16 %v12869_v27, %v12867_v41  ;;  %v16745_v55 = vpack.c.bf16 %v12887_v31, %v12885_v42  ;;  %v12909_v41 = vld [vmem:[%s23343_s21 + $0x558] sm:$0xff]  ;;  %v12925_v27 = vld [vmem:[%s23343_s21 + $0x5c8] sm:$0xff] }
0x1be5   : > { %16662 = vmatprep.subr.bf16.mxu0 %v16661_v52  ;;  %16678 = vmatprep.subr.bf16.mxu1 %v16677_v59  ;;  %v12848_v52 = vld [vmem:[%s23343_s21 + $0x3a0] sm:$0xff]  ;;  %v12850_v59 = vld [vmem:[%s23343_s21 + $0x3b0] sm:$0xff]  ;;  %v16699_v4 = vpack.c.bf16 %v12832_v7, %v12830_v19  ;;  %v16733_v7 = vpack.c.bf16 %v12873_v56, %v12871_v53  ;;  %v12927_v42 = vld [vmem:[%s23343_s21 + $0x5d8] sm:$0xff] }
0x1be6   : > { %v12872_v19 = vld [vmem:[%s23343_s21 + $0x450] sm:$0xff]  ;;  %v12929_v56 = vld [vmem:[%s23343_s21 + $0x5e8] sm:$0xff] }
0x1be7   : > { %12770 = vmatmul.mubr.msk.f32.vlgmr.msra.gmra.mrb[136].mxu0 %vm2675_vm2, %v21001_v29  ;;  %12788 = vmatmul.mubr.msk.f32.vlgmr.msra.gmra.mrb[132].mxu1 %vm2675_vm2, %v21001_v29  ;;  %v12926_v53 = vld [vmem:[%s23343_s21 + $0x5d0] sm:$0xff] }
0x1be8   : > { %16664 = vmatpush1.bf16.msra.mxu0 %v16663_v22  ;;  %16680 = vmatpush1.bf16.msra.mxu1 %v16679_v24  ;;  %v16715_v22 = vpack.c.bf16 %v12850_v59, %v12848_v52  ;;  %v12834_v24 = vld [vmem:[%s23343_s21 + $0x340] sm:$0xff]  ;;  %v16749_v52 = vpack.c.bf16 %v12891_v48, %v12889_v47  ;;  %v12931_v47 = vld [vmem:[%s23343_s21 + $0x5f8] sm:$0xff] }
0x1be9   : > { %9267 = vmatprep.mubr.f32.mxu0 %v17524_v14  ;;  %9361 = vmatprep.mubr.f32.mxu1 %v17524_v14  ;;  %v16703_v26 = vpack.c.bf16 %v12836_v10, %v12834_v24  ;;  %v12888_v59 = vld [vmem:[%s23343_s21 + $0x4c0] sm:$0xff]  ;;  %v12876_v24 = vld [vmem:[%s23343_s21 + $0x470] sm:$0xff] }
0x1bea   : > { %16666 = vmatprep.subr.bf16.mxu0 %v16665_v2  ;;  %16682 = vmatprep.subr.bf16.mxu1 %v16681_v43  ;;  %v12839_v2 = vld [vmem:[%s23343_s21 + $0x368] sm:$0xff]  ;;  %v12841_v43 = vld [vmem:[%s23343_s21 + $0x378] sm:$0xff] }
0x1beb   : > { %12771 = vmatmul.mubr.msk.f32.gmra.mrb[138].mxu0 %vm2675_vm2, %v21031_v39  ;;  %12789 = vmatmul.mubr.msk.f32.gmra.mrb[134].mxu1 %vm2675_vm2, %v21031_v39  ;;  %v16705_v51 = vpack.c.bf16 %v12841_v43, %v12839_v2  ;;  %v12901_v2 = vld [vmem:[%s23343_s21 + $0x518] sm:$0xff]  ;;  %v12917_v43 = vld [vmem:[%s23343_s21 + $0x588] sm:$0xff] }
0x1bec   : > { %16668 = vmatpush1.bf16.msra.mxu0 %v16667_v28  ;;  %16684 = vmatpush1.bf16.msra.mxu1 %v16683_v3  ;;  %v16719_v28 = vpack.c.bf16 %v12854_v25, %v12852_v1  ;;  %v12838_v3 = vld [vmem:[%s23343_s21 + $0x360] sm:$0xff]  ;;  %v12894_v1 = vld [vmem:[%s23343_s21 + $0x4f0] sm:$0xff]  ;;  %v12899_v25 = vld [vmem:[%s23343_s21 + $0x508] sm:$0xff] }
0x1bed   : > { %16670 = vmatprep.subr.bf16.mxu0 %v16669_v58  ;;  %16686 = vmatprep.subr.bf16.mxu1 %v16685_v60  ;;  %v16721_v58 = vpack.c.bf16 %v12859_v23, %v12857_v44  ;;  %v12856_v60 = vld [vmem:[%s23343_s21 + $0x3e0] sm:$0xff]  ;;  %v16707_v15 = vpack.c.bf16 %v12840_v30, %v12838_v3  ;;  %v12919_v44 = vld [vmem:[%s23343_s21 + $0x598] sm:$0xff]  ;;  %v16757_v3 = vpack.c.bf16 %v12901_v2, %v12899_v25  ;;  %v12957_v2 = vld [vmem:[%s23343_s21 + $0x6a8] sm:$0xff] }
0x1bee   : > { %9449 = vmatprep.mubr.f32.mxu0 %v17524_v14  ;;  %9543 = vmatprep.mubr.f32.mxu1 %v17524_v14  ;;  %v16773_v30 = vpack.c.bf16 %v12919_v44, %v12917_v43  ;;  %v12941_v25 = vld [vmem:[%s23343_s21 + $0x638] sm:$0xff] }
0x1bef   : > { %v12959_v43 = vld [vmem:[%s23343_s21 + $0x6b8] sm:$0xff] }
0x1bf0   : > { %16672 = vmatpush1.bf16.msra.mxu0 %v16671_v17  ;;  %16688 = vmatpush1.bf16.msra.mxu1 %v16687_v18  ;;  %v16723_v17 = vpack.c.bf16 %v12858_v32, %v12856_v60  ;;  %v12862_v18 = vld [vmem:[%s23343_s21 + $0x400] sm:$0xff]  ;;  %v12918_v60 = vld [vmem:[%s23343_s21 + $0x590] sm:$0xff]  ;;  %v12903_v32 = vld [vmem:[%s23343_s21 + $0x528] sm:$0xff] }
0x1bf1   : > { %16674 = vmatprep.subr.bf16.mxu0 %v16673_v37  ;;  %16690 = vmatprep.subr.bf16.mxu1 %v16689_v11  ;;  %v12864_v37 = vld [vmem:[%s23343_s21 + $0x410] sm:$0xff]  ;;  %v12880_v11 = vld [vmem:[%s23343_s21 + $0x480] sm:$0xff] }
0x1bf2   : > { %v16727_v46 = vpack.c.bf16 %v12864_v37, %v12862_v18  ;;  %v12904_v18 = vld [vmem:[%s23343_s21 + $0x530] sm:$0xff]  ;;  %v12907_v37 = vld [vmem:[%s23343_s21 + $0x548] sm:$0xff] }
0x1bf4   : > { %16676 = vmatpush1.bf16.msra.mxu0 %v16675_v0  ;;  %16692 = vmatpush1.bf16.msra.mxu1 %v16691_v38  ;;  %v16743_v0 = vpack.c.bf16 %v12882_v40, %v12880_v11  ;;  %v12866_v38 = vld [vmem:[%s23343_s21 + $0x420] sm:$0xff]  ;;  %v16761_v11 = vpack.c.bf16 %v12905_v9, %v12903_v32  ;;  %v16777_v40 = vpack.c.bf16 %v12923_v34, %v12921_v16  ;;  %v12945_v32 = vld [vmem:[%s23343_s21 + $0x658] sm:$0xff]  ;;  %v12961_v9 = vld [vmem:[%s23343_s21 + $0x6c8] sm:$0xff] }
0x1bf5   : > { %16694 = vmatprep.subr.bf16.mxu0 %v16693_v45  ;;  %16710 = vmatprep.subr.bf16.mxu1 %v16709_v50  ;;  %v12884_v45 = vld [vmem:[%s23343_s21 + $0x4a0] sm:$0xff]  ;;  %v12886_v50 = vld [vmem:[%s23343_s21 + $0x4b0] sm:$0xff]  ;;  %v16731_v12 = vpack.c.bf16 %v12868_v49, %v12866_v38  ;;  %v16765_v49 = vpack.c.bf16 %v12909_v41, %v12907_v37  ;;  %v12963_v16 = vld [vmem:[%s23343_s21 + $0x6d8] sm:$0xff] }
0x1bf6   : > { %v12908_v38 = vld [vmem:[%s23343_s21 + $0x550] sm:$0xff]  ;;  %v12965_v41 = vld [vmem:[%s23343_s21 + $0x6e8] sm:$0xff] }
0x1bf7   : > { %12806 = vmatmul.mubr.msk.f32.vlgmr.msra.gmra.mrb[140].mxu0 %vm2675_vm2, %v21001_v29  ;;  %12824 = vmatmul.mubr.msk.f32.vlgmr.msra.gmra.mrb[136].mxu1 %vm2675_vm2, %v21001_v29  ;;  %v12962_v37 = vld [vmem:[%s23343_s21 + $0x6d0] sm:$0xff] }
0x1bf8   : > { %16696 = vmatpush1.bf16.msra.mxu0 %v16695_v20  ;;  %16712 = vmatpush1.bf16.msra.mxu1 %v16711_v13  ;;  %v16747_v20 = vpack.c.bf16 %v12886_v50, %v12884_v45  ;;  %v12870_v13 = vld [vmem:[%s23343_s21 + $0x440] sm:$0xff]  ;;  %v16781_v45 = vpack.c.bf16 %v12927_v42, %v12925_v27  ;;  %v12967_v27 = vld [vmem:[%s23343_s21 + $0x6f8] sm:$0xff] }
0x1bf9   : > { %9455 = vmatprep.mubr.f32.mxu0 %v17524_v14  ;;  %9549 = vmatprep.mubr.f32.mxu1 %v17524_v14  ;;  %v16735_v63 = vpack.c.bf16 %v12872_v19, %v12870_v13  ;;  %v12924_v50 = vld [vmem:[%s23343_s21 + $0x5c0] sm:$0xff]  ;;  %v12912_v13 = vld [vmem:[%s23343_s21 + $0x570] sm:$0xff] }
0x1bfa   : > { %16698 = vmatprep.subr.bf16.mxu0 %v16697_v5  ;;  %16714 = vmatprep.subr.bf16.mxu1 %v16713_v6  ;;  %v12875_v5 = vld [vmem:[%s23343_s21 + $0x468] sm:$0xff]  ;;  %v12877_v6 = vld [vmem:[%s23343_s21 + $0x478] sm:$0xff] }
0x1bfb   : > { %12807 = vmatmul.mubr.msk.f32.gmra.mrb[142].mxu0 %vm2675_vm2, %v21031_v39  ;;  %12825 = vmatmul.mubr.msk.f32.gmra.mrb[138].mxu1 %vm2675_vm2, %v21031_v39  ;;  %v16737_v10 = vpack.c.bf16 %v12877_v6, %v12875_v5  ;;  %v12937_v5 = vld [vmem:[%s23343_s21 + $0x618] sm:$0xff]  ;;  %v12953_v6 = vld [vmem:[%s23343_s21 + $0x688] sm:$0xff] }
0x1bfc   : > { %16700 = vmatpush1.bf16.msra.mxu0 %v16699_v4  ;;  %16716 = vmatpush1.bf16.msra.mxu1 %v16715_v22  ;;  %v16751_v4 = vpack.c.bf16 %v12890_v62, %v12888_v59  ;;  %v12874_v22 = vld [vmem:[%s23343_s21 + $0x460] sm:$0xff]  ;;  %v12930_v59 = vld [vmem:[%s23343_s21 + $0x5f0] sm:$0xff]  ;;  %v12935_v62 = vld [vmem:[%s23343_s21 + $0x608] sm:$0xff] }
0x1bfd   : > { %16702 = vmatprep.subr.bf16.mxu0 %v16701_v57  ;;  %16718 = vmatprep.subr.bf16.mxu1 %v16717_v8  ;;  %v16753_v57 = vpack.c.bf16 %v12895_v21, %v12893_v33  ;;  %v12892_v8 = vld [vmem:[%s23343_s21 + $0x4e0] sm:$0xff]  ;;  %v16739_v23 = vpack.c.bf16 %v12876_v24, %v12874_v22  ;;  %v12955_v33 = vld [vmem:[%s23343_s21 + $0x698] sm:$0xff]  ;;  %v16789_v22 = vpack.c.bf16 %v12937_v5, %v12935_v62  ;;  %v12993_v5 = vld [vmem:[%s23343_s21 + $0x7a8] sm:$0xff] }
0x1bfe   : > { %9637 = vmatprep.mubr.f32.mxu0 %v17524_v14  ;;  %9731 = vmatprep.mubr.f32.mxu1 %v17524_v14  ;;  %v16805_v24 = vpack.c.bf16 %v12955_v33, %v12953_v6  ;;  %v12977_v62 = vld [vmem:[%s23343_s21 + $0x738] sm:$0xff] }
0x1bff   : > { %v12995_v6 = vld [vmem:[%s23343_s21 + $0x7b8] sm:$0xff] }
0x1c00   : > { %16704 = vmatpush1.bf16.msra.mxu0 %v16703_v26  ;;  %16720 = vmatpush1.bf16.msra.mxu1 %v16719_v28  ;;  %v16755_v26 = vpack.c.bf16 %v12894_v1, %v12892_v8  ;;  %v12898_v28 = vld [vmem:[%s23343_s21 + $0x500] sm:$0xff]  ;;  %v12954_v8 = vld [vmem:[%s23343_s21 + $0x690] sm:$0xff]  ;;  %v12939_v1 = vld [vmem:[%s23343_s21 + $0x628] sm:$0xff] }
0x1c01   : > { %16706 = vmatprep.subr.bf16.mxu0 %v16705_v51  ;;  %16722 = vmatprep.subr.bf16.mxu1 %v16721_v58  ;;  %v12900_v51 = vld [vmem:[%s23343_s21 + $0x510] sm:$0xff]  ;;  %v12916_v58 = vld [vmem:[%s23343_s21 + $0x580] sm:$0xff] }
0x1c02   : > { %v16759_v61 = vpack.c.bf16 %v12900_v51, %v12898_v28  ;;  %v12940_v28 = vld [vmem:[%s23343_s21 + $0x630] sm:$0xff]  ;;  %v12943_v51 = vld [vmem:[%s23343_s21 + $0x648] sm:$0xff] }
0x1c04   : > { %16708 = vmatpush1.bf16.msra.mxu0 %v16707_v15  ;;  %16724 = vmatpush1.bf16.msra.mxu1 %v16723_v17  ;;  %v16775_v15 = vpack.c.bf16 %v12918_v60, %v12916_v58  ;;  %v12902_v17 = vld [vmem:[%s23343_s21 + $0x520] sm:$0xff]  ;;  %v16793_v58 = vpack.c.bf16 %v12941_v25, %v12939_v1  ;;  %v16809_v60 = vpack.c.bf16 %v12959_v43, %v12957_v2  ;;  %v12981_v1 = vld [vmem:[%s23343_s21 + $0x758] sm:$0xff]  ;;  %v12997_v25 = vld [vmem:[%s23343_s21 + $0x7c8] sm:$0xff] }
0x1c05   : > { %16726 = vmatprep.subr.bf16.mxu0 %v16725_v35  ;;  %16742 = vmatprep.subr.bf16.mxu1 %v16741_v36  ;;  %v12920_v35 = vld [vmem:[%s23343_s21 + $0x5a0] sm:$0xff]  ;;  %v12922_v36 = vld [vmem:[%s23343_s21 + $0x5b0] sm:$0xff]  ;;  %v16763_v31 = vpack.c.bf16 %v12904_v18, %v12902_v17  ;;  %v16797_v18 = vpack.c.bf16 %v12945_v32, %v12943_v51  ;;  %v12999_v2 = vld [vmem:[%s23343_s21 + $0x7d8] sm:$0xff] }
0x1c06   : > { %v12944_v17 = vld [vmem:[%s23343_s21 + $0x650] sm:$0xff]  ;;  %v13001_v32 = vld [vmem:[%s23343_s21 + $0x7e8] sm:$0xff] }
0x1c07   : > { %12842 = vmatmul.mubr.msk.f32.vlgmr.msra.gmra.mrb[144].mxu0 %vm2675_vm2, %v21001_v29  ;;  %12860 = vmatmul.mubr.msk.f32.vlgmr.msra.gmra.mrb[140].mxu1 %vm2675_vm2, %v21001_v29  ;;  %v12998_v51 = vld [vmem:[%s23343_s21 + $0x7d0] sm:$0xff] }
0x1c08   : > { %16728 = vmatpush1.bf16.msra.mxu0 %v16727_v46  ;;  %16744 = vmatpush1.bf16.msra.mxu1 %v16743_v0  ;;  %v16779_v46 = vpack.c.bf16 %v12922_v36, %v12920_v35  ;;  %v12906_v0 = vld [vmem:[%s23343_s21 + $0x540] sm:$0xff]  ;;  %v16813_v35 = vpack.c.bf16 %v12963_v16, %v12961_v9  ;;  %v13003_v9 = vld [vmem:[%s23343_s21 + $0x7f8] sm:$0xff] }
0x1c09   : > { %9643 = vmatprep.mubr.f32.mxu0 %v17524_v14  ;;  %9737 = vmatprep.mubr.f32.mxu1 %v17524_v14  ;;  %v16767_v48 = vpack.c.bf16 %v12908_v38, %v12906_v0  ;;  %v12960_v36 = vld [vmem:[%s23343_s21 + $0x6c0] sm:$0xff]  ;;  %v12948_v0 = vld [vmem:[%s23343_s21 + $0x670] sm:$0xff] }
0x1c0a   : > { %16730 = vmatprep.subr.bf16.mxu0 %v16729_v54  ;;  %16746 = vmatprep.subr.bf16.mxu1 %v16745_v55  ;;  %v12911_v54 = vld [vmem:[%s23343_s21 + $0x568] sm:$0xff]  ;;  %v12913_v55 = vld [vmem:[%s23343_s21 + $0x578] sm:$0xff] }
0x1c0b   : > { %12843 = vmatmul.mubr.msk.f32.gmra.mrb[146].mxu0 %vm2675_vm2, %v21031_v39  ;;  %12861 = vmatmul.mubr.msk.f32.gmra.mrb[142].mxu1 %vm2675_vm2, %v21031_v39  ;;  %v16769_v19 = vpack.c.bf16 %v12913_v55, %v12911_v54  ;;  %v12973_v54 = vld [vmem:[%s23343_s21 + $0x718] sm:$0xff]  ;;  %v12989_v55 = vld [vmem:[%s23343_s21 + $0x788] sm:$0xff] }
0x1c0c   : > { %16732 = vmatpush1.bf16.msra.mxu0 %v16731_v12  ;;  %16748 = vmatpush1.bf16.msra.mxu1 %v16747_v20  ;;  %v16783_v12 = vpack.c.bf16 %v12926_v53, %v12924_v50  ;;  %v12910_v20 = vld [vmem:[%s23343_s21 + $0x560] sm:$0xff]  ;;  %v12966_v50 = vld [vmem:[%s23343_s21 + $0x6f0] sm:$0xff]  ;;  %v12971_v53 = vld [vmem:[%s23343_s21 + $0x708] sm:$0xff] }
0x1c0d   : > { %16734 = vmatprep.subr.bf16.mxu0 %v16733_v7  ;;  %16750 = vmatprep.subr.bf16.mxu1 %v16749_v52  ;;  %v16785_v7 = vpack.c.bf16 %v12931_v47, %v12929_v56  ;;  %v12928_v52 = vld [vmem:[%s23343_s21 + $0x5e0] sm:$0xff]  ;;  %v16771_v21 = vpack.c.bf16 %v12912_v13, %v12910_v20  ;;  %v12991_v56 = vld [vmem:[%s23343_s21 + $0x798] sm:$0xff]  ;;  %v16821_v20 = vpack.c.bf16 %v12973_v54, %v12971_v53 }
0x1c0e   : > { %9825 = vmatprep.mubr.f32.mxu0 %v17524_v14  ;;  %9919 = vmatprep.mubr.f32.mxu1 %v17524_v14  ;;  %v16837_v13 = vpack.c.bf16 %v12991_v56, %v12989_v55 }
0x1c10   : > { %16736 = vmatpush1.bf16.msra.mxu0 %v16735_v63  ;;  %16752 = vmatpush1.bf16.msra.mxu1 %v16751_v4  ;;  %v16787_v63 = vpack.c.bf16 %v12930_v59, %v12928_v52  ;;  %v12934_v4 = vld [vmem:[%s23343_s21 + $0x600] sm:$0xff]  ;;  %v12990_v52 = vld [vmem:[%s23343_s21 + $0x790] sm:$0xff]  ;;  %v12975_v59 = vld [vmem:[%s23343_s21 + $0x728] sm:$0xff] }
0x1c11   : > { %16738 = vmatprep.subr.bf16.mxu0 %v16737_v10  ;;  %16754 = vmatprep.subr.bf16.mxu1 %v16753_v57  ;;  %v12936_v10 = vld [vmem:[%s23343_s21 + $0x610] sm:$0xff]  ;;  %v12952_v57 = vld [vmem:[%s23343_s21 + $0x680] sm:$0xff] }
0x1c12   : > { %v16791_v44 = vpack.c.bf16 %v12936_v10, %v12934_v4  ;;  %v12976_v4 = vld [vmem:[%s23343_s21 + $0x730] sm:$0xff]  ;;  %v12979_v10 = vld [vmem:[%s23343_s21 + $0x748] sm:$0xff] }
0x1c14   : > { %16740 = vmatpush1.bf16.msra.mxu0 %v16739_v23  ;;  %16756 = vmatpush1.bf16.msra.mxu1 %v16755_v26  ;;  %v16807_v23 = vpack.c.bf16 %v12954_v8, %v12952_v57  ;;  %v12938_v26 = vld [vmem:[%s23343_s21 + $0x620] sm:$0xff]  ;;  %v16825_v57 = vpack.c.bf16 %v12977_v62, %v12975_v59  ;;  %v16841_v8 = vpack.c.bf16 %v12995_v6, %v12993_v5 }
0x1c15   : > { %16758 = vmatprep.subr.bf16.mxu0 %v16757_v3  ;;  %16774 = vmatprep.subr.bf16.mxu1 %v16773_v30  ;;  %v12956_v3 = vld [vmem:[%s23343_s21 + $0x6a0] sm:$0xff]  ;;  %v12958_v30 = vld [vmem:[%s23343_s21 + $0x6b0] sm:$0xff]  ;;  %v16795_v34 = vpack.c.bf16 %v12940_v28, %v12938_v26  ;;  %v16829_v28 = vpack.c.bf16 %v12981_v1, %v12979_v10 }
0x1c16   : > { %v12980_v26 = vld [vmem:[%s23343_s21 + $0x750] sm:$0xff] }
0x1c17   : > { %12878 = vmatmul.mubr.msk.f32.vlgmr.msra.gmra.mrb[148].mxu0 %vm2675_vm2, %v21001_v29  ;;  %12896 = vmatmul.mubr.msk.f32.vlgmr.msra.gmra.mrb[144].mxu1 %vm2675_vm2, %v21001_v29 }
0x1c18   : > { %16760 = vmatpush1.bf16.msra.mxu0 %v16759_v61  ;;  %16776 = vmatpush1.bf16.msra.mxu1 %v16775_v15  ;;  %v16811_v61 = vpack.c.bf16 %v12958_v30, %v12956_v3  ;;  %v12942_v15 = vld [vmem:[%s23343_s21 + $0x640] sm:$0xff]  ;;  %v16845_v3 = vpack.c.bf16 %v12999_v2, %v12997_v25 }
0x1c19   : > { %9831 = vmatprep.mubr.f32.mxu0 %v17524_v14  ;;  %9925 = vmatprep.mubr.f32.mxu1 %v17524_v14  ;;  %v16799_v42 = vpack.c.bf16 %v12944_v17, %v12942_v15  ;;  %v12996_v30 = vld [vmem:[%s23343_s21 + $0x7c0] sm:$0xff]  ;;  %v16849_v17 = vpack.c.bf16 %v13003_v9, %v13001_v32 }
0x1c1a   : > { %16762 = vmatprep.subr.bf16.mxu0 %v16761_v11  ;;  %16778 = vmatprep.subr.bf16.mxu1 %v16777_v40  ;;  %v12947_v11 = vld [vmem:[%s23343_s21 + $0x668] sm:$0xff]  ;;  %v12949_v40 = vld [vmem:[%s23343_s21 + $0x678] sm:$0xff] }
0x1c1b   : > { %12879 = vmatmul.mubr.msk.f32.gmra.mrb[150].mxu0 %vm2675_vm2, %v21031_v39  ;;  %12897 = vmatmul.mubr.msk.f32.gmra.mrb[146].mxu1 %vm2675_vm2, %v21031_v39  ;;  %v16801_v38 = vpack.c.bf16 %v12949_v40, %v12947_v11  ;;  %v8986_v40 = vld [vmem:[%s23344_s22 + $0x8] sm:$0xff] }
0x1c1c   : > { %16764 = vmatpush1.bf16.msra.mxu0 %v16763_v31  ;;  %16780 = vmatpush1.bf16.msra.mxu1 %v16779_v46  ;;  %v16815_v31 = vpack.c.bf16 %v12962_v37, %v12960_v36  ;;  %v12946_v46 = vld [vmem:[%s23343_s21 + $0x660] sm:$0xff]  ;;  %v13002_v36 = vld [vmem:[%s23343_s21 + $0x7f0] sm:$0xff] }
0x1c1d   : > { %16766 = vmatprep.subr.bf16.mxu0 %v16765_v49  ;;  %16782 = vmatprep.subr.bf16.mxu1 %v16781_v45  ;;  %v16817_v49 = vpack.c.bf16 %v12967_v27, %v12965_v41  ;;  %v12964_v45 = vld [vmem:[%s23343_s21 + $0x6e0] sm:$0xff]  ;;  %v16803_v47 = vpack.c.bf16 %v12948_v0, %v12946_v46 }
0x1c1e   : > { %10013 = vmatprep.mubr.f32.mxu0 %v17524_v14  ;;  %10107 = vmatprep.mubr.f32.mxu1 %v17524_v14 }
0x1c20   : > { %16768 = vmatpush1.bf16.msra.mxu0 %v16767_v48  ;;  %16784 = vmatpush1.bf16.msra.mxu1 %v16783_v12  ;;  %v16819_v48 = vpack.c.bf16 %v12966_v50, %v12964_v45  ;;  %v12970_v12 = vld [vmem:[%s23343_s21 + $0x700] sm:$0xff] }
0x1c21   : > { %16770 = vmatprep.subr.bf16.mxu0 %v16769_v19  ;;  %16786 = vmatprep.subr.bf16.mxu1 %v16785_v7  ;;  %v12972_v19 = vld [vmem:[%s23343_s21 + $0x710] sm:$0xff]  ;;  %v12988_v7 = vld [vmem:[%s23343_s21 + $0x780] sm:$0xff] }
0x1c22   : > { %v16823_v33 = vpack.c.bf16 %v12972_v19, %v12970_v12 }
0x1c24   : > { %16772 = vmatpush1.bf16.msra.mxu0 %v16771_v21  ;;  %16788 = vmatpush1.bf16.msra.mxu1 %v16787_v63  ;;  %v16839_v21 = vpack.c.bf16 %v12990_v52, %v12988_v7  ;;  %v12974_v63 = vld [vmem:[%s23343_s21 + $0x720] sm:$0xff] }
0x1c25   : > { %16790 = vmatprep.subr.bf16.mxu0 %v16789_v22  ;;  %16806 = vmatprep.subr.bf16.mxu1 %v16805_v24  ;;  %v12992_v22 = vld [vmem:[%s23343_s21 + $0x7a0] sm:$0xff]  ;;  %v12994_v24 = vld [vmem:[%s23343_s21 + $0x7b0] sm:$0xff]  ;;  %v16827_v43 = vpack.c.bf16 %v12976_v4, %v12974_v63 }
0x1c27   : > { %12914 = vmatmul.mubr.msk.f32.vlgmr.msra.gmra.mrb[152].mxu0 %vm2675_vm2, %v21001_v29  ;;  %12932 = vmatmul.mubr.msk.f32.vlgmr.msra.gmra.mrb[148].mxu1 %vm2675_vm2, %v21001_v29 }
0x1c28   : > { %16792 = vmatpush1.bf16.msra.mxu0 %v16791_v44  ;;  %16808 = vmatpush1.bf16.msra.mxu1 %v16807_v23  ;;  %v16843_v44 = vpack.c.bf16 %v12994_v24, %v12992_v22  ;;  %v12978_v23 = vld [vmem:[%s23343_s21 + $0x740] sm:$0xff] }
0x1c29   : > { %10019 = vmatprep.mubr.f32.mxu0 %v17524_v14  ;;  %10113 = vmatprep.mubr.f32.mxu1 %v17524_v14  ;;  %v16831_v16 = vpack.c.bf16 %v12980_v26, %v12978_v23 }
0x1c2a   : > { %16794 = vmatprep.subr.bf16.mxu0 %v16793_v58  ;;  %16810 = vmatprep.subr.bf16.mxu1 %v16809_v60  ;;  %v12983_v58 = vld [vmem:[%s23343_s21 + $0x768] sm:$0xff]  ;;  %v12985_v60 = vld [vmem:[%s23343_s21 + $0x778] sm:$0xff] }
0x1c2b   : > { %12915 = vmatmul.mubr.msk.f32.gmra.mrb[154].mxu0 %vm2675_vm2, %v21031_v39  ;;  %12933 = vmatmul.mubr.msk.f32.gmra.mrb[150].mxu1 %vm2675_vm2, %v21031_v39  ;;  %v16833_v15 = vpack.c.bf16 %v12985_v60, %v12983_v58 }
0x1c2c   : > { %16796 = vmatpush1.bf16.msra.mxu0 %v16795_v34  ;;  %16812 = vmatpush1.bf16.msra.mxu1 %v16811_v61  ;;  %v16847_v34 = vpack.c.bf16 %v12998_v51, %v12996_v30  ;;  %v12982_v61 = vld [vmem:[%s23343_s21 + $0x760] sm:$0xff] }
0x1c2d   : > { %16798 = vmatprep.subr.bf16.mxu0 %v16797_v18  ;;  %16814 = vmatprep.subr.bf16.mxu1 %v16813_v35  ;;  %v12984_v18 = vld [vmem:[%s23343_s21 + $0x770] sm:$0xff]  ;;  %v13000_v35 = vld [vmem:[%s23343_s21 + $0x7e0] sm:$0xff] }
0x1c2e   : > { %10201 = vmatprep.mubr.f32.mxu0 %v17524_v14  ;;  %10295 = vmatprep.mubr.f32.mxu1 %v17524_v14  ;;  %v16835_v37 = vpack.c.bf16 %v12984_v18, %v12982_v61  ;;  %v16851_v11 = vpack.c.bf16 %v13002_v36, %v13000_v35 }
0x1c30   : > { %16800 = vmatpush1.bf16.msra.mxu0 %v16799_v42  ;;  %16816 = vmatpush1.bf16.msra.mxu1 %v16815_v31 }
0x1c31   : > { %16802 = vmatprep.subr.bf16.mxu0 %v16801_v38  ;;  %16818 = vmatprep.subr.bf16.mxu1 %v16817_v49 }
0x1c34   : > { %16804 = vmatpush1.bf16.msra.mxu0 %v16803_v47  ;;  %16820 = vmatpush1.bf16.msra.mxu1 %v16819_v48 }
0x1c35   : > { %16822 = vmatprep.subr.bf16.mxu0 %v16821_v20  ;;  %16838 = vmatprep.subr.bf16.mxu1 %v16837_v13 }
0x1c37   : > { %12950 = vmatmul.mubr.msk.f32.vlgmr.msra.gmra.mrb[156].mxu0 %vm2675_vm2, %v21001_v29  ;;  %12968 = vmatmul.mubr.msk.f32.vlgmr.msra.gmra.mrb[152].mxu1 %vm2675_vm2, %v21001_v29 }
0x1c38   : > { %16824 = vmatpush1.bf16.msra.mxu0 %v16823_v33  ;;  %16840 = vmatpush1.bf16.msra.mxu1 %v16839_v21 }
0x1c39   : > { %10207 = vmatprep.mubr.f32.mxu0 %v17524_v14  ;;  %10301 = vmatprep.mubr.f32.mxu1 %v17524_v14 }
0x1c3a   : > { %16826 = vmatprep.subr.bf16.mxu0 %v16825_v57  ;;  %16842 = vmatprep.subr.bf16.mxu1 %v16841_v8 }
0x1c3b   : > { %12951 = vmatmul.mubr.msk.f32.gmra.mrb[158].mxu0 %vm2675_vm2, %v21031_v39  ;;  %12969 = vmatmul.mubr.msk.f32.gmra.mrb[154].mxu1 %vm2675_vm2, %v21031_v39 }
0x1c3c   : > { %16828 = vmatpush1.bf16.msra.mxu0 %v16827_v43  ;;  %16844 = vmatpush1.bf16.msra.mxu1 %v16843_v44 }
0x1c3d   : > { %16830 = vmatprep.subr.bf16.mxu0 %v16829_v28  ;;  %16846 = vmatprep.subr.bf16.mxu1 %v16845_v3 }
0x1c3e   : > { %10389 = vmatprep.mubr.f32.mxu0 %v17524_v14  ;;  %10483 = vmatprep.mubr.f32.mxu1 %v17524_v14 }
0x1c40   : > { %16832 = vmatpush1.bf16.msra.mxu0 %v16831_v16  ;;  %16848 = vmatpush1.bf16.msra.mxu1 %v16847_v34 }
0x1c41   : > { %16834 = vmatprep.subr.bf16.mxu0 %v16833_v15  ;;  %16850 = vmatprep.subr.bf16.mxu1 %v16849_v17 }
0x1c44   : > { %16836 = vmatpush1.bf16.msra.mxu0 %v16835_v37  ;;  %16852 = vmatpush1.bf16.msra.mxu1 %v16851_v11 }
0x1c47   : > { %12986 = vmatmul.mubr.msk.f32.vlgmr.msra.gmra.mrb[160].mxu0 %vm2675_vm2, %v21001_v29  ;;  %13004 = vmatmul.mubr.msk.f32.vlgmr.msra.gmra.mrb[156].mxu1 %vm2675_vm2, %v21001_v29 }
0x1c48   : > { %10395 = vmatprep.mubr.f32.mxu0 %v17524_v14  ;;  %10489 = vmatprep.mubr.f32.mxu1 %v17524_v14 }
0x1c4b   : > { %12987 = vmatmul.mubr.msk.f32.gmra.mrb[162].mxu0 %vm2675_vm2, %v21031_v39  ;;  %13005 = vmatmul.mubr.msk.f32.gmra.mrb[158].mxu1 %vm2675_vm2, %v21031_v39 }
0x1c4c   : > { %10560 = vmatprep.mubr.f32.mxu0 %v8986_v40 }
0x1caa   : > { %v9075_v41 = vpop.f32.mrb[132].mxu0  ;;  %v9169_v27 = vpop.f32.mrb[128].mxu1 }
0x1cab   : > { %v9077_v42 = vpop.f32.mrb[133].mxu0  ;;  %v9171_v31 = vpop.f32.mrb[129].mxu1 }
0x1cae   : > { %v9081_v29 = vpop.f32.mrb[134].mxu0  ;;  %v9175_v46 = vpop.f32.mrb[130].mxu1 }
0x1caf   : > { %v16855_v0 = vpack.c.bf16 %v9081_v29, %v9075_v41  ;;  %v16859_v38 = vpack.c.bf16 %v9175_v46, %v9169_v27  ;;  %v9083_v14 = vpop.f32.mrb[135].mxu0  ;;  %v9177_v49 = vpop.f32.mrb[131].mxu1 }
0x1cb0   : > { %v16853_v45 = vpack.c.bf16 %v9083_v14, %v9077_v42  ;;  %v16857_v50 = vpack.c.bf16 %v9177_v49, %v9171_v31 }
0x1cb2   : > { %16854 = vmatprep.subr.bf16.mxu0 %v16853_v45 }
0x1cb3   : > { %16856 = vmatpush1.bf16.msra.mxu0 %v16855_v0 }
0x1cb4   : > { %16858 = vmatprep.subr.bf16.mxu0 %v16857_v50 }
0x1cb7   : > { %16860 = vmatpush1.bf16.msra.mxu0 %v16859_v38 }
0x1cba   : > { %v9263_v39 = vpop.f32.mrb[136].mxu0  ;;  %v9357_v53 = vpop.f32.mrb[132].mxu1 }
0x1cbb   : > { %v9265_v54 = vpop.f32.mrb[137].mxu0  ;;  %v9359_v55 = vpop.f32.mrb[133].mxu1 }
0x1cbe   : > { %v9269_v56 = vpop.f32.mrb[138].mxu0  ;;  %v9363_v47 = vpop.f32.mrb[134].mxu1 }
0x1cbf   : > { %v16863_v48 = vpack.c.bf16 %v9269_v56, %v9263_v39  ;;  %v16867_v12 = vpack.c.bf16 %v9363_v47, %v9357_v53  ;;  %v9271_v20 = vpop.f32.mrb[139].mxu0  ;;  %v9365_v13 = vpop.f32.mrb[135].mxu1 }
0x1cc0   : > { %v16861_v19 = vpack.c.bf16 %v9271_v20, %v9265_v54  ;;  %v16865_v7 = vpack.c.bf16 %v9365_v13, %v9359_v55 }
0x1cc2   : > { %16862 = vmatprep.subr.bf16.mxu0 %v16861_v19 }
0x1cc3   : > { %16864 = vmatpush1.bf16.msra.mxu0 %v16863_v48 }
0x1cc4   : > { %16866 = vmatprep.subr.bf16.mxu0 %v16865_v7 }
0x1cc7   : > { %16868 = vmatpush1.bf16.msra.mxu0 %v16867_v12 }
0x1cca   : > { %v9451_v52 = vpop.f32.mrb[140].mxu0  ;;  %v9545_v59 = vpop.f32.mrb[136].mxu1 }
0x1ccb   : > { %v9453_v62 = vpop.f32.mrb[141].mxu0  ;;  %v9547_v5 = vpop.f32.mrb[137].mxu1 }
0x1cce   : > { %v9457_v6 = vpop.f32.mrb[142].mxu0  ;;  %v9551_v33 = vpop.f32.mrb[138].mxu1 }
0x1ccf   : > { %v16871_v21 = vpack.c.bf16 %v9457_v6, %v9451_v52  ;;  %v16875_v63 = vpack.c.bf16 %v9551_v33, %v9545_v59  ;;  %v9459_v4 = vpop.f32.mrb[143].mxu0  ;;  %v9553_v22 = vpop.f32.mrb[139].mxu1 }
0x1cd0   : > { %v16869_v24 = vpack.c.bf16 %v9459_v4, %v9453_v62  ;;  %v16873_v10 = vpack.c.bf16 %v9553_v22, %v9547_v5  ;;  %v8985_v4 = vld [vmem:[%s23344_s22] sm:$0xff] }
0x1cd2   : > { %16870 = vmatprep.subr.bf16.mxu0 %v16869_v24 }
0x1cd3   : > { %16872 = vmatpush1.bf16.msra.mxu0 %v16871_v21 }
0x1cd4   : > { %16874 = vmatprep.subr.bf16.mxu0 %v16873_v10 }
0x1cd7   : > { %16876 = vmatpush1.bf16.msra.mxu0 %v16875_v63 }
0x1cda   : > { %v9639_v57 = vpop.f32.mrb[144].mxu0  ;;  %v9733_v8 = vpop.f32.mrb[140].mxu1 }
0x1cdb   : > { %v9641_v1 = vpop.f32.mrb[145].mxu0  ;;  %v9735_v25 = vpop.f32.mrb[141].mxu1 }
0x1cde   : > { %v9645_v2 = vpop.f32.mrb[146].mxu0  ;;  %v9739_v43 = vpop.f32.mrb[142].mxu1 }
0x1cdf   : > { %v16879_v44 = vpack.c.bf16 %v9645_v2, %v9639_v57  ;;  %v16883_v23 = vpack.c.bf16 %v9739_v43, %v9733_v8  ;;  %v9647_v26 = vpop.f32.mrb[147].mxu0  ;;  %v9741_v28 = vpop.f32.mrb[143].mxu1  ;;  %v10568_v57 = vld [vmem:[%s23346_s24] sm:$0xff]  ;;  %v10602_v8 = vld [vmem:[%s23347_s25 + $0x8] sm:$0xff]  ;;  %v13009_v43 = vld [vmem:[%s23347_s25 + $0x218] sm:$0xff] }
0x1ce0   : > { %v16877_v3 = vpack.c.bf16 %v9647_v26, %v9641_v1  ;;  %v16881_v30 = vpack.c.bf16 %v9741_v28, %v9735_v25  ;;  %v10604_v1 = vld [vmem:[%s23347_s25 + $0x18] sm:$0xff]  ;;  %v13007_v25 = vld [vmem:[%s23347_s25 + $0x208] sm:$0xff] }
0x1ce1   : > { %v16917_v2 = vpack.c.bf16 %v10604_v1, %v10602_v8  ;;  %v16981_v26 = vpack.c.bf16 %v13009_v43, %v13007_v25  ;;  %v10623_v43 = vld [vmem:[%s23347_s25 + $0xb0] sm:$0xff] }
0x1ce2   : > { %16878 = vmatprep.subr.bf16.mxu0 %v16877_v3  ;;  %v13006_v3 = vld [vmem:[%s23347_s25 + $0x200] sm:$0xff] }
0x1ce3   : > { %16880 = vmatpush1.bf16.msra.mxu0 %v16879_v44  ;;  %v10601_v44 = vld [vmem:[%s23347_s25] sm:$0xff]  ;;  %16918 = vmatprep.subr.bf16.mxu1 %v16917_v2 }
0x1ce4   : > { %16882 = vmatprep.subr.bf16.mxu0 %v16881_v30  ;;  %v13008_v30 = vld [vmem:[%s23347_s25 + $0x210] sm:$0xff]  ;;  %v10621_v2 = vld [vmem:[%s23347_s25 + $0xa0] sm:$0xff] }
0x1ce7   : > { %16884 = vmatpush1.bf16.msra.mxu0 %v16883_v23  ;;  %v10603_v23 = vld [vmem:[%s23347_s25 + $0x10] sm:$0xff] }
0x1ce8   : > { %v16919_v28 = vpack.c.bf16 %v10603_v23, %v10601_v44  ;;  %v13026_v44 = vld [vmem:[%s23347_s25 + $0x2a0] sm:$0xff] }
0x1cea   : > { %v9827_v51 = vpop.f32.mrb[148].mxu0  ;;  %v9921_v58 = vpop.f32.mrb[144].mxu1  ;;  %16920 = vmatpush1.bf16.msra.mxu1 %v16919_v28  ;;  %v10626_v28 = vld [vmem:[%s23347_s25 + $0xc8] sm:$0xff] }
0x1ceb   : > { %v9829_v60 = vpop.f32.mrb[149].mxu0  ;;  %v9923_v32 = vpop.f32.mrb[145].mxu1 }
0x1cee   : > { %v9833_v9 = vpop.f32.mrb[150].mxu0  ;;  %v9927_v16 = vpop.f32.mrb[146].mxu1 }
0x1cef   : > { %v16887_v34 = vpack.c.bf16 %v9833_v9, %v9827_v51  ;;  %v16891_v61 = vpack.c.bf16 %v9927_v16, %v9921_v58  ;;  %v9835_v15 = vpop.f32.mrb[151].mxu0  ;;  %v9929_v17 = vpop.f32.mrb[147].mxu1  ;;  %v10606_v51 = vld [vmem:[%s23347_s25 + $0x28] sm:$0xff]  ;;  %v16983_v58 = vpack.c.bf16 %v13008_v30, %v13006_v3  ;;  %v13013_v9 = vld [vmem:[%s23347_s25 + $0x238] sm:$0xff] }
0x1cf0   : > { %v16885_v18 = vpack.c.bf16 %v9835_v15, %v9829_v60  ;;  %v16889_v35 = vpack.c.bf16 %v9929_v17, %v9923_v32  ;;  %v10608_v60 = vld [vmem:[%s23347_s25 + $0x38] sm:$0xff]  ;;  %v13011_v32 = vld [vmem:[%s23347_s25 + $0x228] sm:$0xff]  ;;  %v10607_v15 = vld [vmem:[%s23347_s25 + $0x30] sm:$0xff] }
0x1cf1   : > { %v16921_v16 = vpack.c.bf16 %v10608_v60, %v10606_v51  ;;  %v13010_v17 = vld [vmem:[%s23347_s25 + $0x220] sm:$0xff]  ;;  %v10628_v3 = vld [vmem:[%s23347_s25 + $0xd8] sm:$0xff]  ;;  %v13031_v30 = vld [vmem:[%s23347_s25 + $0x2c8] sm:$0xff] }
0x1cf2   : > { %16886 = vmatprep.subr.bf16.mxu0 %v16885_v18  ;;  %v13033_v51 = vld [vmem:[%s23347_s25 + $0x2d8] sm:$0xff] }
0x1cf3   : > { %16888 = vmatpush1.bf16.msra.mxu0 %v16887_v34  ;;  %v16985_v34 = vpack.c.bf16 %v13013_v9, %v13011_v32  ;;  %16922 = vmatprep.subr.bf16.mxu1 %v16921_v16  ;;  %v16941_v32 = vpack.c.bf16 %v10628_v3, %v10626_v28  ;;  %v10625_v9 = vld [vmem:[%s23347_s25 + $0xc0] sm:$0xff]  ;;  %v10627_v16 = vld [vmem:[%s23347_s25 + $0xd0] sm:$0xff] }
0x1cf4   : > { %16890 = vmatprep.subr.bf16.mxu0 %v16889_v35  ;;  %v13012_v35 = vld [vmem:[%s23347_s25 + $0x230] sm:$0xff]  ;;  %v10641_v3 = vld [vmem:[%s23347_s25 + $0x140] sm:$0xff] }
0x1cf7   : > { %16892 = vmatpush1.bf16.msra.mxu0 %v16891_v61  ;;  %v10605_v61 = vld [vmem:[%s23347_s25 + $0x20] sm:$0xff] }
0x1cf8   : > { %v16923_v18 = vpack.c.bf16 %v10607_v15, %v10605_v61  ;;  %v17005_v61 = vpack.c.bf16 %v13033_v51, %v13031_v30  ;;  %v13032_v15 = vld [vmem:[%s23347_s25 + $0x2d0] sm:$0xff] }
0x1cf9   : > { %v13048_v51 = vld [vmem:[%s23347_s25 + $0x350] sm:$0xff] }
0x1cfa   : > { %v10015_v36 = vpop.f32.mrb[152].mxu0  ;;  %v10109_v37 = vpop.f32.mrb[148].mxu1  ;;  %16924 = vmatpush1.bf16.msra.mxu1 %v16923_v18  ;;  %v10632_v18 = vld [vmem:[%s23347_s25 + $0xf8] sm:$0xff] }
0x1cfb   : > { %v10017_v11 = vpop.f32.mrb[153].mxu0  ;;  %v10111_v40 = vpop.f32.mrb[149].mxu1 }
0x1cfe   : > { %v10021_v41 = vpop.f32.mrb[154].mxu0  ;;  %v10115_v27 = vpop.f32.mrb[150].mxu1 }
0x1cff   : > { %v16895_v42 = vpack.c.bf16 %v10021_v41, %v10015_v36  ;;  %v16899_v31 = vpack.c.bf16 %v10115_v27, %v10109_v37  ;;  %v10023_v29 = vpop.f32.mrb[155].mxu0  ;;  %v10117_v46 = vpop.f32.mrb[151].mxu1  ;;  %v10610_v36 = vld [vmem:[%s23347_s25 + $0x48] sm:$0xff]  ;;  %v10612_v37 = vld [vmem:[%s23347_s25 + $0x58] sm:$0xff] }
0x1d00   : > { %v16893_v0 = vpack.c.bf16 %v10023_v29, %v10017_v11  ;;  %v16897_v38 = vpack.c.bf16 %v10117_v46, %v10111_v40  ;;  %v16987_v11 = vpack.c.bf16 %v13012_v35, %v13010_v17  ;;  %v16925_v40 = vpack.c.bf16 %v10612_v37, %v10610_v36  ;;  %v13015_v41 = vld [vmem:[%s23347_s25 + $0x248] sm:$0xff]  ;;  %v13017_v27 = vld [vmem:[%s23347_s25 + $0x258] sm:$0xff]  ;;  %v10611_v29 = vld [vmem:[%s23347_s25 + $0x50] sm:$0xff] }
0x1d01   : > { %v13014_v46 = vld [vmem:[%s23347_s25 + $0x240] sm:$0xff]  ;;  %v10630_v17 = vld [vmem:[%s23347_s25 + $0xe8] sm:$0xff]  ;;  %v13037_v36 = vld [vmem:[%s23347_s25 + $0x2f8] sm:$0xff]  ;;  %v16943_v37 = vpack.c.bf16 %v10627_v16, %v10625_v9 }
0x1d02   : > { %16894 = vmatprep.subr.bf16.mxu0 %v16893_v0  ;;  %v13016_v0 = vld [vmem:[%s23347_s25 + $0x250] sm:$0xff]  ;;  %16926 = vmatprep.subr.bf16.mxu1 %v16925_v40  ;;  %v13035_v35 = vld [vmem:[%s23347_s25 + $0x2e8] sm:$0xff]  ;;  %v16945_v40 = vpack.c.bf16 %v10632_v18, %v10630_v17 }
0x1d03   : > { %16896 = vmatpush1.bf16.msra.mxu0 %v16895_v42  ;;  %v10609_v42 = vld [vmem:[%s23347_s25 + $0x40] sm:$0xff]  ;;  %v13051_v9 = vld [vmem:[%s23347_s25 + $0x368] sm:$0xff] }
0x1d04   : > { %16898 = vmatprep.subr.bf16.mxu0 %v16897_v38  ;;  %v16927_v38 = vpack.c.bf16 %v10611_v29, %v10609_v42  ;;  %v13034_v42 = vld [vmem:[%s23347_s25 + $0x2e0] sm:$0xff]  ;;  %v13036_v29 = vld [vmem:[%s23347_s25 + $0x2f0] sm:$0xff] }
0x1d06   : > { %16928 = vmatpush1.bf16.msra.mxu1 %v16927_v38  ;;  %v13039_v38 = vld [vmem:[%s23347_s25 + $0x308] sm:$0xff] }
0x1d07   : > { %16900 = vmatpush1.bf16.msra.mxu0 %v16899_v31  ;;  %v16989_v31 = vpack.c.bf16 %v13017_v27, %v13015_v41  ;;  %v10629_v41 = vld [vmem:[%s23347_s25 + $0xe0] sm:$0xff]  ;;  %v10631_v27 = vld [vmem:[%s23347_s25 + $0xf0] sm:$0xff] }
0x1d0a   : > { %v10203_v14 = vpop.f32.mrb[156].mxu0  ;;  %v10297_v49 = vpop.f32.mrb[152].mxu1 }
0x1d0b   : > { %v10205_v45 = vpop.f32.mrb[157].mxu0  ;;  %v10299_v50 = vpop.f32.mrb[153].mxu1 }
0x1d0e   : > { %v10209_v39 = vpop.f32.mrb[158].mxu0  ;;  %v10303_v53 = vpop.f32.mrb[154].mxu1 }
0x1d0f   : > { %v16903_v54 = vpack.c.bf16 %v10209_v39, %v10203_v14  ;;  %v16907_v55 = vpack.c.bf16 %v10303_v53, %v10297_v49  ;;  %v10211_v56 = vpop.f32.mrb[159].mxu0  ;;  %v10305_v47 = vpop.f32.mrb[155].mxu1  ;;  %v10614_v14 = vld [vmem:[%s23347_s25 + $0x68] sm:$0xff]  ;;  %v10616_v49 = vld [vmem:[%s23347_s25 + $0x78] sm:$0xff] }
0x1d10   : > { %v16901_v48 = vpack.c.bf16 %v10211_v56, %v10205_v45  ;;  %v16905_v12 = vpack.c.bf16 %v10305_v47, %v10299_v50  ;;  %v13019_v45 = vld [vmem:[%s23347_s25 + $0x268] sm:$0xff]  ;;  %v16991_v50 = vpack.c.bf16 %v13016_v0, %v13014_v46  ;;  %v16929_v39 = vpack.c.bf16 %v10616_v49, %v10614_v14  ;;  %v13021_v53 = vld [vmem:[%s23347_s25 + $0x278] sm:$0xff]  ;;  %v13018_v47 = vld [vmem:[%s23347_s25 + $0x260] sm:$0xff] }
0x1d11   : > { %v16993_v56 = vpack.c.bf16 %v13021_v53, %v13019_v45  ;;  %v10634_v46 = vld [vmem:[%s23347_s25 + $0x108] sm:$0xff]  ;;  %v10636_v0 = vld [vmem:[%s23347_s25 + $0x118] sm:$0xff]  ;;  %v16947_v49 = vpack.c.bf16 %v10631_v27, %v10629_v41  ;;  %v17011_v45 = vpack.c.bf16 %v13036_v29, %v13034_v42  ;;  %v10635_v53 = vld [vmem:[%s23347_s25 + $0x110] sm:$0xff] }
0x1d12   : > { %16902 = vmatprep.subr.bf16.mxu0 %v16901_v48  ;;  %v13020_v48 = vld [vmem:[%s23347_s25 + $0x270] sm:$0xff]  ;;  %16930 = vmatprep.subr.bf16.mxu1 %v16929_v39  ;;  %v13041_v14 = vld [vmem:[%s23347_s25 + $0x318] sm:$0xff]  ;;  %v10633_v39 = vld [vmem:[%s23347_s25 + $0x100] sm:$0xff] }
0x1d13   : > { %16904 = vmatpush1.bf16.msra.mxu0 %v16903_v54  ;;  %v10613_v54 = vld [vmem:[%s23347_s25 + $0x60] sm:$0xff]  ;;  %v10652_v41 = vld [vmem:[%s23347_s25 + $0x198] sm:$0xff]  ;;  %v13055_v27 = vld [vmem:[%s23347_s25 + $0x388] sm:$0xff] }
0x1d14   : > { %16906 = vmatprep.subr.bf16.mxu0 %v16905_v12  ;;  %v10618_v12 = vld [vmem:[%s23347_s25 + $0x88] sm:$0xff]  ;;  %v10649_v29 = vld [vmem:[%s23347_s25 + $0x180] sm:$0xff] }
0x1d17   : > { %16908 = vmatpush1.bf16.msra.mxu0 %v16907_v55  ;;  %v10615_v55 = vld [vmem:[%s23347_s25 + $0x70] sm:$0xff] }
0x1d1a   : > { %v10391_v20 = vpop.f32.mrb[160].mxu0  ;;  %v10485_v13 = vpop.f32.mrb[156].mxu1 }
0x1d1b   : > { %v10393_v19 = vpop.f32.mrb[161].mxu0  ;;  %v10487_v7 = vpop.f32.mrb[157].mxu1 }
0x1d1e   : > { %v10397_v52 = vpop.f32.mrb[162].mxu0  ;;  %v10491_v59 = vpop.f32.mrb[158].mxu1 }
0x1d1f   : > { %v16911_v62 = vpack.c.bf16 %v10397_v52, %v10391_v20  ;;  %v16915_v5 = vpack.c.bf16 %v10491_v59, %v10485_v13  ;;  %v10399_v6 = vpop.f32.mrb[163].mxu0  ;;  %v10493_v33 = vpop.f32.mrb[159].mxu1  ;;  %v10620_v20 = vld [vmem:[%s23347_s25 + $0x98] sm:$0xff]  ;;  %v13023_v13 = vld [vmem:[%s23347_s25 + $0x288] sm:$0xff]  ;;  %v16995_v52 = vpack.c.bf16 %v13020_v48, %v13018_v47 }
0x1d20   : > { %v16909_v21 = vpack.c.bf16 %v10399_v6, %v10393_v19  ;;  %v16913_v63 = vpack.c.bf16 %v10493_v33, %v10487_v7  ;;  %v13025_v19 = vld [vmem:[%s23347_s25 + $0x298] sm:$0xff]  ;;  %v16931_v7 = vpack.c.bf16 %v10615_v55, %v10613_v54  ;;  %v16933_v59 = vpack.c.bf16 %v10620_v20, %v10618_v12  ;;  %v13022_v6 = vld [vmem:[%s23347_s25 + $0x280] sm:$0xff]  ;;  %v10638_v47 = vld [vmem:[%s23347_s25 + $0x128] sm:$0xff] }
0x1d21   : > { %v16997_v33 = vpack.c.bf16 %v13025_v19, %v13023_v13  ;;  %v13038_v54 = vld [vmem:[%s23347_s25 + $0x300] sm:$0xff]  ;;  %v17013_v55 = vpack.c.bf16 %v13041_v14, %v13039_v38  ;;  %v10640_v48 = vld [vmem:[%s23347_s25 + $0x138] sm:$0xff]  ;;  %v13043_v12 = vld [vmem:[%s23347_s25 + $0x328] sm:$0xff]  ;;  %v16951_v13 = vpack.c.bf16 %v10635_v53, %v10633_v39 }
0x1d22   : > { %16910 = vmatprep.subr.bf16.mxu0 %v16909_v21  ;;  %v13024_v21 = vld [vmem:[%s23347_s25 + $0x290] sm:$0xff]  ;;  %16932 = vmatpush1.bf16.msra.mxu1 %v16931_v7  ;;  %v13045_v20 = vld [vmem:[%s23347_s25 + $0x338] sm:$0xff]  ;;  %v16953_v7 = vpack.c.bf16 %v10640_v48, %v10638_v47  ;;  %v13054_v14 = vld [vmem:[%s23347_s25 + $0x380] sm:$0xff] }
0x1d23   : > { %16912 = vmatpush1.bf16.msra.mxu0 %v16911_v62  ;;  %v10617_v62 = vld [vmem:[%s23347_s25 + $0x80] sm:$0xff]  ;;  %16934 = vmatprep.subr.bf16.mxu1 %v16933_v59  ;;  %v16999_v1 = vpack.c.bf16 %v13024_v21, %v13022_v6  ;;  %v10639_v59 = vld [vmem:[%s23347_s25 + $0x130] sm:$0xff]  ;;  %v10644_v21 = vld [vmem:[%s23347_s25 + $0x158] sm:$0xff] }
0x1d24   : > { %16914 = vmatprep.subr.bf16.mxu0 %v16913_v63  ;;  %v10622_v63 = vld [vmem:[%s23347_s25 + $0xa8] sm:$0xff]  ;;  %v13044_v6 = vld [vmem:[%s23347_s25 + $0x330] sm:$0xff]  ;;  %v10656_v39 = vld [vmem:[%s23347_s25 + $0x1b8] sm:$0xff] }
0x1d25   : > { %v13059_v53 = vld [vmem:[%s23347_s25 + $0x3a8] sm:$0xff]  ;;  %v10655_v47 = vld [vmem:[%s23347_s25 + $0x1b0] sm:$0xff] }
0x1d27   : > { %16916 = vmatpush1.bf16.msra.mxu0 %v16915_v5  ;;  %v10619_v5 = vld [vmem:[%s23347_s25 + $0x90] sm:$0xff] }
0x1d28   : > { %16982 = vmatprep.subr.bf16.mxu0 %v16981_v26  ;;  %v16935_v8 = vpack.c.bf16 %v10619_v5, %v10617_v62  ;;  %v13028_v26 = vld [vmem:[%s23347_s25 + $0x2b0] sm:$0xff]  ;;  %v13042_v62 = vld [vmem:[%s23347_s25 + $0x320] sm:$0xff]  ;;  %v17017_v5 = vpack.c.bf16 %v13045_v20, %v13043_v12 }
0x1d29   : > { %v17003_v60 = vpack.c.bf16 %v13028_v26, %v13026_v44  ;;  %v13058_v20 = vld [vmem:[%s23347_s25 + $0x3a0] sm:$0xff] }
0x1d2a   : > { %10561 = vmatmul.mubr.f32.vlgmr.msra.gmra.mrb[164].mxu0 %v8985_v4  ;;  %v10624_v4 = vld [vmem:[%s23347_s25 + $0xb8] sm:$0xff]  ;;  %16936 = vmatpush1.bf16.msra.mxu1 %v16935_v8 }
0x1d2b   : > { %16984 = vmatpush1.bf16.msra.mxu0 %v16983_v58  ;;  %v16937_v25 = vpack.c.bf16 %v10624_v4, %v10622_v63  ;;  %v16939_v58 = vpack.c.bf16 %v10623_v43, %v10621_v2  ;;  %v13047_v63 = vld [vmem:[%s23347_s25 + $0x348] sm:$0xff]  ;;  %v13049_v4 = vld [vmem:[%s23347_s25 + $0x358] sm:$0xff] }
0x1d2c   : > { %16986 = vmatprep.subr.bf16.mxu0 %v16985_v34  ;;  %v13030_v34 = vld [vmem:[%s23347_s25 + $0x2c0] sm:$0xff] }
0x1d2d   : > { %16938 = vmatprep.subr.bf16.mxu1 %v16937_v25 }
0x1d2e   : > { %16940 = vmatpush1.bf16.msra.mxu1 %v16939_v58 }
0x1d2f   : > { %16988 = vmatpush1.bf16.msra.mxu0 %v16987_v11  ;;  %16942 = vmatprep.subr.bf16.mxu1 %v16941_v32  ;;  %v17007_v11 = vpack.c.bf16 %v13032_v15, %v13030_v34  ;;  %v10648_v32 = vld [vmem:[%s23347_s25 + $0x178] sm:$0xff]  ;;  %v10647_v15 = vld [vmem:[%s23347_s25 + $0x170] sm:$0xff] }
0x1d30   : > { %16990 = vmatprep.subr.bf16.mxu0 %v16989_v31  ;;  %v17009_v31 = vpack.c.bf16 %v13037_v36, %v13035_v35  ;;  %v13053_v34 = vld [vmem:[%s23347_s25 + $0x378] sm:$0xff]  ;;  %v13050_v35 = vld [vmem:[%s23347_s25 + $0x360] sm:$0xff]  ;;  %v13052_v36 = vld [vmem:[%s23347_s25 + $0x370] sm:$0xff] }
0x1d31   : > { %v17025_v17 = vpack.c.bf16 %v13053_v34, %v13051_v9 }
0x1d32   : > { %16944 = vmatpush1.bf16.msra.mxu1 %v16943_v37  ;;  %v10567_v37 = vld [vmem:[%s23345_s23] sm:$0xff] }
0x1d33   : > { %16992 = vmatpush1.bf16.msra.mxu0 %v16991_v50  ;;  %16946 = vmatprep.subr.bf16.mxu1 %v16945_v40  ;;  %v16949_v50 = vpack.c.bf16 %v10636_v0, %v10634_v46  ;;  %v10650_v40 = vld [vmem:[%s23347_s25 + $0x188] sm:$0xff]  ;;  %v10651_v46 = vld [vmem:[%s23347_s25 + $0x190] sm:$0xff] }
0x1d34   : > { %16994 = vmatprep.subr.bf16.mxu0 %v16993_v56  ;;  %v13040_v56 = vld [vmem:[%s23347_s25 + $0x310] sm:$0xff]  ;;  %v16965_v42 = vpack.c.bf16 %v10652_v41, %v10650_v40  ;;  %v16967_v38 = vpack.c.bf16 %v10651_v46, %v10649_v29  ;;  %v13070_v41 = vld [vmem:[%s23347_s25 + $0x400] sm:$0xff]  ;;  %v13075_v46 = vld [vmem:[%s23347_s25 + $0x428] sm:$0xff] }
0x1d35   : > { %v17015_v19 = vpack.c.bf16 %v13040_v56, %v13038_v54  ;;  %v10653_v56 = vld [vmem:[%s23347_s25 + $0x1a0] sm:$0xff] }
0x1d36   : > { %16948 = vmatpush1.bf16.msra.mxu1 %v16947_v49  ;;  %v13056_v49 = vld [vmem:[%s23347_s25 + $0x390] sm:$0xff]  ;;  %v16971_v12 = vpack.c.bf16 %v10655_v47, %v10653_v56  ;;  %v13079_v47 = vld [vmem:[%s23347_s25 + $0x448] sm:$0xff] }
0x1d37   : > { %16996 = vmatpush1.bf16.msra.mxu0 %v16995_v52  ;;  %16950 = vmatprep.subr.bf16.mxu1 %v16949_v50  ;;  %v10637_v52 = vld [vmem:[%s23347_s25 + $0x120] sm:$0xff]  ;;  %v10654_v50 = vld [vmem:[%s23347_s25 + $0x1a8] sm:$0xff]  ;;  %v13140_v56 = vld [vmem:[%s23347_s25 + $0x630] sm:$0xff] }
0x1d38   : > { %16998 = vmatprep.subr.bf16.mxu0 %v16997_v33  ;;  %v10642_v33 = vld [vmem:[%s23347_s25 + $0x148] sm:$0xff]  ;;  %v16969_v54 = vpack.c.bf16 %v10656_v39, %v10654_v50 }
0x1d39   : > { %v16957_v8 = vpack.c.bf16 %v10644_v21, %v10642_v33  ;;  %v10659_v33 = vld [vmem:[%s23347_s25 + $0x1d0] sm:$0xff] }
0x1d3a   : > { %16952 = vmatpush1.bf16.msra.mxu1 %v16951_v13  ;;  %v13060_v13 = vld [vmem:[%s23347_s25 + $0x3b0] sm:$0xff] }
0x1d3b   : > { %17000 = vmatpush1.bf16.msra.mxu0 %v16999_v1  ;;  %16954 = vmatprep.subr.bf16.mxu1 %v16953_v7  ;;  %v17021_v1 = vpack.c.bf16 %v13049_v4, %v13047_v63  ;;  %v10658_v7 = vld [vmem:[%s23347_s25 + $0x1c8] sm:$0xff]  ;;  %v13062_v4 = vld [vmem:[%s23347_s25 + $0x3c0] sm:$0xff] }
0x1dfd   : > { %v21735_v22 = vpop.f32.mrb[164].mxu0 }
0x1dfe   : > { %v21737_v24 = vpop.f32.mrb[165].mxu0 }
0x1dff   : > { %v10569_v10 = vadd.f32 %v21737_v24, %v21735_v22 }
0x1e01   : > { %10570 = vadd.xlane.f32.xlu1 %v10569_v10  ;;  %v13027_v10 = vld [vmem:[%s23347_s25 + $0x2a8] sm:$0xff] }
0x1e12   : > { %10594 = vperm.xlu1 %17441, %v10568_v57   ;;  %v13029_v57 = vld [vmem:[%s23347_s25 + $0x2b8] sm:$0xff] }
0x1e13   : > { %v17001_v23 = vpack.c.bf16 %v13029_v57, %v13027_v10  ;;  %v16955_v10 = vpack.c.bf16 %v10639_v59, %v10637_v52  ;;  %v17019_v57 = vpack.c.bf16 %v13044_v6, %v13042_v62  ;;  %v10660_v52 = vld [vmem:[%s23347_s25 + $0x1d8] sm:$0xff]  ;;  %v13063_v59 = vld [vmem:[%s23347_s25 + $0x3c8] sm:$0xff]  ;;  %v10657_v6 = vld [vmem:[%s23347_s25 + $0x1c0] sm:$0xff] }
0x1e14   : > { %v16973_v62 = vpack.c.bf16 %v10660_v52, %v10658_v7  ;;  %v16975_v63 = vpack.c.bf16 %v10659_v33, %v10657_v6  ;;  %v13142_v33 = vld [vmem:[%s23347_s25 + $0x640] sm:$0xff] }
0x1e15   : > { %17002 = vmatprep.subr.bf16.mxu0 %v17001_v23  ;;  %16956 = vmatpush1.bf16.msra.mxu1 %v16955_v10  ;;  %v13064_v10 = vld [vmem:[%s23347_s25 + $0x3d0] sm:$0xff] }
0x1e16   : > { %17004 = vmatpush1.bf16.msra.mxu0 %v17003_v60  ;;  %16958 = vmatprep.subr.bf16.mxu1 %v16957_v8  ;;  %v10646_v60 = vld [vmem:[%s23347_s25 + $0x168] sm:$0xff] }
0x1e17   : > { %17006 = vmatprep.subr.bf16.mxu0 %v17005_v61  ;;  %v16961_v16 = vpack.c.bf16 %v10648_v32, %v10646_v60  ;;  %v10645_v61 = vld [vmem:[%s23347_s25 + $0x160] sm:$0xff]  ;;  %v10662_v8 = vld [vmem:[%s23347_s25 + $0x1e8] sm:$0xff]  ;;  %v13073_v60 = vld [vmem:[%s23347_s25 + $0x418] sm:$0xff] }
0x1e18   : > { %v16963_v18 = vpack.c.bf16 %v10647_v15, %v10645_v61  ;;  %v13135_v32 = vld [vmem:[%s23347_s25 + $0x608] sm:$0xff] }
0x1e1a   : > { %17008 = vmatpush1.bf16.msra.mxu0 %v17007_v11  ;;  %v17027_v11 = vpack.c.bf16 %v13052_v36, %v13050_v35 }
0x1e1b   : > { %17010 = vmatprep.subr.bf16.mxu0 %v17009_v31  ;;  %v13057_v31 = vld [vmem:[%s23347_s25 + $0x398] sm:$0xff] }
0x1e1c   : > { %v17029_v0 = vpack.c.bf16 %v13057_v31, %v13055_v27  ;;  %v13134_v31 = vld [vmem:[%s23347_s25 + $0x600] sm:$0xff] }
0x1e1e   : > { %17012 = vmatpush1.bf16.msra.mxu0 %v17011_v45  ;;  %v17031_v45 = vpack.c.bf16 %v13056_v49, %v13054_v14  ;;  %v13141_v14 = vld [vmem:[%s23347_s25 + $0x638] sm:$0xff] }
0x1e1f   : > { %17014 = vmatprep.subr.bf16.mxu0 %v17013_v55  ;;  %v13061_v55 = vld [vmem:[%s23347_s25 + $0x3b8] sm:$0xff] }
0x1e20   : > { %v17033_v48 = vpack.c.bf16 %v13061_v55, %v13059_v53  ;;  %v13074_v53 = vld [vmem:[%s23347_s25 + $0x420] sm:$0xff] }
0x1e21   : > { %v13138_v55 = vld [vmem:[%s23347_s25 + $0x620] sm:$0xff] }
0x1e22   : > { %17016 = vmatpush1.bf16.msra.mxu0 %v17015_v19  ;;  %v17035_v19 = vpack.c.bf16 %v13060_v13, %v13058_v20  ;;  %v13081_v20 = vld [vmem:[%s23347_s25 + $0x458] sm:$0xff]  ;;  %v13143_v13 = vld [vmem:[%s23347_s25 + $0x648] sm:$0xff]  ;;  %v17115_v52 = vpack.c.bf16 %v13140_v56, %v13138_v55  ;;  %v13158_v55 = vld [vmem:[%s23347_s25 + $0x6c0] sm:$0xff] }
0x1e23   : > { %17018 = vmatprep.subr.bf16.mxu0 %v17017_v5  ;;  %v13065_v5 = vld [vmem:[%s23347_s25 + $0x3d8] sm:$0xff]  ;;  %v13160_v56 = vld [vmem:[%s23347_s25 + $0x6d0] sm:$0xff] }
0x1e24   : > { %v17037_v21 = vpack.c.bf16 %v13065_v5, %v13063_v59  ;;  %v13078_v59 = vld [vmem:[%s23347_s25 + $0x440] sm:$0xff]  ;;  %v17053_v5 = vpack.c.bf16 %v13081_v20, %v13079_v47  ;;  %v13099_v47 = vld [vmem:[%s23347_s25 + $0x4e8] sm:$0xff]  ;;  %v13165_v20 = vld [vmem:[%s23347_s25 + $0x6f8] sm:$0xff] }
0x1e26   : > { %17020 = vmatpush1.bf16.msra.mxu0 %v17019_v57  ;;  %v17039_v57 = vpack.c.bf16 %v13064_v10, %v13062_v4  ;;  %v13085_v4 = vld [vmem:[%s23347_s25 + $0x478] sm:$0xff]  ;;  %v13147_v10 = vld [vmem:[%s23347_s25 + $0x668] sm:$0xff] }
0x1e27   : > { %17022 = vmatprep.subr.bf16.mxu0 %v17021_v1  ;;  %v10664_v1 = vld [vmem:[%s23347_s25 + $0x1f8] sm:$0xff] }
0x1e8e   : > { %v10571_v25 = vpop.xlane.xlu1 %10570 }
0x1e8f   : > { %v10572_v2 = vmul.f32 0.00390625, %v10571_v25  ;;  %v13067_v25 = vld [vmem:[%s23347_s25 + $0x3e8] sm:$0xff] }
0x1e91   : > { %v21997_v43 = vsub.f32 %v21735_v22, %v10572_v2  ;;  %v22000_v44 = vsub.f32 %v21737_v24, %v10572_v2  ;;  %v10643_v22 = vld [vmem:[%s23347_s25 + $0x150] sm:$0xff]  ;;  %v13046_v24 = vld [vmem:[%s23347_s25 + $0x340] sm:$0xff]  ;;  %v16977_v2 = vpack.c.bf16 %v10664_v1, %v10662_v8 }
0x1e92   : > { %v16959_v30 = vpack.c.bf16 %v10643_v22, %v10641_v3  ;;  %v17023_v58 = vpack.c.bf16 %v13048_v51, %v13046_v24  ;;  %v13066_v24 = vld [vmem:[%s23347_s25 + $0x3e0] sm:$0xff]  ;;  %v10595_v27 = vpop.permute.xlu1 %10594 }
0x1e93   : > { %v10575_v23 = vmul.f32 %v21997_v43, %v21997_v43  ;;  %v10576_v26 = vmul.f32 %v22000_v44, %v22000_v44 }
0x1e94   : > { %16960 = vmatpush1.bf16.msra.mxu1 %v16959_v30  ;;  %17024 = vmatpush1.bf16.msra.mxu0 %v17023_v58  ;;  %v13068_v30 = vld [vmem:[%s23347_s25 + $0x3f0] sm:$0xff]  ;;  %v13071_v58 = vld [vmem:[%s23347_s25 + $0x408] sm:$0xff] }
0x1e95   : > { %v10577_v28 = vadd.f32 %v10576_v26, %v10575_v23  ;;  %16962 = vmatprep.subr.bf16.mxu1 %v16961_v16  ;;  %17026 = vmatprep.subr.bf16.mxu0 %v17025_v17  ;;  %v13069_v23 = vld [vmem:[%s23347_s25 + $0x3f8] sm:$0xff]  ;;  %v10661_v26 = vld [vmem:[%s23347_s25 + $0x1e0] sm:$0xff]  ;;  %v17043_v51 = vpack.c.bf16 %v13068_v30, %v13066_v24  ;;  %v17045_v9 = vpack.c.bf16 %v13073_v60, %v13071_v58  ;;  %v13151_v30 = vld [vmem:[%s23347_s25 + $0x688] sm:$0xff] }
0x1e96   : > { %v17041_v3 = vpack.c.bf16 %v13069_v23, %v13067_v25  ;;  %v13137_v16 = vld [vmem:[%s23347_s25 + $0x618] sm:$0xff]  ;;  %v13082_v25 = vld [vmem:[%s23347_s25 + $0x460] sm:$0xff] }
0x1e97   : > { %10578 = vadd.xlane.f32.xlu0 %v10577_v28  ;;  %v10663_v28 = vld [vmem:[%s23347_s25 + $0x1f0] sm:$0xff]  ;;  %v17109_v34 = vpack.c.bf16 %v13137_v16, %v13135_v32  ;;  %v13089_v24 = vld [vmem:[%s23347_s25 + $0x498] sm:$0xff]  ;;  %v13086_v32 = vld [vmem:[%s23347_s25 + $0x480] sm:$0xff] }
0x1e98   : > { %16964 = vmatpush1.bf16.msra.mxu1 %v16963_v18  ;;  %17028 = vmatpush1.bf16.msra.mxu0 %v17027_v11  ;;  %v16979_v22 = vpack.c.bf16 %v10663_v28, %v10661_v26  ;;  %v13146_v28 = vld [vmem:[%s23347_s25 + $0x660] sm:$0xff] }
0x1e99   : > { %16966 = vmatprep.subr.bf16.mxu1 %v16965_v42  ;;  %17030 = vmatprep.subr.bf16.mxu0 %v17029_v0  ;;  %v13072_v42 = vld [vmem:[%s23347_s25 + $0x410] sm:$0xff]  ;;  %v13077_v0 = vld [vmem:[%s23347_s25 + $0x438] sm:$0xff] }
0x1e9a   : > { %v17047_v50 = vpack.c.bf16 %v13072_v42, %v13070_v41  ;;  %v13092_v41 = vld [vmem:[%s23347_s25 + $0x4b0] sm:$0xff] }
0x1e9c   : > { %16968 = vmatpush1.bf16.msra.mxu1 %v16967_v38  ;;  %17032 = vmatpush1.bf16.msra.mxu0 %v17031_v45  ;;  %v13139_v38 = vld [vmem:[%s23347_s25 + $0x628] sm:$0xff] }
0x1e9d   : > { %16970 = vmatprep.subr.bf16.mxu1 %v16969_v54  ;;  %17034 = vmatprep.subr.bf16.mxu0 %v17033_v48  ;;  %v13076_v54 = vld [vmem:[%s23347_s25 + $0x430] sm:$0xff]  ;;  %v17049_v48 = vpack.c.bf16 %v13077_v0, %v13075_v46  ;;  %v13159_v46 = vld [vmem:[%s23347_s25 + $0x6c8] sm:$0xff]  ;;  %v13161_v0 = vld [vmem:[%s23347_s25 + $0x6d8] sm:$0xff] }
0x1e9e   : > { %v17051_v7 = vpack.c.bf16 %v13076_v54, %v13074_v53  ;;  %v17133_v54 = vpack.c.bf16 %v13161_v0, %v13159_v46 }
0x1ea0   : > { %16972 = vmatpush1.bf16.msra.mxu1 %v16971_v12  ;;  %17036 = vmatpush1.bf16.msra.mxu0 %v17035_v19  ;;  %v17113_v12 = vpack.c.bf16 %v13141_v14, %v13139_v38  ;;  %v13145_v19 = vld [vmem:[%s23347_s25 + $0x658] sm:$0xff] }
0x1ea1   : > { %16974 = vmatprep.subr.bf16.mxu1 %v16973_v62  ;;  %17038 = vmatprep.subr.bf16.mxu0 %v17037_v21  ;;  %v13080_v62 = vld [vmem:[%s23347_s25 + $0x450] sm:$0xff]  ;;  %v17117_v6 = vpack.c.bf16 %v13145_v19, %v13143_v13  ;;  %v17135_v19 = vpack.c.bf16 %v13160_v56, %v13158_v55  ;;  %v13119_v55 = vld [vmem:[%s23347_s25 + $0x588] sm:$0xff]  ;;  %v13121_v56 = vld [vmem:[%s23347_s25 + $0x598] sm:$0xff] }
0x1ea2   : > { %v13144_v21 = vld [vmem:[%s23347_s25 + $0x650] sm:$0xff]  ;;  %v17055_v8 = vpack.c.bf16 %v13080_v62, %v13078_v59 }
0x1ea3   : > { %v17119_v1 = vpack.c.bf16 %v13144_v21, %v13142_v33  ;;  %v13103_v33 = vld [vmem:[%s23347_s25 + $0x508] sm:$0xff]  ;;  %v13105_v21 = vld [vmem:[%s23347_s25 + $0x518] sm:$0xff] }
0x1ea4   : > { %16976 = vmatpush1.bf16.msra.mxu1 %v16975_v63  ;;  %17040 = vmatpush1.bf16.msra.mxu0 %v17039_v57  ;;  %v13083_v63 = vld [vmem:[%s23347_s25 + $0x468] sm:$0xff]  ;;  %v13149_v57 = vld [vmem:[%s23347_s25 + $0x678] sm:$0xff] }
0x1ea5   : > { %16978 = vmatprep.subr.bf16.mxu1 %v16977_v2  ;;  %17042 = vmatprep.subr.bf16.mxu0 %v17041_v3  ;;  %v13084_v2 = vld [vmem:[%s23347_s25 + $0x470] sm:$0xff]  ;;  %v17057_v23 = vpack.c.bf16 %v13085_v4, %v13083_v63  ;;  %v17121_v26 = vpack.c.bf16 %v13149_v57, %v13147_v10  ;;  %v13167_v63 = vld [vmem:[%s23347_s25 + $0x708] sm:$0xff]  ;;  %v13169_v4 = vld [vmem:[%s23347_s25 + $0x718] sm:$0xff] }
0x1ea6   : > { %v13148_v3 = vld [vmem:[%s23347_s25 + $0x670] sm:$0xff]  ;;  %v17059_v58 = vpack.c.bf16 %v13084_v2, %v13082_v25  ;;  %v17077_v25 = vpack.c.bf16 %v13105_v21, %v13103_v33  ;;  %v17141_v2 = vpack.c.bf16 %v13169_v4, %v13167_v63  ;;  %v13187_v33 = vld [vmem:[%s23347_s25 + $0x7a8] sm:$0xff]  ;;  %v13189_v21 = vld [vmem:[%s23347_s25 + $0x7b8] sm:$0xff] }
0x1ea7   : > { %v17123_v60 = vpack.c.bf16 %v13148_v3, %v13146_v28  ;;  %v13107_v28 = vld [vmem:[%s23347_s25 + $0x528] sm:$0xff]  ;;  %v13109_v3 = vld [vmem:[%s23347_s25 + $0x538] sm:$0xff] }
0x1ea8   : > { %16980 = vmatpush1.bf16.msra.mxu1 %v16979_v22  ;;  %17044 = vmatpush1.bf16.msra.mxu0 %v17043_v51  ;;  %v13087_v22 = vld [vmem:[%s23347_s25 + $0x488] sm:$0xff]  ;;  %v13153_v51 = vld [vmem:[%s23347_s25 + $0x698] sm:$0xff] }
0x1ea9   : > { %17046 = vmatprep.subr.bf16.mxu1 %v17045_v9  ;;  %17110 = vmatprep.subr.bf16.mxu0 %v17109_v34  ;;  %v13088_v9 = vld [vmem:[%s23347_s25 + $0x490] sm:$0xff]  ;;  %v17061_v16 = vpack.c.bf16 %v13089_v24, %v13087_v22  ;;  %v17125_v34 = vpack.c.bf16 %v13153_v51, %v13151_v30  ;;  %v13171_v22 = vld [vmem:[%s23347_s25 + $0x728] sm:$0xff]  ;;  %v13173_v24 = vld [vmem:[%s23347_s25 + $0x738] sm:$0xff] }
0x1ead   : > { %10587 = vperm.xlu0 %17442, %v10567_v37  }
0x1f24   : > { %v10579_v61 = vpop.xlane.xlu0 %10578 }
0x1f25   : > { %v10580_v15 = vmul.f32 0.00390625, %v10579_v61  ;;  %v13150_v61 = vld [vmem:[%s23347_s25 + $0x680] sm:$0xff] }
0x1f27   : > { %v10581_v17 = vadd.f32 1e-05, %v10580_v15  ;;  %v13152_v15 = vld [vmem:[%s23347_s25 + $0x690] sm:$0xff] }
0x1f29   : > { %17509 = vrsqrt.f32 %v10581_v17  ;;  %v13091_v17 = vld [vmem:[%s23347_s25 + $0x4a8] sm:$0xff] }
0x1f2c   : > { %v10588_v37 = vpop.permute.xlu0 %10587 }
0x1f33   : > { %v17510_v18 = vpop.eup %17509 }
0x1f34   : > { %v10583_v35 = vmul.f32 %v17510_v18, %v21997_v43  ;;  %v10584_v36 = vmul.f32 %v17510_v18, %v22000_v44  ;;  %v13136_v43 = vld [vmem:[%s23347_s25 + $0x610] sm:$0xff]  ;;  %v13093_v18 = vld [vmem:[%s23347_s25 + $0x4b8] sm:$0xff] }
0x1f35   : > { %v17111_v39 = vpack.c.bf16 %v13136_v43, %v13134_v31  ;;  %v13154_v31 = vld [vmem:[%s23347_s25 + $0x6a0] sm:$0xff]  ;;  %v13156_v43 = vld [vmem:[%s23347_s25 + $0x6b0] sm:$0xff] }
0x1f36   : > { %v10590_v11 = vmul.f32 %v10588_v37, %v10583_v35  ;;  %v10591_v40 = vmul.f32 %v10588_v37, %v10584_v36  ;;  %v13155_v35 = vld [vmem:[%s23347_s25 + $0x6a8] sm:$0xff]  ;;  %v13157_v36 = vld [vmem:[%s23347_s25 + $0x6b8] sm:$0xff]  ;;  %v17063_v37 = vpack.c.bf16 %v13088_v9, %v13086_v32  ;;  %v17131_v14 = vpack.c.bf16 %v13156_v43, %v13154_v31 }
0x1f37   : > { %v17129_v42 = vpack.c.bf16 %v13157_v36, %v13155_v35  ;;  %v17081_v32 = vpack.c.bf16 %v13109_v3, %v13107_v28  ;;  %v17145_v9 = vpack.c.bf16 %v13173_v24, %v13171_v22  ;;  %v13115_v31 = vld [vmem:[%s23347_s25 + $0x568] sm:$0xff]  ;;  %v13117_v43 = vld [vmem:[%s23347_s25 + $0x578] sm:$0xff] }
0x1f38   : > { %v10597_v44 = vadd.f32 %v10595_v27, %v10590_v11  ;;  %v10598_v29 = vadd.f32 %v10595_v27, %v10591_v40  ;;  %v17127_v11 = vpack.c.bf16 %v13152_v15, %v13150_v61  ;;  %v13090_v40 = vld [vmem:[%s23347_s25 + $0x4a0] sm:$0xff]  ;;  %v17065_v27 = vpack.c.bf16 %v13093_v18, %v13091_v17  ;;  %v13111_v61 = vld [vmem:[%s23347_s25 + $0x548] sm:$0xff]  ;;  %v13113_v15 = vld [vmem:[%s23347_s25 + $0x558] sm:$0xff] }
0x1f39   : > { %v17067_v38 = vpack.c.bf16 %v13092_v41, %v13090_v40  ;;  %v13175_v17 = vld [vmem:[%s23347_s25 + $0x748] sm:$0xff]  ;;  %v13177_v18 = vld [vmem:[%s23347_s25 + $0x758] sm:$0xff]  ;;  %v17085_v40 = vpack.c.bf16 %v13113_v15, %v13111_v61 }
0x1f3a   : > { %v22179_v49 = vmax.f32 %v10597_v44, 0.0  ;;  %v22181_v45 = vmax.f32 %v10598_v29, 0.0  ;;  %v13095_v44 = vld [vmem:[%s23347_s25 + $0x4c8] sm:$0xff]  ;;  %v13097_v29 = vld [vmem:[%s23347_s25 + $0x4d8] sm:$0xff]  ;;  %v17149_v41 = vpack.c.bf16 %v13177_v18, %v13175_v17 }
0x1f3b   : > { %v17069_v53 = vpack.c.bf16 %v13097_v29, %v13095_v44  ;;  %v13179_v44 = vld [vmem:[%s23347_s25 + $0x768] sm:$0xff]  ;;  %v13181_v29 = vld [vmem:[%s23347_s25 + $0x778] sm:$0xff] }
0x1f3c   : > { %10729 = vmatprep.mubr.f32.mxu1 %v22181_v45  ;;  %10865 = vmatprep.mubr.f32.mxu0 %v22181_v45  ;;  %v13191_v28 = vld [vmem:[%s23347_s25 + $0x7c8] sm:$0xff]  ;;  %v13193_v3 = vld [vmem:[%s23347_s25 + $0x7d8] sm:$0xff] }
0x1f3d   : > { %10730 = vmatmul.mubr.f32.vlgmr.msra.gmra.mrb[160].mxu1 %v22179_v49  ;;  %10866 = vmatmul.mubr.f32.vlgmr.msra.gmra.mrb[166].mxu0 %v22179_v49  ;;  %v13195_v61 = vld [vmem:[%s23347_s25 + $0x7e8] sm:$0xff]  ;;  %v13197_v15 = vld [vmem:[%s23347_s25 + $0x7f8] sm:$0xff] }
0x1f3e   : > { %17048 = vmatpush1.bf16.msra.mxu1 %v17047_v50  ;;  %17112 = vmatpush1.bf16.msra.mxu0 %v17111_v39  ;;  %v13094_v50 = vld [vmem:[%s23347_s25 + $0x4c0] sm:$0xff]  ;;  %v13096_v39 = vld [vmem:[%s23347_s25 + $0x4d0] sm:$0xff] }
0x1f3f   : > { %11009 = vmatprep.mubr.f32.mxu1 %v22181_v45  ;;  %11153 = vmatprep.mubr.f32.mxu0 %v22181_v45  ;;  %v17071_v13 = vpack.c.bf16 %v13096_v39, %v13094_v50  ;;  %v17089_v50 = vpack.c.bf16 %v13117_v43, %v13115_v31  ;;  %v17153_v39 = vpack.c.bf16 %v13181_v29, %v13179_v44  ;;  %v13263_v31 = vld [vmem:[%s23347_s25 + $0xa08] sm:$0xff]  ;;  %v13265_v43 = vld [vmem:[%s23347_s25 + $0xa18] sm:$0xff] }
0x1f40   : > { %17050 = vmatprep.subr.bf16.mxu1 %v17049_v48  ;;  %17114 = vmatprep.subr.bf16.mxu0 %v17113_v12  ;;  %v13101_v48 = vld [vmem:[%s23347_s25 + $0x4f8] sm:$0xff]  ;;  %v13163_v12 = vld [vmem:[%s23347_s25 + $0x6e8] sm:$0xff] }
0x1f41   : > { %v17073_v59 = vpack.c.bf16 %v13101_v48, %v13099_v47  ;;  %v17137_v62 = vpack.c.bf16 %v13165_v20, %v13163_v12  ;;  %v13183_v47 = vld [vmem:[%s23347_s25 + $0x788] sm:$0xff]  ;;  %v13185_v48 = vld [vmem:[%s23347_s25 + $0x798] sm:$0xff] }
0x1f42   : > { %17052 = vmatpush1.bf16.msra.mxu1 %v17051_v7  ;;  %17116 = vmatpush1.bf16.msra.mxu0 %v17115_v52  ;;  %v13098_v7 = vld [vmem:[%s23347_s25 + $0x4e0] sm:$0xff]  ;;  %v13100_v52 = vld [vmem:[%s23347_s25 + $0x4f0] sm:$0xff] }
0x1f43   : > { %17054 = vmatprep.subr.bf16.mxu1 %v17053_v5  ;;  %17118 = vmatprep.subr.bf16.mxu0 %v17117_v6  ;;  %v13162_v5 = vld [vmem:[%s23347_s25 + $0x6e0] sm:$0xff]  ;;  %v13164_v6 = vld [vmem:[%s23347_s25 + $0x6f0] sm:$0xff]  ;;  %v17075_v10 = vpack.c.bf16 %v13100_v52, %v13098_v7  ;;  %v17093_v7 = vpack.c.bf16 %v13121_v56, %v13119_v55  ;;  %v17157_v52 = vpack.c.bf16 %v13185_v48, %v13183_v47  ;;  %v13267_v55 = vld [vmem:[%s23347_s25 + $0xa28] sm:$0xff] }
0x1f44   : > { %v17139_v57 = vpack.c.bf16 %v13164_v6, %v13162_v5  ;;  %v13123_v5 = vld [vmem:[%s23347_s25 + $0x5a8] sm:$0xff]  ;;  %v13125_v6 = vld [vmem:[%s23347_s25 + $0x5b8] sm:$0xff] }
0x1f45   : > { %v13269_v56 = vld [vmem:[%s23347_s25 + $0xa38] sm:$0xff] }
0x1f46   : > { %17056 = vmatpush1.bf16.msra.mxu1 %v17055_v8  ;;  %17120 = vmatpush1.bf16.msra.mxu0 %v17119_v1  ;;  %v13102_v8 = vld [vmem:[%s23347_s25 + $0x500] sm:$0xff]  ;;  %v13104_v1 = vld [vmem:[%s23347_s25 + $0x510] sm:$0xff] }
0x1f47   : > { %17058 = vmatprep.subr.bf16.mxu1 %v17057_v23  ;;  %17122 = vmatprep.subr.bf16.mxu0 %v17121_v26  ;;  %v13166_v23 = vld [vmem:[%s23347_s25 + $0x700] sm:$0xff]  ;;  %v13168_v26 = vld [vmem:[%s23347_s25 + $0x710] sm:$0xff]  ;;  %v17079_v30 = vpack.c.bf16 %v13104_v1, %v13102_v8  ;;  %v17097_v8 = vpack.c.bf16 %v13125_v6, %v13123_v5  ;;  %v17161_v1 = vpack.c.bf16 %v13189_v21, %v13187_v33  ;;  %v13271_v5 = vld [vmem:[%s23347_s25 + $0xa48] sm:$0xff] }
0x1f48   : > { %v17143_v51 = vpack.c.bf16 %v13168_v26, %v13166_v23  ;;  %v13127_v23 = vld [vmem:[%s23347_s25 + $0x5c8] sm:$0xff]  ;;  %v13129_v26 = vld [vmem:[%s23347_s25 + $0x5d8] sm:$0xff] }
0x1f49   : > { %v13273_v6 = vld [vmem:[%s23347_s25 + $0xa58] sm:$0xff] }
0x1f4a   : > { %17060 = vmatpush1.bf16.msra.mxu1 %v17059_v58  ;;  %17124 = vmatpush1.bf16.msra.mxu0 %v17123_v60  ;;  %v13106_v58 = vld [vmem:[%s23347_s25 + $0x520] sm:$0xff]  ;;  %v13108_v60 = vld [vmem:[%s23347_s25 + $0x530] sm:$0xff] }
0x1f4b   : > { %17062 = vmatprep.subr.bf16.mxu1 %v17061_v16  ;;  %17126 = vmatprep.subr.bf16.mxu0 %v17125_v34  ;;  %v13170_v16 = vld [vmem:[%s23347_s25 + $0x720] sm:$0xff]  ;;  %v13172_v34 = vld [vmem:[%s23347_s25 + $0x730] sm:$0xff]  ;;  %v17083_v35 = vpack.c.bf16 %v13108_v60, %v13106_v58  ;;  %v17101_v58 = vpack.c.bf16 %v13129_v26, %v13127_v23  ;;  %v17165_v60 = vpack.c.bf16 %v13193_v3, %v13191_v28  ;;  %v13275_v23 = vld [vmem:[%s23347_s25 + $0xa68] sm:$0xff] }
0x1f4c   : > { %v17147_v36 = vpack.c.bf16 %v13172_v34, %v13170_v16  ;;  %v13131_v16 = vld [vmem:[%s23347_s25 + $0x5e8] sm:$0xff]  ;;  %v13133_v34 = vld [vmem:[%s23347_s25 + $0x5f8] sm:$0xff] }
0x1f4d   : > { %v13277_v26 = vld [vmem:[%s23347_s25 + $0xa78] sm:$0xff] }
0x1f4e   : > { %17064 = vmatpush1.bf16.msra.mxu1 %v17063_v37  ;;  %17128 = vmatpush1.bf16.msra.mxu0 %v17127_v11  ;;  %v13110_v37 = vld [vmem:[%s23347_s25 + $0x540] sm:$0xff]  ;;  %v13112_v11 = vld [vmem:[%s23347_s25 + $0x550] sm:$0xff] }
0x1f4f   : > { %17066 = vmatprep.subr.bf16.mxu1 %v17065_v27  ;;  %17130 = vmatprep.subr.bf16.mxu0 %v17129_v42  ;;  %v13174_v27 = vld [vmem:[%s23347_s25 + $0x740] sm:$0xff]  ;;  %v13176_v42 = vld [vmem:[%s23347_s25 + $0x750] sm:$0xff]  ;;  %v17087_v46 = vpack.c.bf16 %v13112_v11, %v13110_v37  ;;  %v17105_v37 = vpack.c.bf16 %v13133_v34, %v13131_v16  ;;  %v17169_v11 = vpack.c.bf16 %v13197_v15, %v13195_v61  ;;  %v13279_v16 = vld [vmem:[%s23347_s25 + $0xa88] sm:$0xff] }
0x1f50   : > { %v17151_v0 = vpack.c.bf16 %v13176_v42, %v13174_v27  ;;  %v13199_v27 = vld [vmem:[%s23347_s25 + $0x808] sm:$0xff]  ;;  %v13201_v42 = vld [vmem:[%s23347_s25 + $0x818] sm:$0xff] }
0x1f51   : > { %v13281_v34 = vld [vmem:[%s23347_s25 + $0xa98] sm:$0xff] }
0x1f52   : > { %17068 = vmatpush1.bf16.msra.mxu1 %v17067_v38  ;;  %17132 = vmatpush1.bf16.msra.mxu0 %v17131_v14  ;;  %v13114_v38 = vld [vmem:[%s23347_s25 + $0x560] sm:$0xff]  ;;  %v13116_v14 = vld [vmem:[%s23347_s25 + $0x570] sm:$0xff] }
0x1f53   : > { %17070 = vmatprep.subr.bf16.mxu1 %v17069_v53  ;;  %17134 = vmatprep.subr.bf16.mxu0 %v17133_v54  ;;  %v13178_v53 = vld [vmem:[%s23347_s25 + $0x760] sm:$0xff]  ;;  %v13180_v54 = vld [vmem:[%s23347_s25 + $0x770] sm:$0xff]  ;;  %v17091_v12 = vpack.c.bf16 %v13116_v14, %v13114_v38 }
0x1f54   : > { %v17155_v20 = vpack.c.bf16 %v13180_v54, %v13178_v53  ;;  %v13198_v38 = vld [vmem:[%s23347_s25 + $0x800] sm:$0xff]  ;;  %v13200_v14 = vld [vmem:[%s23347_s25 + $0x810] sm:$0xff]  ;;  %v13203_v53 = vld [vmem:[%s23347_s25 + $0x828] sm:$0xff] }
0x1f55   : > { %v13205_v54 = vld [vmem:[%s23347_s25 + $0x838] sm:$0xff]  ;;  %v17175_v47 = vpack.c.bf16 %v13200_v14, %v13198_v38  ;;  %v13284_v14 = vld [vmem:[%s23347_s25 + $0xab0] sm:$0xff] }
0x1f56   : > { %17072 = vmatpush1.bf16.msra.mxu1 %v17071_v13  ;;  %17136 = vmatpush1.bf16.msra.mxu0 %v17135_v19  ;;  %v13118_v13 = vld [vmem:[%s23347_s25 + $0x580] sm:$0xff]  ;;  %v13120_v19 = vld [vmem:[%s23347_s25 + $0x590] sm:$0xff] }
0x1f57   : > { %17074 = vmatprep.subr.bf16.mxu1 %v17073_v59  ;;  %17138 = vmatprep.subr.bf16.mxu0 %v17137_v62  ;;  %v13182_v59 = vld [vmem:[%s23347_s25 + $0x780] sm:$0xff]  ;;  %v13184_v62 = vld [vmem:[%s23347_s25 + $0x790] sm:$0xff]  ;;  %v17095_v63 = vpack.c.bf16 %v13120_v19, %v13118_v13  ;;  %v17177_v19 = vpack.c.bf16 %v13205_v54, %v13203_v53  ;;  %v13287_v53 = vld [vmem:[%s23347_s25 + $0xac8] sm:$0xff] }
0x1f58   : > { %v17159_v4 = vpack.c.bf16 %v13184_v62, %v13182_v59  ;;  %v13266_v13 = vld [vmem:[%s23347_s25 + $0xa20] sm:$0xff]  ;;  %v13207_v59 = vld [vmem:[%s23347_s25 + $0x848] sm:$0xff]  ;;  %v13209_v62 = vld [vmem:[%s23347_s25 + $0x858] sm:$0xff] }
0x1f59   : > { %v13289_v54 = vld [vmem:[%s23347_s25 + $0xad8] sm:$0xff] }
0x1f5a   : > { %17076 = vmatpush1.bf16.msra.mxu1 %v17075_v10  ;;  %17140 = vmatpush1.bf16.msra.mxu0 %v17139_v57  ;;  %v13122_v10 = vld [vmem:[%s23347_s25 + $0x5a0] sm:$0xff]  ;;  %v13124_v57 = vld [vmem:[%s23347_s25 + $0x5b0] sm:$0xff] }
0x1f5b   : > { %17078 = vmatprep.subr.bf16.mxu1 %v17077_v25  ;;  %17142 = vmatprep.subr.bf16.mxu0 %v17141_v2  ;;  %v13186_v25 = vld [vmem:[%s23347_s25 + $0x7a0] sm:$0xff]  ;;  %v13188_v2 = vld [vmem:[%s23347_s25 + $0x7b0] sm:$0xff]  ;;  %v17099_v22 = vpack.c.bf16 %v13124_v57, %v13122_v10 }
0x1f5c   : > { %v17163_v24 = vpack.c.bf16 %v13188_v2, %v13186_v25  ;;  %v13208_v10 = vld [vmem:[%s23347_s25 + $0x850] sm:$0xff]  ;;  %v13270_v57 = vld [vmem:[%s23347_s25 + $0xa40] sm:$0xff]  ;;  %v13211_v25 = vld [vmem:[%s23347_s25 + $0x868] sm:$0xff] }
0x1f5d   : > { %v13213_v2 = vld [vmem:[%s23347_s25 + $0x878] sm:$0xff] }
0x1f5e   : > { %17080 = vmatpush1.bf16.msra.mxu1 %v17079_v30  ;;  %17144 = vmatpush1.bf16.msra.mxu0 %v17143_v51  ;;  %v13126_v30 = vld [vmem:[%s23347_s25 + $0x5c0] sm:$0xff]  ;;  %v13128_v51 = vld [vmem:[%s23347_s25 + $0x5d0] sm:$0xff] }
0x1f5f   : > { %17082 = vmatprep.subr.bf16.mxu1 %v17081_v32  ;;  %17146 = vmatprep.subr.bf16.mxu0 %v17145_v9  ;;  %v13190_v32 = vld [vmem:[%s23347_s25 + $0x7c0] sm:$0xff]  ;;  %v13192_v9 = vld [vmem:[%s23347_s25 + $0x7d0] sm:$0xff]  ;;  %v17103_v17 = vpack.c.bf16 %v13128_v51, %v13126_v30 }
0x1f60   : > { %v17167_v18 = vpack.c.bf16 %v13192_v9, %v13190_v32  ;;  %v13212_v30 = vld [vmem:[%s23347_s25 + $0x870] sm:$0xff]  ;;  %v13274_v51 = vld [vmem:[%s23347_s25 + $0xa60] sm:$0xff]  ;;  %v13215_v32 = vld [vmem:[%s23347_s25 + $0x888] sm:$0xff] }
0x1f61   : > { %v13217_v9 = vld [vmem:[%s23347_s25 + $0x898] sm:$0xff] }
0x1f62   : > { %17084 = vmatpush1.bf16.msra.mxu1 %v17083_v35  ;;  %17148 = vmatpush1.bf16.msra.mxu0 %v17147_v36  ;;  %v13130_v35 = vld [vmem:[%s23347_s25 + $0x5e0] sm:$0xff]  ;;  %v13132_v36 = vld [vmem:[%s23347_s25 + $0x5f0] sm:$0xff] }
0x1f63   : > { %17086 = vmatprep.subr.bf16.mxu1 %v17085_v40  ;;  %17150 = vmatprep.subr.bf16.mxu0 %v17149_v41  ;;  %v13194_v40 = vld [vmem:[%s23347_s25 + $0x7e0] sm:$0xff]  ;;  %v13196_v41 = vld [vmem:[%s23347_s25 + $0x7f0] sm:$0xff]  ;;  %v17107_v44 = vpack.c.bf16 %v13132_v36, %v13130_v35 }
0x1f64   : > { %v17171_v29 = vpack.c.bf16 %v13196_v41, %v13194_v40  ;;  %v13216_v35 = vld [vmem:[%s23347_s25 + $0x890] sm:$0xff]  ;;  %v13278_v36 = vld [vmem:[%s23347_s25 + $0xa80] sm:$0xff]  ;;  %v13219_v40 = vld [vmem:[%s23347_s25 + $0x8a8] sm:$0xff] }
0x1f65   : > { %v13221_v41 = vld [vmem:[%s23347_s25 + $0x8b8] sm:$0xff] }
0x1f66   : > { %17088 = vmatpush1.bf16.msra.mxu1 %v17087_v46  ;;  %17152 = vmatpush1.bf16.msra.mxu0 %v17151_v0  ;;  %v17173_v46 = vpack.c.bf16 %v13201_v42, %v13199_v27  ;;  %v17237_v0 = vpack.c.bf16 %v13265_v43, %v13263_v31  ;;  %v13283_v27 = vld [vmem:[%s23347_s25 + $0xaa8] sm:$0xff]  ;;  %v13285_v42 = vld [vmem:[%s23347_s25 + $0xab8] sm:$0xff] }
0x1f67   : > { %17090 = vmatprep.subr.bf16.mxu1 %v17089_v50  ;;  %17154 = vmatprep.subr.bf16.mxu0 %v17153_v39  ;;  %v13262_v50 = vld [vmem:[%s23347_s25 + $0xa00] sm:$0xff]  ;;  %v13264_v39 = vld [vmem:[%s23347_s25 + $0xa10] sm:$0xff]  ;;  %v17257_v38 = vpack.c.bf16 %v13285_v42, %v13283_v27 }
0x1f68   : > { %v17239_v48 = vpack.c.bf16 %v13264_v39, %v13262_v50  ;;  %v13223_v50 = vld [vmem:[%s23347_s25 + $0x8c8] sm:$0xff]  ;;  %v13225_v39 = vld [vmem:[%s23347_s25 + $0x8d8] sm:$0xff] }
0x1f6a   : > { %17092 = vmatpush1.bf16.msra.mxu1 %v17091_v12  ;;  %17156 = vmatpush1.bf16.msra.mxu0 %v17155_v20  ;;  %v13202_v12 = vld [vmem:[%s23347_s25 + $0x820] sm:$0xff]  ;;  %v13204_v20 = vld [vmem:[%s23347_s25 + $0x830] sm:$0xff] }
0x1f6b   : > { %17094 = vmatprep.subr.bf16.mxu1 %v17093_v7  ;;  %17158 = vmatprep.subr.bf16.mxu0 %v17157_v52  ;;  %v17241_v7 = vpack.c.bf16 %v13269_v56, %v13267_v55  ;;  %v13268_v52 = vld [vmem:[%s23347_s25 + $0xa30] sm:$0xff]  ;;  %v17179_v33 = vpack.c.bf16 %v13204_v20, %v13202_v12  ;;  %v13286_v20 = vld [vmem:[%s23347_s25 + $0xac0] sm:$0xff] }
0x1f6c   : > { %v17243_v21 = vpack.c.bf16 %v13268_v52, %v13266_v13  ;;  %v13224_v12 = vld [vmem:[%s23347_s25 + $0x8d0] sm:$0xff]  ;;  %v17261_v13 = vpack.c.bf16 %v13289_v54, %v13287_v53  ;;  %v13229_v52 = vld [vmem:[%s23347_s25 + $0x8f8] sm:$0xff] }
0x1f6e   : > { %17096 = vmatpush1.bf16.msra.mxu1 %v17095_v63  ;;  %17160 = vmatpush1.bf16.msra.mxu0 %v17159_v4  ;;  %v17181_v63 = vpack.c.bf16 %v13209_v62, %v13207_v59  ;;  %v13206_v4 = vld [vmem:[%s23347_s25 + $0x840] sm:$0xff]  ;;  %v13291_v59 = vld [vmem:[%s23347_s25 + $0xae8] sm:$0xff]  ;;  %v13293_v62 = vld [vmem:[%s23347_s25 + $0xaf8] sm:$0xff] }
0x1f6f   : > { %17098 = vmatprep.subr.bf16.mxu1 %v17097_v8  ;;  %17162 = vmatprep.subr.bf16.mxu0 %v17161_v1  ;;  %v17245_v8 = vpack.c.bf16 %v13273_v6, %v13271_v5  ;;  %v13272_v1 = vld [vmem:[%s23347_s25 + $0xa50] sm:$0xff]  ;;  %v17183_v28 = vpack.c.bf16 %v13208_v10, %v13206_v4  ;;  %v13290_v4 = vld [vmem:[%s23347_s25 + $0xae0] sm:$0xff]  ;;  %v17265_v10 = vpack.c.bf16 %v13293_v62, %v13291_v59 }
0x1f70   : > { %v17247_v3 = vpack.c.bf16 %v13272_v1, %v13270_v57  ;;  %v13292_v57 = vld [vmem:[%s23347_s25 + $0xaf0] sm:$0xff]  ;;  %v13233_v1 = vld [vmem:[%s23347_s25 + $0x918] sm:$0xff] }
0x1f72   : > { %17100 = vmatpush1.bf16.msra.mxu1 %v17099_v22  ;;  %17164 = vmatpush1.bf16.msra.mxu0 %v17163_v24  ;;  %v17185_v22 = vpack.c.bf16 %v13213_v2, %v13211_v25  ;;  %v13210_v24 = vld [vmem:[%s23347_s25 + $0x860] sm:$0xff]  ;;  %v13295_v25 = vld [vmem:[%s23347_s25 + $0xb08] sm:$0xff]  ;;  %v13297_v2 = vld [vmem:[%s23347_s25 + $0xb18] sm:$0xff] }
0x1f73   : > { %17102 = vmatprep.subr.bf16.mxu1 %v17101_v58  ;;  %17166 = vmatprep.subr.bf16.mxu0 %v17165_v60  ;;  %v17249_v58 = vpack.c.bf16 %v13277_v26, %v13275_v23  ;;  %v13276_v60 = vld [vmem:[%s23347_s25 + $0xa70] sm:$0xff]  ;;  %v17187_v61 = vpack.c.bf16 %v13212_v30, %v13210_v24  ;;  %v17267_v26 = vpack.c.bf16 %v13292_v57, %v13290_v4  ;;  %v13294_v24 = vld [vmem:[%s23347_s25 + $0xb00] sm:$0xff]  ;;  %v13253_v57 = vld [vmem:[%s23347_s25 + $0x9b8] sm:$0xff] }
0x1f74   : > { %v17251_v15 = vpack.c.bf16 %v13276_v60, %v13274_v51  ;;  %v17269_v30 = vpack.c.bf16 %v13297_v2, %v13295_v25  ;;  %v13296_v51 = vld [vmem:[%s23347_s25 + $0xb10] sm:$0xff]  ;;  %v13237_v60 = vld [vmem:[%s23347_s25 + $0x938] sm:$0xff] }
0x1f75   : > { %v13312_v4 = vld [vmem:[%s23347_s25 + $0xb90] sm:$0xff] }
0x1f76   : > { %17104 = vmatpush1.bf16.msra.mxu1 %v17103_v17  ;;  %17168 = vmatpush1.bf16.msra.mxu0 %v17167_v18  ;;  %v17189_v17 = vpack.c.bf16 %v13217_v9, %v13215_v32  ;;  %v13214_v18 = vld [vmem:[%s23347_s25 + $0x880] sm:$0xff]  ;;  %v13299_v32 = vld [vmem:[%s23347_s25 + $0xb28] sm:$0xff]  ;;  %v13301_v9 = vld [vmem:[%s23347_s25 + $0xb38] sm:$0xff] }
0x1f77   : > { %17106 = vmatprep.subr.bf16.mxu1 %v17105_v37  ;;  %17170 = vmatprep.subr.bf16.mxu0 %v17169_v11  ;;  %v17253_v37 = vpack.c.bf16 %v13281_v34, %v13279_v16  ;;  %v13280_v11 = vld [vmem:[%s23347_s25 + $0xa90] sm:$0xff]  ;;  %v17191_v31 = vpack.c.bf16 %v13216_v35, %v13214_v18  ;;  %v17271_v34 = vpack.c.bf16 %v13296_v51, %v13294_v24  ;;  %v13298_v18 = vld [vmem:[%s23347_s25 + $0xb20] sm:$0xff]  ;;  %v13257_v51 = vld [vmem:[%s23347_s25 + $0x9d8] sm:$0xff] }
0x1f78   : > { %v17255_v43 = vpack.c.bf16 %v13280_v11, %v13278_v36  ;;  %v17273_v35 = vpack.c.bf16 %v13301_v9, %v13299_v32  ;;  %v13300_v36 = vld [vmem:[%s23347_s25 + $0xb30] sm:$0xff]  ;;  %v13241_v11 = vld [vmem:[%s23347_s25 + $0x958] sm:$0xff] }
0x1f79   : > { %v17275_v42 = vpack.c.bf16 %v13300_v36, %v13298_v18  ;;  %v13316_v24 = vld [vmem:[%s23347_s25 + $0xbb0] sm:$0xff]  ;;  %v13261_v36 = vld [vmem:[%s23347_s25 + $0x9f8] sm:$0xff] }
0x1f7a   : > { %17108 = vmatpush1.bf16.msra.mxu1 %v17107_v44  ;;  %17172 = vmatpush1.bf16.msra.mxu0 %v17171_v29  ;;  %v17193_v44 = vpack.c.bf16 %v13221_v41, %v13219_v40  ;;  %v13218_v29 = vld [vmem:[%s23347_s25 + $0x8a0] sm:$0xff]  ;;  %v13303_v40 = vld [vmem:[%s23347_s25 + $0xb48] sm:$0xff]  ;;  %v13305_v41 = vld [vmem:[%s23347_s25 + $0xb58] sm:$0xff] }
0x1f7b   : > { %17174 = vmatprep.subr.bf16.mxu1 %v17173_v46  ;;  %17238 = vmatprep.subr.bf16.mxu0 %v17237_v0  ;;  %v13220_v46 = vld [vmem:[%s23347_s25 + $0x8b0] sm:$0xff]  ;;  %v13282_v0 = vld [vmem:[%s23347_s25 + $0xaa0] sm:$0xff] }
0x1f7c   : > { %v17195_v55 = vpack.c.bf16 %v13220_v46, %v13218_v29  ;;  %v17259_v56 = vpack.c.bf16 %v13284_v14, %v13282_v0  ;;  %v13302_v29 = vld [vmem:[%s23347_s25 + $0xb40] sm:$0xff]  ;;  %v17277_v46 = vpack.c.bf16 %v13305_v41, %v13303_v40  ;;  %v13304_v0 = vld [vmem:[%s23347_s25 + $0xb50] sm:$0xff]  ;;  %v13245_v14 = vld [vmem:[%s23347_s25 + $0x978] sm:$0xff] }
0x1f7d   : > { %11010 = vmatmul.mubr.f32.vlgmr.msra.gmra.mrb[162].mxu1 %v22179_v49  ;;  %11154 = vmatmul.mubr.f32.vlgmr.msra.gmra.mrb[168].mxu0 %v22179_v49  ;;  %v17279_v54 = vpack.c.bf16 %v13304_v0, %v13302_v29  ;;  %v13320_v18 = vld [vmem:[%s23347_s25 + $0xbd0] sm:$0xff]  ;;  %v13329_v0 = vld [vmem:[%s23347_s25 + $0xc18] sm:$0xff] }
0x1f7e   : > { %17176 = vmatpush1.bf16.msra.mxu1 %v17175_v47  ;;  %11297 = vmatprep.mubr.f32.mxu1 %v22181_v45  ;;  %v17197_v47 = vpack.c.bf16 %v13225_v39, %v13223_v50  ;;  %v13307_v50 = vld [vmem:[%s23347_s25 + $0xb68] sm:$0xff]  ;;  %v13309_v39 = vld [vmem:[%s23347_s25 + $0xb78] sm:$0xff]  ;;  %v13324_v29 = vld [vmem:[%s23347_s25 + $0xbf0] sm:$0xff] }
0x1f7f   : > { %17240 = vmatpush1.bf16.msra.mxu0 %v17239_v48  ;;  %11441 = vmatprep.mubr.f32.mxu0 %v22181_v45  ;;  %v13222_v48 = vld [vmem:[%s23347_s25 + $0x8c0] sm:$0xff] }
0x1f80   : > { %17178 = vmatprep.subr.bf16.mxu1 %v17177_v19  ;;  %17242 = vmatprep.subr.bf16.mxu0 %v17241_v7  ;;  %v13288_v19 = vld [vmem:[%s23347_s25 + $0xad0] sm:$0xff]  ;;  %v13227_v7 = vld [vmem:[%s23347_s25 + $0x8e8] sm:$0xff]  ;;  %v17199_v5 = vpack.c.bf16 %v13224_v12, %v13222_v48  ;;  %v13306_v48 = vld [vmem:[%s23347_s25 + $0xb60] sm:$0xff]  ;;  %v17281_v12 = vpack.c.bf16 %v13309_v39, %v13307_v50 }
0x1f81   : > { %v17263_v6 = vpack.c.bf16 %v13288_v19, %v13286_v20  ;;  %v13308_v20 = vld [vmem:[%s23347_s25 + $0xb70] sm:$0xff]  ;;  %v13249_v19 = vld [vmem:[%s23347_s25 + $0x998] sm:$0xff] }
0x1f82   : > { %17180 = vmatpush1.bf16.msra.mxu1 %v17179_v33  ;;  %v17201_v33 = vpack.c.bf16 %v13229_v52, %v13227_v7  ;;  %v13311_v7 = vld [vmem:[%s23347_s25 + $0xb88] sm:$0xff]  ;;  %v13313_v52 = vld [vmem:[%s23347_s25 + $0xb98] sm:$0xff]  ;;  %v17283_v62 = vpack.c.bf16 %v13308_v20, %v13306_v48  ;;  %v13392_v48 = vld [vmem:[%s23347_s25 + $0xe10] sm:$0xff] }
0x1f83   : > { %17244 = vmatpush1.bf16.msra.mxu0 %v17243_v21  ;;  %17182 = vmatprep.subr.bf16.mxu1 %v17181_v63  ;;  %v13226_v21 = vld [vmem:[%s23347_s25 + $0x8e0] sm:$0xff]  ;;  %v13228_v63 = vld [vmem:[%s23347_s25 + $0x8f0] sm:$0xff]  ;;  %v13333_v20 = vld [vmem:[%s23347_s25 + $0xc38] sm:$0xff] }
0x1f84   : > { %17246 = vmatprep.subr.bf16.mxu0 %v17245_v8  ;;  %v13231_v8 = vld [vmem:[%s23347_s25 + $0x908] sm:$0xff]  ;;  %v17203_v23 = vpack.c.bf16 %v13228_v63, %v13226_v21  ;;  %v13310_v21 = vld [vmem:[%s23347_s25 + $0xb80] sm:$0xff]  ;;  %v17285_v63 = vpack.c.bf16 %v13313_v52, %v13311_v7  ;;  %v13397_v7 = vld [vmem:[%s23347_s25 + $0xe38] sm:$0xff] }
0x1f85   : > { %v17287_v2 = vpack.c.bf16 %v13312_v4, %v13310_v21  ;;  %v13335_v21 = vld [vmem:[%s23347_s25 + $0xc48] sm:$0xff] }
0x1f86   : > { %17184 = vmatpush1.bf16.msra.mxu1 %v17183_v28  ;;  %v17205_v28 = vpack.c.bf16 %v13233_v1, %v13231_v8  ;;  %v13315_v8 = vld [vmem:[%s23347_s25 + $0xba8] sm:$0xff]  ;;  %v13317_v1 = vld [vmem:[%s23347_s25 + $0xbb8] sm:$0xff] }
0x1f87   : > { %17248 = vmatpush1.bf16.msra.mxu0 %v17247_v3  ;;  %17186 = vmatprep.subr.bf16.mxu1 %v17185_v22  ;;  %v13230_v3 = vld [vmem:[%s23347_s25 + $0x900] sm:$0xff]  ;;  %v13232_v22 = vld [vmem:[%s23347_s25 + $0x910] sm:$0xff] }
0x1f88   : > { %17250 = vmatprep.subr.bf16.mxu0 %v17249_v58  ;;  %v13235_v58 = vld [vmem:[%s23347_s25 + $0x928] sm:$0xff]  ;;  %v17207_v16 = vpack.c.bf16 %v13232_v22, %v13230_v3  ;;  %v13314_v3 = vld [vmem:[%s23347_s25 + $0xba0] sm:$0xff]  ;;  %v17289_v22 = vpack.c.bf16 %v13317_v1, %v13315_v8 }
0x1f89   : > { %v17291_v9 = vpack.c.bf16 %v13316_v24, %v13314_v3  ;;  %v13400_v3 = vld [vmem:[%s23347_s25 + $0xe50] sm:$0xff]  ;;  %v13341_v24 = vld [vmem:[%s23347_s25 + $0xc78] sm:$0xff] }
0x1f8a   : > { %17188 = vmatpush1.bf16.msra.mxu1 %v17187_v61  ;;  %v17209_v61 = vpack.c.bf16 %v13237_v60, %v13235_v58  ;;  %v13319_v58 = vld [vmem:[%s23347_s25 + $0xbc8] sm:$0xff]  ;;  %v13321_v60 = vld [vmem:[%s23347_s25 + $0xbd8] sm:$0xff] }
0x1f8b   : > { %17252 = vmatpush1.bf16.msra.mxu0 %v17251_v15  ;;  %17190 = vmatprep.subr.bf16.mxu1 %v17189_v17  ;;  %v13234_v15 = vld [vmem:[%s23347_s25 + $0x920] sm:$0xff]  ;;  %v13236_v17 = vld [vmem:[%s23347_s25 + $0x930] sm:$0xff] }
0x1f8c   : > { %17254 = vmatprep.subr.bf16.mxu0 %v17253_v37  ;;  %v13239_v37 = vld [vmem:[%s23347_s25 + $0x948] sm:$0xff]  ;;  %v17211_v27 = vpack.c.bf16 %v13236_v17, %v13234_v15  ;;  %v13318_v15 = vld [vmem:[%s23347_s25 + $0xbc0] sm:$0xff]  ;;  %v17293_v17 = vpack.c.bf16 %v13321_v60, %v13319_v58 }
0x1f8d   : > { %v17295_v41 = vpack.c.bf16 %v13320_v18, %v13318_v15  ;;  %v13343_v15 = vld [vmem:[%s23347_s25 + $0xc88] sm:$0xff] }
0x1f8e   : > { %17192 = vmatpush1.bf16.msra.mxu1 %v17191_v31  ;;  %v17213_v31 = vpack.c.bf16 %v13241_v11, %v13239_v37  ;;  %v13323_v37 = vld [vmem:[%s23347_s25 + $0xbe8] sm:$0xff]  ;;  %v13325_v11 = vld [vmem:[%s23347_s25 + $0xbf8] sm:$0xff] }
0x1f8f   : > { %17256 = vmatpush1.bf16.msra.mxu0 %v17255_v43  ;;  %17194 = vmatprep.subr.bf16.mxu1 %v17193_v44  ;;  %v13238_v43 = vld [vmem:[%s23347_s25 + $0x940] sm:$0xff]  ;;  %v13240_v44 = vld [vmem:[%s23347_s25 + $0x950] sm:$0xff]  ;;  %v13407_v18 = vld [vmem:[%s23347_s25 + $0xe88] sm:$0xff] }
0x1f90   : > { %17258 = vmatprep.subr.bf16.mxu0 %v17257_v38  ;;  %v13243_v38 = vld [vmem:[%s23347_s25 + $0x968] sm:$0xff]  ;;  %v17215_v53 = vpack.c.bf16 %v13240_v44, %v13238_v43  ;;  %v13322_v43 = vld [vmem:[%s23347_s25 + $0xbe0] sm:$0xff]  ;;  %v17297_v44 = vpack.c.bf16 %v13325_v11, %v13323_v37 }
0x1f91   : > { %v17299_v39 = vpack.c.bf16 %v13324_v29, %v13322_v43  ;;  %v13347_v43 = vld [vmem:[%s23347_s25 + $0xca8] sm:$0xff] }
0x1f92   : > { %17196 = vmatpush1.bf16.msra.mxu1 %v17195_v55  ;;  %v17217_v55 = vpack.c.bf16 %v13245_v14, %v13243_v38  ;;  %v13391_v38 = vld [vmem:[%s23347_s25 + $0xe08] sm:$0xff]  ;;  %v13393_v14 = vld [vmem:[%s23347_s25 + $0xe18] sm:$0xff] }
0x1f93   : > { %17260 = vmatpush1.bf16.msra.mxu0 %v17259_v56  ;;  %17198 = vmatprep.subr.bf16.mxu1 %v17197_v47  ;;  %v13242_v56 = vld [vmem:[%s23347_s25 + $0x960] sm:$0xff]  ;;  %v13244_v47 = vld [vmem:[%s23347_s25 + $0x970] sm:$0xff]  ;;  %v13411_v29 = vld [vmem:[%s23347_s25 + $0xea8] sm:$0xff] }
0x1f94   : > { %17262 = vmatprep.subr.bf16.mxu0 %v17261_v13  ;;  %v13247_v13 = vld [vmem:[%s23347_s25 + $0x988] sm:$0xff]  ;;  %v17219_v59 = vpack.c.bf16 %v13244_v47, %v13242_v56  ;;  %v17365_v56 = vpack.c.bf16 %v13393_v14, %v13391_v38  ;;  %v13390_v47 = vld [vmem:[%s23347_s25 + $0xe00] sm:$0xff] }
0x1f95   : > { %v17367_v52 = vpack.c.bf16 %v13392_v48, %v13390_v47  ;;  %v13353_v47 = vld [vmem:[%s23347_s25 + $0xcd8] sm:$0xff]  ;;  %v13415_v48 = vld [vmem:[%s23347_s25 + $0xec8] sm:$0xff] }
0x1f96   : > { %17200 = vmatpush1.bf16.msra.mxu1 %v17199_v5  ;;  %v17221_v5 = vpack.c.bf16 %v13249_v19, %v13247_v13  ;;  %v13395_v19 = vld [vmem:[%s23347_s25 + $0xe28] sm:$0xff] }
0x1f97   : > { %17264 = vmatpush1.bf16.msra.mxu0 %v17263_v6  ;;  %17202 = vmatprep.subr.bf16.mxu1 %v17201_v33  ;;  %v13246_v6 = vld [vmem:[%s23347_s25 + $0x980] sm:$0xff]  ;;  %v13248_v33 = vld [vmem:[%s23347_s25 + $0x990] sm:$0xff]  ;;  %v17369_v4 = vpack.c.bf16 %v13397_v7, %v13395_v19 }
0x1f98   : > { %17266 = vmatprep.subr.bf16.mxu0 %v17265_v10  ;;  %v13251_v10 = vld [vmem:[%s23347_s25 + $0x9a8] sm:$0xff]  ;;  %v17223_v25 = vpack.c.bf16 %v13248_v33, %v13246_v6  ;;  %v13396_v33 = vld [vmem:[%s23347_s25 + $0xe30] sm:$0xff]  ;;  %v13350_v7 = vld [vmem:[%s23347_s25 + $0xcc0] sm:$0xff] }
0x1f9a   : > { %17204 = vmatpush1.bf16.msra.mxu1 %v17203_v23  ;;  %v17225_v23 = vpack.c.bf16 %v13253_v57, %v13251_v10  ;;  %v13399_v10 = vld [vmem:[%s23347_s25 + $0xe48] sm:$0xff]  ;;  %v13401_v57 = vld [vmem:[%s23347_s25 + $0xe58] sm:$0xff] }
0x1f9b   : > { %17268 = vmatpush1.bf16.msra.mxu0 %v17267_v26  ;;  %17206 = vmatprep.subr.bf16.mxu1 %v17205_v28  ;;  %v13250_v26 = vld [vmem:[%s23347_s25 + $0x9a0] sm:$0xff]  ;;  %v13252_v28 = vld [vmem:[%s23347_s25 + $0x9b0] sm:$0xff] }
0x1f9c   : > { %17270 = vmatprep.subr.bf16.mxu0 %v17269_v30  ;;  %v13255_v30 = vld [vmem:[%s23347_s25 + $0x9c8] sm:$0xff]  ;;  %v17227_v32 = vpack.c.bf16 %v13252_v28, %v13250_v26  ;;  %v13398_v26 = vld [vmem:[%s23347_s25 + $0xe40] sm:$0xff]  ;;  %v17373_v28 = vpack.c.bf16 %v13401_v57, %v13399_v10 }
0x1f9d   : > { %v17375_v58 = vpack.c.bf16 %v13400_v3, %v13398_v26  ;;  %v13359_v26 = vld [vmem:[%s23347_s25 + $0xd08] sm:$0xff] }
0x1f9e   : > { %17208 = vmatpush1.bf16.msra.mxu1 %v17207_v16  ;;  %v17229_v16 = vpack.c.bf16 %v13257_v51, %v13255_v30  ;;  %v13403_v30 = vld [vmem:[%s23347_s25 + $0xe68] sm:$0xff] }
0x1f9f   : > { %17272 = vmatpush1.bf16.msra.mxu0 %v17271_v34  ;;  %17210 = vmatprep.subr.bf16.mxu1 %v17209_v61  ;;  %v13254_v34 = vld [vmem:[%s23347_s25 + $0x9c0] sm:$0xff]  ;;  %v13256_v61 = vld [vmem:[%s23347_s25 + $0x9d0] sm:$0xff]  ;;  %v13423_v3 = vld [vmem:[%s23347_s25 + $0xf08] sm:$0xff] }
0x1fa0   : > { %17274 = vmatprep.subr.bf16.mxu0 %v17273_v35  ;;  %v13259_v35 = vld [vmem:[%s23347_s25 + $0x9e8] sm:$0xff]  ;;  %v17231_v40 = vpack.c.bf16 %v13256_v61, %v13254_v34  ;;  %v13404_v61 = vld [vmem:[%s23347_s25 + $0xe70] sm:$0xff] }
0x1fa2   : > { %17212 = vmatpush1.bf16.msra.mxu1 %v17211_v27  ;;  %v17233_v27 = vpack.c.bf16 %v13261_v36, %v13259_v35  ;;  %v13409_v35 = vld [vmem:[%s23347_s25 + $0xe98] sm:$0xff] }
0x1fa3   : > { %17276 = vmatpush1.bf16.msra.mxu0 %v17275_v42  ;;  %17214 = vmatprep.subr.bf16.mxu1 %v17213_v31  ;;  %v13258_v42 = vld [vmem:[%s23347_s25 + $0x9e0] sm:$0xff]  ;;  %v13260_v31 = vld [vmem:[%s23347_s25 + $0x9f0] sm:$0xff] }
0x1fa4   : > { %17278 = vmatprep.subr.bf16.mxu0 %v17277_v46  ;;  %v13327_v46 = vld [vmem:[%s23347_s25 + $0xc08] sm:$0xff]  ;;  %v17235_v50 = vpack.c.bf16 %v13260_v31, %v13258_v42  ;;  %v17381_v42 = vpack.c.bf16 %v13409_v35, %v13407_v18  ;;  %v13408_v31 = vld [vmem:[%s23347_s25 + $0xe90] sm:$0xff] }
0x1fa6   : > { %17216 = vmatpush1.bf16.msra.mxu1 %v17215_v53  ;;  %v17301_v53 = vpack.c.bf16 %v13329_v0, %v13327_v46  ;;  %v13413_v46 = vld [vmem:[%s23347_s25 + $0xeb8] sm:$0xff] }
0x1fa7   : > { %17280 = vmatpush1.bf16.msra.mxu0 %v17279_v54  ;;  %17218 = vmatprep.subr.bf16.mxu1 %v17217_v55  ;;  %v13326_v54 = vld [vmem:[%s23347_s25 + $0xc00] sm:$0xff]  ;;  %v13328_v55 = vld [vmem:[%s23347_s25 + $0xc10] sm:$0xff] }
0x1fa8   : > { %17282 = vmatprep.subr.bf16.mxu0 %v17281_v12  ;;  %v13331_v12 = vld [vmem:[%s23347_s25 + $0xc28] sm:$0xff]  ;;  %v17303_v13 = vpack.c.bf16 %v13328_v55, %v13326_v54  ;;  %v17385_v54 = vpack.c.bf16 %v13413_v46, %v13411_v29  ;;  %v13412_v55 = vld [vmem:[%s23347_s25 + $0xeb0] sm:$0xff] }
0x1fa9   : > { %v17305_v6 = vpack.c.bf16 %v13333_v20, %v13331_v12  ;;  %v13417_v12 = vld [vmem:[%s23347_s25 + $0xed8] sm:$0xff] }
0x1faa   : > { %17220 = vmatpush1.bf16.msra.mxu1 %v17219_v59  ;;  %v13330_v59 = vld [vmem:[%s23347_s25 + $0xc20] sm:$0xff] }
0x1fab   : > { %17284 = vmatpush1.bf16.msra.mxu0 %v17283_v62  ;;  %17222 = vmatprep.subr.bf16.mxu1 %v17221_v5  ;;  %v13332_v62 = vld [vmem:[%s23347_s25 + $0xc30] sm:$0xff]  ;;  %v13394_v5 = vld [vmem:[%s23347_s25 + $0xe20] sm:$0xff] }
0x1fac   : > { %17286 = vmatprep.subr.bf16.mxu0 %v17285_v63  ;;  %v13337_v63 = vld [vmem:[%s23347_s25 + $0xc58] sm:$0xff]  ;;  %v17307_v8 = vpack.c.bf16 %v13332_v62, %v13330_v59  ;;  %v17371_v1 = vpack.c.bf16 %v13396_v33, %v13394_v5  ;;  %v13414_v59 = vld [vmem:[%s23347_s25 + $0xec0] sm:$0xff]  ;;  %v17389_v62 = vpack.c.bf16 %v13417_v12, %v13415_v48  ;;  %v13416_v5 = vld [vmem:[%s23347_s25 + $0xed0] sm:$0xff] }
0x1fad   : > { %v13357_v33 = vld [vmem:[%s23347_s25 + $0xcf8] sm:$0xff]  ;;  %v17391_v10 = vpack.c.bf16 %v13416_v5, %v13414_v59  ;;  %v13375_v59 = vld [vmem:[%s23347_s25 + $0xd88] sm:$0xff] }
0x1fae   : > { %17224 = vmatpush1.bf16.msra.mxu1 %v17223_v25  ;;  %v17309_v25 = vpack.c.bf16 %v13337_v63, %v13335_v21  ;;  %v13419_v21 = vld [vmem:[%s23347_s25 + $0xee8] sm:$0xff]  ;;  %v13421_v63 = vld [vmem:[%s23347_s25 + $0xef8] sm:$0xff] }
0x1faf   : > { %17288 = vmatpush1.bf16.msra.mxu0 %v17287_v2  ;;  %17226 = vmatprep.subr.bf16.mxu1 %v17225_v23  ;;  %v13334_v2 = vld [vmem:[%s23347_s25 + $0xc40] sm:$0xff]  ;;  %v13336_v23 = vld [vmem:[%s23347_s25 + $0xc50] sm:$0xff]  ;;  %v13439_v5 = vld [vmem:[%s23347_s25 + $0xf88] sm:$0xff] }
0x1fb0   : > { %17290 = vmatprep.subr.bf16.mxu0 %v17289_v22  ;;  %v13339_v22 = vld [vmem:[%s23347_s25 + $0xc68] sm:$0xff]  ;;  %v17311_v51 = vpack.c.bf16 %v13336_v23, %v13334_v2  ;;  %v17393_v2 = vpack.c.bf16 %v13421_v63, %v13419_v21  ;;  %v13420_v23 = vld [vmem:[%s23347_s25 + $0xef0] sm:$0xff] }
0x1fb1   : > { %v17313_v60 = vpack.c.bf16 %v13341_v24, %v13339_v22  ;;  %v13425_v22 = vld [vmem:[%s23347_s25 + $0xf18] sm:$0xff] }
0x1fb2   : > { %17228 = vmatpush1.bf16.msra.mxu1 %v17227_v32  ;;  %v13338_v32 = vld [vmem:[%s23347_s25 + $0xc60] sm:$0xff] }
0x1fb3   : > { %17292 = vmatpush1.bf16.msra.mxu0 %v17291_v9  ;;  %17230 = vmatprep.subr.bf16.mxu1 %v17229_v16  ;;  %v13340_v9 = vld [vmem:[%s23347_s25 + $0xc70] sm:$0xff]  ;;  %v13402_v16 = vld [vmem:[%s23347_s25 + $0xe60] sm:$0xff] }
0x1fb4   : > { %17294 = vmatprep.subr.bf16.mxu0 %v17293_v17  ;;  %v13345_v17 = vld [vmem:[%s23347_s25 + $0xc98] sm:$0xff]  ;;  %v17315_v36 = vpack.c.bf16 %v13340_v9, %v13338_v32  ;;  %v17379_v37 = vpack.c.bf16 %v13404_v61, %v13402_v16  ;;  %v17397_v32 = vpack.c.bf16 %v13425_v22, %v13423_v3  ;;  %v13424_v9 = vld [vmem:[%s23347_s25 + $0xf10] sm:$0xff]  ;;  %v13363_v16 = vld [vmem:[%s23347_s25 + $0xd28] sm:$0xff] }
0x1fb5   : > { %v17317_v11 = vpack.c.bf16 %v13345_v17, %v13343_v15  ;;  %v13427_v61 = vld [vmem:[%s23347_s25 + $0xf28] sm:$0xff]  ;;  %v13429_v15 = vld [vmem:[%s23347_s25 + $0xf38] sm:$0xff] }
0x1fb6   : > { %17232 = vmatpush1.bf16.msra.mxu1 %v17231_v40  ;;  %v13342_v40 = vld [vmem:[%s23347_s25 + $0xc80] sm:$0xff] }
0x1fb7   : > { %17296 = vmatpush1.bf16.msra.mxu0 %v17295_v41  ;;  %17234 = vmatprep.subr.bf16.mxu1 %v17233_v27  ;;  %v13344_v41 = vld [vmem:[%s23347_s25 + $0xc90] sm:$0xff]  ;;  %v13406_v27 = vld [vmem:[%s23347_s25 + $0xe80] sm:$0xff] }
0x1fb8   : > { %17298 = vmatprep.subr.bf16.mxu0 %v17297_v44  ;;  %v13349_v44 = vld [vmem:[%s23347_s25 + $0xcb8] sm:$0xff]  ;;  %v17319_v0 = vpack.c.bf16 %v13344_v41, %v13342_v40  ;;  %v17383_v38 = vpack.c.bf16 %v13408_v31, %v13406_v27  ;;  %v17401_v40 = vpack.c.bf16 %v13429_v15, %v13427_v61  ;;  %v13428_v41 = vld [vmem:[%s23347_s25 + $0xf30] sm:$0xff]  ;;  %v13367_v27 = vld [vmem:[%s23347_s25 + $0xd48] sm:$0xff] }
0x1fb9   : > { %v17321_v14 = vpack.c.bf16 %v13349_v44, %v13347_v43  ;;  %v13431_v31 = vld [vmem:[%s23347_s25 + $0xf48] sm:$0xff]  ;;  %v13433_v43 = vld [vmem:[%s23347_s25 + $0xf58] sm:$0xff] }
0x1fba   : > { %17236 = vmatpush1.bf16.msra.mxu1 %v17235_v50  ;;  %v13346_v50 = vld [vmem:[%s23347_s25 + $0xca0] sm:$0xff] }
0x1fbb   : > { %17300 = vmatpush1.bf16.msra.mxu0 %v17299_v39  ;;  %17302 = vmatprep.subr.bf16.mxu1 %v17301_v53  ;;  %v13348_v39 = vld [vmem:[%s23347_s25 + $0xcb0] sm:$0xff]  ;;  %v13410_v53 = vld [vmem:[%s23347_s25 + $0xea0] sm:$0xff] }
0x1fbc   : > { %17366 = vmatprep.subr.bf16.mxu0 %v17365_v56  ;;  %v13351_v56 = vld [vmem:[%s23347_s25 + $0xcc8] sm:$0xff]  ;;  %v17323_v20 = vpack.c.bf16 %v13348_v39, %v13346_v50  ;;  %v17405_v50 = vpack.c.bf16 %v13433_v43, %v13431_v31  ;;  %v13432_v39 = vld [vmem:[%s23347_s25 + $0xf50] sm:$0xff] }
0x1fbd   : > { %11298 = vmatmul.mubr.f32.vlgmr.msra.gmra.mrb[164].mxu1 %v22179_v49  ;;  %v17325_v19 = vpack.c.bf16 %v13353_v47, %v13351_v56  ;;  %v13437_v56 = vld [vmem:[%s23347_s25 + $0xf78] sm:$0xff] }
0x1fbe   : > { %11442 = vmatmul.mubr.f32.vlgmr.msra.gmra.mrb[170].mxu0 %v22179_v49  ;;  %17304 = vmatpush1.bf16.msra.mxu1 %v17303_v13  ;;  %v17387_v13 = vpack.c.bf16 %v13412_v55, %v13410_v53  ;;  %v13371_v53 = vld [vmem:[%s23347_s25 + $0xd68] sm:$0xff] }
0x1fbf   : > { %11585 = vmatprep.mubr.f32.mxu1 %v22181_v45  ;;  %17368 = vmatpush1.bf16.msra.mxu0 %v17367_v52  ;;  %v13352_v52 = vld [vmem:[%s23347_s25 + $0xcd0] sm:$0xff]  ;;  %v13435_v55 = vld [vmem:[%s23347_s25 + $0xf68] sm:$0xff] }
0x1fc0   : > { %11729 = vmatprep.mubr.f32.mxu0 %v22181_v45  ;;  %17306 = vmatprep.subr.bf16.mxu1 %v17305_v6  ;;  %v13405_v45 = vld [vmem:[%s23347_s25 + $0xe78] sm:$0xff]  ;;  %v13355_v6 = vld [vmem:[%s23347_s25 + $0xce8] sm:$0xff] }
0x1fc1   : > { %17370 = vmatprep.subr.bf16.mxu0 %v17369_v4  ;;  %v17377_v34 = vpack.c.bf16 %v13405_v45, %v13403_v30  ;;  %v17327_v4 = vpack.c.bf16 %v13352_v52, %v13350_v7  ;;  %v17329_v57 = vpack.c.bf16 %v13357_v33, %v13355_v6  ;;  %v17409_v7 = vpack.c.bf16 %v13437_v56, %v13435_v55  ;;  %v13436_v52 = vld [vmem:[%s23347_s25 + $0xf70] sm:$0xff]  ;;  %v13441_v6 = vld [vmem:[%s23347_s25 + $0xf98] sm:$0xff] }
0x1fc2   : > { %17308 = vmatpush1.bf16.msra.mxu1 %v17307_v8  ;;  %v13354_v8 = vld [vmem:[%s23347_s25 + $0xce0] sm:$0xff] }
0x1fc3   : > { %17372 = vmatpush1.bf16.msra.mxu0 %v17371_v1  ;;  %17310 = vmatprep.subr.bf16.mxu1 %v17309_v25  ;;  %v13356_v1 = vld [vmem:[%s23347_s25 + $0xcf0] sm:$0xff]  ;;  %v13418_v25 = vld [vmem:[%s23347_s25 + $0xee0] sm:$0xff] }
0x1fc4   : > { %17374 = vmatprep.subr.bf16.mxu0 %v17373_v28  ;;  %v13361_v28 = vld [vmem:[%s23347_s25 + $0xd18] sm:$0xff]  ;;  %v17331_v24 = vpack.c.bf16 %v13356_v1, %v13354_v8  ;;  %v17395_v30 = vpack.c.bf16 %v13420_v23, %v13418_v25  ;;  %v17413_v8 = vpack.c.bf16 %v13441_v6, %v13439_v5  ;;  %v13440_v1 = vld [vmem:[%s23347_s25 + $0xf90] sm:$0xff]  ;;  %v13379_v25 = vld [vmem:[%s23347_s25 + $0xda8] sm:$0xff] }
0x1fc5   : > { %v17333_v45 = vpack.c.bf16 %v13361_v28, %v13359_v26  ;;  %v13443_v23 = vld [vmem:[%s23347_s25 + $0xfa8] sm:$0xff]  ;;  %v13445_v26 = vld [vmem:[%s23347_s25 + $0xfb8] sm:$0xff] }
0x1fc6   : > { %17312 = vmatpush1.bf16.msra.mxu1 %v17311_v51  ;;  %v13358_v51 = vld [vmem:[%s23347_s25 + $0xd00] sm:$0xff] }
0x1fc7   : > { %17376 = vmatpush1.bf16.msra.mxu0 %v17375_v58  ;;  %17314 = vmatprep.subr.bf16.mxu1 %v17313_v60  ;;  %v13360_v58 = vld [vmem:[%s23347_s25 + $0xd10] sm:$0xff]  ;;  %v13422_v60 = vld [vmem:[%s23347_s25 + $0xf00] sm:$0xff] }
0x1fc8   : > { %17378 = vmatprep.subr.bf16.mxu0 %v17377_v34  ;;  %v13365_v34 = vld [vmem:[%s23347_s25 + $0xd38] sm:$0xff]  ;;  %v17335_v17 = vpack.c.bf16 %v13360_v58, %v13358_v51  ;;  %v17399_v18 = vpack.c.bf16 %v13424_v9, %v13422_v60  ;;  %v17417_v51 = vpack.c.bf16 %v13445_v26, %v13443_v23  ;;  %v13444_v58 = vld [vmem:[%s23347_s25 + $0xfb0] sm:$0xff]  ;;  %v13383_v60 = vld [vmem:[%s23347_s25 + $0xdc8] sm:$0xff] }
0x1fc9   : > { %v17337_v35 = vpack.c.bf16 %v13365_v34, %v13363_v16  ;;  %v13447_v9 = vld [vmem:[%s23347_s25 + $0xfc8] sm:$0xff]  ;;  %v13449_v16 = vld [vmem:[%s23347_s25 + $0xfd8] sm:$0xff] }
0x1fca   : > { %17316 = vmatpush1.bf16.msra.mxu1 %v17315_v36  ;;  %v13362_v36 = vld [vmem:[%s23347_s25 + $0xd20] sm:$0xff] }
0x1fcb   : > { %17380 = vmatpush1.bf16.msra.mxu0 %v17379_v37  ;;  %17318 = vmatprep.subr.bf16.mxu1 %v17317_v11  ;;  %v13364_v37 = vld [vmem:[%s23347_s25 + $0xd30] sm:$0xff]  ;;  %v13426_v11 = vld [vmem:[%s23347_s25 + $0xf20] sm:$0xff] }
0x1fcc   : > { %17382 = vmatprep.subr.bf16.mxu0 %v17381_v42  ;;  %v13369_v42 = vld [vmem:[%s23347_s25 + $0xd58] sm:$0xff]  ;;  %v17339_v44 = vpack.c.bf16 %v13364_v37, %v13362_v36  ;;  %v17403_v29 = vpack.c.bf16 %v13428_v41, %v13426_v11  ;;  %v17421_v36 = vpack.c.bf16 %v13449_v16, %v13447_v9  ;;  %v13448_v37 = vld [vmem:[%s23347_s25 + $0xfd0] sm:$0xff]  ;;  %v13387_v11 = vld [vmem:[%s23347_s25 + $0xde8] sm:$0xff] }
0x1fcd   : > { %v17341_v46 = vpack.c.bf16 %v13369_v42, %v13367_v27  ;;  %v13451_v41 = vld [vmem:[%s23347_s25 + $0xfe8] sm:$0xff]  ;;  %v13453_v27 = vld [vmem:[%s23347_s25 + $0xff8] sm:$0xff] }
0x1fce   : > { %17320 = vmatpush1.bf16.msra.mxu1 %v17319_v0  ;;  %v13366_v0 = vld [vmem:[%s23347_s25 + $0xd40] sm:$0xff] }
0x1fcf   : > { %17384 = vmatpush1.bf16.msra.mxu0 %v17383_v38  ;;  %17322 = vmatprep.subr.bf16.mxu1 %v17321_v14  ;;  %v13368_v38 = vld [vmem:[%s23347_s25 + $0xd50] sm:$0xff]  ;;  %v13430_v14 = vld [vmem:[%s23347_s25 + $0xf40] sm:$0xff] }
0x1fd0   : > { %17386 = vmatprep.subr.bf16.mxu0 %v17385_v54  ;;  %v13373_v54 = vld [vmem:[%s23347_s25 + $0xd78] sm:$0xff]  ;;  %v17343_v47 = vpack.c.bf16 %v13368_v38, %v13366_v0  ;;  %v17407_v48 = vpack.c.bf16 %v13432_v39, %v13430_v14  ;;  %v13450_v0 = vld [vmem:[%s23347_s25 + $0xfe0] sm:$0xff]  ;;  %v13452_v38 = vld [vmem:[%s23347_s25 + $0xff0] sm:$0xff] }
0x1fd1   : > { %v17345_v12 = vpack.c.bf16 %v13373_v54, %v13371_v53 }
0x1fd2   : > { %17324 = vmatpush1.bf16.msra.mxu1 %v17323_v20  ;;  %v13370_v20 = vld [vmem:[%s23347_s25 + $0xd60] sm:$0xff] }
0x1fd3   : > { %17388 = vmatpush1.bf16.msra.mxu0 %v17387_v13  ;;  %17326 = vmatprep.subr.bf16.mxu1 %v17325_v19  ;;  %v13372_v13 = vld [vmem:[%s23347_s25 + $0xd70] sm:$0xff]  ;;  %v13434_v19 = vld [vmem:[%s23347_s25 + $0xf60] sm:$0xff] }
0x1fd4   : > { %17390 = vmatprep.subr.bf16.mxu0 %v17389_v62  ;;  %v13377_v62 = vld [vmem:[%s23347_s25 + $0xd98] sm:$0xff]  ;;  %v17347_v33 = vpack.c.bf16 %v13372_v13, %v13370_v20  ;;  %v17411_v21 = vpack.c.bf16 %v13436_v52, %v13434_v19 }
0x1fd5   : > { %v17349_v63 = vpack.c.bf16 %v13377_v62, %v13375_v59 }
0x1fd6   : > { %17328 = vmatpush1.bf16.msra.mxu1 %v17327_v4  ;;  %v13374_v4 = vld [vmem:[%s23347_s25 + $0xd80] sm:$0xff] }
0x1fd7   : > { %17392 = vmatpush1.bf16.msra.mxu0 %v17391_v10  ;;  %17330 = vmatprep.subr.bf16.mxu1 %v17329_v57  ;;  %v13376_v10 = vld [vmem:[%s23347_s25 + $0xd90] sm:$0xff]  ;;  %v13438_v57 = vld [vmem:[%s23347_s25 + $0xf80] sm:$0xff] }
0x1fd8   : > { %17394 = vmatprep.subr.bf16.mxu0 %v17393_v2  ;;  %v13381_v2 = vld [vmem:[%s23347_s25 + $0xdb8] sm:$0xff]  ;;  %v17351_v28 = vpack.c.bf16 %v13376_v10, %v13374_v4  ;;  %v17415_v3 = vpack.c.bf16 %v13440_v1, %v13438_v57 }
0x1fd9   : > { %v17353_v22 = vpack.c.bf16 %v13381_v2, %v13379_v25 }
0x1fda   : > { %17332 = vmatpush1.bf16.msra.mxu1 %v17331_v24  ;;  %v13378_v24 = vld [vmem:[%s23347_s25 + $0xda0] sm:$0xff] }
0x1fdb   : > { %17396 = vmatpush1.bf16.msra.mxu0 %v17395_v30  ;;  %17334 = vmatprep.subr.bf16.mxu1 %v17333_v45  ;;  %v13380_v30 = vld [vmem:[%s23347_s25 + $0xdb0] sm:$0xff]  ;;  %v13442_v45 = vld [vmem:[%s23347_s25 + $0xfa0] sm:$0xff] }
0x1fdc   : > { %17398 = vmatprep.subr.bf16.mxu0 %v17397_v32  ;;  %v13385_v32 = vld [vmem:[%s23347_s25 + $0xdd8] sm:$0xff]  ;;  %v17355_v34 = vpack.c.bf16 %v13380_v30, %v13378_v24  ;;  %v17419_v61 = vpack.c.bf16 %v13444_v58, %v13442_v45 }
0x1fdd   : > { %v17357_v15 = vpack.c.bf16 %v13385_v32, %v13383_v60 }
0x1fde   : > { %17336 = vmatpush1.bf16.msra.mxu1 %v17335_v17  ;;  %v13382_v17 = vld [vmem:[%s23347_s25 + $0xdc0] sm:$0xff] }
0x1fdf   : > { %17400 = vmatpush1.bf16.msra.mxu0 %v17399_v18  ;;  %17338 = vmatprep.subr.bf16.mxu1 %v17337_v35  ;;  %v13384_v18 = vld [vmem:[%s23347_s25 + $0xdd0] sm:$0xff]  ;;  %v13446_v35 = vld [vmem:[%s23347_s25 + $0xfc0] sm:$0xff] }
0x1fe0   : > { %17402 = vmatprep.subr.bf16.mxu0 %v17401_v40  ;;  %v13389_v40 = vld [vmem:[%s23347_s25 + $0xdf8] sm:$0xff]  ;;  %v17359_v42 = vpack.c.bf16 %v13384_v18, %v13382_v17  ;;  %v17423_v31 = vpack.c.bf16 %v13448_v37, %v13446_v35  ;;  %v11752_v18 = vlaneseq }
0x1fe1   : > { %v17361_v43 = vpack.c.bf16 %v13389_v40, %v13387_v11 }
0x1fe2   : > { %17340 = vmatpush1.bf16.msra.mxu1 %v17339_v44  ;;  %v13386_v44 = vld [vmem:[%s23347_s25 + $0xde0] sm:$0xff]  ;;  %vm11766_vm5 = vcmp.lt.s32.totalorder %v11752_v18, 256 }
0x1fe3   : > { %17404 = vmatpush1.bf16.msra.mxu0 %v17403_v29  ;;  %17342 = vmatprep.subr.bf16.mxu1 %v17341_v46  ;;  %v13388_v29 = vld [vmem:[%s23347_s25 + $0xdf0] sm:$0xff]  ;;  %v17425_v46 = vpack.c.bf16 %v13453_v27, %v13451_v41 }
0x1fe4   : > { %17406 = vmatprep.subr.bf16.mxu0 %v17405_v50  ;;  %v17363_v14 = vpack.c.bf16 %v13388_v29, %v13386_v44  ;;  %v17427_v50 = vpack.c.bf16 %v13452_v38, %v13450_v0 }
0x1fe6   : > { %17344 = vmatpush1.bf16.msra.mxu1 %v17343_v47 }
0x1fe7   : > { %17408 = vmatpush1.bf16.msra.mxu0 %v17407_v48  ;;  %17346 = vmatprep.subr.bf16.mxu1 %v17345_v12 }
0x1fe8   : > { %17410 = vmatprep.subr.bf16.mxu0 %v17409_v7 }
0x1fea   : > { %17348 = vmatpush1.bf16.msra.mxu1 %v17347_v33 }
0x1feb   : > { %17412 = vmatpush1.bf16.msra.mxu0 %v17411_v21  ;;  %17350 = vmatprep.subr.bf16.mxu1 %v17349_v63 }
0x1fec   : > { %17414 = vmatprep.subr.bf16.mxu0 %v17413_v8 }
0x1fee   : > { %17352 = vmatpush1.bf16.msra.mxu1 %v17351_v28 }
0x1fef   : > { %17416 = vmatpush1.bf16.msra.mxu0 %v17415_v3  ;;  %17354 = vmatprep.subr.bf16.mxu1 %v17353_v22 }
0x1ff0   : > { %17418 = vmatprep.subr.bf16.mxu0 %v17417_v51 }
0x1ff2   : > { %17356 = vmatpush1.bf16.msra.mxu1 %v17355_v34 }
0x1ff3   : > { %17420 = vmatpush1.bf16.msra.mxu0 %v17419_v61  ;;  %17358 = vmatprep.subr.bf16.mxu1 %v17357_v15  ;;  %v17525_v15 = vmov 1966171168  }
0x1ff4   : > { %17422 = vmatprep.subr.bf16.mxu0 %v17421_v36  ;;  %v11750_v17 = vunpack.c.l.s4 %v17525_v15  ;;  %v11753_v36 = vshrl.u32 %v11752_v18, 7 }
0x1ff6   : > { %17360 = vmatpush1.bf16.msra.mxu1 %v17359_v42  ;;  %v11751_v35 = vunpack.c.0.s8 %v11750_v17 }
0x1ff7   : > { %17424 = vmatpush1.bf16.msra.mxu0 %v17423_v31  ;;  %17362 = vmatprep.subr.bf16.mxu1 %v17361_v43 }
0x1ff8   : > { %17426 = vmatprep.subr.bf16.mxu0 %v17425_v46  ;;  %v11754_v11 = vsub.s32 %v11751_v35, %v11753_v36 }
0x1ffa   : > { %17364 = vmatpush1.bf16.msra.mxu1 %v17363_v14 }
0x1ffb   : > { %17428 = vmatpush1.bf16.msra.mxu0 %v17427_v50 }
0x1ffd   : > { %11586 = vmatmul.mubr.f32.vlgmr.msra.gmra.mrb[166].mxu1 %v22179_v49 }
0x1ffe   : > { %11730 = vmatmul.mubr.f32.vlgmr.msra.gmra.mrb[172].mxu0 %v22179_v49 }
0x2010   : > { %v10731_v39 = vpop.f32.mrb[160].mxu1  ;;  %v10867_v53 = vpop.f32.mrb[166].mxu0 }
0x2011   : > { %v10874_v54 = vrot.slane %v10867_v53, 1  ;;  %v10733_v55 = vpop.f32.mrb[161].mxu1  ;;  %v10869_v56 = vpop.f32.mrb[167].mxu0 }
0x2012   : > { %v10875_v47 = vrot.slane %v10869_v56, 1 }
0x2013   : > { %v10878_v48 = vadd.f32 %v10874_v54, %v10731_v39 }
0x2014   : > { %v10879_v12 = vadd.f32 %v10875_v47, %v10733_v55 }
0x2050   : > { %v11011_v20 = vpop.f32.mrb[162].mxu1  ;;  %v11155_v13 = vpop.f32.mrb[168].mxu0 }
0x2051   : > { %v11018_v19 = vrot.slane %v11011_v20, 2  ;;  %v11013_v7 = vpop.f32.mrb[163].mxu1  ;;  %v11157_v52 = vpop.f32.mrb[169].mxu0  ;;  %v11162_v5 = vrot.slane %v11155_v13, 3 }
0x2052   : > { %v11019_v59 = vrot.slane %v11013_v7, 2  ;;  %v11163_v33 = vrot.slane %v11157_v52, 3 }
0x2053   : > { %v11022_v62 = vadd.f32 %v11018_v19, %v10878_v48 }
0x2054   : > { %v11023_v6 = vadd.f32 %v11019_v59, %v10879_v12 }
0x2055   : > { %v11166_v21 = vadd.f32 %v11162_v5, %v11022_v62 }
0x2056   : > { %v11167_v49 = vadd.f32 %v11163_v33, %v11023_v6 }
0x2090   : > { %v11299_v63 = vpop.f32.mrb[164].mxu1 }
0x2091   : > { %v11306_v4 = vrot.slane %v11299_v63, 4  ;;  %v11443_v10 = vpop.f32.mrb[170].mxu0  ;;  %v11301_v57 = vpop.f32.mrb[165].mxu1 }
0x2092   : > { %v11307_v8 = vrot.slane %v11301_v57, 4  ;;  %v11445_v1 = vpop.f32.mrb[171].mxu0  ;;  %v11450_v2 = vrot.slane %v11443_v10, 5 }
0x2093   : > { %v11310_v25 = vadd.f32 %v11306_v4, %v11166_v21  ;;  %v11451_v26 = vrot.slane %v11445_v1, 5 }
0x2094   : > { %v11311_v23 = vadd.f32 %v11307_v8, %v11167_v49 }
0x2095   : > { %v11454_v28 = vadd.f32 %v11450_v2, %v11310_v25 }
0x2096   : > { %v11455_v3 = vadd.f32 %v11451_v26, %v11311_v23 }
0x20d0   : > { %v11587_v22 = vpop.f32.mrb[166].mxu1 }
0x20d1   : > { %v11594_v24 = vrot.slane %v11587_v22, 6  ;;  %v11731_v30 = vpop.f32.mrb[172].mxu0  ;;  %v11589_v45 = vpop.f32.mrb[167].mxu1 }
0x20d2   : > { %v11595_v51 = vrot.slane %v11589_v45, 6  ;;  %v11733_v58 = vpop.f32.mrb[173].mxu0  ;;  %v11738_v32 = vrot.slane %v11731_v30, 7 }
0x20d3   : > { %v11598_v60 = vadd.f32 %v11594_v24, %v11454_v28  ;;  %v11739_v16 = vrot.slane %v11733_v58, 7 }
0x20d4   : > { %v11599_v9 = vadd.f32 %v11595_v51, %v11455_v3 }
0x20d5   : > { %v11742_v34 = vadd.f32 %v11738_v32, %v11598_v60 }
0x20d6   : > { %v11743_v61 = vadd.f32 %v11739_v16, %v11599_v9 }
0x20d7   : > { %17511 = vtanh.f32 %v11742_v34 }
0x20d8   : > { %17513 = vtanh.f32 %v11743_v61 }
0x20e1   : > { %v17512_v37 = vpop.eup %17511 }
0x20e2   : > { %v17514_v40 = vpop.eup %17513 }
0x20e3   : > { %v11748_v41 = vcombine.low %v17512_v37, %v17514_v40 }
0x20e5   : > { %v11755_v27 = vrot.slane %v11748_v41, %v11754_v11 }
0x20e7   : > { %v11762_v42 = vrot.slane %v11755_v27, %v11754_v11 }
0x20e9   : > { %11768 = vst.msk [vmem:[%s789_s6] sm:$0x3] %vm11766_vm5, %v11762_v42 }
0x20ea PF: > { %s36_s27 = sadd.s32 1, %s17521_s27  }
0x20eb   : > { %p33_p4 = scmp.ge.s32.totalorder %s36_s27, 4  }
0x20ed   :  { %35 = sbr.rel (!%p33_p4) target bundleno = 13 (0xd), region = 243 }

</bundles_post_ra>
